<compile_context>
chip_gen: v6e
topology: v6e:2x2x1
jax: 0.10.0
libtpu: 0.0.40
codegen_flags: <defaults>
</compile_context>

<pallas_src>
import jax
import jax.numpy as jnp
from jax.experimental import pallas as pl
from jax.experimental.pallas import tpu as pltpu


def _dot(a, b):
    """2-D matmul on the MXU with f32 accumulation (operands are bf16)."""
    return jnp.dot(a, b, preferred_element_type=jnp.float32)


def _vmem_capacity_bytes():
    try:
        return int(pltpu.get_tpu_info().vmem_capacity_bytes)
    except Exception:
        return 64 * 1024 * 1024  # conservative default (v7x per-core VMEM)


def _pick_batch_tile(B, K, D, act_budget_bytes):
    """Largest batch tile NB that (a) divides B, (b) is a multiple of 16 (bf16
    sublane packing) or the whole batch, (c) fits the activation budget, and
    (d) prefers >= 2 (and even) grid steps plus NB*K >= 256 for MXU fill."""
    bytes_per_batch = K * D * 32  # bf16 in/out (double-buffered) + live f32 temporaries
    cap = max(16, act_budget_bytes // max(1, bytes_per_batch))
    target = max(16, 256 // max(1, K))  # NB*K >= 256 fills the MXU M dimension
    cands = {nb for nb in range(16, B + 1, 16) if B % nb == 0}
    cands.add(B)  # full batch is always legal (block dims == full array dims)

    def score(nb):
        steps = B // nb
        return (nb <= cap, steps >= 2, steps % 2 == 0, nb >= target, nb)

    return max(cands, key=score)


def _dyn_layer(x3_bf, stc_bf, g_gate, s_gate, params, fuse_cols):
    """One synthetic DynamicInteraction layer on a (NB, K, D) tile.

    x3_bf : (NB, K, D) bf16 region features
    stc_bf: (NB, D)    bf16 sentence feature
    g_gate: (NB, D)    f32 sigmoid gate (GlobalCell), hoisted/precomputed
    s_gate: (NB, D)    f32 tanh gate (StyleCell), hoisted/precomputed
    """
    NB, K, D = x3_bf.shape
    x2_bf = x3_bf.reshape(NB * K, D)

    if fuse_cols:
        rw1, rb1, rw2, rb2, w_rs, b_rs, glo_wo, glo_bo = params
    else:
        (rw1a, rw1b, rb1, rw2, rb2,
         res_w, res_b, sty_wo, sty_bo, glo_wo, glo_bo) = params

    # ---------------- Router (synthetic): K-pooled 2-layer MLP + softmax ----------------
    x_mean_bf = (jnp.sum(x3_bf.astype(jnp.float32), axis=1) * (1.0 / K)).astype(jnp.bfloat16)
    if fuse_cols:
        # cat([mean(x), stc]) @ [rw1a; rw1b]  (lane-aligned concat, D % 128 == 0)
        h = _dot(jnp.concatenate([x_mean_bf, stc_bf], axis=-1), rw1) + rb1
    else:
        h = _dot(x_mean_bf, rw1a) + _dot(stc_bf, rw1b) + rb1
    h = jnp.maximum(h, 0.0)
    logits = _dot(h.astype(jnp.bfloat16), rw2) + rb2
    logits = logits - jnp.max(logits, axis=-1, keepdims=True)
    e = jnp.exp(logits)
    prob = e / jnp.sum(e, axis=-1, keepdims=True)  # (NB, NC) f32 softmax

    # ------------- Cell projections: the big (NB*K, D) MXU matmuls -------------
    if fuse_cols:
        rs = _dot(x2_bf, w_rs) + b_rs                 # (NB*K, 2D), fused Rescell|StyleCell
        res2, sty2 = rs[:, :D], rs[:, D:]             # split at a lane-aligned column
    else:
        res2 = _dot(x2_bf, res_w) + res_b             # Rescell projection
        sty2 = _dot(x2_bf, sty_wo) + sty_bo           # StyleCell projection (pre-gate)
    xg_bf = (x3_bf * g_gate.astype(jnp.bfloat16)[:, None, :]).reshape(NB * K, D)
    glo2 = _dot(xg_bf, glo_wo) + glo_bo               # GlobalCell projection

    # ------------- Weighted cell sum: single f32 accumulator -------------
    p_res, p_glo, p_sty = prob[:, 0:1], prob[:, 1:2], prob[:, 2:3]
    out = (res2.reshape(NB, K, D) + x3_bf.astype(jnp.float32)) * p_res[:, :, None]
    out = out + glo2.reshape(NB, K, D) * p_glo[:, :, None]
    out = out + sty2.reshape(NB, K, D) * (s_gate * p_sty)[:, None, :]
    return out, prob


def interaction_forward(rgn, img, stc, gate_params, layer_p0, layer_p1,
                        num_cells=3, fuse_cols=False):
    B, K, D = rgn.shape
    n_gate, n_layer = len(gate_params), len(layer_p0)
    all_params = (*gate_params, *layer_p0, *layer_p1)

    vmem_limit = (_vmem_capacity_bytes() * 3) // 4   # ~96 MiB v5e/v6e, ~48 MiB v7x
    weight_bytes = sum(int(a.size) * a.dtype.itemsize for a in all_params)

    # bf16 at the call boundary: halves HBM read traffic for all streamed inputs.
    rgn_bf = rgn.astype(jnp.bfloat16)
    img_bf = img.astype(jnp.bfloat16)
    stc_bf = stc.astype(jnp.bfloat16)

    def kernel(*refs):
        rgn_ref, img_ref, stc_ref = refs[:3]
        i0 = 3
        gp = tuple(r[...] for r in refs[i0:i0 + n_gate])
        p0 = tuple(r[...] for r in refs[i0 + n_gate:i0 + n_gate + n_layer])
        p1 = tuple(r[...] for r in refs[i0 + n_gate + n_layer:i0 + n_gate + 2 * n_layer])
        out1_ref, out2_ref, prob_ref = refs[i0 + n_gate + 2 * n_layer:]

        x0_bf = rgn_ref[...]          # (NB, K, D) bf16
        stc_t = stc_ref[...]          # (NB, D)    bf16
        img_t = img_ref[...]          # (NB, D)    bf16

        # ---- Gate matmuls for BOTH layers hoisted before layer 0 (shared LHS) ----
        if fuse_cols:
            glo_wg_b, glo_bg_b, sty_wg_b, sty_bg_b = gp      # (D, 2D) / (1, 2D)
            gg = jax.nn.sigmoid(_dot(stc_t, glo_wg_b) + glo_bg_b)   # (NB, 2D) f32
            sg = jnp.tanh(_dot(img_t, sty_wg_b) + sty_bg_b)
            g_gates = (gg[:, :D], gg[:, D:])
            s_gates = (sg[:, :D], sg[:, D:])
        else:
            (glo_wg0, glo_bg0, sty_wg0, sty_bg0,
             glo_wg1, glo_bg1, sty_wg1, sty_bg1) = gp
            g_gates = (jax.nn.sigmoid(_dot(stc_t, glo_wg0) + glo_bg0),
                       jax.nn.sigmoid(_dot(stc_t, glo_wg1) + glo_bg1))
            s_gates = (jnp.tanh(_dot(img_t, sty_wg0) + sty_bg0),
                       jnp.tanh(_dot(img_t, sty_wg1) + sty_bg1))

        # ---------- layer 0 ----------
        out1, prob1 = _dyn_layer(x0_bf, stc_t, g_gates[0], s_gates[0], p0, fuse_cols)
        out1_bf = out1.astype(jnp.bfloat16)
        out1_ref[...] = out1_bf

        # ---------- layer 1: consumes out1 directly from VMEM (no HBM round trip) ----------
        out2, prob2 = _dyn_layer(out1_bf, stc_t, g_gates[1], s_gates[1], p1, fuse_cols)
        out2_ref[...] = out2.astype(out2_ref.dtype)
        prob_ref[...] = jnp.concatenate([prob1, prob2], axis=-1).astype(prob_ref.dtype)

    def call(single_buffer):
        wbuf = weight_bytes * (1 if single_buffer else 2)
        act_budget = max(2 * 1024 * 1024, (vmem_limit - wbuf) * 2 // 3)
        NB = _pick_batch_tile(B, K, D, act_budget)
        grid = (B // NB,)

        def resident(arr):
            # constant block index -> weight stays VMEM-resident across the grid;
            # single-buffer it (no need for a second pipeline buffer).
            kw = {"pipeline_mode": pl.Buffered(1)} if single_buffer else {}
            return pl.BlockSpec(arr.shape, lambda i, _nd=arr.ndim: (0,) * _nd, **kw)

        in_specs = [
            pl.BlockSpec((NB, K, D), lambda i: (i, 0, 0)),   # rgn tile
            pl.BlockSpec((NB, D), lambda i: (i, 0)),         # img tile
            pl.BlockSpec((NB, D), lambda i: (i, 0)),         # stc tile
        ] + [resident(a) for a in all_params]

        out_specs = (
            pl.BlockSpec((NB, K, D), lambda i: (i, 0, 0)),
            pl.BlockSpec((NB, K, D), lambda i: (i, 0, 0)),
            pl.BlockSpec((NB, 2 * num_cells), lambda i: (i, 0)),
        )
        out_shape = (
            jax.ShapeDtypeStruct((B, K, D), jnp.bfloat16),   # out1 (bf16: halve HBM writes)
            jax.ShapeDtypeStruct((B, K, D), jnp.bfloat16),   # out2
            jax.ShapeDtypeStruct((B, 2 * num_cells), jnp.float32),  # packed prob1|prob2
        )
        return pl.pallas_call(
            kernel,
            grid=grid,
            in_specs=in_specs,
            out_specs=out_specs,
            out_shape=out_shape,
            compiler_params=pltpu.CompilerParams(
                dimension_semantics=("parallel",),           # shard tiles across TCs
                vmem_limit_bytes=int(vmem_limit),
            ),
        )(rgn_bf, img_bf, stc_bf, *all_params)

    try:
        out1, out2, prob = call(single_buffer=True)
    except Exception:
        # TODO(synk): fall back to default double-buffered weight blocks if this
        # JAX/Mosaic build rejects pipeline_mode=pl.Buffered(1).
        out1, out2, prob = call(single_buffer=False)

    return out1, out2, prob[:, :num_cells], prob[:, num_cells:]


def _init_layer_params(key, embed_size, hid_router, num_cells):
    ks = jax.random.split(key, 8)
    s = 0.05
    return {
        # Router: Linear(2*D -> hid) split into two D->hid halves, Linear(hid -> NC)
        "rw1a": s * jax.random.normal(ks[0], (embed_size, hid_router), jnp.float32),
        "rw1b": s * jax.random.normal(ks[1], (embed_size, hid_router), jnp.float32),
        "rb1": jnp.zeros((1, hid_router), jnp.float32),
        "rw2": s * jax.random.normal(ks[2], (hid_router, num_cells), jnp.float32),
        "rb2": jnp.zeros((1, num_cells), jnp.float32),
        # Rescell
        "res_w": s * jax.random.normal(ks[3], (embed_size, embed_size), jnp.float32),
        "res_b": jnp.zeros((1, embed_size), jnp.float32),
        # GlobalCell
        "glo_wg": s * jax.random.normal(ks[4], (embed_size, embed_size), jnp.float32),
        "glo_bg": jnp.zeros((1, embed_size), jnp.float32),
        "glo_wo": s * jax.random.normal(ks[5], (embed_size, embed_size), jnp.float32),
        "glo_bo": jnp.zeros((1, embed_size), jnp.float32),
        # StyleCell
        "sty_wg": s * jax.random.normal(ks[6], (embed_size, embed_size), jnp.float32),
        "sty_bg": jnp.zeros((1, embed_size), jnp.float32),
        "sty_wo": s * jax.random.normal(ks[7], (embed_size, embed_size), jnp.float32),
        "sty_bo": jnp.zeros((1, embed_size), jnp.float32),
    }


def _fuse_params(p0, p1, fuse_cols):
    """Pre-fuse & pre-cast parameters for the kernel.

    Column-wise fusions (shared-LHS matmul merging) are only applied when the
    embed dim is a multiple of 128, so in-kernel splits stay lane-aligned.
    Cell ordering (res, glo, sty) is hard-wired to match the PyTorch emb_lst.
    """
    bf = lambda a: a.astype(jnp.bfloat16)
    if fuse_cols:
        gate = (
            bf(jnp.concatenate([p0["glo_wg"], p1["glo_wg"]], axis=1)),   # stc gates, both layers
            jnp.concatenate([p0["glo_bg"], p1["glo_bg"]], axis=1),
            bf(jnp.concatenate([p0["sty_wg"], p1["sty_wg"]], axis=1)),   # img gates, both layers
            jnp.concatenate([p0["sty_bg"], p1["sty_bg"]], axis=1),
        )

        def layer(p):
            return (
                bf(jnp.concatenate([p["rw1a"], p["rw1b"]], axis=0)),     # (2D, HID) router W1
                p["rb1"], bf(p["rw2"]), p["rb2"],
                bf(jnp.concatenate([p["res_w"], p["sty_wo"]], axis=1)),  # (D, 2D) res|sty
                jnp.concatenate([p["res_b"], p["sty_bo"]], axis=1),
                bf(p["glo_wo"]), p["glo_bo"],
            )
    else:
        gate = (
            bf(p0["glo_wg"]), p0["glo_bg"], bf(p0["sty_wg"]), p0["sty_bg"],
            bf(p1["glo_wg"]), p1["glo_bg"], bf(p1["sty_wg"]), p1["sty_bg"],
        )

        def layer(p):
            return (
                bf(p["rw1a"]), bf(p["rw1b"]), p["rb1"], bf(p["rw2"]), p["rb2"],
                bf(p["res_w"]), p["res_b"], bf(p["sty_wo"]), p["sty_bo"],
                bf(p["glo_wo"]), p["glo_bo"],
            )
    return gate, layer(p0), layer(p1)


class InteractionModule:
    """JAX/Pallas port of InteractionModule: two DynamicInteraction layers fused
    into a single batch-tiled TPU kernel."""

    def __init__(self, embed_size, hid_router, num_cells=3, seed=0):
        # The PyTorch DynamicInteraction_Layer hard-wires exactly 3 cells (ric/glo/sty).
        assert num_cells == 3, "DynamicInteraction_Layer wires exactly 3 cells"
        self.num_cells = num_cells
        self.fuse_cols = (embed_size % 128 == 0)
        k0, k1 = jax.random.split(jax.random.PRNGKey(seed))
        self.params_l0 = _init_layer_params(k0, embed_size, hid_router, num_cells)
        self.params_l1 = _init_layer_params(k1, embed_size, hid_router, num_cells)
        self.gate_params, self.layer_p0, self.layer_p1 = _fuse_params(
            self.params_l0, self.params_l1, self.fuse_cols)

    def __call__(self, rgn, img, wrd, stc, stc_lens):
        # TODO(synk): wrd / stc_lens are unused by the synthetic GlobalCell / StyleCell.
        del wrd, stc_lens
        return interaction_forward(rgn, img, stc, self.gate_params,
                                   self.layer_p0, self.layer_p1,
                                   num_cells=self.num_cells,
                                   fuse_cols=self.fuse_cols)


if __name__ == "__main__":
    B, K, D, HID, NW, NC = 32, 8, 32, 16, 6, 3

    key = jax.random.PRNGKey(0)
    k_rgn, k_img, k_wrd, k_stc = jax.random.split(key, 4)
    rgn = jax.random.normal(k_rgn, (B, K, D), jnp.float32)
    img = jax.random.normal(k_img, (B, D), jnp.float32)
    wrd = jax.random.normal(k_wrd, (B, NW, D), jnp.float32)
    stc = jax.random.normal(k_stc, (B, D), jnp.float32)
    stc_lens = jnp.full((B,), NW, dtype=jnp.int32)

    model = InteractionModule(embed_size=D, hid_router=HID, num_cells=NC, seed=0)
    out1, out2, p1, p2 = model(rgn, img, wrd, stc, stc_lens)
    jax.block_until_ready((out1, out2, p1, p2))

    assert out1.shape == (B, K, D) and out2.shape == (B, K, D)
    assert p1.shape == (B, NC) and p2.shape == (B, NC)
    assert bool(jnp.all(jnp.isfinite(out1.astype(jnp.float32))))
    assert bool(jnp.all(jnp.isfinite(out2.astype(jnp.float32))))
    assert bool(jnp.allclose(jnp.sum(p1, axis=-1), 1.0, atol=1e-3))
    assert bool(jnp.allclose(jnp.sum(p2, axis=-1), 1.0, atol=1e-3))
    print("KERNEL_OK")
</pallas_src>

<mosaic_0001>
module attributes {stable_mosaic.version = 11 : i64} {
  func.func @kernel(%arg0: i32, %arg1: memref<16x8x32xbf16, #tpu.memory_space<vmem>>, %arg2: memref<16x32xbf16, #tpu.memory_space<vmem>>, %arg3: memref<16x32xbf16, #tpu.memory_space<vmem>>, %arg4: memref<32x32xbf16, #tpu.memory_space<vmem>>, %arg5: memref<1x32xf32, #tpu.memory_space<vmem>>, %arg6: memref<32x32xbf16, #tpu.memory_space<vmem>>, %arg7: memref<1x32xf32, #tpu.memory_space<vmem>>, %arg8: memref<32x32xbf16, #tpu.memory_space<vmem>>, %arg9: memref<1x32xf32, #tpu.memory_space<vmem>>, %arg10: memref<32x32xbf16, #tpu.memory_space<vmem>>, %arg11: memref<1x32xf32, #tpu.memory_space<vmem>>, %arg12: memref<32x16xbf16, #tpu.memory_space<vmem>>, %arg13: memref<32x16xbf16, #tpu.memory_space<vmem>>, %arg14: memref<1x16xf32, #tpu.memory_space<vmem>>, %arg15: memref<16x3xbf16, #tpu.memory_space<vmem>>, %arg16: memref<1x3xf32, #tpu.memory_space<vmem>>, %arg17: memref<32x32xbf16, #tpu.memory_space<vmem>>, %arg18: memref<1x32xf32, #tpu.memory_space<vmem>>, %arg19: memref<32x32xbf16, #tpu.memory_space<vmem>>, %arg20: memref<1x32xf32, #tpu.memory_space<vmem>>, %arg21: memref<32x32xbf16, #tpu.memory_space<vmem>>, %arg22: memref<1x32xf32, #tpu.memory_space<vmem>>, %arg23: memref<32x16xbf16, #tpu.memory_space<vmem>>, %arg24: memref<32x16xbf16, #tpu.memory_space<vmem>>, %arg25: memref<1x16xf32, #tpu.memory_space<vmem>>, %arg26: memref<16x3xbf16, #tpu.memory_space<vmem>>, %arg27: memref<1x3xf32, #tpu.memory_space<vmem>>, %arg28: memref<32x32xbf16, #tpu.memory_space<vmem>>, %arg29: memref<1x32xf32, #tpu.memory_space<vmem>>, %arg30: memref<32x32xbf16, #tpu.memory_space<vmem>>, %arg31: memref<1x32xf32, #tpu.memory_space<vmem>>, %arg32: memref<32x32xbf16, #tpu.memory_space<vmem>>, %arg33: memref<1x32xf32, #tpu.memory_space<vmem>>, %arg34: memref<16x8x32xbf16, #tpu.memory_space<vmem>>, %arg35: memref<16x8x32xbf16, #tpu.memory_space<vmem>>, %arg36: memref<16x6xf32, #tpu.memory_space<vmem>>) attributes {dimension_semantics = [#tpu.dimension_semantics<parallel>], iteration_bounds = array<i64: 2>, scalar_prefetch = 0 : i64, scratch_operands = 0 : i64, tpu.core_type = #tpu.core_type<tc>, window_params = [{transform_indices = @transform_0, window_bounds = array<i64: 16, 8, 32>}, {transform_indices = @transform_1, window_bounds = array<i64: 16, 32>}, {transform_indices = @transform_2, window_bounds = array<i64: 16, 32>}, {pipeline_mode = #tpu.pipeline_mode<synchronous>, transform_indices = @transform_3, window_bounds = array<i64: 32, 32>}, {pipeline_mode = #tpu.pipeline_mode<synchronous>, transform_indices = @transform_4, window_bounds = array<i64: 1, 32>}, {pipeline_mode = #tpu.pipeline_mode<synchronous>, transform_indices = @transform_5, window_bounds = array<i64: 32, 32>}, {pipeline_mode = #tpu.pipeline_mode<synchronous>, transform_indices = @transform_6, window_bounds = array<i64: 1, 32>}, {pipeline_mode = #tpu.pipeline_mode<synchronous>, transform_indices = @transform_7, window_bounds = array<i64: 32, 32>}, {pipeline_mode = #tpu.pipeline_mode<synchronous>, transform_indices = @transform_8, window_bounds = array<i64: 1, 32>}, {pipeline_mode = #tpu.pipeline_mode<synchronous>, transform_indices = @transform_9, window_bounds = array<i64: 32, 32>}, {pipeline_mode = #tpu.pipeline_mode<synchronous>, transform_indices = @transform_10, window_bounds = array<i64: 1, 32>}, {pipeline_mode = #tpu.pipeline_mode<synchronous>, transform_indices = @transform_11, window_bounds = array<i64: 32, 16>}, {pipeline_mode = #tpu.pipeline_mode<synchronous>, transform_indices = @transform_12, window_bounds = array<i64: 32, 16>}, {pipeline_mode = #tpu.pipeline_mode<synchronous>, transform_indices = @transform_13, window_bounds = array<i64: 1, 16>}, {pipeline_mode = #tpu.pipeline_mode<synchronous>, transform_indices = @transform_14, window_bounds = array<i64: 16, 3>}, {pipeline_mode = #tpu.pipeline_mode<synchronous>, transform_indices = @transform_15, window_bounds = array<i64: 1, 3>}, {pipeline_mode = #tpu.pipeline_mode<synchronous>, transform_indices = @transform_16, window_bounds = array<i64: 32, 32>}, {pipeline_mode = #tpu.pipeline_mode<synchronous>, transform_indices = @transform_17, window_bounds = array<i64: 1, 32>}, {pipeline_mode = #tpu.pipeline_mode<synchronous>, transform_indices = @transform_18, window_bounds = array<i64: 32, 32>}, {pipeline_mode = #tpu.pipeline_mode<synchronous>, transform_indices = @transform_19, window_bounds = array<i64: 1, 32>}, {pipeline_mode = #tpu.pipeline_mode<synchronous>, transform_indices = @transform_20, window_bounds = array<i64: 32, 32>}, {pipeline_mode = #tpu.pipeline_mode<synchronous>, transform_indices = @transform_21, window_bounds = array<i64: 1, 32>}, {pipeline_mode = #tpu.pipeline_mode<synchronous>, transform_indices = @transform_22, window_bounds = array<i64: 32, 16>}, {pipeline_mode = #tpu.pipeline_mode<synchronous>, transform_indices = @transform_23, window_bounds = array<i64: 32, 16>}, {pipeline_mode = #tpu.pipeline_mode<synchronous>, transform_indices = @transform_24, window_bounds = array<i64: 1, 16>}, {pipeline_mode = #tpu.pipeline_mode<synchronous>, transform_indices = @transform_25, window_bounds = array<i64: 16, 3>}, {pipeline_mode = #tpu.pipeline_mode<synchronous>, transform_indices = @transform_26, window_bounds = array<i64: 1, 3>}, {pipeline_mode = #tpu.pipeline_mode<synchronous>, transform_indices = @transform_27, window_bounds = array<i64: 32, 32>}, {pipeline_mode = #tpu.pipeline_mode<synchronous>, transform_indices = @transform_28, window_bounds = array<i64: 1, 32>}, {pipeline_mode = #tpu.pipeline_mode<synchronous>, transform_indices = @transform_29, window_bounds = array<i64: 32, 32>}, {pipeline_mode = #tpu.pipeline_mode<synchronous>, transform_indices = @transform_30, window_bounds = array<i64: 1, 32>}, {pipeline_mode = #tpu.pipeline_mode<synchronous>, transform_indices = @transform_31, window_bounds = array<i64: 32, 32>}, {pipeline_mode = #tpu.pipeline_mode<synchronous>, transform_indices = @transform_32, window_bounds = array<i64: 1, 32>}, {transform_indices = @transform_33, window_bounds = array<i64: 16, 8, 32>}, {transform_indices = @transform_34, window_bounds = array<i64: 16, 8, 32>}, {transform_indices = @transform_35, window_bounds = array<i64: 16, 6>}]} {
    %c0 = arith.constant 0 : index
    %c0_0 = arith.constant 0 : index
    %0 = vector.load %arg4[%c0, %c0_0] : memref<32x32xbf16, #tpu.memory_space<vmem>>, vector<32x32xbf16>
    %c0_1 = arith.constant 0 : index
    %c0_2 = arith.constant 0 : index
    %1 = vector.load %arg5[%c0_1, %c0_2] : memref<1x32xf32, #tpu.memory_space<vmem>>, vector<1x32xf32>
    %c0_3 = arith.constant 0 : index
    %c0_4 = arith.constant 0 : index
    %2 = vector.load %arg6[%c0_3, %c0_4] : memref<32x32xbf16, #tpu.memory_space<vmem>>, vector<32x32xbf16>
    %c0_5 = arith.constant 0 : index
    %c0_6 = arith.constant 0 : index
    %3 = vector.load %arg7[%c0_5, %c0_6] : memref<1x32xf32, #tpu.memory_space<vmem>>, vector<1x32xf32>
    %c0_7 = arith.constant 0 : index
    %c0_8 = arith.constant 0 : index
    %4 = vector.load %arg8[%c0_7, %c0_8] : memref<32x32xbf16, #tpu.memory_space<vmem>>, vector<32x32xbf16>
    %c0_9 = arith.constant 0 : index
    %c0_10 = arith.constant 0 : index
    %5 = vector.load %arg9[%c0_9, %c0_10] : memref<1x32xf32, #tpu.memory_space<vmem>>, vector<1x32xf32>
    %c0_11 = arith.constant 0 : index
    %c0_12 = arith.constant 0 : index
    %6 = vector.load %arg10[%c0_11, %c0_12] : memref<32x32xbf16, #tpu.memory_space<vmem>>, vector<32x32xbf16>
    %c0_13 = arith.constant 0 : index
    %c0_14 = arith.constant 0 : index
    %7 = vector.load %arg11[%c0_13, %c0_14] : memref<1x32xf32, #tpu.memory_space<vmem>>, vector<1x32xf32>
    %c0_15 = arith.constant 0 : index
    %c0_16 = arith.constant 0 : index
    %8 = vector.load %arg12[%c0_15, %c0_16] : memref<32x16xbf16, #tpu.memory_space<vmem>>, vector<32x16xbf16>
    %c0_17 = arith.constant 0 : index
    %c0_18 = arith.constant 0 : index
    %9 = vector.load %arg13[%c0_17, %c0_18] : memref<32x16xbf16, #tpu.memory_space<vmem>>, vector<32x16xbf16>
    %c0_19 = arith.constant 0 : index
    %c0_20 = arith.constant 0 : index
    %10 = vector.load %arg14[%c0_19, %c0_20] : memref<1x16xf32, #tpu.memory_space<vmem>>, vector<1x16xf32>
    %c0_21 = arith.constant 0 : index
    %c0_22 = arith.constant 0 : index
    %11 = vector.load %arg15[%c0_21, %c0_22] : memref<16x3xbf16, #tpu.memory_space<vmem>>, vector<16x3xbf16>
    %c0_23 = arith.constant 0 : index
    %c0_24 = arith.constant 0 : index
    %12 = vector.load %arg16[%c0_23, %c0_24] : memref<1x3xf32, #tpu.memory_space<vmem>>, vector<1x3xf32>
    %c0_25 = arith.constant 0 : index
    %c0_26 = arith.constant 0 : index
    %13 = vector.load %arg17[%c0_25, %c0_26] : memref<32x32xbf16, #tpu.memory_space<vmem>>, vector<32x32xbf16>
    %c0_27 = arith.constant 0 : index
    %c0_28 = arith.constant 0 : index
    %14 = vector.load %arg18[%c0_27, %c0_28] : memref<1x32xf32, #tpu.memory_space<vmem>>, vector<1x32xf32>
    %c0_29 = arith.constant 0 : index
    %c0_30 = arith.constant 0 : index
    %15 = vector.load %arg19[%c0_29, %c0_30] : memref<32x32xbf16, #tpu.memory_space<vmem>>, vector<32x32xbf16>
    %c0_31 = arith.constant 0 : index
    %c0_32 = arith.constant 0 : index
    %16 = vector.load %arg20[%c0_31, %c0_32] : memref<1x32xf32, #tpu.memory_space<vmem>>, vector<1x32xf32>
    %c0_33 = arith.constant 0 : index
    %c0_34 = arith.constant 0 : index
    %17 = vector.load %arg21[%c0_33, %c0_34] : memref<32x32xbf16, #tpu.memory_space<vmem>>, vector<32x32xbf16>
    %c0_35 = arith.constant 0 : index
    %c0_36 = arith.constant 0 : index
    %18 = vector.load %arg22[%c0_35, %c0_36] : memref<1x32xf32, #tpu.memory_space<vmem>>, vector<1x32xf32>
    %c0_37 = arith.constant 0 : index
    %c0_38 = arith.constant 0 : index
    %19 = vector.load %arg23[%c0_37, %c0_38] : memref<32x16xbf16, #tpu.memory_space<vmem>>, vector<32x16xbf16>
    %c0_39 = arith.constant 0 : index
    %c0_40 = arith.constant 0 : index
    %20 = vector.load %arg24[%c0_39, %c0_40] : memref<32x16xbf16, #tpu.memory_space<vmem>>, vector<32x16xbf16>
    %c0_41 = arith.constant 0 : index
    %c0_42 = arith.constant 0 : index
    %21 = vector.load %arg25[%c0_41, %c0_42] : memref<1x16xf32, #tpu.memory_space<vmem>>, vector<1x16xf32>
    %c0_43 = arith.constant 0 : index
    %c0_44 = arith.constant 0 : index
    %22 = vector.load %arg26[%c0_43, %c0_44] : memref<16x3xbf16, #tpu.memory_space<vmem>>, vector<16x3xbf16>
    %c0_45 = arith.constant 0 : index
    %c0_46 = arith.constant 0 : index
    %23 = vector.load %arg27[%c0_45, %c0_46] : memref<1x3xf32, #tpu.memory_space<vmem>>, vector<1x3xf32>
    %c0_47 = arith.constant 0 : index
    %c0_48 = arith.constant 0 : index
    %24 = vector.load %arg28[%c0_47, %c0_48] : memref<32x32xbf16, #tpu.memory_space<vmem>>, vector<32x32xbf16>
    %c0_49 = arith.constant 0 : index
    %c0_50 = arith.constant 0 : index
    %25 = vector.load %arg29[%c0_49, %c0_50] : memref<1x32xf32, #tpu.memory_space<vmem>>, vector<1x32xf32>
    %c0_51 = arith.constant 0 : index
    %c0_52 = arith.constant 0 : index
    %26 = vector.load %arg30[%c0_51, %c0_52] : memref<32x32xbf16, #tpu.memory_space<vmem>>, vector<32x32xbf16>
    %c0_53 = arith.constant 0 : index
    %c0_54 = arith.constant 0 : index
    %27 = vector.load %arg31[%c0_53, %c0_54] : memref<1x32xf32, #tpu.memory_space<vmem>>, vector<1x32xf32>
    %c0_55 = arith.constant 0 : index
    %c0_56 = arith.constant 0 : index
    %28 = vector.load %arg32[%c0_55, %c0_56] : memref<32x32xbf16, #tpu.memory_space<vmem>>, vector<32x32xbf16>
    %c0_57 = arith.constant 0 : index
    %c0_58 = arith.constant 0 : index
    %29 = vector.load %arg33[%c0_57, %c0_58] : memref<1x32xf32, #tpu.memory_space<vmem>>, vector<1x32xf32>
    %c0_59 = arith.constant 0 : index
    %c0_60 = arith.constant 0 : index
    %c0_61 = arith.constant 0 : index
    %30 = vector.load %arg1[%c0_59, %c0_60, %c0_61] : memref<16x8x32xbf16, #tpu.memory_space<vmem>>, vector<16x8x32xbf16>
    %c0_62 = arith.constant 0 : index
    %c0_63 = arith.constant 0 : index
    %31 = vector.load %arg3[%c0_62, %c0_63] : memref<16x32xbf16, #tpu.memory_space<vmem>>, vector<16x32xbf16>
    %c0_64 = arith.constant 0 : index
    %c0_65 = arith.constant 0 : index
    %32 = vector.load %arg2[%c0_64, %c0_65] : memref<16x32xbf16, #tpu.memory_space<vmem>>, vector<16x32xbf16>
    %cst = arith.constant dense<0.000000e+00> : vector<16x32xf32>
    %33 = tpu.matmul %31, %0, %cst {dimension_numbers = #tpu.dot_dimension_numbers<[1], [0], [0], [1], [0, 0, 1, 1], [], []>} : vector<16x32xbf16>, vector<32x32xbf16>, vector<16x32xf32> -> vector<16x32xf32>
    %34 = vector.broadcast %1 : vector<1x32xf32> to vector<16x32xf32>
    %35 = arith.addf %33, %34 : vector<16x32xf32>
    %36 = arith.negf %35 : vector<16x32xf32>
    %37 = math.exp %36 : vector<16x32xf32>
    %cst_66 = arith.constant 1.000000e+00 : f32
    %38 = vector.broadcast %cst_66 : f32 to vector<16x32xf32>
    %39 = arith.addf %38, %37 : vector<16x32xf32>
    %40 = arith.divf %38, %39 : vector<16x32xf32>
    %cst_67 = arith.constant dense<0.000000e+00> : vector<16x32xf32>
    %41 = tpu.matmul %31, %4, %cst_67 {dimension_numbers = #tpu.dot_dimension_numbers<[1], [0], [0], [1], [0, 0, 1, 1], [], []>} : vector<16x32xbf16>, vector<32x32xbf16>, vector<16x32xf32> -> vector<16x32xf32>
    %42 = vector.broadcast %5 : vector<1x32xf32> to vector<16x32xf32>
    %43 = arith.addf %41, %42 : vector<16x32xf32>
    %44 = arith.negf %43 : vector<16x32xf32>
    %45 = math.exp %44 : vector<16x32xf32>
    %cst_68 = arith.constant 1.000000e+00 : f32
    %46 = vector.broadcast %cst_68 : f32 to vector<16x32xf32>
    %47 = arith.addf %46, %45 : vector<16x32xf32>
    %48 = arith.divf %46, %47 : vector<16x32xf32>
    %cst_69 = arith.constant dense<0.000000e+00> : vector<16x32xf32>
    %49 = tpu.matmul %32, %2, %cst_69 {dimension_numbers = #tpu.dot_dimension_numbers<[1], [0], [0], [1], [0, 0, 1, 1], [], []>} : vector<16x32xbf16>, vector<32x32xbf16>, vector<16x32xf32> -> vector<16x32xf32>
    %50 = vector.broadcast %3 : vector<1x32xf32> to vector<16x32xf32>
    %51 = arith.addf %49, %50 : vector<16x32xf32>
    %52 = math.tanh %51 : vector<16x32xf32>
    %cst_70 = arith.constant dense<0.000000e+00> : vector<16x32xf32>
    %53 = tpu.matmul %32, %6, %cst_70 {dimension_numbers = #tpu.dot_dimension_numbers<[1], [0], [0], [1], [0, 0, 1, 1], [], []>} : vector<16x32xbf16>, vector<32x32xbf16>, vector<16x32xf32> -> vector<16x32xf32>
    %54 = vector.broadcast %7 : vector<1x32xf32> to vector<16x32xf32>
    %55 = arith.addf %53, %54 : vector<16x32xf32>
    %56 = math.tanh %55 : vector<16x32xf32>
    %57 = vector.shape_cast %30 : vector<16x8x32xbf16> to vector<128x32xbf16>
    %58 = arith.extf %30 : vector<16x8x32xbf16> to vector<16x8x32xf32>
    %cst_71 = arith.constant dense<0.000000e+00> : vector<16x32xf32>
    %59 = vector.multi_reduction <add>, %58, %cst_71 [1] : vector<16x8x32xf32> to vector<16x32xf32>
    %cst_72 = arith.constant 1.250000e-01 : f32
    %60 = vector.broadcast %cst_72 : f32 to vector<16x32xf32>
    %61 = arith.mulf %59, %60 : vector<16x32xf32>
    %62 = arith.truncf %61 : vector<16x32xf32> to vector<16x32xbf16>
    %cst_73 = arith.constant dense<0.000000e+00> : vector<16x16xf32>
    %63 = tpu.matmul %62, %8, %cst_73 {dimension_numbers = #tpu.dot_dimension_numbers<[1], [0], [0], [1], [0, 0, 1, 1], [], []>} : vector<16x32xbf16>, vector<32x16xbf16>, vector<16x16xf32> -> vector<16x16xf32>
    %cst_74 = arith.constant dense<0.000000e+00> : vector<16x16xf32>
    %64 = tpu.matmul %31, %9, %cst_74 {dimension_numbers = #tpu.dot_dimension_numbers<[1], [0], [0], [1], [0, 0, 1, 1], [], []>} : vector<16x32xbf16>, vector<32x16xbf16>, vector<16x16xf32> -> vector<16x16xf32>
    %65 = arith.addf %63, %64 : vector<16x16xf32>
    %66 = vector.broadcast %10 : vector<1x16xf32> to vector<16x16xf32>
    %67 = arith.addf %65, %66 : vector<16x16xf32>
    %cst_75 = arith.constant 0.000000e+00 : f32
    %68 = vector.broadcast %cst_75 : f32 to vector<16x16xf32>
    %69 = arith.maximumf %67, %68 : vector<16x16xf32>
    %70 = arith.truncf %69 : vector<16x16xf32> to vector<16x16xbf16>
    %cst_76 = arith.constant dense<0.000000e+00> : vector<16x3xf32>
    %71 = tpu.matmul %70, %11, %cst_76 {dimension_numbers = #tpu.dot_dimension_numbers<[1], [0], [0], [1], [0, 0, 1, 1], [], []>} : vector<16x16xbf16>, vector<16x3xbf16>, vector<16x3xf32> -> vector<16x3xf32>
    %72 = vector.broadcast %12 : vector<1x3xf32> to vector<16x3xf32>
    %73 = arith.addf %71, %72 : vector<16x3xf32>
    %cst_77 = arith.constant dense<0xFF800000> : vector<16xf32>
    %74 = vector.multi_reduction <maximumf>, %73, %cst_77 [1] : vector<16x3xf32> to vector<16xf32>
    %75 = vector.shape_cast %74 : vector<16xf32> to vector<16x1xf32>
    %76 = vector.broadcast %75 : vector<16x1xf32> to vector<16x3xf32>
    %77 = arith.subf %73, %76 : vector<16x3xf32>
    %78 = math.exp %77 : vector<16x3xf32>
    %cst_78 = arith.constant dense<0.000000e+00> : vector<16xf32>
    %79 = vector.multi_reduction <add>, %78, %cst_78 [1] : vector<16x3xf32> to vector<16xf32>
    %80 = vector.shape_cast %79 : vector<16xf32> to vector<16x1xf32>
    %81 = vector.broadcast %80 : vector<16x1xf32> to vector<16x3xf32>
    %82 = arith.divf %78, %81 : vector<16x3xf32>
    %cst_79 = arith.constant dense<0.000000e+00> : vector<128x32xf32>
    %83 = tpu.matmul %57, %13, %cst_79 {dimension_numbers = #tpu.dot_dimension_numbers<[1], [0], [0], [1], [0, 0, 1, 1], [], []>} : vector<128x32xbf16>, vector<32x32xbf16>, vector<128x32xf32> -> vector<128x32xf32>
    %84 = vector.broadcast %14 : vector<1x32xf32> to vector<128x32xf32>
    %85 = arith.addf %83, %84 : vector<128x32xf32>
    %cst_80 = arith.constant dense<0.000000e+00> : vector<128x32xf32>
    %86 = tpu.matmul %57, %15, %cst_80 {dimension_numbers = #tpu.dot_dimension_numbers<[1], [0], [0], [1], [0, 0, 1, 1], [], []>} : vector<128x32xbf16>, vector<32x32xbf16>, vector<128x32xf32> -> vector<128x32xf32>
    %87 = vector.broadcast %16 : vector<1x32xf32> to vector<128x32xf32>
    %88 = arith.addf %86, %87 : vector<128x32xf32>
    %89 = arith.truncf %40 : vector<16x32xf32> to vector<16x32xbf16>
    %90 = vector.shape_cast %89 : vector<16x32xbf16> to vector<16x1x32xbf16>
    %91 = vector.broadcast %90 : vector<16x1x32xbf16> to vector<16x8x32xbf16>
    %92 = arith.mulf %30, %91 : vector<16x8x32xbf16>
    %93 = vector.shape_cast %92 : vector<16x8x32xbf16> to vector<128x32xbf16>
    %cst_81 = arith.constant dense<0.000000e+00> : vector<128x32xf32>
    %94 = tpu.matmul %93, %17, %cst_81 {dimension_numbers = #tpu.dot_dimension_numbers<[1], [0], [0], [1], [0, 0, 1, 1], [], []>} : vector<128x32xbf16>, vector<32x32xbf16>, vector<128x32xf32> -> vector<128x32xf32>
    %95 = vector.broadcast %18 : vector<1x32xf32> to vector<128x32xf32>
    %96 = arith.addf %94, %95 : vector<128x32xf32>
    %97 = vector.extract_strided_slice %82 {offsets = [0, 0], sizes = [16, 1], strides = [1, 1]} : vector<16x3xf32> to vector<16x1xf32>
    %98 = vector.extract_strided_slice %82 {offsets = [0, 1], sizes = [16, 1], strides = [1, 1]} : vector<16x3xf32> to vector<16x1xf32>
    %99 = vector.extract_strided_slice %82 {offsets = [0, 2], sizes = [16, 1], strides = [1, 1]} : vector<16x3xf32> to vector<16x1xf32>
    %100 = vector.shape_cast %85 : vector<128x32xf32> to vector<16x8x32xf32>
    %101 = arith.extf %30 : vector<16x8x32xbf16> to vector<16x8x32xf32>
    %102 = arith.addf %100, %101 : vector<16x8x32xf32>
    %103 = vector.shape_cast %97 : vector<16x1xf32> to vector<16x1x1xf32>
    %104 = vector.broadcast %103 : vector<16x1x1xf32> to vector<16x8x32xf32>
    %105 = arith.mulf %102, %104 : vector<16x8x32xf32>
    %106 = vector.shape_cast %96 : vector<128x32xf32> to vector<16x8x32xf32>
    %107 = vector.shape_cast %98 : vector<16x1xf32> to vector<16x1x1xf32>
    %108 = vector.broadcast %107 : vector<16x1x1xf32> to vector<16x8x32xf32>
    %109 = arith.mulf %106, %108 : vector<16x8x32xf32>
    %110 = arith.addf %105, %109 : vector<16x8x32xf32>
    %111 = vector.shape_cast %88 : vector<128x32xf32> to vector<16x8x32xf32>
    %112 = vector.broadcast %99 : vector<16x1xf32> to vector<16x32xf32>
    %113 = arith.mulf %52, %112 : vector<16x32xf32>
    %114 = vector.shape_cast %113 : vector<16x32xf32> to vector<16x1x32xf32>
    %115 = vector.broadcast %114 : vector<16x1x32xf32> to vector<16x8x32xf32>
    %116 = arith.mulf %111, %115 : vector<16x8x32xf32>
    %117 = arith.addf %110, %116 : vector<16x8x32xf32>
    %118 = arith.truncf %117 : vector<16x8x32xf32> to vector<16x8x32xbf16>
    %c0_82 = arith.constant 0 : index
    %c0_83 = arith.constant 0 : index
    %c0_84 = arith.constant 0 : index
    %119 = vector.load %arg34[%c0_82, %c0_83, %c0_84] : memref<16x8x32xbf16, #tpu.memory_space<vmem>>, vector<16x8x32xbf16>
    tpu.vector_store %arg34[%c0_82, %c0_83, %c0_84], %118 {strides = array<i32>} : memref<16x8x32xbf16, #tpu.memory_space<vmem>>, vector<16x8x32xbf16>,
    %120 = vector.shape_cast %118 : vector<16x8x32xbf16> to vector<128x32xbf16>
    %121 = arith.extf %118 : vector<16x8x32xbf16> to vector<16x8x32xf32>
    %cst_85 = arith.constant dense<0.000000e+00> : vector<16x32xf32>
    %122 = vector.multi_reduction <add>, %121, %cst_85 [1] : vector<16x8x32xf32> to vector<16x32xf32>
    %cst_86 = arith.constant 1.250000e-01 : f32
    %123 = vector.broadcast %cst_86 : f32 to vector<16x32xf32>
    %124 = arith.mulf %122, %123 : vector<16x32xf32>
    %125 = arith.truncf %124 : vector<16x32xf32> to vector<16x32xbf16>
    %cst_87 = arith.constant dense<0.000000e+00> : vector<16x16xf32>
    %126 = tpu.matmul %125, %19, %cst_87 {dimension_numbers = #tpu.dot_dimension_numbers<[1], [0], [0], [1], [0, 0, 1, 1], [], []>} : vector<16x32xbf16>, vector<32x16xbf16>, vector<16x16xf32> -> vector<16x16xf32>
    %cst_88 = arith.constant dense<0.000000e+00> : vector<16x16xf32>
    %127 = tpu.matmul %31, %20, %cst_88 {dimension_numbers = #tpu.dot_dimension_numbers<[1], [0], [0], [1], [0, 0, 1, 1], [], []>} : vector<16x32xbf16>, vector<32x16xbf16>, vector<16x16xf32> -> vector<16x16xf32>
    %128 = arith.addf %126, %127 : vector<16x16xf32>
    %129 = vector.broadcast %21 : vector<1x16xf32> to vector<16x16xf32>
    %130 = arith.addf %128, %129 : vector<16x16xf32>
    %cst_89 = arith.constant 0.000000e+00 : f32
    %131 = vector.broadcast %cst_89 : f32 to vector<16x16xf32>
    %132 = arith.maximumf %130, %131 : vector<16x16xf32>
    %133 = arith.truncf %132 : vector<16x16xf32> to vector<16x16xbf16>
    %cst_90 = arith.constant dense<0.000000e+00> : vector<16x3xf32>
    %134 = tpu.matmul %133, %22, %cst_90 {dimension_numbers = #tpu.dot_dimension_numbers<[1], [0], [0], [1], [0, 0, 1, 1], [], []>} : vector<16x16xbf16>, vector<16x3xbf16>, vector<16x3xf32> -> vector<16x3xf32>
    %135 = vector.broadcast %23 : vector<1x3xf32> to vector<16x3xf32>
    %136 = arith.addf %134, %135 : vector<16x3xf32>
    %cst_91 = arith.constant dense<0xFF800000> : vector<16xf32>
    %137 = vector.multi_reduction <maximumf>, %136, %cst_91 [1] : vector<16x3xf32> to vector<16xf32>
    %138 = vector.shape_cast %137 : vector<16xf32> to vector<16x1xf32>
    %139 = vector.broadcast %138 : vector<16x1xf32> to vector<16x3xf32>
    %140 = arith.subf %136, %139 : vector<16x3xf32>
    %141 = math.exp %140 : vector<16x3xf32>
    %cst_92 = arith.constant dense<0.000000e+00> : vector<16xf32>
    %142 = vector.multi_reduction <add>, %141, %cst_92 [1] : vector<16x3xf32> to vector<16xf32>
    %143 = vector.shape_cast %142 : vector<16xf32> to vector<16x1xf32>
    %144 = vector.broadcast %143 : vector<16x1xf32> to vector<16x3xf32>
    %145 = arith.divf %141, %144 : vector<16x3xf32>
    %cst_93 = arith.constant dense<0.000000e+00> : vector<128x32xf32>
    %146 = tpu.matmul %120, %24, %cst_93 {dimension_numbers = #tpu.dot_dimension_numbers<[1], [0], [0], [1], [0, 0, 1, 1], [], []>} : vector<128x32xbf16>, vector<32x32xbf16>, vector<128x32xf32> -> vector<128x32xf32>
    %147 = vector.broadcast %25 : vector<1x32xf32> to vector<128x32xf32>
    %148 = arith.addf %146, %147 : vector<128x32xf32>
    %cst_94 = arith.constant dense<0.000000e+00> : vector<128x32xf32>
    %149 = tpu.matmul %120, %26, %cst_94 {dimension_numbers = #tpu.dot_dimension_numbers<[1], [0], [0], [1], [0, 0, 1, 1], [], []>} : vector<128x32xbf16>, vector<32x32xbf16>, vector<128x32xf32> -> vector<128x32xf32>
    %150 = vector.broadcast %27 : vector<1x32xf32> to vector<128x32xf32>
    %151 = arith.addf %149, %150 : vector<128x32xf32>
    %152 = arith.truncf %48 : vector<16x32xf32> to vector<16x32xbf16>
    %153 = vector.shape_cast %152 : vector<16x32xbf16> to vector<16x1x32xbf16>
    %154 = vector.broadcast %153 : vector<16x1x32xbf16> to vector<16x8x32xbf16>
    %155 = arith.mulf %118, %154 : vector<16x8x32xbf16>
    %156 = vector.shape_cast %155 : vector<16x8x32xbf16> to vector<128x32xbf16>
    %cst_95 = arith.constant dense<0.000000e+00> : vector<128x32xf32>
    %157 = tpu.matmul %156, %28, %cst_95 {dimension_numbers = #tpu.dot_dimension_numbers<[1], [0], [0], [1], [0, 0, 1, 1], [], []>} : vector<128x32xbf16>, vector<32x32xbf16>, vector<128x32xf32> -> vector<128x32xf32>
    %158 = vector.broadcast %29 : vector<1x32xf32> to vector<128x32xf32>
    %159 = arith.addf %157, %158 : vector<128x32xf32>
    %160 = vector.extract_strided_slice %145 {offsets = [0, 0], sizes = [16, 1], strides = [1, 1]} : vector<16x3xf32> to vector<16x1xf32>
    %161 = vector.extract_strided_slice %145 {offsets = [0, 1], sizes = [16, 1], strides = [1, 1]} : vector<16x3xf32> to vector<16x1xf32>
    %162 = vector.extract_strided_slice %145 {offsets = [0, 2], sizes = [16, 1], strides = [1, 1]} : vector<16x3xf32> to vector<16x1xf32>
    %163 = vector.shape_cast %148 : vector<128x32xf32> to vector<16x8x32xf32>
    %164 = arith.extf %118 : vector<16x8x32xbf16> to vector<16x8x32xf32>
    %165 = arith.addf %163, %164 : vector<16x8x32xf32>
    %166 = vector.shape_cast %160 : vector<16x1xf32> to vector<16x1x1xf32>
    %167 = vector.broadcast %166 : vector<16x1x1xf32> to vector<16x8x32xf32>
    %168 = arith.mulf %165, %167 : vector<16x8x32xf32>
    %169 = vector.shape_cast %159 : vector<128x32xf32> to vector<16x8x32xf32>
    %170 = vector.shape_cast %161 : vector<16x1xf32> to vector<16x1x1xf32>
    %171 = vector.broadcast %170 : vector<16x1x1xf32> to vector<16x8x32xf32>
    %172 = arith.mulf %169, %171 : vector<16x8x32xf32>
    %173 = arith.addf %168, %172 : vector<16x8x32xf32>
    %174 = vector.shape_cast %151 : vector<128x32xf32> to vector<16x8x32xf32>
    %175 = vector.broadcast %162 : vector<16x1xf32> to vector<16x32xf32>
    %176 = arith.mulf %56, %175 : vector<16x32xf32>
    %177 = vector.shape_cast %176 : vector<16x32xf32> to vector<16x1x32xf32>
    %178 = vector.broadcast %177 : vector<16x1x32xf32> to vector<16x8x32xf32>
    %179 = arith.mulf %174, %178 : vector<16x8x32xf32>
    %180 = arith.addf %173, %179 : vector<16x8x32xf32>
    %181 = arith.truncf %180 : vector<16x8x32xf32> to vector<16x8x32xbf16>
    %c0_96 = arith.constant 0 : index
    %c0_97 = arith.constant 0 : index
    %c0_98 = arith.constant 0 : index
    %182 = vector.load %arg35[%c0_96, %c0_97, %c0_98] : memref<16x8x32xbf16, #tpu.memory_space<vmem>>, vector<16x8x32xbf16>
    tpu.vector_store %arg35[%c0_96, %c0_97, %c0_98], %181 {strides = array<i32>} : memref<16x8x32xbf16, #tpu.memory_space<vmem>>, vector<16x8x32xbf16>,
    %183 = tpu.concatenate %82, %145 in 1 : vector<16x3xf32>, vector<16x3xf32> -> vector<16x6xf32>
    %c0_99 = arith.constant 0 : index
    %c0_100 = arith.constant 0 : index
    %184 = vector.load %arg36[%c0_99, %c0_100] : memref<16x6xf32, #tpu.memory_space<vmem>>, vector<16x6xf32>
    tpu.vector_store %arg36[%c0_99, %c0_100], %183 {strides = array<i32>} : memref<16x6xf32, #tpu.memory_space<vmem>>, vector<16x6xf32>,
    return
  }
  func.func @transform_0(%arg0: i32) -> (i32, i32, i32) {
    %c0_i32 = arith.constant 0 : i32
    %c0_i32_0 = arith.constant 0 : i32
    %c0_i32_1 = arith.constant 0 : i32
    return %arg0, %c0_i32, %c0_i32_0 : i32, i32, i32
  }
  func.func @transform_1(%arg0: i32) -> (i32, i32) {
    %c0_i32 = arith.constant 0 : i32
    %c0_i32_0 = arith.constant 0 : i32
    return %arg0, %c0_i32 : i32, i32
  }
  func.func @transform_2(%arg0: i32) -> (i32, i32) {
    %c0_i32 = arith.constant 0 : i32
    %c0_i32_0 = arith.constant 0 : i32
    return %arg0, %c0_i32 : i32, i32
  }
  func.func @transform_3(%arg0: i32) -> (i32, i32) {
    %c0_i32 = arith.constant 0 : i32
    %c0_i32_0 = arith.constant 0 : i32
    %c0_i32_1 = arith.constant 0 : i32
    return %c0_i32, %c0_i32_0 : i32, i32
  }
  func.func @transform_4(%arg0: i32) -> (i32, i32) {
    %c0_i32 = arith.constant 0 : i32
    %c0_i32_0 = arith.constant 0 : i32
    %c0_i32_1 = arith.constant 0 : i32
    return %c0_i32, %c0_i32_0 : i32, i32
  }
  func.func @transform_5(%arg0: i32) -> (i32, i32) {
    %c0_i32 = arith.constant 0 : i32
    %c0_i32_0 = arith.constant 0 : i32
    %c0_i32_1 = arith.constant 0 : i32
    return %c0_i32, %c0_i32_0 : i32, i32
  }
  func.func @transform_6(%arg0: i32) -> (i32, i32) {
    %c0_i32 = arith.constant 0 : i32
    %c0_i32_0 = arith.constant 0 : i32
    %c0_i32_1 = arith.constant 0 : i32
    return %c0_i32, %c0_i32_0 : i32, i32
  }
  func.func @transform_7(%arg0: i32) -> (i32, i32) {
    %c0_i32 = arith.constant 0 : i32
    %c0_i32_0 = arith.constant 0 : i32
    %c0_i32_1 = arith.constant 0 : i32
    return %c0_i32, %c0_i32_0 : i32, i32
  }
  func.func @transform_8(%arg0: i32) -> (i32, i32) {
    %c0_i32 = arith.constant 0 : i32
    %c0_i32_0 = arith.constant 0 : i32
    %c0_i32_1 = arith.constant 0 : i32
    return %c0_i32, %c0_i32_0 : i32, i32
  }
  func.func @transform_9(%arg0: i32) -> (i32, i32) {
    %c0_i32 = arith.constant 0 : i32
    %c0_i32_0 = arith.constant 0 : i32
    %c0_i32_1 = arith.constant 0 : i32
    return %c0_i32, %c0_i32_0 : i32, i32
  }
  func.func @transform_10(%arg0: i32) -> (i32, i32) {
    %c0_i32 = arith.constant 0 : i32
    %c0_i32_0 = arith.constant 0 : i32
    %c0_i32_1 = arith.constant 0 : i32
    return %c0_i32, %c0_i32_0 : i32, i32
  }
  func.func @transform_11(%arg0: i32) -> (i32, i32) {
    %c0_i32 = arith.constant 0 : i32
    %c0_i32_0 = arith.constant 0 : i32
    %c0_i32_1 = arith.constant 0 : i32
    return %c0_i32, %c0_i32_0 : i32, i32
  }
  func.func @transform_12(%arg0: i32) -> (i32, i32) {
    %c0_i32 = arith.constant 0 : i32
    %c0_i32_0 = arith.constant 0 : i32
    %c0_i32_1 = arith.constant 0 : i32
    return %c0_i32, %c0_i32_0 : i32, i32
  }
  func.func @transform_13(%arg0: i32) -> (i32, i32) {
    %c0_i32 = arith.constant 0 : i32
    %c0_i32_0 = arith.constant 0 : i32
    %c0_i32_1 = arith.constant 0 : i32
    return %c0_i32, %c0_i32_0 : i32, i32
  }
  func.func @transform_14(%arg0: i32) -> (i32, i32) {
    %c0_i32 = arith.constant 0 : i32
    %c0_i32_0 = arith.constant 0 : i32
    %c0_i32_1 = arith.constant 0 : i32
    return %c0_i32, %c0_i32_0 : i32, i32
  }
  func.func @transform_15(%arg0: i32) -> (i32, i32) {
    %c0_i32 = arith.constant 0 : i32
    %c0_i32_0 = arith.constant 0 : i32
    %c0_i32_1 = arith.constant 0 : i32
    return %c0_i32, %c0_i32_0 : i32, i32
  }
  func.func @transform_16(%arg0: i32) -> (i32, i32) {
    %c0_i32 = arith.constant 0 : i32
    %c0_i32_0 = arith.constant 0 : i32
    %c0_i32_1 = arith.constant 0 : i32
    return %c0_i32, %c0_i32_0 : i32, i32
  }
  func.func @transform_17(%arg0: i32) -> (i32, i32) {
    %c0_i32 = arith.constant 0 : i32
    %c0_i32_0 = arith.constant 0 : i32
    %c0_i32_1 = arith.constant 0 : i32
    return %c0_i32, %c0_i32_0 : i32, i32
  }
  func.func @transform_18(%arg0: i32) -> (i32, i32) {
    %c0_i32 = arith.constant 0 : i32
    %c0_i32_0 = arith.constant 0 : i32
    %c0_i32_1 = arith.constant 0 : i32
    return %c0_i32, %c0_i32_0 : i32, i32
  }
  func.func @transform_19(%arg0: i32) -> (i32, i32) {
    %c0_i32 = arith.constant 0 : i32
    %c0_i32_0 = arith.constant 0 : i32
    %c0_i32_1 = arith.constant 0 : i32
    return %c0_i32, %c0_i32_0 : i32, i32
  }
  func.func @transform_20(%arg0: i32) -> (i32, i32) {
    %c0_i32 = arith.constant 0 : i32
    %c0_i32_0 = arith.constant 0 : i32
    %c0_i32_1 = arith.constant 0 : i32
    return %c0_i32, %c0_i32_0 : i32, i32
  }
  func.func @transform_21(%arg0: i32) -> (i32, i32) {
    %c0_i32 = arith.constant 0 : i32
    %c0_i32_0 = arith.constant 0 : i32
    %c0_i32_1 = arith.constant 0 : i32
    return %c0_i32, %c0_i32_0 : i32, i32
  }
  func.func @transform_22(%arg0: i32) -> (i32, i32) {
    %c0_i32 = arith.constant 0 : i32
    %c0_i32_0 = arith.constant 0 : i32
    %c0_i32_1 = arith.constant 0 : i32
    return %c0_i32, %c0_i32_0 : i32, i32
  }
  func.func @transform_23(%arg0: i32) -> (i32, i32) {
    %c0_i32 = arith.constant 0 : i32
    %c0_i32_0 = arith.constant 0 : i32
    %c0_i32_1 = arith.constant 0 : i32
    return %c0_i32, %c0_i32_0 : i32, i32
  }
  func.func @transform_24(%arg0: i32) -> (i32, i32) {
    %c0_i32 = arith.constant 0 : i32
    %c0_i32_0 = arith.constant 0 : i32
    %c0_i32_1 = arith.constant 0 : i32
    return %c0_i32, %c0_i32_0 : i32, i32
  }
  func.func @transform_25(%arg0: i32) -> (i32, i32) {
    %c0_i32 = arith.constant 0 : i32
    %c0_i32_0 = arith.constant 0 : i32
    %c0_i32_1 = arith.constant 0 : i32
    return %c0_i32, %c0_i32_0 : i32, i32
  }
  func.func @transform_26(%arg0: i32) -> (i32, i32) {
    %c0_i32 = arith.constant 0 : i32
    %c0_i32_0 = arith.constant 0 : i32
    %c0_i32_1 = arith.constant 0 : i32
    return %c0_i32, %c0_i32_0 : i32, i32
  }
  func.func @transform_27(%arg0: i32) -> (i32, i32) {
    %c0_i32 = arith.constant 0 : i32
    %c0_i32_0 = arith.constant 0 : i32
    %c0_i32_1 = arith.constant 0 : i32
    return %c0_i32, %c0_i32_0 : i32, i32
  }
  func.func @transform_28(%arg0: i32) -> (i32, i32) {
    %c0_i32 = arith.constant 0 : i32
    %c0_i32_0 = arith.constant 0 : i32
    %c0_i32_1 = arith.constant 0 : i32
    return %c0_i32, %c0_i32_0 : i32, i32
  }
  func.func @transform_29(%arg0: i32) -> (i32, i32) {
    %c0_i32 = arith.constant 0 : i32
    %c0_i32_0 = arith.constant 0 : i32
    %c0_i32_1 = arith.constant 0 : i32
    return %c0_i32, %c0_i32_0 : i32, i32
  }
  func.func @transform_30(%arg0: i32) -> (i32, i32) {
    %c0_i32 = arith.constant 0 : i32
    %c0_i32_0 = arith.constant 0 : i32
    %c0_i32_1 = arith.constant 0 : i32
    return %c0_i32, %c0_i32_0 : i32, i32
  }
  func.func @transform_31(%arg0: i32) -> (i32, i32) {
    %c0_i32 = arith.constant 0 : i32
    %c0_i32_0 = arith.constant 0 : i32
    %c0_i32_1 = arith.constant 0 : i32
    return %c0_i32, %c0_i32_0 : i32, i32
  }
  func.func @transform_32(%arg0: i32) -> (i32, i32) {
    %c0_i32 = arith.constant 0 : i32
    %c0_i32_0 = arith.constant 0 : i32
    %c0_i32_1 = arith.constant 0 : i32
    return %c0_i32, %c0_i32_0 : i32, i32
  }
  func.func @transform_33(%arg0: i32) -> (i32, i32, i32) {
    %c0_i32 = arith.constant 0 : i32
    %c0_i32_0 = arith.constant 0 : i32
    %c0_i32_1 = arith.constant 0 : i32
    return %arg0, %c0_i32, %c0_i32_0 : i32, i32, i32
  }
  func.func @transform_34(%arg0: i32) -> (i32, i32, i32) {
    %c0_i32 = arith.constant 0 : i32
    %c0_i32_0 = arith.constant 0 : i32
    %c0_i32_1 = arith.constant 0 : i32
    return %arg0, %c0_i32, %c0_i32_0 : i32, i32, i32
  }
  func.func @transform_35(%arg0: i32) -> (i32, i32) {
    %c0_i32 = arith.constant 0 : i32
    %c0_i32_0 = arith.constant 0 : i32
    return %arg0, %c0_i32 : i32, i32
  }
}

module attributes {stable_mosaic.version = 11 : i64} {
  func.func @kernel(%arg0: i32, %arg1: memref<16x8x32xbf16, #tpu.memory_space<vmem>>, %arg2: memref<16x32xbf16, #tpu.memory_space<vmem>>, %arg3: memref<16x32xbf16, #tpu.memory_space<vmem>>, %arg4: memref<32x32xbf16, #tpu.memory_space<vmem>>, %arg5: memref<1x32xf32, #tpu.memory_space<vmem>>, %arg6: memref<32x32xbf16, #tpu.memory_space<vmem>>, %arg7: memref<1x32xf32, #tpu.memory_space<vmem>>, %arg8: memref<32x32xbf16, #tpu.memory_space<vmem>>, %arg9: memref<1x32xf32, #tpu.memory_space<vmem>>, %arg10: memref<32x32xbf16, #tpu.memory_space<vmem>>, %arg11: memref<1x32xf32, #tpu.memory_space<vmem>>, %arg12: memref<32x16xbf16, #tpu.memory_space<vmem>>, %arg13: memref<32x16xbf16, #tpu.memory_space<vmem>>, %arg14: memref<1x16xf32, #tpu.memory_space<vmem>>, %arg15: memref<16x3xbf16, #tpu.memory_space<vmem>>, %arg16: memref<1x3xf32, #tpu.memory_space<vmem>>, %arg17: memref<32x32xbf16, #tpu.memory_space<vmem>>, %arg18: memref<1x32xf32, #tpu.memory_space<vmem>>, %arg19: memref<32x32xbf16, #tpu.memory_space<vmem>>, %arg20: memref<1x32xf32, #tpu.memory_space<vmem>>, %arg21: memref<32x32xbf16, #tpu.memory_space<vmem>>, %arg22: memref<1x32xf32, #tpu.memory_space<vmem>>, %arg23: memref<32x16xbf16, #tpu.memory_space<vmem>>, %arg24: memref<32x16xbf16, #tpu.memory_space<vmem>>, %arg25: memref<1x16xf32, #tpu.memory_space<vmem>>, %arg26: memref<16x3xbf16, #tpu.memory_space<vmem>>, %arg27: memref<1x3xf32, #tpu.memory_space<vmem>>, %arg28: memref<32x32xbf16, #tpu.memory_space<vmem>>, %arg29: memref<1x32xf32, #tpu.memory_space<vmem>>, %arg30: memref<32x32xbf16, #tpu.memory_space<vmem>>, %arg31: memref<1x32xf32, #tpu.memory_space<vmem>>, %arg32: memref<32x32xbf16, #tpu.memory_space<vmem>>, %arg33: memref<1x32xf32, #tpu.memory_space<vmem>>, %arg34: memref<16x8x32xbf16, #tpu.memory_space<vmem>>, %arg35: memref<16x8x32xbf16, #tpu.memory_space<vmem>>, %arg36: memref<16x6xf32, #tpu.memory_space<vmem>>) attributes {dimension_semantics = [#tpu.dimension_semantics<parallel>], iteration_bounds = array<i64: 2>, scalar_prefetch = 0 : i64, scratch_operands = 0 : i64, tpu.core_type = #tpu.core_type<tc>, window_params = [{transform_indices = @transform_0, window_bounds = array<i64: 16, 8, 32>}, {transform_indices = @transform_1, window_bounds = array<i64: 16, 32>}, {transform_indices = @transform_2, window_bounds = array<i64: 16, 32>}, {pipeline_mode = #tpu.pipeline_mode<synchronous>, transform_indices = @transform_3, window_bounds = array<i64: 32, 32>}, {pipeline_mode = #tpu.pipeline_mode<synchronous>, transform_indices = @transform_4, window_bounds = array<i64: 1, 32>}, {pipeline_mode = #tpu.pipeline_mode<synchronous>, transform_indices = @transform_5, window_bounds = array<i64: 32, 32>}, {pipeline_mode = #tpu.pipeline_mode<synchronous>, transform_indices = @transform_6, window_bounds = array<i64: 1, 32>}, {pipeline_mode = #tpu.pipeline_mode<synchronous>, transform_indices = @transform_7, window_bounds = array<i64: 32, 32>}, {pipeline_mode = #tpu.pipeline_mode<synchronous>, transform_indices = @transform_8, window_bounds = array<i64: 1, 32>}, {pipeline_mode = #tpu.pipeline_mode<synchronous>, transform_indices = @transform_9, window_bounds = array<i64: 32, 32>}, {pipeline_mode = #tpu.pipeline_mode<synchronous>, transform_indices = @transform_10, window_bounds = array<i64: 1, 32>}, {pipeline_mode = #tpu.pipeline_mode<synchronous>, transform_indices = @transform_11, window_bounds = array<i64: 32, 16>}, {pipeline_mode = #tpu.pipeline_mode<synchronous>, transform_indices = @transform_12, window_bounds = array<i64: 32, 16>}, {pipeline_mode = #tpu.pipeline_mode<synchronous>, transform_indices = @transform_13, window_bounds = array<i64: 1, 16>}, {pipeline_mode = #tpu.pipeline_mode<synchronous>, transform_indices = @transform_14, window_bounds = array<i64: 16, 3>}, {pipeline_mode = #tpu.pipeline_mode<synchronous>, transform_indices = @transform_15, window_bounds = array<i64: 1, 3>}, {pipeline_mode = #tpu.pipeline_mode<synchronous>, transform_indices = @transform_16, window_bounds = array<i64: 32, 32>}, {pipeline_mode = #tpu.pipeline_mode<synchronous>, transform_indices = @transform_17, window_bounds = array<i64: 1, 32>}, {pipeline_mode = #tpu.pipeline_mode<synchronous>, transform_indices = @transform_18, window_bounds = array<i64: 32, 32>}, {pipeline_mode = #tpu.pipeline_mode<synchronous>, transform_indices = @transform_19, window_bounds = array<i64: 1, 32>}, {pipeline_mode = #tpu.pipeline_mode<synchronous>, transform_indices = @transform_20, window_bounds = array<i64: 32, 32>}, {pipeline_mode = #tpu.pipeline_mode<synchronous>, transform_indices = @transform_21, window_bounds = array<i64: 1, 32>}, {pipeline_mode = #tpu.pipeline_mode<synchronous>, transform_indices = @transform_22, window_bounds = array<i64: 32, 16>}, {pipeline_mode = #tpu.pipeline_mode<synchronous>, transform_indices = @transform_23, window_bounds = array<i64: 32, 16>}, {pipeline_mode = #tpu.pipeline_mode<synchronous>, transform_indices = @transform_24, window_bounds = array<i64: 1, 16>}, {pipeline_mode = #tpu.pipeline_mode<synchronous>, transform_indices = @transform_25, window_bounds = array<i64: 16, 3>}, {pipeline_mode = #tpu.pipeline_mode<synchronous>, transform_indices = @transform_26, window_bounds = array<i64: 1, 3>}, {pipeline_mode = #tpu.pipeline_mode<synchronous>, transform_indices = @transform_27, window_bounds = array<i64: 32, 32>}, {pipeline_mode = #tpu.pipeline_mode<synchronous>, transform_indices = @transform_28, window_bounds = array<i64: 1, 32>}, {pipeline_mode = #tpu.pipeline_mode<synchronous>, transform_indices = @transform_29, window_bounds = array<i64: 32, 32>}, {pipeline_mode = #tpu.pipeline_mode<synchronous>, transform_indices = @transform_30, window_bounds = array<i64: 1, 32>}, {pipeline_mode = #tpu.pipeline_mode<synchronous>, transform_indices = @transform_31, window_bounds = array<i64: 32, 32>}, {pipeline_mode = #tpu.pipeline_mode<synchronous>, transform_indices = @transform_32, window_bounds = array<i64: 1, 32>}, {transform_indices = @transform_33, window_bounds = array<i64: 16, 8, 32>}, {transform_indices = @transform_34, window_bounds = array<i64: 16, 8, 32>}, {transform_indices = @transform_35, window_bounds = array<i64: 16, 6>}]} {
    %c0 = arith.constant 0 : index
    %c0_0 = arith.constant 0 : index
    %0 = vector.load %arg4[%c0, %c0_0] : memref<32x32xbf16, #tpu.memory_space<vmem>>, vector<32x32xbf16>
    %c0_1 = arith.constant 0 : index
    %c0_2 = arith.constant 0 : index
    %1 = vector.load %arg5[%c0_1, %c0_2] : memref<1x32xf32, #tpu.memory_space<vmem>>, vector<1x32xf32>
    %c0_3 = arith.constant 0 : index
    %c0_4 = arith.constant 0 : index
    %2 = vector.load %arg6[%c0_3, %c0_4] : memref<32x32xbf16, #tpu.memory_space<vmem>>, vector<32x32xbf16>
    %c0_5 = arith.constant 0 : index
    %c0_6 = arith.constant 0 : index
    %3 = vector.load %arg7[%c0_5, %c0_6] : memref<1x32xf32, #tpu.memory_space<vmem>>, vector<1x32xf32>
    %c0_7 = arith.constant 0 : index
    %c0_8 = arith.constant 0 : index
    %4 = vector.load %arg8[%c0_7, %c0_8] : memref<32x32xbf16, #tpu.memory_space<vmem>>, vector<32x32xbf16>
    %c0_9 = arith.constant 0 : index
    %c0_10 = arith.constant 0 : index
    %5 = vector.load %arg9[%c0_9, %c0_10] : memref<1x32xf32, #tpu.memory_space<vmem>>, vector<1x32xf32>
    %c0_11 = arith.constant 0 : index
    %c0_12 = arith.constant 0 : index
    %6 = vector.load %arg10[%c0_11, %c0_12] : memref<32x32xbf16, #tpu.memory_space<vmem>>, vector<32x32xbf16>
    %c0_13 = arith.constant 0 : index
    %c0_14 = arith.constant 0 : index
    %7 = vector.load %arg11[%c0_13, %c0_14] : memref<1x32xf32, #tpu.memory_space<vmem>>, vector<1x32xf32>
    %c0_15 = arith.constant 0 : index
    %c0_16 = arith.constant 0 : index
    %8 = vector.load %arg12[%c0_15, %c0_16] : memref<32x16xbf16, #tpu.memory_space<vmem>>, vector<32x16xbf16>
    %c0_17 = arith.constant 0 : index
    %c0_18 = arith.constant 0 : index
    %9 = vector.load %arg13[%c0_17, %c0_18] : memref<32x16xbf16, #tpu.memory_space<vmem>>, vector<32x16xbf16>
    %c0_19 = arith.constant 0 : index
    %c0_20 = arith.constant 0 : index
    %10 = vector.load %arg14[%c0_19, %c0_20] : memref<1x16xf32, #tpu.memory_space<vmem>>, vector<1x16xf32>
    %c0_21 = arith.constant 0 : index
    %c0_22 = arith.constant 0 : index
    %11 = vector.load %arg15[%c0_21, %c0_22] : memref<16x3xbf16, #tpu.memory_space<vmem>>, vector<16x3xbf16>
    %c0_23 = arith.constant 0 : index
    %c0_24 = arith.constant 0 : index
    %12 = vector.load %arg16[%c0_23, %c0_24] : memref<1x3xf32, #tpu.memory_space<vmem>>, vector<1x3xf32>
    %c0_25 = arith.constant 0 : index
    %c0_26 = arith.constant 0 : index
    %13 = vector.load %arg17[%c0_25, %c0_26] : memref<32x32xbf16, #tpu.memory_space<vmem>>, vector<32x32xbf16>
    %c0_27 = arith.constant 0 : index
    %c0_28 = arith.constant 0 : index
    %14 = vector.load %arg18[%c0_27, %c0_28] : memref<1x32xf32, #tpu.memory_space<vmem>>, vector<1x32xf32>
    %c0_29 = arith.constant 0 : index
    %c0_30 = arith.constant 0 : index
    %15 = vector.load %arg19[%c0_29, %c0_30] : memref<32x32xbf16, #tpu.memory_space<vmem>>, vector<32x32xbf16>
    %c0_31 = arith.constant 0 : index
    %c0_32 = arith.constant 0 : index
    %16 = vector.load %arg20[%c0_31, %c0_32] : memref<1x32xf32, #tpu.memory_space<vmem>>, vector<1x32xf32>
    %c0_33 = arith.constant 0 : index
    %c0_34 = arith.constant 0 : index
    %17 = vector.load %arg21[%c0_33, %c0_34] : memref<32x32xbf16, #tpu.memory_space<vmem>>, vector<32x32xbf16>
    %c0_35 = arith.constant 0 : index
    %c0_36 = arith.constant 0 : index
    %18 = vector.load %arg22[%c0_35, %c0_36] : memref<1x32xf32, #tpu.memory_space<vmem>>, vector<1x32xf32>
    %c0_37 = arith.constant 0 : index
    %c0_38 = arith.constant 0 : index
    %19 = vector.load %arg23[%c0_37, %c0_38] : memref<32x16xbf16, #tpu.memory_space<vmem>>, vector<32x16xbf16>
    %c0_39 = arith.constant 0 : index
    %c0_40 = arith.constant 0 : index
    %20 = vector.load %arg24[%c0_39, %c0_40] : memref<32x16xbf16, #tpu.memory_space<vmem>>, vector<32x16xbf16>
    %c0_41 = arith.constant 0 : index
    %c0_42 = arith.constant 0 : index
    %21 = vector.load %arg25[%c0_41, %c0_42] : memref<1x16xf32, #tpu.memory_space<vmem>>, vector<1x16xf32>
    %c0_43 = arith.constant 0 : index
    %c0_44 = arith.constant 0 : index
    %22 = vector.load %arg26[%c0_43, %c0_44] : memref<16x3xbf16, #tpu.memory_space<vmem>>, vector<16x3xbf16>
    %c0_45 = arith.constant 0 : index
    %c0_46 = arith.constant 0 : index
    %23 = vector.load %arg27[%c0_45, %c0_46] : memref<1x3xf32, #tpu.memory_space<vmem>>, vector<1x3xf32>
    %c0_47 = arith.constant 0 : index
    %c0_48 = arith.constant 0 : index
    %24 = vector.load %arg28[%c0_47, %c0_48] : memref<32x32xbf16, #tpu.memory_space<vmem>>, vector<32x32xbf16>
    %c0_49 = arith.constant 0 : index
    %c0_50 = arith.constant 0 : index
    %25 = vector.load %arg29[%c0_49, %c0_50] : memref<1x32xf32, #tpu.memory_space<vmem>>, vector<1x32xf32>
    %c0_51 = arith.constant 0 : index
    %c0_52 = arith.constant 0 : index
    %26 = vector.load %arg30[%c0_51, %c0_52] : memref<32x32xbf16, #tpu.memory_space<vmem>>, vector<32x32xbf16>
    %c0_53 = arith.constant 0 : index
    %c0_54 = arith.constant 0 : index
    %27 = vector.load %arg31[%c0_53, %c0_54] : memref<1x32xf32, #tpu.memory_space<vmem>>, vector<1x32xf32>
    %c0_55 = arith.constant 0 : index
    %c0_56 = arith.constant 0 : index
    %28 = vector.load %arg32[%c0_55, %c0_56] : memref<32x32xbf16, #tpu.memory_space<vmem>>, vector<32x32xbf16>
    %c0_57 = arith.constant 0 : index
    %c0_58 = arith.constant 0 : index
    %29 = vector.load %arg33[%c0_57, %c0_58] : memref<1x32xf32, #tpu.memory_space<vmem>>, vector<1x32xf32>
    %c0_59 = arith.constant 0 : index
    %c0_60 = arith.constant 0 : index
    %c0_61 = arith.constant 0 : index
    %30 = vector.load %arg1[%c0_59, %c0_60, %c0_61] : memref<16x8x32xbf16, #tpu.memory_space<vmem>>, vector<16x8x32xbf16>
    %c0_62 = arith.constant 0 : index
    %c0_63 = arith.constant 0 : index
    %31 = vector.load %arg3[%c0_62, %c0_63] : memref<16x32xbf16, #tpu.memory_space<vmem>>, vector<16x32xbf16>
    %c0_64 = arith.constant 0 : index
    %c0_65 = arith.constant 0 : index
    %32 = vector.load %arg2[%c0_64, %c0_65] : memref<16x32xbf16, #tpu.memory_space<vmem>>, vector<16x32xbf16>
    %cst = arith.constant dense<0.000000e+00> : vector<16x32xf32>
    %33 = tpu.matmul %31, %0, %cst {dimension_numbers = #tpu.dot_dimension_numbers<[1], [0], [0], [1], [0, 0, 1, 1], [], []>} : vector<16x32xbf16>, vector<32x32xbf16>, vector<16x32xf32> -> vector<16x32xf32>
    %34 = vector.broadcast %1 : vector<1x32xf32> to vector<16x32xf32>
    %35 = arith.addf %33, %34 : vector<16x32xf32>
    %36 = arith.negf %35 : vector<16x32xf32>
    %37 = math.exp %36 : vector<16x32xf32>
    %cst_66 = arith.constant 1.000000e+00 : f32
    %38 = vector.broadcast %cst_66 : f32 to vector<16x32xf32>
    %39 = arith.addf %38, %37 : vector<16x32xf32>
    %40 = arith.divf %38, %39 : vector<16x32xf32>
    %cst_67 = arith.constant dense<0.000000e+00> : vector<16x32xf32>
    %41 = tpu.matmul %31, %4, %cst_67 {dimension_numbers = #tpu.dot_dimension_numbers<[1], [0], [0], [1], [0, 0, 1, 1], [], []>} : vector<16x32xbf16>, vector<32x32xbf16>, vector<16x32xf32> -> vector<16x32xf32>
    %42 = vector.broadcast %5 : vector<1x32xf32> to vector<16x32xf32>
    %43 = arith.addf %41, %42 : vector<16x32xf32>
    %44 = arith.negf %43 : vector<16x32xf32>
    %45 = math.exp %44 : vector<16x32xf32>
    %cst_68 = arith.constant 1.000000e+00 : f32
    %46 = vector.broadcast %cst_68 : f32 to vector<16x32xf32>
    %47 = arith.addf %46, %45 : vector<16x32xf32>
    %48 = arith.divf %46, %47 : vector<16x32xf32>
    %cst_69 = arith.constant dense<0.000000e+00> : vector<16x32xf32>
    %49 = tpu.matmul %32, %2, %cst_69 {dimension_numbers = #tpu.dot_dimension_numbers<[1], [0], [0], [1], [0, 0, 1, 1], [], []>} : vector<16x32xbf16>, vector<32x32xbf16>, vector<16x32xf32> -> vector<16x32xf32>
    %50 = vector.broadcast %3 : vector<1x32xf32> to vector<16x32xf32>
    %51 = arith.addf %49, %50 : vector<16x32xf32>
    %52 = math.tanh %51 : vector<16x32xf32>
    %cst_70 = arith.constant dense<0.000000e+00> : vector<16x32xf32>
    %53 = tpu.matmul %32, %6, %cst_70 {dimension_numbers = #tpu.dot_dimension_numbers<[1], [0], [0], [1], [0, 0, 1, 1], [], []>} : vector<16x32xbf16>, vector<32x32xbf16>, vector<16x32xf32> -> vector<16x32xf32>
    %54 = vector.broadcast %7 : vector<1x32xf32> to vector<16x32xf32>
    %55 = arith.addf %53, %54 : vector<16x32xf32>
    %56 = math.tanh %55 : vector<16x32xf32>
    %57 = vector.shape_cast %30 : vector<16x8x32xbf16> to vector<128x32xbf16>
    %58 = arith.extf %30 : vector<16x8x32xbf16> to vector<16x8x32xf32>
    %cst_71 = arith.constant dense<0.000000e+00> : vector<16x32xf32>
    %59 = vector.multi_reduction <add>, %58, %cst_71 [1] : vector<16x8x32xf32> to vector<16x32xf32>
    %cst_72 = arith.constant 1.250000e-01 : f32
    %60 = vector.broadcast %cst_72 : f32 to vector<16x32xf32>
    %61 = arith.mulf %59, %60 : vector<16x32xf32>
    %62 = arith.truncf %61 : vector<16x32xf32> to vector<16x32xbf16>
    %cst_73 = arith.constant dense<0.000000e+00> : vector<16x16xf32>
    %63 = tpu.matmul %62, %8, %cst_73 {dimension_numbers = #tpu.dot_dimension_numbers<[1], [0], [0], [1], [0, 0, 1, 1], [], []>} : vector<16x32xbf16>, vector<32x16xbf16>, vector<16x16xf32> -> vector<16x16xf32>
    %cst_74 = arith.constant dense<0.000000e+00> : vector<16x16xf32>
    %64 = tpu.matmul %31, %9, %cst_74 {dimension_numbers = #tpu.dot_dimension_numbers<[1], [0], [0], [1], [0, 0, 1, 1], [], []>} : vector<16x32xbf16>, vector<32x16xbf16>, vector<16x16xf32> -> vector<16x16xf32>
    %65 = arith.addf %63, %64 : vector<16x16xf32>
    %66 = vector.broadcast %10 : vector<1x16xf32> to vector<16x16xf32>
    %67 = arith.addf %65, %66 : vector<16x16xf32>
    %cst_75 = arith.constant 0.000000e+00 : f32
    %68 = vector.broadcast %cst_75 : f32 to vector<16x16xf32>
    %69 = arith.maximumf %67, %68 : vector<16x16xf32>
    %70 = arith.truncf %69 : vector<16x16xf32> to vector<16x16xbf16>
    %cst_76 = arith.constant dense<0.000000e+00> : vector<16x3xf32>
    %71 = tpu.matmul %70, %11, %cst_76 {dimension_numbers = #tpu.dot_dimension_numbers<[1], [0], [0], [1], [0, 0, 1, 1], [], []>} : vector<16x16xbf16>, vector<16x3xbf16>, vector<16x3xf32> -> vector<16x3xf32>
    %72 = vector.broadcast %12 : vector<1x3xf32> to vector<16x3xf32>
    %73 = arith.addf %71, %72 : vector<16x3xf32>
    %cst_77 = arith.constant dense<0xFF800000> : vector<16xf32>
    %74 = vector.multi_reduction <maximumf>, %73, %cst_77 [1] : vector<16x3xf32> to vector<16xf32>
    %75 = vector.shape_cast %74 : vector<16xf32> to vector<16x1xf32>
    %76 = vector.broadcast %75 : vector<16x1xf32> to vector<16x3xf32>
    %77 = arith.subf %73, %76 : vector<16x3xf32>
    %78 = math.exp %77 : vector<16x3xf32>
    %cst_78 = arith.constant dense<0.000000e+00> : vector<16xf32>
    %79 = vector.multi_reduction <add>, %78, %cst_78 [1] : vector<16x3xf32> to vector<16xf32>
    %80 = vector.shape_cast %79 : vector<16xf32> to vector<16x1xf32>
    %81 = vector.broadcast %80 : vector<16x1xf32> to vector<16x3xf32>
    %82 = arith.divf %78, %81 : vector<16x3xf32>
    %cst_79 = arith.constant dense<0.000000e+00> : vector<128x32xf32>
    %83 = tpu.matmul %57, %13, %cst_79 {dimension_numbers = #tpu.dot_dimension_numbers<[1], [0], [0], [1], [0, 0, 1, 1], [], []>} : vector<128x32xbf16>, vector<32x32xbf16>, vector<128x32xf32> -> vector<128x32xf32>
    %84 = vector.broadcast %14 : vector<1x32xf32> to vector<128x32xf32>
    %85 = arith.addf %83, %84 : vector<128x32xf32>
    %cst_80 = arith.constant dense<0.000000e+00> : vector<128x32xf32>
    %86 = tpu.matmul %57, %15, %cst_80 {dimension_numbers = #tpu.dot_dimension_numbers<[1], [0], [0], [1], [0, 0, 1, 1], [], []>} : vector<128x32xbf16>, vector<32x32xbf16>, vector<128x32xf32> -> vector<128x32xf32>
    %87 = vector.broadcast %16 : vector<1x32xf32> to vector<128x32xf32>
    %88 = arith.addf %86, %87 : vector<128x32xf32>
    %89 = arith.truncf %40 : vector<16x32xf32> to vector<16x32xbf16>
    %90 = vector.shape_cast %89 : vector<16x32xbf16> to vector<16x1x32xbf16>
    %91 = vector.broadcast %90 : vector<16x1x32xbf16> to vector<16x8x32xbf16>
    %92 = arith.mulf %30, %91 : vector<16x8x32xbf16>
    %93 = vector.shape_cast %92 : vector<16x8x32xbf16> to vector<128x32xbf16>
    %cst_81 = arith.constant dense<0.000000e+00> : vector<128x32xf32>
    %94 = tpu.matmul %93, %17, %cst_81 {dimension_numbers = #tpu.dot_dimension_numbers<[1], [0], [0], [1], [0, 0, 1, 1], [], []>} : vector<128x32xbf16>, vector<32x32xbf16>, vector<128x32xf32> -> vector<128x32xf32>
    %95 = vector.broadcast %18 : vector<1x32xf32> to vector<128x32xf32>
    %96 = arith.addf %94, %95 : vector<128x32xf32>
    %97 = vector.extract_strided_slice %82 {offsets = [0, 0], sizes = [16, 1], strides = [1, 1]} : vector<16x3xf32> to vector<16x1xf32>
    %98 = vector.extract_strided_slice %82 {offsets = [0, 1], sizes = [16, 1], strides = [1, 1]} : vector<16x3xf32> to vector<16x1xf32>
    %99 = vector.extract_strided_slice %82 {offsets = [0, 2], sizes = [16, 1], strides = [1, 1]} : vector<16x3xf32> to vector<16x1xf32>
    %100 = vector.shape_cast %85 : vector<128x32xf32> to vector<16x8x32xf32>
    %101 = arith.extf %30 : vector<16x8x32xbf16> to vector<16x8x32xf32>
    %102 = arith.addf %100, %101 : vector<16x8x32xf32>
    %103 = vector.shape_cast %97 : vector<16x1xf32> to vector<16x1x1xf32>
    %104 = vector.broadcast %103 : vector<16x1x1xf32> to vector<16x8x32xf32>
    %105 = arith.mulf %102, %104 : vector<16x8x32xf32>
    %106 = vector.shape_cast %96 : vector<128x32xf32> to vector<16x8x32xf32>
    %107 = vector.shape_cast %98 : vector<16x1xf32> to vector<16x1x1xf32>
    %108 = vector.broadcast %107 : vector<16x1x1xf32> to vector<16x8x32xf32>
    %109 = arith.mulf %106, %108 : vector<16x8x32xf32>
    %110 = arith.addf %105, %109 : vector<16x8x32xf32>
    %111 = vector.shape_cast %88 : vector<128x32xf32> to vector<16x8x32xf32>
    %112 = vector.broadcast %99 : vector<16x1xf32> to vector<16x32xf32>
    %113 = arith.mulf %52, %112 : vector<16x32xf32>
    %114 = vector.shape_cast %113 : vector<16x32xf32> to vector<16x1x32xf32>
    %115 = vector.broadcast %114 : vector<16x1x32xf32> to vector<16x8x32xf32>
    %116 = arith.mulf %111, %115 : vector<16x8x32xf32>
    %117 = arith.addf %110, %116 : vector<16x8x32xf32>
    %118 = arith.truncf %117 : vector<16x8x32xf32> to vector<16x8x32xbf16>
    %c0_82 = arith.constant 0 : index
    %c0_83 = arith.constant 0 : index
    %c0_84 = arith.constant 0 : index
    %119 = vector.load %arg34[%c0_82, %c0_83, %c0_84] : memref<16x8x32xbf16, #tpu.memory_space<vmem>>, vector<16x8x32xbf16>
    tpu.vector_store %arg34[%c0_82, %c0_83, %c0_84], %118 {strides = array<i32>} : memref<16x8x32xbf16, #tpu.memory_space<vmem>>, vector<16x8x32xbf16>,
    %120 = vector.shape_cast %118 : vector<16x8x32xbf16> to vector<128x32xbf16>
    %121 = arith.extf %118 : vector<16x8x32xbf16> to vector<16x8x32xf32>
    %cst_85 = arith.constant dense<0.000000e+00> : vector<16x32xf32>
    %122 = vector.multi_reduction <add>, %121, %cst_85 [1] : vector<16x8x32xf32> to vector<16x32xf32>
    %cst_86 = arith.constant 1.250000e-01 : f32
    %123 = vector.broadcast %cst_86 : f32 to vector<16x32xf32>
    %124 = arith.mulf %122, %123 : vector<16x32xf32>
    %125 = arith.truncf %124 : vector<16x32xf32> to vector<16x32xbf16>
    %cst_87 = arith.constant dense<0.000000e+00> : vector<16x16xf32>
    %126 = tpu.matmul %125, %19, %cst_87 {dimension_numbers = #tpu.dot_dimension_numbers<[1], [0], [0], [1], [0, 0, 1, 1], [], []>} : vector<16x32xbf16>, vector<32x16xbf16>, vector<16x16xf32> -> vector<16x16xf32>
    %cst_88 = arith.constant dense<0.000000e+00> : vector<16x16xf32>
    %127 = tpu.matmul %31, %20, %cst_88 {dimension_numbers = #tpu.dot_dimension_numbers<[1], [0], [0], [1], [0, 0, 1, 1], [], []>} : vector<16x32xbf16>, vector<32x16xbf16>, vector<16x16xf32> -> vector<16x16xf32>
    %128 = arith.addf %126, %127 : vector<16x16xf32>
    %129 = vector.broadcast %21 : vector<1x16xf32> to vector<16x16xf32>
    %130 = arith.addf %128, %129 : vector<16x16xf32>
    %cst_89 = arith.constant 0.000000e+00 : f32
    %131 = vector.broadcast %cst_89 : f32 to vector<16x16xf32>
    %132 = arith.maximumf %130, %131 : vector<16x16xf32>
    %133 = arith.truncf %132 : vector<16x16xf32> to vector<16x16xbf16>
    %cst_90 = arith.constant dense<0.000000e+00> : vector<16x3xf32>
    %134 = tpu.matmul %133, %22, %cst_90 {dimension_numbers = #tpu.dot_dimension_numbers<[1], [0], [0], [1], [0, 0, 1, 1], [], []>} : vector<16x16xbf16>, vector<16x3xbf16>, vector<16x3xf32> -> vector<16x3xf32>
    %135 = vector.broadcast %23 : vector<1x3xf32> to vector<16x3xf32>
    %136 = arith.addf %134, %135 : vector<16x3xf32>
    %cst_91 = arith.constant dense<0xFF800000> : vector<16xf32>
    %137 = vector.multi_reduction <maximumf>, %136, %cst_91 [1] : vector<16x3xf32> to vector<16xf32>
    %138 = vector.shape_cast %137 : vector<16xf32> to vector<16x1xf32>
    %139 = vector.broadcast %138 : vector<16x1xf32> to vector<16x3xf32>
    %140 = arith.subf %136, %139 : vector<16x3xf32>
    %141 = math.exp %140 : vector<16x3xf32>
    %cst_92 = arith.constant dense<0.000000e+00> : vector<16xf32>
    %142 = vector.multi_reduction <add>, %141, %cst_92 [1] : vector<16x3xf32> to vector<16xf32>
    %143 = vector.shape_cast %142 : vector<16xf32> to vector<16x1xf32>
    %144 = vector.broadcast %143 : vector<16x1xf32> to vector<16x3xf32>
    %145 = arith.divf %141, %144 : vector<16x3xf32>
    %cst_93 = arith.constant dense<0.000000e+00> : vector<128x32xf32>
    %146 = tpu.matmul %120, %24, %cst_93 {dimension_numbers = #tpu.dot_dimension_numbers<[1], [0], [0], [1], [0, 0, 1, 1], [], []>} : vector<128x32xbf16>, vector<32x32xbf16>, vector<128x32xf32> -> vector<128x32xf32>
    %147 = vector.broadcast %25 : vector<1x32xf32> to vector<128x32xf32>
    %148 = arith.addf %146, %147 : vector<128x32xf32>
    %cst_94 = arith.constant dense<0.000000e+00> : vector<128x32xf32>
    %149 = tpu.matmul %120, %26, %cst_94 {dimension_numbers = #tpu.dot_dimension_numbers<[1], [0], [0], [1], [0, 0, 1, 1], [], []>} : vector<128x32xbf16>, vector<32x32xbf16>, vector<128x32xf32> -> vector<128x32xf32>
    %150 = vector.broadcast %27 : vector<1x32xf32> to vector<128x32xf32>
    %151 = arith.addf %149, %150 : vector<128x32xf32>
    %152 = arith.truncf %48 : vector<16x32xf32> to vector<16x32xbf16>
    %153 = vector.shape_cast %152 : vector<16x32xbf16> to vector<16x1x32xbf16>
    %154 = vector.broadcast %153 : vector<16x1x32xbf16> to vector<16x8x32xbf16>
    %155 = arith.mulf %118, %154 : vector<16x8x32xbf16>
    %156 = vector.shape_cast %155 : vector<16x8x32xbf16> to vector<128x32xbf16>
    %cst_95 = arith.constant dense<0.000000e+00> : vector<128x32xf32>
    %157 = tpu.matmul %156, %28, %cst_95 {dimension_numbers = #tpu.dot_dimension_numbers<[1], [0], [0], [1], [0, 0, 1, 1], [], []>} : vector<128x32xbf16>, vector<32x32xbf16>, vector<128x32xf32> -> vector<128x32xf32>
    %158 = vector.broadcast %29 : vector<1x32xf32> to vector<128x32xf32>
    %159 = arith.addf %157, %158 : vector<128x32xf32>
    %160 = vector.extract_strided_slice %145 {offsets = [0, 0], sizes = [16, 1], strides = [1, 1]} : vector<16x3xf32> to vector<16x1xf32>
    %161 = vector.extract_strided_slice %145 {offsets = [0, 1], sizes = [16, 1], strides = [1, 1]} : vector<16x3xf32> to vector<16x1xf32>
    %162 = vector.extract_strided_slice %145 {offsets = [0, 2], sizes = [16, 1], strides = [1, 1]} : vector<16x3xf32> to vector<16x1xf32>
    %163 = vector.shape_cast %148 : vector<128x32xf32> to vector<16x8x32xf32>
    %164 = arith.extf %118 : vector<16x8x32xbf16> to vector<16x8x32xf32>
    %165 = arith.addf %163, %164 : vector<16x8x32xf32>
    %166 = vector.shape_cast %160 : vector<16x1xf32> to vector<16x1x1xf32>
    %167 = vector.broadcast %166 : vector<16x1x1xf32> to vector<16x8x32xf32>
    %168 = arith.mulf %165, %167 : vector<16x8x32xf32>
    %169 = vector.shape_cast %159 : vector<128x32xf32> to vector<16x8x32xf32>
    %170 = vector.shape_cast %161 : vector<16x1xf32> to vector<16x1x1xf32>
    %171 = vector.broadcast %170 : vector<16x1x1xf32> to vector<16x8x32xf32>
    %172 = arith.mulf %169, %171 : vector<16x8x32xf32>
    %173 = arith.addf %168, %172 : vector<16x8x32xf32>
    %174 = vector.shape_cast %151 : vector<128x32xf32> to vector<16x8x32xf32>
    %175 = vector.broadcast %162 : vector<16x1xf32> to vector<16x32xf32>
    %176 = arith.mulf %56, %175 : vector<16x32xf32>
    %177 = vector.shape_cast %176 : vector<16x32xf32> to vector<16x1x32xf32>
    %178 = vector.broadcast %177 : vector<16x1x32xf32> to vector<16x8x32xf32>
    %179 = arith.mulf %174, %178 : vector<16x8x32xf32>
    %180 = arith.addf %173, %179 : vector<16x8x32xf32>
    %181 = arith.truncf %180 : vector<16x8x32xf32> to vector<16x8x32xbf16>
    %c0_96 = arith.constant 0 : index
    %c0_97 = arith.constant 0 : index
    %c0_98 = arith.constant 0 : index
    %182 = vector.load %arg35[%c0_96, %c0_97, %c0_98] : memref<16x8x32xbf16, #tpu.memory_space<vmem>>, vector<16x8x32xbf16>
    tpu.vector_store %arg35[%c0_96, %c0_97, %c0_98], %181 {strides = array<i32>} : memref<16x8x32xbf16, #tpu.memory_space<vmem>>, vector<16x8x32xbf16>,
    %183 = tpu.concatenate %82, %145 in 1 : vector<16x3xf32>, vector<16x3xf32> -> vector<16x6xf32>
    %c0_99 = arith.constant 0 : index
    %c0_100 = arith.constant 0 : index
    %184 = vector.load %arg36[%c0_99, %c0_100] : memref<16x6xf32, #tpu.memory_space<vmem>>, vector<16x6xf32>
    tpu.vector_store %arg36[%c0_99, %c0_100], %183 {strides = array<i32>} : memref<16x6xf32, #tpu.memory_space<vmem>>, vector<16x6xf32>,
    return
  }
  func.func @transform_0(%arg0: i32) -> (i32, i32, i32) {
    %c0_i32 = arith.constant 0 : i32
    %c0_i32_0 = arith.constant 0 : i32
    %c0_i32_1 = arith.constant 0 : i32
    return %arg0, %c0_i32, %c0_i32_0 : i32, i32, i32
  }
  func.func @transform_1(%arg0: i32) -> (i32, i32) {
    %c0_i32 = arith.constant 0 : i32
    %c0_i32_0 = arith.constant 0 : i32
    return %arg0, %c0_i32 : i32, i32
  }
  func.func @transform_2(%arg0: i32) -> (i32, i32) {
    %c0_i32 = arith.constant 0 : i32
    %c0_i32_0 = arith.constant 0 : i32
    return %arg0, %c0_i32 : i32, i32
  }
  func.func @transform_3(%arg0: i32) -> (i32, i32) {
    %c0_i32 = arith.constant 0 : i32
    %c0_i32_0 = arith.constant 0 : i32
    %c0_i32_1 = arith.constant 0 : i32
    return %c0_i32, %c0_i32_0 : i32, i32
  }
  func.func @transform_4(%arg0: i32) -> (i32, i32) {
    %c0_i32 = arith.constant 0 : i32
    %c0_i32_0 = arith.constant 0 : i32
    %c0_i32_1 = arith.constant 0 : i32
    return %c0_i32, %c0_i32_0 : i32, i32
  }
  func.func @transform_5(%arg0: i32) -> (i32, i32) {
    %c0_i32 = arith.constant 0 : i32
    %c0_i32_0 = arith.constant 0 : i32
    %c0_i32_1 = arith.constant 0 : i32
    return %c0_i32, %c0_i32_0 : i32, i32
  }
  func.func @transform_6(%arg0: i32) -> (i32, i32) {
    %c0_i32 = arith.constant 0 : i32
    %c0_i32_0 = arith.constant 0 : i32
    %c0_i32_1 = arith.constant 0 : i32
    return %c0_i32, %c0_i32_0 : i32, i32
  }
  func.func @transform_7(%arg0: i32) -> (i32, i32) {
    %c0_i32 = arith.constant 0 : i32
    %c0_i32_0 = arith.constant 0 : i32
    %c0_i32_1 = arith.constant 0 : i32
    return %c0_i32, %c0_i32_0 : i32, i32
  }
  func.func @transform_8(%arg0: i32) -> (i32, i32) {
    %c0_i32 = arith.constant 0 : i32
    %c0_i32_0 = arith.constant 0 : i32
    %c0_i32_1 = arith.constant 0 : i32
    return %c0_i32, %c0_i32_0 : i32, i32
  }
  func.func @transform_9(%arg0: i32) -> (i32, i32) {
    %c0_i32 = arith.constant 0 : i32
    %c0_i32_0 = arith.constant 0 : i32
    %c0_i32_1 = arith.constant 0 : i32
    return %c0_i32, %c0_i32_0 : i32, i32
  }
  func.func @transform_10(%arg0: i32) -> (i32, i32) {
    %c0_i32 = arith.constant 0 : i32
    %c0_i32_0 = arith.constant 0 : i32
    %c0_i32_1 = arith.constant 0 : i32
    return %c0_i32, %c0_i32_0 : i32, i32
  }
  func.func @transform_11(%arg0: i32) -> (i32, i32) {
    %c0_i32 = arith.constant 0 : i32
    %c0_i32_0 = arith.constant 0 : i32
    %c0_i32_1 = arith.constant 0 : i32
    return %c0_i32, %c0_i32_0 : i32, i32
  }
  func.func @transform_12(%arg0: i32) -> (i32, i32) {
    %c0_i32 = arith.constant 0 : i32
    %c0_i32_0 = arith.constant 0 : i32
    %c0_i32_1 = arith.constant 0 : i32
    return %c0_i32, %c0_i32_0 : i32, i32
  }
  func.func @transform_13(%arg0: i32) -> (i32, i32) {
    %c0_i32 = arith.constant 0 : i32
    %c0_i32_0 = arith.constant 0 : i32
    %c0_i32_1 = arith.constant 0 : i32
    return %c0_i32, %c0_i32_0 : i32, i32
  }
  func.func @transform_14(%arg0: i32) -> (i32, i32) {
    %c0_i32 = arith.constant 0 : i32
    %c0_i32_0 = arith.constant 0 : i32
    %c0_i32_1 = arith.constant 0 : i32
    return %c0_i32, %c0_i32_0 : i32, i32
  }
  func.func @transform_15(%arg0: i32) -> (i32, i32) {
    %c0_i32 = arith.constant 0 : i32
    %c0_i32_0 = arith.constant 0 : i32
    %c0_i32_1 = arith.constant 0 : i32
    return %c0_i32, %c0_i32_0 : i32, i32
  }
  func.func @transform_16(%arg0: i32) -> (i32, i32) {
    %c0_i32 = arith.constant 0 : i32
    %c0_i32_0 = arith.constant 0 : i32
    %c0_i32_1 = arith.constant 0 : i32
    return %c0_i32, %c0_i32_0 : i32, i32
  }
  func.func @transform_17(%arg0: i32) -> (i32, i32) {
    %c0_i32 = arith.constant 0 : i32
    %c0_i32_0 = arith.constant 0 : i32
    %c0_i32_1 = arith.constant 0 : i32
    return %c0_i32, %c0_i32_0 : i32, i32
  }
  func.func @transform_18(%arg0: i32) -> (i32, i32) {
    %c0_i32 = arith.constant 0 : i32
    %c0_i32_0 = arith.constant 0 : i32
    %c0_i32_1 = arith.constant 0 : i32
    return %c0_i32, %c0_i32_0 : i32, i32
  }
  func.func @transform_19(%arg0: i32) -> (i32, i32) {
    %c0_i32 = arith.constant 0 : i32
    %c0_i32_0 = arith.constant 0 : i32
    %c0_i32_1 = arith.constant 0 : i32
    return %c0_i32, %c0_i32_0 : i32, i32
  }
  func.func @transform_20(%arg0: i32) -> (i32, i32) {
    %c0_i32 = arith.constant 0 : i32
    %c0_i32_0 = arith.constant 0 : i32
    %c0_i32_1 = arith.constant 0 : i32
    return %c0_i32, %c0_i32_0 : i32, i32
  }
  func.func @transform_21(%arg0: i32) -> (i32, i32) {
    %c0_i32 = arith.constant 0 : i32
    %c0_i32_0 = arith.constant 0 : i32
    %c0_i32_1 = arith.constant 0 : i32
    return %c0_i32, %c0_i32_0 : i32, i32
  }
  func.func @transform_22(%arg0: i32) -> (i32, i32) {
    %c0_i32 = arith.constant 0 : i32
    %c0_i32_0 = arith.constant 0 : i32
    %c0_i32_1 = arith.constant 0 : i32
    return %c0_i32, %c0_i32_0 : i32, i32
  }
  func.func @transform_23(%arg0: i32) -> (i32, i32) {
    %c0_i32 = arith.constant 0 : i32
    %c0_i32_0 = arith.constant 0 : i32
    %c0_i32_1 = arith.constant 0 : i32
    return %c0_i32, %c0_i32_0 : i32, i32
  }
  func.func @transform_24(%arg0: i32) -> (i32, i32) {
    %c0_i32 = arith.constant 0 : i32
    %c0_i32_0 = arith.constant 0 : i32
    %c0_i32_1 = arith.constant 0 : i32
    return %c0_i32, %c0_i32_0 : i32, i32
  }
  func.func @transform_25(%arg0: i32) -> (i32, i32) {
    %c0_i32 = arith.constant 0 : i32
    %c0_i32_0 = arith.constant 0 : i32
    %c0_i32_1 = arith.constant 0 : i32
    return %c0_i32, %c0_i32_0 : i32, i32
  }
  func.func @transform_26(%arg0: i32) -> (i32, i32) {
    %c0_i32 = arith.constant 0 : i32
    %c0_i32_0 = arith.constant 0 : i32
    %c0_i32_1 = arith.constant 0 : i32
    return %c0_i32, %c0_i32_0 : i32, i32
  }
  func.func @transform_27(%arg0: i32) -> (i32, i32) {
    %c0_i32 = arith.constant 0 : i32
    %c0_i32_0 = arith.constant 0 : i32
    %c0_i32_1 = arith.constant 0 : i32
    return %c0_i32, %c0_i32_0 : i32, i32
  }
  func.func @transform_28(%arg0: i32) -> (i32, i32) {
    %c0_i32 = arith.constant 0 : i32
    %c0_i32_0 = arith.constant 0 : i32
    %c0_i32_1 = arith.constant 0 : i32
    return %c0_i32, %c0_i32_0 : i32, i32
  }
  func.func @transform_29(%arg0: i32) -> (i32, i32) {
    %c0_i32 = arith.constant 0 : i32
    %c0_i32_0 = arith.constant 0 : i32
    %c0_i32_1 = arith.constant 0 : i32
    return %c0_i32, %c0_i32_0 : i32, i32
  }
  func.func @transform_30(%arg0: i32) -> (i32, i32) {
    %c0_i32 = arith.constant 0 : i32
    %c0_i32_0 = arith.constant 0 : i32
    %c0_i32_1 = arith.constant 0 : i32
    return %c0_i32, %c0_i32_0 : i32, i32
  }
  func.func @transform_31(%arg0: i32) -> (i32, i32) {
    %c0_i32 = arith.constant 0 : i32
    %c0_i32_0 = arith.constant 0 : i32
    %c0_i32_1 = arith.constant 0 : i32
    return %c0_i32, %c0_i32_0 : i32, i32
  }
  func.func @transform_32(%arg0: i32) -> (i32, i32) {
    %c0_i32 = arith.constant 0 : i32
    %c0_i32_0 = arith.constant 0 : i32
    %c0_i32_1 = arith.constant 0 : i32
    return %c0_i32, %c0_i32_0 : i32, i32
  }
  func.func @transform_33(%arg0: i32) -> (i32, i32, i32) {
    %c0_i32 = arith.constant 0 : i32
    %c0_i32_0 = arith.constant 0 : i32
    %c0_i32_1 = arith.constant 0 : i32
    return %arg0, %c0_i32, %c0_i32_0 : i32, i32, i32
  }
  func.func @transform_34(%arg0: i32) -> (i32, i32, i32) {
    %c0_i32 = arith.constant 0 : i32
    %c0_i32_0 = arith.constant 0 : i32
    %c0_i32_1 = arith.constant 0 : i32
    return %arg0, %c0_i32, %c0_i32_0 : i32, i32, i32
  }
  func.func @transform_35(%arg0: i32) -> (i32, i32) {
    %c0_i32 = arith.constant 0 : i32
    %c0_i32_0 = arith.constant 0 : i32
    return %arg0, %c0_i32 : i32, i32
  }
}

</mosaic_0001>

<bundles_post_ra>
// kernel: tpu_custom_call.1
= control target key start
LH: loop header
LB: loop body
LE: loop exit
PB: predicated region body
PF: predicated region fallthrough
CT: control target
= control target key end

     0   :  { %s6829_s6 = smov 1   ;;  %s6830_s10 = smov 2   ;;  %s9004_s0 = inlined_call_operand.smem [shape: u32[36], index: -1, kind: input, shape index: {}] }
   0x1   :  { %s6897_s5 = sld [smem:[%s9004_s0]]   ;;  %s6831_s14 = smov 3  }
   0x2   :  { %s6902_s9 = sld [smem:[%s9004_s0 + %s6829_s6]]   ;;  %s6832_s18 = smov 4  }
   0x3   :  { %s6907_s13 = sld [smem:[%s9004_s0 + %s6830_s10]]   ;;  %s6833_s22 = smov 5  }
   0x4   :  { %s6912_s17 = sld [smem:[%s9004_s0 + %s6831_s14]]   ;;  %s6834_s26 = smov 6  }
   0x5   :  { %s6917_s21 = sld [smem:[%s9004_s0 + %s6832_s18]]   ;;  %s6835_s30 = smov 7  }
   0x6   :  { %s6922_s25 = sld [smem:[%s9004_s0 + %s6833_s22]]   ;;  %s6836_s4 = smov 8  }
   0x7   :  { %9098 = sst [smem:[#allocation34_spill]] %s6897_s5  ;;  %s6837_s10 = smov 9  }
   0x8   :  { %9099 = sst [smem:[#allocation35_spill]] %s6902_s9  ;;  %s6838_s15 = smov 10  }
   0x9   :  { %9100 = sst [smem:[#allocation36_spill]] %s6907_s13  ;;  %s6839_s20 = smov 11  }
   0xa   :  { %s6927_s29 = sld [smem:[%s9004_s0 + %s6834_s26]]   ;;  %s6840_s26 = smov 12  }
   0xb   :  { %s6932_s3 = sld [smem:[%s9004_s0 + %s6835_s30]]   ;;  %s6841_s1 = smov 13  }
   0xc   :  { %9101 = sst [smem:[#allocation37_spill]] %s6922_s25  ;;  %s6842_s7 = smov 14  }
   0xd   :  { %s6937_s8 = sld [smem:[%s9004_s0 + %s6836_s4]]   ;;  %s6844_s22 = smov 16  }
   0xe   :  { %s6942_s14 = sld [smem:[%s9004_s0 + %s6837_s10]]   ;;  %s6845_s28 = smov 17  }
   0xf   :  { %s6947_s19 = sld [smem:[%s9004_s0 + %s6838_s15]]   ;;  %s6843_s15 = smov 15  }
  0x10   :  { %s6952_s24 = sld [smem:[%s9004_s0 + %s6839_s20]]  }
  0x11   :  { %9102 = sst [smem:[#allocation38_spill]] %s6932_s3 }
  0x12   :  { %s6957_s30 = sld [smem:[%s9004_s0 + %s6840_s26]]  }
  0x13   :  { %9103 = sst [smem:[#allocation39_spill]] %s6937_s8 }
  0x14   :  { %9104 = sst [smem:[#allocation40_spill]] %s6942_s14 }
  0x15   :  { %9105 = sst [smem:[#allocation41_spill]] %s6947_s19 }
  0x16   :  { %9106 = sst [smem:[#allocation42_spill]] %s6952_s24 }
  0x17   :  { %s6962_s6 = sld [smem:[%s9004_s0 + %s6841_s1]]  }
  0x18   :  { %9107 = sst [smem:[#allocation43_spill]] %s6957_s30 }
  0x19   :  { %s6967_s12 = sld [smem:[%s9004_s0 + %s6842_s7]]   ;;  %s6846_s7 = smov 18  }
  0x1a   :  { %s6972_s20 = sld [smem:[%s9004_s0 + %s6843_s15]]   ;;  %s6847_s15 = smov 19  }
  0x1b   :  { %s6977_s27 = sld [smem:[%s9004_s0 + %s6844_s22]]   ;;  %s6848_s22 = smov 20  }
  0x1c   :  { %s6982_s4 = sld [smem:[%s9004_s0 + %s6845_s28]]   ;;  %s6849_s28 = smov 21  }
  0x1d   :  { %9108 = sst [smem:[#allocation44_spill]] %s6962_s6 }
  0x1e   :  { %s6987_s8 = sld [smem:[%s9004_s0 + %s6846_s7]]   ;;  %s6850_s7 = smov 22  }
  0x1f   :  { %9109 = sst [smem:[#allocation45_spill]] %s6967_s12 }
  0x20   :  { %s6992_s12 = sld [smem:[%s9004_s0 + %s6847_s15]]   ;;  %s6851_s15 = smov 23  }
  0x21   :  { %9110 = sst [smem:[#allocation46_spill]] %s6977_s27 }
  0x22   :  { %9111 = sst [smem:[#allocation47_spill]] %s6982_s4 }
  0x23   :  { %s6997_s27 = sld [smem:[%s9004_s0 + %s6848_s22]]   ;;  %s6852_s22 = smov 24  }
  0x24   :  { %9112 = sst [smem:[#allocation48_spill]] %s6987_s8 }
  0x25   :  { %s7002_s24 = sld [smem:[%s9004_s0 + %s6849_s28]]   ;;  %s6853_s28 = smov 25  }
  0x26   :  { %9113 = sst [smem:[#allocation49_spill]] %s6992_s12 }
  0x27   :  { %s7007_s8 = sld [smem:[%s9004_s0 + %s6850_s7]]   ;;  %s6854_s7 = smov 26  }
  0x28   :  { %s7012_s30 = sld [smem:[%s9004_s0 + %s6851_s15]]   ;;  %s6855_s15 = smov 27  }
  0x29   :  { %9114 = sst [smem:[#allocation50_spill]] %s6997_s27 }
  0x2a   :  { %s7017_s27 = sld [smem:[%s9004_s0 + %s6852_s22]]   ;;  %s6856_s22 = smov 28  }
  0x2b   :  { %s7022_s14 = sld [smem:[%s9004_s0 + %s6853_s28]]   ;;  %s6857_s28 = smov 29  }
  0x2c   :  { %s7037_s25 = sld [smem:[%s9004_s0 + %s6856_s22]]   ;;  %s6860_s22 = smov 32  }
  0x2d   :  { %9115 = sst [smem:[#allocation51_spill]] %s7007_s8 }
  0x2e   :  { %9116 = sst [smem:[#allocation52_spill]] %s7012_s30 }
  0x2f   :  { %s7027_s8 = sld [smem:[%s9004_s0 + %s6854_s7]]   ;;  %s6858_s7 = smov 30  }
  0x30   :  { %s7032_s30 = sld [smem:[%s9004_s0 + %s6855_s15]]   ;;  %s6859_s15 = smov 31  }
  0x31   :  { %9117 = sst [smem:[#allocation53_spill]] %s7022_s14 }
  0x32   :  { %9120 = sst [smem:[#allocation56_spill]] %s7037_s25 }
  0x33   :  { %s7042_s14 = sld [smem:[%s9004_s0 + %s6857_s28]]   ;;  %s6861_s28 = smov 33  }
  0x34   :  { %s7057_s25 = sld [smem:[%s9004_s0 + %s6860_s22]]  }
  0x35   :  { %9118 = sst [smem:[#allocation54_spill]] %s7027_s8 }
  0x36   :  { %9119 = sst [smem:[#allocation55_spill]] %s7032_s30 }
  0x37   :  { %s7047_s8 = sld [smem:[%s9004_s0 + %s6858_s7]]   ;;  %s6862_s7 = smov 34  }
  0x38   :  { %s7052_s30 = sld [smem:[%s9004_s0 + %s6859_s15]]   ;;  %s6863_s15 = smov 35  }
  0x39   :  { %9121 = sst [smem:[#allocation57_spill]] %s7042_s14 }
  0x3a   :  { %9123 = sst [smem:[#allocation59_spill]] %s7057_s25 }
  0x3b   :  { %s7062_s9 = sld [smem:[%s9004_s0 + %s6861_s28]]  }
  0x3c   :  { %s7072_s13 = sld [smem:[%s9004_s0 + %s6863_s15]]  }
  0x3d   :  { %9122 = sst [smem:[#allocation58_spill]] %s7047_s8 }
  0x3e   :  { %s7067_s8 = sld [smem:[%s9004_s0 + %s6862_s7]]  }
  0x42   :  { %9125 = sst [smem:[#allocation61_spill]] %s7072_s13 }
  0x44   :  { %9124 = sst [smem:[#allocation60_spill]] %s7067_s8 }
  0x45   :  { %77 = vsyncpa [#allocation3], 0 }
  0x46   :  { %79 = vsyncpa [#allocation3 + $0x1], 0 }
  0x47   :  { %80 = vsyncpa [#allocation6], 0 }
  0x48   :  { %81 = vsyncpa [#allocation9], 0 }
  0x49   :  { %82 = vsyncpa [#allocation12], 0 }
  0x4a   :  { %83 = vsyncpa [#allocation15], 0 }
  0x4b   :  { %84 = vsyncpa [#allocation18], 0 }
  0x4c   :  { %85 = vsyncpa [#allocation21], 0 }
  0x4d   :  { %86 = vsyncpa [#allocation4], 0 }
  0x4e   :  { %88 = vsyncpa [#allocation4 + $0x1], 0 }
  0x4f   :  { %89 = vsyncpa [#allocation24], 0 }
  0x50   :  { %91 = vsyncpa [#allocation24 + $0x1], 0  ;;  %s7074_s22 = smov 0   ;;  %s7076_s23 = smov 0  }
  0x51   :  { %s7078_s26 = smov 0   ;;  %s7080_s0 = smov 0  }
  0x52 LB: > { %s9126_s3 = sld [smem:[#allocation38_spill]]  ;;  %s6864_s28 = smov [#allocation5]   ;;  %s6819_s23 = sphi %s7076_s23, %s9317_s23   ;;  %s6815_s22 = sphi %s7074_s22, %s9316_s22   ;;  %s6827_s0 = sphi %s7080_s0, %s9319_s0   ;;  %s6823_s26 = sphi %s7078_s26, %s9318_s26  }
  0x53   : > { %s9127_s5 = sld [smem:[#allocation34_spill]]  ;;  %s904_s1 = sshll.u32 %s6864_s28, 4  ;;  %s905_s1 = int_to_ptr.vmem [resolvable:$true] %s904_s1 }
  0x54   : > { %s7095_s2 = sadd.s32 4294967295, %s6827_s0   ;;  %p5564_p0 = scmp.ge.s32.totalorder %s6827_s0, 1 }
  0x55   : > { %p9016_p1 = scmp.eq.s32.totalorder %s7095_s2, 0  ;;  %p888_p2 = scmp.lt.s32.totalorder %s6827_s0, 3 }
  0x56   : > { %s6865_s10 = smov [#allocation8]   ;;  %s6866_s15 = smov [#allocation11]  }
  0x57   : > { %p7100_p3 = pnand %p5564_p0, %p888_p2  ;;  %s938_s11 = sshll.u32 %s6865_s10, 4  ;;  %s7107_s11 = int_to_ptr.vmem [resolvable:$true] %s938_s11 }
  0x58   : > { %s969_s16 = sshll.u32 %s6866_s15, 4  ;;  %s6867_s28 = smov [#allocation14]   ;;  %s7115_s16 = int_to_ptr.vmem [resolvable:$true] %s969_s16 }
  0x59   : > { %s9128_s7 = scalar_select %p7100_p3, 1, 0 }
  0x5a   : > { %p6116_p5 = pneg %p7100_p3  ;;  %s7117_s8 = sshll.u32 %s6867_s28, 4  ;;  %s998_s8 = int_to_ptr.vmem [resolvable:$true] %s7117_s8 }
  0x5b   : > { %s6406_s10 = scalar_lea.vmem %s905_s1, 16  ;;  %s6413_s15 = scalar_lea.vmem %s905_s1, 32 }
  0x5c   : > { %p7111_p6 = pnand %p6116_p5, %p9016_p1  ;;  %p6407_p8 = scmp.ne.s32.totalorder %s905_s1, %s6406_s10 }
  0x5d   : > { %p6414_p11 = scmp.lt.s32.totalorder %s905_s1, %s905_s1  ;;  %p6415_p12 = scmp.lt.s32.totalorder %s6413_s15, %s6406_s10 }
  0x5e   : > { %p7121_p7 = pneg %p7111_p6 }
  0x5f   : > { %p6416_p13 = por %p6415_p12, %p6414_p11 }
  0x60   : > { %p6409_p9 = pnand %p6407_p8, %p7121_p7 }
  0x62   : > { %p6410_p10 = pneg %p6409_p9 }
  0x64   : > { %p6417_p0 = pnand %p6416_p13, %p6410_p10 }
  0x66   : > { %6420 = shalt.err (!%p6417_p0)
}
  0x67   : > { %6119 = dma.hbm_to_vmem [thread:$0]  (!%p7111_p6), %s6917_s21, 16, %s905_s1, [#allocation6]  }
  0x68   : > { %s6432_s28 = scalar_lea.vmem %s7107_s11, 16  ;;  %s6439_s25 = scalar_lea.vmem %s7107_s11, 32 }
  0x69   : > { %p6433_p2 = scmp.ne.s32.totalorder %s7107_s11, %s6432_s28  ;;  %p6440_p9 = scmp.lt.s32.totalorder %s7107_s11, %s7107_s11 }
  0x6a   : > { %p6441_p11 = scmp.lt.s32.totalorder %s6439_s25, %s6432_s28 }
  0x6b   : > { %p6435_p5 = pnand %p6433_p2, %p7121_p7 }
  0x6c   : > { %p6442_p10 = por %p6441_p11, %p6440_p9 }
  0x6d   : > { %p6436_p8 = pneg %p6435_p5 }
  0x6f   : > { %p6443_p12 = pnand %p6442_p10, %p6436_p8 }
  0x71   : > { %6446 = shalt.err (!%p6443_p12)
}
  0x72   : > { %s9131_s19 = sld [smem:[#allocation41_spill]]  ;;  %s6458_s1 = scalar_lea.vmem %s7115_s16, 16 }
  0x73   : > { %p6459_p13 = scmp.ne.s32.totalorder %s7115_s16, %s6458_s1  ;;  %s6465_s10 = scalar_lea.vmem %s7115_s16, 32 }
  0x74   : > { %p6466_p5 = scmp.lt.s32.totalorder %s7115_s16, %s7115_s16  ;;  %p6467_p8 = scmp.lt.s32.totalorder %s6465_s10, %s6458_s1 }
  0x75   : > { %p6461_p0 = pnand %p6459_p13, %p7121_p7 }
  0x76   : > { %p6468_p9 = por %p6467_p8, %p6466_p5 }
  0x77   : > { %p6462_p2 = pneg %p6461_p0 }
  0x78   : > { %6125 = dma.hbm_to_vmem [thread:$0]  (!%p7111_p6), %s9131_s19, 16, %s7107_s11, [#allocation9]  }
  0x79   : > { %p6469_p11 = pnand %p6468_p9, %p6462_p2 }
  0x7b   : > { %6472 = shalt.err (!%p6469_p11)
}
  0x7c   : > { %6131 = dma.hbm_to_vmem [thread:$0]  (!%p7111_p6), %s6972_s20, 16, %s7115_s16, [#allocation12]  }
  0x7d   : > { %s6868_s25 = smov [#allocation17]   ;;  %s6484_s15 = scalar_lea.vmem %s998_s8, 16 }
  0x7e   : > { %s1028_s11 = sshll.u32 %s6868_s25, 4  ;;  %p6485_p10 = scmp.ne.s32.totalorder %s998_s8, %s6484_s15  ;;  %s1029_s11 = int_to_ptr.vmem [resolvable:$true] %s1028_s11 }
  0x7f   : > { %s6491_s28 = scalar_lea.vmem %s998_s8, 32  ;;  %p6492_p0 = scmp.lt.s32.totalorder %s998_s8, %s998_s8 }
  0x80   : > { %p6487_p12 = pnand %p6485_p10, %p7121_p7  ;;  %p6493_p5 = scmp.lt.s32.totalorder %s6491_s28, %s6484_s15 }
  0x82   : > { %p6488_p13 = pneg %p6487_p12  ;;  %p6494_p2 = por %p6493_p5, %p6492_p0 }
  0x84   : > { %p6495_p8 = pnand %p6494_p2, %p6488_p13 }
  0x86   : > { %6498 = shalt.err (!%p6495_p8)
}
  0x87   : > { %s9132_s12 = sld [smem:[#allocation49_spill]]  ;;  %s6510_s16 = scalar_lea.vmem %s1029_s11, 16 }
  0x88   : > { %p6511_p9 = scmp.ne.s32.totalorder %s1029_s11, %s6510_s16  ;;  %s6517_s1 = scalar_lea.vmem %s1029_s11, 32 }
  0x89   : > { %p6518_p10 = scmp.lt.s32.totalorder %s1029_s11, %s1029_s11  ;;  %p6519_p12 = scmp.lt.s32.totalorder %s6517_s1, %s6510_s16 }
  0x8a   : > { %p6513_p11 = pnand %p6511_p9, %p7121_p7 }
  0x8b   : > { %p6520_p1 = por %p6519_p12, %p6518_p10 }
  0x8c   : > { %p6514_p4 = pneg %p6513_p11 }
  0x8d   : > { %6137 = dma.hbm_to_vmem [thread:$0]  (!%p7111_p6), %s9132_s12, 16, %s998_s8, [#allocation15]  }
  0x8e   : > { %p6521_p3 = pnand %p6520_p1, %p6514_p4 }
  0x90   : > { %6524 = shalt.err (!%p6521_p3)
}
  0x91   : > { %6143 = dma.hbm_to_vmem [thread:$0]  (!%p7111_p6), %s7017_s27, 16, %s1029_s11, [#allocation18]  }
  0x92   : > { %s6869_s10 = smov [#allocation7]   ;;  %s6870_s8 = smov [#allocation10]  }
  0x93   : > { %s918_s25 = sshll.u32 %s6869_s10, 4  ;;  %s955_s15 = sshll.u32 %s6870_s8, 4  ;;  %s919_s25 = int_to_ptr.vmem [resolvable:$true] %s918_s25  ;;  %s956_s15 = int_to_ptr.vmem [resolvable:$true] %s955_s15 }
  0x94   : > { %s6536_s28 = scalar_lea.vmem %s919_s25, 16  ;;  %s6543_s12 = scalar_lea.vmem %s919_s25, 32 }
  0x95   : > { %p6537_p13 = scmp.ne.s32.totalorder %s919_s25, %s6536_s28  ;;  %p6544_p2 = scmp.lt.s32.totalorder %s919_s25, %s919_s25 }
  0x96   : > { %p6545_p8 = scmp.lt.s32.totalorder %s6543_s12, %s6536_s28 }
  0x97   : > { %p6539_p0 = pnand %p6537_p13, %p7121_p7 }
  0x98   : > { %p6546_p1 = por %p6545_p8, %p6544_p2 }
  0x99   : > { %p6540_p5 = pneg %p6539_p0 }
  0x9b   : > { %p6547_p3 = pnand %p6546_p1, %p6540_p5 }
  0x9d   : > { %6550 = shalt.err (!%p6547_p3)
}
  0x9e   : > { %6122 = dma.hbm_to_vmem [thread:$0]  (!%p7111_p6), %s6927_s29, 16, %s919_s25, [#allocation6]  }
  0x9f   : > { %s6562_s11 = scalar_lea.vmem %s956_s15, 16  ;;  %s6569_s16 = scalar_lea.vmem %s956_s15, 32 }
  0xa0   : > { %p6563_p4 = scmp.ne.s32.totalorder %s956_s15, %s6562_s11  ;;  %p6570_p10 = scmp.lt.s32.totalorder %s956_s15, %s956_s15 }
  0xa1   : > { %p6571_p12 = scmp.lt.s32.totalorder %s6569_s16, %s6562_s11 }
  0xa2   : > { %p6565_p9 = pnand %p6563_p4, %p7121_p7 }
  0xa3   : > { %p6572_p13 = por %p6571_p12, %p6570_p10 }
  0xa4   : > { %p6566_p11 = pneg %p6565_p9 }
  0xa6   : > { %p6573_p0 = pnand %p6572_p13, %p6566_p11 }
  0xa8   : > { %6576 = shalt.err (!%p6573_p0)
}
  0xa9   : > { %s9133_s6 = sld [smem:[#allocation44_spill]]  ;;  %s6871_s12 = smov [#allocation13]  }
  0xaa   : > { %s983_s1 = sshll.u32 %s6871_s12, 4  ;;  %s6872_s10 = smov [#allocation16]   ;;  %s984_s1 = int_to_ptr.vmem [resolvable:$true] %s983_s1 }
  0xab   : > { %s1011_s25 = sshll.u32 %s6872_s10, 4  ;;  %s6588_s8 = scalar_lea.vmem %s984_s1, 16  ;;  %s1012_s25 = int_to_ptr.vmem [resolvable:$true] %s1011_s25 }
  0xac   : > { %p6589_p5 = scmp.ne.s32.totalorder %s984_s1, %s6588_s8  ;;  %s6595_s28 = scalar_lea.vmem %s984_s1, 32 }
  0xad   : > { %p6596_p1 = scmp.lt.s32.totalorder %s984_s1, %s984_s1  ;;  %p6597_p3 = scmp.lt.s32.totalorder %s6595_s28, %s6588_s8 }
  0xae   : > { %p6591_p2 = pnand %p6589_p5, %p7121_p7 }
  0xaf   : > { %6128 = dma.hbm_to_vmem [thread:$0]  (!%p7111_p6), %s9133_s6, 16, %s956_s15, [#allocation9]  }
  0xb0   : > { %p6592_p8 = pneg %p6591_p2  ;;  %p6598_p4 = por %p6597_p3, %p6596_p1 }
  0xb2   : > { %p6599_p9 = pnand %p6598_p4, %p6592_p8 }
  0xb4   : > { %6602 = shalt.err (!%p6599_p9)
}
  0xb5   : > { %s9134_s4 = sld [smem:[#allocation47_spill]]  ;;  %s6614_s15 = scalar_lea.vmem %s1012_s25, 16 }
  0xb6   : > { %p6615_p11 = scmp.ne.s32.totalorder %s1012_s25, %s6614_s15  ;;  %s6621_s11 = scalar_lea.vmem %s1012_s25, 32 }
  0xb7   : > { %p6622_p13 = scmp.lt.s32.totalorder %s1012_s25, %s1012_s25  ;;  %p6623_p0 = scmp.lt.s32.totalorder %s6621_s11, %s6614_s15 }
  0xb8   : > { %p6617_p10 = pnand %p6615_p11, %p7121_p7 }
  0xb9   : > { %p6624_p5 = por %p6623_p0, %p6622_p13 }
  0xba   : > { %p6618_p12 = pneg %p6617_p10 }
  0xbb   : > { %6134 = dma.hbm_to_vmem [thread:$0]  (!%p7111_p6), %s9134_s4, 16, %s984_s1, [#allocation12]  }
  0xbc   : > { %p6625_p2 = pnand %p6624_p5, %p6618_p12 }
  0xbe   : > { %6628 = shalt.err (!%p6625_p2)
}
  0xbf   : > { %6140 = dma.hbm_to_vmem [thread:$0]  (!%p7111_p6), %s7002_s24, 16, %s1012_s25, [#allocation15]  }
  0xc0   : > { %s6873_s16 = smov [#allocation19]  }
  0xc1   : > { %s1050_s12 = sshll.u32 %s6873_s16, 4  ;;  %s1051_s12 = int_to_ptr.vmem [resolvable:$true] %s1050_s12 }
  0xc2   : > { %s6640_s1 = scalar_lea.vmem %s1051_s12, 256  ;;  %p6648_p4 = scmp.lt.s32.totalorder %s1051_s12, %s1051_s12 }
  0xc3   : > { %p6641_p8 = scmp.ne.s32.totalorder %s1051_s12, %s6640_s1  ;;  %p6649_p9 = scmp.lt.s32.totalorder %s6640_s1, %s6640_s1 }
  0xc5   : > { %p6643_p1 = pnand %p6641_p8, %p7121_p7  ;;  %p6650_p11 = por %p6649_p9, %p6648_p4 }
  0xc7   : > { %p6644_p3 = pneg %p6643_p1 }
  0xc9   : > { %p6651_p10 = pnand %p6650_p11, %p6644_p3 }
  0xcb   : > { %6654 = shalt.err (!%p6651_p10)
}
  0xcc   : > { %s9018_s10 = smov 64   ;;  %s9135_s14 = sld [smem:[#allocation57_spill]] }
  0xcd   : > { %s9019_s8 = smov 4   ;;  %s6876_s25 = smov [#allocation20]  }
  0xce   : > { %s1066_s28 = sshll.u32 %s6876_s25, 4  ;;  %s1067_s28 = int_to_ptr.vmem [resolvable:$true] %s1066_s28 }
  0xcf   : > { %s6666_s15 = scalar_lea.vmem %s1067_s28, 256  ;;  %p6674_p5 = scmp.lt.s32.totalorder %s1067_s28, %s1067_s28 }
  0xd0   : > { %p6667_p12 = scmp.ne.s32.totalorder %s1067_s28, %s6666_s15  ;;  %p6675_p2 = scmp.lt.s32.totalorder %s6666_s15, %s6666_s15 }
  0xd2   : > { %6146 = dma.hbm_to_vmem [thread:$0]  (!%p7111_p6), %s9135_s14, 256, %s1051_s12, [#allocation18], %s9018_s10, %s9018_s10, %s9019_s8  }
  0xd3   : > { %p6669_p13 = pnand %p6667_p12, %p7121_p7  ;;  %p6676_p8 = por %p6675_p2, %p6674_p5 }
  0xd5   : > { %p6670_p0 = pneg %p6669_p13 }
  0xd7   : > { %p6677_p1 = pnand %p6676_p8, %p6670_p0 }
  0xd9   : > { %6680 = shalt.err (!%p6677_p1)
}
  0xda   : > { %6149 = dma.hbm_to_vmem [thread:$0]  (!%p7111_p6), %s7052_s30, 256, %s1067_s28, [#allocation21], %s9018_s10, %s9018_s10, %s9019_s8  }
  0xdb   : > { %s5563_s13 = sadd.s32 4294967294, %s6827_s0   ;;  %s7201_s18 = sadd.s32 1, %s6827_s0  }
  0xdc   : > { %s104_s11 = sadd.s32 1, %s6823_s26  ;;  %s101_s16 = ssub.s32 %s6827_s0, %s7201_s18 }
  0xdd   : > { %p111_p7 = scmp.ne.s32.totalorder %s6823_s26, %s6819_s23  ;;  %p102_p3 = scmp.eq.s32.totalorder %s101_s16, 0 }
  0xde   : > { %p112_p4 = scmp.eq.s32.totalorder %s6827_s0, 0  ;;  %p117_p9 = scmp.ne.s32.totalorder %s6819_s23, %s6815_s22 }
  0xdf   : > { %p823_p11 = scmp.eq.s32.totalorder %s7095_s2, 1  ;;  %p9136_p12 = scmp.eq.s32.totalorder %s7095_s2, 0 }
  0xe0   : > { %s7213_s12 = scalar_select %p102_p3, %s6823_s26, %s104_s11  }
  0xe1   : > { %p113_p10 = por %p112_p4, %p111_p7  ;;  %p7217_p13 = por %p9136_p12, %p117_p9 }
  0xe2   : > { %p7221_p6 = por %p823_p11, %p111_p7  ;;  %p829_p0 = scmp.eq.s32.totalorder %s5563_s13, 1 }
  0xe3   : > { %s9137_s1 = scalar_select %p7217_p13, 1, 0 }
  0xe4   : > { %s9138_s25 = scalar_select %p7221_p6, 1, 0 }
  0xe5   : > { %p6172_p5 = scmp.lt.s32.totalorder %s6827_s0, 2  ;;  %s1083_s28 = sand.u32 1, %s6823_s26  }
  0xe6   : > { %p7227_p2 = por %p829_p0, %p117_p9  ;;  %s5577_s11 = sshll.u32 %s1083_s28, 6 }
  0xe7   : > { %s5767_s16 = sshll.u32 %s6827_s0, 10  ;;  %s1087_s8 = scalar_lea.vmem [#allocation2], %s5577_s11 }
  0xe8   : > { %s9139_s15 = scalar_select %p7227_p2, 1, 0 }
  0xe9   : > { %s7233_s10 = scalar_lea.hbm %s9127_s5, %s5767_s16  ;;  %s1094_s4 = sshll.u32 %s1087_s8, 4  ;;  %s7239_s4 = int_to_ptr.vmem [resolvable:$true] %s1094_s4 }
  0xea   : > { %p7235_p8 = pnand %p6172_p5, %p113_p10  ;;  %s7241_s13 = scalar_lea.sflag [#allocation3], %s1083_s28 }
  0xeb   : > { %s6681_s14 = scalar_lea.hbm %s7233_s10, 1024  ;;  %s6686_s16 = scalar_lea.hbm %s9127_s5, 2048 }
  0xec   : > { %p6682_p1 = scmp.ne.s32.totalorder %s7233_s10, %s6681_s14  ;;  %p6683_p7 = pneg %p7235_p8 }
  0xed   : > { %p6687_p9 = scmp.lt.s32.totalorder %s7233_s10, %s9127_s5  ;;  %p6688_p11 = scmp.lt.s32.totalorder %s6686_s16, %s6681_s14 }
  0xee   : > { %p6684_p3 = pnand %p6683_p7, %p6682_p1 }
  0xef   : > { %p6689_p12 = por %p6688_p11, %p6687_p9 }
  0xf0   : > { %p6685_p4 = pneg %p6684_p3 }
  0xf2   : > { %p6690_p0 = pnand %p6689_p12, %p6685_p4 }
  0xf4   : > { %6693 = shalt.err (!%p6690_p0)
}
  0xf5   : > { %s6694_s8 = scalar_lea.vmem %s7239_s4, 1024  ;;  %s6877_s28 = smov [#allocation2]  }
  0xf6   : > { %p6695_p10 = scmp.ne.s32.totalorder %s7239_s4, %s6694_s8  ;;  %s6699_s11 = sshll.u32 %s6877_s28, 4  ;;  %s6700_s11 = int_to_ptr.vmem [resolvable:$false] %s6699_s11 }
  0xf7   : > { %s6701_s19 = scalar_lea.vmem %s6700_s11, 2048  ;;  %p6702_p6 = scmp.lt.s32.totalorder %s7239_s4, %s6700_s11 }
  0xf8   : > { %p6697_p5 = pnand %p6695_p10, %p6683_p7  ;;  %p6703_p1 = scmp.lt.s32.totalorder %s6701_s19, %s6694_s8 }
  0xfa   : > { %p6698_p2 = pneg %p6697_p5  ;;  %p6704_p3 = por %p6703_p1, %p6702_p6 }
  0xfc   : > { %p6705_p13 = pnand %p6704_p3, %p6698_p2 }
  0xfe   : > { %6708 = shalt.err (!%p6705_p13)
}
  0xff   : > { %s9141_s14 = smov 4   ;;  %s9142_s16 = smov 64  }
 0x100   : > { %6153 = dma.hbm_to_vmem [thread:$0]  (!%p7235_p8), %s7233_s10, 1024, %s7239_s4, %s7241_s13, %s9142_s16, %s9142_s16, %s9141_s14  }
 0x101   : > { %p9143_p7 = scmp.ne.s32.totalorder %s9128_s7, 0 }
 0x103   : > { %1124 = sbr.rel (%p9143_p7) target bundleno = 2289 (0x8f1), region = 152 }
 0x108   : > { %s7264_s28 = sand.u32 1, %s6819_s23   ;;  %p9144_p13 = scmp.ne.s32.totalorder %s9137_s1, 0 }
 0x109   : > { %s7267_s19 = sshll.u32 %s7264_s28, 6  ;;  %s1127_s6 = scalar_lea.sflag [#allocation3], %s7264_s28 }
 0x10a   : > { %s7271_s8 = scalar_lea.vmem [#allocation2], %s7267_s19 }
 0x10b   : > { %6778 = dma.done.wait (%p9144_p13), %s1127_s6, 1024  }
 0x10c   : > { %6780 = vsyncadd (%p9144_p13), %s1127_s6, 4294966272  ;;  %p9145_p6 = scmp.eq.s32.totalorder %s7095_s2, 0 }
 0x10e   : > { %6782 = dma.done.wait (%p9145_p6), [#allocation6], 32   ;;  %p9146_p2 = pmov %p9145_p6 }
 0x110   : > { %6784 = vsyncadd (%p9146_p2), [#allocation6], 4294967264  ;;  %p9147_p8 = pmov %p9146_p2 }
 0x111   : > { %p9148_p4 = pmov %p9146_p2 }
 0x112   : > { %6786 = dma.done.wait (%p9147_p8), [#allocation9], 32  }
 0x113   : > { %6788 = vsyncadd (%p9148_p4), [#allocation9], 4294967264  ;;  %p9149_p9 = pmov %p9146_p2 }
 0x114   : > { %p9150_p11 = pmov %p9146_p2 }
 0x115   : > { %6790 = dma.done.wait (%p9149_p9), [#allocation12], 32  }
 0x116   : > { %6792 = vsyncadd (%p9150_p11), [#allocation12], 4294967264  ;;  %p9151_p12 = pmov %p9146_p2 }
 0x117   : > { %p9152_p0 = pmov %p9146_p2 }
 0x118   : > { %6794 = dma.done.wait (%p9151_p12), [#allocation15], 32  }
 0x119   : > { %6796 = vsyncadd (%p9152_p0), [#allocation15], 4294967264  ;;  %p9153_p10 = pmov %p9152_p0 }
 0x11a   : > { %p9154_p5 = pmov %p9152_p0 }
 0x11b   : > { %6798 = dma.done.wait (%p9153_p10), [#allocation18], 272  }
 0x11c   : > { %6800 = vsyncadd (%p9154_p5), [#allocation18], 4294967024  ;;  %p9155_p1 = pmov %p9152_p0 }
 0x11d   : > { %p9156_p3 = pmov %p9152_p0 }
 0x11e   : > { %6802 = dma.done.wait (%p9155_p1), [#allocation21], 256  }
 0x11f   : > { %6804 = vsyncadd (%p9156_p3), [#allocation21], 4294967040  ;;  %s9157_s4 = sld [smem:[#allocation36_spill]]  ;;  %s5595_s7 = sshll.u32 %s7095_s2, 1  ;;  %v9039_v0 = vmov 0.0   ;;  %vm6879_vm0 = vmmov 0  }
 0x120   : > { %5866 = vmatprep.subr.bf16.mxu0 %v9039_v0  ;;  %s9158_s10 = sld [smem:[#allocation35_spill]]  ;;  %5874 = vmatprep.subr.bf16.mxu1 %v9039_v0  ;;  %p1283_p7 = scmp.lt.s32.totalorder %s5595_s7, 3  ;;  %v6314_v1 = vld [vmem:[%s6912_s17 + $0x8] sm:$0xff]   ;;  %v6316_v3 = vld [vmem:[%s6912_s17] sm:$0xff]   ;;  %vm1420_vm1 = vcmask 261120   ;;  %vm1923_vm2 = vcmask 1041409  }
 0x121   : > { %5870 = vmatprep.mubr.msk.bf16.mxu0 %vm6879_vm0, %v9039_v0  ;;  %s9159_s1 = sld [smem:[#allocation37_spill]]  ;;  %5878 = vmatprep.mubr.msk.bf16.mxu1 %vm6879_vm0, %v9039_v0  ;;  %v6315_v2 = vld [vmem:[%s9126_s3 + $0x8] sm:$0xff]   ;;  %v6317_v4 = vld [vmem:[%s9126_s3] sm:$0xff]   ;;  %v7356_v17 = vld [vmem:[%s7271_s8 + $0x10] sm:$0xf]  ;;  %vm1925_vm3 = vcmask 1042434  }
 0x122   : > { %s9321_s7 = smov (!%p1283_p7, %s5595_s7), 3  ;;  %s9160_s11 = sld [smem:[#allocation40_spill]]  ;;  %5867 = vmatpush3.bf16.msra.mxu0 %v6314_v1  ;;  %5875 = vmatpush3.bf16.msra.mxu1 %v6315_v2  ;;  %v7343_v13 = vld [vmem:[%s7271_s8] sm:$0xf]  ;;  %v7346_v14 = vld [vmem:[%s7271_s8 + $0x4] sm:$0xf]  ;;  %v9034_v29 = vunpack.c.l.bf16 %v7356_v17 }
 0x123   : > { %s5596_s13 = sshll.u32 %s9321_s7, 2  ;;  %5868 = vmatprep.subr.bf16.mxu0 %v9039_v0  ;;  %5876 = vmatprep.subr.bf16.mxu1 %v9039_v0  ;;  %s9161_s6 = sld [smem:[#allocation43_spill]]  ;;  %v7349_v15 = vld [vmem:[%s7271_s8 + $0x8] sm:$0xf]  ;;  %v7353_v16 = vld [vmem:[%s7271_s8 + $0xc] sm:$0xf]  ;;  %v9038_v19 = vunpack.c.l.bf16 %v7343_v13  ;;  %v9037_v23 = vunpack.c.l.bf16 %v7346_v14 }
 0x124   : > { %s9162_s5 = sld [smem:[#allocation42_spill]]  ;;  %v7359_v18 = vld [vmem:[%s7271_s8 + $0x14] sm:$0xf]  ;;  %v7364_v20 = vld [vmem:[%s7271_s8 + $0x18] sm:$0xf]  ;;  %v9036_v24 = vunpack.c.l.bf16 %v7349_v15  ;;  %v9032_v28 = vunpack.c.l.bf16 %v7353_v16  ;;  %v1722_v46 = vsel %vm1420_vm1, %v9034_v29, 0.0 }
 0x125   : > { %s7315_s14 = scalar_lea.vmem %s9157_s4, %s5596_s13  ;;  %v7367_v21 = vld [vmem:[%s7271_s8 + $0x1c] sm:$0xf]  ;;  %v7370_v22 = vld [vmem:[%s7271_s8 + $0x20] sm:$0xf]  ;;  %v7376_v25 = vld [vmem:[%s7271_s8 + $0x24] sm:$0xf]  ;;  %v9031_v31 = vunpack.c.l.bf16 %v7359_v18  ;;  %v9030_v32 = vunpack.c.l.bf16 %v7364_v20 }
 0x126   : > { %s1286_s16 = scalar_lea.vmem %s9158_s10, %s5596_s13  ;;  %v7322_v5 = vld [vmem:[%s7315_s14] sm:$0xff]   ;;  %5869 = vmatpush3.bf16.msra.mxu0 %v6316_v3  ;;  %5877 = vmatpush3.bf16.msra.mxu1 %v6317_v4  ;;  %9163 = vst [vmem:[#allocation62_spill] sm:$0xff] %v7367_v21  ;;  %9164 = vst [vmem:[#allocation63_spill] sm:$0xff] %v7376_v25  ;;  %v7379_v26 = vld [vmem:[%s7271_s8 + $0x28] sm:$0xf]  ;;  %v9025_v33 = vunpack.c.l.bf16 %v7367_v21  ;;  %v9033_v35 = vunpack.c.l.bf16 %v7370_v22  ;;  %v9029_v36 = vunpack.c.l.bf16 %v7376_v25  ;;  %v1694_v38 = vsel %vm1420_vm1, %v9038_v19, 0.0 }
 0x127   : > { %v6319_v6 = vld [vmem:[%s9159_s1 + $0x8] sm:$0xff]   ;;  %5882 = vmatprep.subr.bf16.mxu0 %v9039_v0  ;;  %5890 = vmatprep.subr.bf16.mxu1 %v9039_v0  ;;  %v6321_v8 = vld [vmem:[%s9159_s1] sm:$0xff]   ;;  %9165 = vst [vmem:[#allocation64_spill] sm:$0xff] %v7379_v26  ;;  %v9027_v37 = vunpack.c.l.bf16 %v7379_v26  ;;  %v1695_v40 = vrot.slane %v1694_v38, 4  ;;  %v1701_v41 = vsel %vm1420_vm1, %v9037_v23, 0.0  ;;  %v1708_v42 = vsel %vm1420_vm1, %v9036_v24, 0.0 }
 0x128   : > { %v6320_v7 = vld [vmem:[%s9160_s11 + $0x8] sm:$0xff]   ;;  %v6322_v9 = vld [vmem:[%s9160_s11] sm:$0xff]   ;;  %v1702_v43 = vrot.slane %v1701_v41, 4  ;;  %v1709_v44 = vrot.slane %v1708_v42, 4  ;;  %v1715_v45 = vsel %vm1420_vm1, %v9032_v28, 0.0  ;;  %v1723_v49 = vrot.slane %v1722_v46, 4 }
 0x129   : > { %5871 = vmatmul.mubr.msk.bf16.vlgmr.msra.gmra.mxu0 %vm1420_vm1, %v7322_v5  ;;  %5879 = vmatmul.mubr.msk.bf16.vlgmr.msra.gmra.mxu1 %vm1420_vm1, %v7322_v5  ;;  %v6323_v10 = vld [vmem:[%s1286_s16] sm:$0xff]   ;;  %v6324_v11 = vld [vmem:[%s9161_s6 + $0x8] sm:$0xff]   ;;  %v1696_v47 = vadd.f32 %v1695_v40, %v1694_v38  ;;  %v1716_v48 = vrot.slane %v1715_v45, 4  ;;  %v1729_v50 = vsel %vm1420_vm1, %v9031_v31, 0.0  ;;  %v1736_v54 = vsel %vm1420_vm1, %v9030_v32, 0.0  ;;  %s9172_s4 = sld [smem:[#allocation45_spill]] }
 0x12a   : > { %5883 = vmatpush3.bf16.msra.mxu0 %v6319_v6  ;;  %5891 = vmatpush3.bf16.msra.mxu1 %v6320_v7  ;;  %v6326_v12 = vld [vmem:[%s9162_s5 + $0x8] sm:$0xff]   ;;  %v6325_v30 = vld [vmem:[%s9161_s6] sm:$0xff]   ;;  %v1703_v51 = vadd.f32 %v1702_v43, %v1701_v41  ;;  %v1710_v52 = vadd.f32 %v1709_v44, %v1708_v42  ;;  %v1730_v53 = vrot.slane %v1729_v50, 4  ;;  %v1724_v57 = vadd.f32 %v1723_v49, %v1722_v46  ;;  %v7427_v59 = vld [vmem:[%s7271_s8 + $0x30] sm:$0xf]  ;;  %s9173_s10 = sld [smem:[#allocation48_spill]] }
 0x12b   : > { %5884 = vmatprep.subr.bf16.mxu0 %v9039_v0  ;;  %5892 = vmatprep.subr.bf16.mxu1 %v9039_v0  ;;  %v7382_v27 = vld [vmem:[%s7271_s8 + $0x2c] sm:$0xf]  ;;  %v6327_v34 = vld [vmem:[%s9162_s5] sm:$0xff]   ;;  %v1697_v55 = vrot.slane %v1696_v47, 2  ;;  %v1717_v56 = vadd.f32 %v1716_v48, %v1715_v45  ;;  %v1737_v58 = vrot.slane %v1736_v54, 4  ;;  %9167 = vst [vmem:[#allocation66_spill] sm:$0xff] %v7427_v59  ;;  %v9026_v44 = vunpack.c.l.bf16 %v7427_v59 }
 0x12c   : > { %5886 = vmatprep.mubr.msk.bf16.mxu0 %vm6879_vm0, %v9039_v0  ;;  %5894 = vmatprep.mubr.msk.bf16.mxu1 %vm6879_vm0, %v9039_v0  ;;  %9166 = vst [vmem:[#allocation65_spill] sm:$0xff] %v7382_v27  ;;  %v9023_v39 = vunpack.c.l.bf16 %v7382_v27  ;;  %v7430_v60 = vld [vmem:[%s7271_s8 + $0x34] sm:$0xf]  ;;  %v1704_v61 = vrot.slane %v1703_v51, 2  ;;  %v1711_v62 = vrot.slane %v1710_v52, 2  ;;  %v1731_v63 = vadd.f32 %v1730_v53, %v1729_v50  ;;  %s9174_s13 = sld [smem:[#allocation50_spill]] }
 0x12d   : > { %9168 = vst [vmem:[#allocation67_spill] sm:$0xff] %v7430_v60  ;;  %v1743_v1 = vsel %vm1420_vm1, %v9025_v33, 0.0  ;;  %v7436_v2 = vld [vmem:[%s7271_s8 + $0x38] sm:$0xf]  ;;  %v7439_v3 = vld [vmem:[%s7271_s8 + $0x3c] sm:$0xf]  ;;  %v1698_v4 = vadd.f32 %v1697_v55, %v1696_v47  ;;  %v9024_v45 = vunpack.c.l.bf16 %v7430_v60 }
 0x12e   : > { %5885 = vmatpush3.bf16.msra.mxu0 %v6321_v8  ;;  %5893 = vmatpush3.bf16.msra.mxu1 %v6322_v9  ;;  %9169 = vst [vmem:[#allocation68_spill] sm:$0xff] %v7436_v2  ;;  %9170 = vst [vmem:[#allocation69_spill] sm:$0xff] %v7439_v3  ;;  %v1718_v6 = vrot.slane %v1717_v56, 2  ;;  %v1725_v7 = vrot.slane %v1724_v57, 2  ;;  %v1738_v8 = vadd.f32 %v1737_v58, %v1736_v54  ;;  %v9028_v48 = vunpack.c.l.bf16 %v7436_v2  ;;  %s9171_s8 = sld [smem:[#allocation46_spill]]  ;;  %s5226_s6 = scalar_lea.sflag [#allocation4], %s7264_s28 }
 0x12f   : > { %5898 = vmatprep.subr.bf16.mxu0 %v9039_v0  ;;  %5906 = vmatprep.subr.bf16.mxu1 %v9039_v0  ;;  %v1712_v9 = vadd.f32 %v1711_v62, %v1710_v52  ;;  %v9035_v49 = vunpack.c.l.bf16 %v7439_v3  ;;  %v1750_v55 = vsel %vm1420_vm1, %v9033_v35, 0.0  ;;  %vm1927_vm4 = vcmask 1043459   ;;  %s9175_s16 = sld [smem:[#allocation39_spill]]  ;;  %p9266_p6 = scmp.ne.s32.totalorder %s9138_s25, 0 }
 0x130   : > { %v1739_v38 = vrot.slane %v1738_v8, 2  ;;  %v1751_v58 = vrot.slane %v1750_v55, 4  ;;  %vm1929_vm5 = vcmask 1044484   ;;  %vm1931_vm6 = vcmask 1045509   ;;  %s9250_s1 = sld [smem:[#allocation53_spill]] }
 0x131   : > { %5887 = vmatmul.mubr.msk.bf16.vlgmr.msra.gmra.mxu0 %vm1420_vm1, %v6323_v10  ;;  %5895 = vmatmul.mubr.msk.bf16.vlgmr.msra.gmra.mxu1 %vm1420_vm1, %v6323_v10  ;;  %v1732_v10 = vrot.slane %v1731_v63, 2  ;;  %v1713_v41 = vrot.slane %v1712_v9, 1  ;;  %vm1933_vm7 = vcmask 1046534   ;;  %vm1935_vm8 = vcmask 1047559   ;;  %s9251_s3 = sld [smem:[#allocation55_spill]] }
 0x132   : > { %5899 = vmatpush3.bf16.msra.mxu0 %v6324_v11  ;;  %5907 = vmatpush3.bf16.msra.mxu1 %v6326_v12  ;;  %v1744_v11 = vrot.slane %v1743_v1, 4  ;;  %v1699_v12 = vrot.slane %v1698_v4, 1  ;;  %vm2024_vm9 = vcmask 130048   ;;  %vm2069_vm10 = vcmask 23552  }
 0x133   : > { %5900 = vmatprep.subr.bf16.mxu0 %v9039_v0  ;;  %5902 = vmatprep.mubr.msk.bf16.mxu0 %vm6879_vm0, %v9039_v0  ;;  %v1733_v42 = vadd.f32 %v1732_v10, %v1731_v63  ;;  %v1778_v10 = vsel %vm1420_vm1, %v9026_v44, 0.0  ;;  %vm3434_vm11 = vcmask 257024  }
 0x134   : > { %5908 = vmatprep.subr.bf16.mxu1 %v9039_v0  ;;  %5910 = vmatprep.mubr.msk.bf16.mxu1 %vm6879_vm0, %v9039_v0  ;;  %v1745_v43 = vadd.f32 %v1744_v11, %v1743_v1  ;;  %v7447_v52 = vadd.f32 %v1699_v12, %v1698_v4  ;;  %v1764_v1 = vsel %vm1420_vm1, %v9027_v37, 0.0  ;;  %v1771_v4 = vsel %vm1420_vm1, %v9023_v39, 0.0 }
 0x135   : > { %v1734_v50 = vrot.slane %v1733_v42, 1  ;;  %v1785_v11 = vsel %vm1420_vm1, %v9024_v45, 0.0  ;;  %v1792_v12 = vsel %vm1420_vm1, %v9028_v48, 0.0  ;;  %v1799_v39 = vsel %vm1420_vm1, %v9035_v49, 0.0 }
 0x136   : > { %5901 = vmatpush3.bf16.msra.mxu0 %v6325_v30  ;;  %5909 = vmatpush3.bf16.msra.mxu1 %v6327_v34  ;;  %v1719_v30 = vadd.f32 %v1718_v6, %v1717_v56  ;;  %v1726_v34 = vadd.f32 %v1725_v7, %v1724_v57  ;;  %v1746_v54 = vrot.slane %v1745_v43, 2  ;;  %v1714_v56 = vadd.f32 %v1713_v41, %v1712_v9 }
 0x137   : > { %5914 = vmatprep.subr.bf16.mxu0 %v9039_v0  ;;  %v1752_v7 = vadd.f32 %v1751_v58, %v1750_v55  ;;  %v1793_v55 = vrot.slane %v1792_v12, 4  ;;  %v1735_v28 = vadd.f32 %v1734_v50, %v1733_v42 }
 0x138   : > { %v1720_v46 = vrot.slane %v1719_v30, 1  ;;  %v1727_v47 = vrot.slane %v1726_v34, 1 }
 0x139   : > { %5903 = vmatmul.mubr.msk.bf16.vlgmr.msra.gmra.mxu0 %vm1420_vm1, %v7322_v5  ;;  %v1705_v5 = vadd.f32 %v1704_v61, %v1703_v51  ;;  %v1740_v51 = vadd.f32 %v1739_v38, %v1738_v8  ;;  %v1757_v61 = vsel %vm1420_vm1, %v9029_v36, 0.0  ;;  %v1765_v8 = vrot.slane %v1764_v1, 4 }
 0x13a   : > { %5916 = vmatprep.mubr.msk.bf16.mxu0 %vm6879_vm0, %v9039_v0  ;;  %v7454_v57 = vadd.f32 %v1720_v46, %v1719_v30  ;;  %v1728_v62 = vadd.f32 %v1727_v47, %v1726_v34  ;;  %v1758_v63 = vrot.slane %v1757_v61, 4  ;;  %v1747_v30 = vadd.f32 %v1746_v54, %v1745_v43 }
 0x13b   : > { %v1706_v40 = vrot.slane %v1705_v5, 1  ;;  %v1741_v6 = vrot.slane %v1740_v51, 1  ;;  %v1753_v34 = vrot.slane %v1752_v7, 2  ;;  %v1766_v38 = vadd.f32 %v1765_v8, %v1764_v1 }
 0x13c   : > { %v1759_v9 = vadd.f32 %v1758_v63, %v1757_v61  ;;  %v1779_v46 = vrot.slane %v1778_v10, 4  ;;  %v1786_v47 = vrot.slane %v1785_v11, 4  ;;  %v1794_v37 = vadd.f32 %v1793_v55, %v1792_v12 }
 0x13d   : > { %v7449_v53 = vadd.f32 %v1706_v40, %v1705_v5  ;;  %v1772_v5 = vrot.slane %v1771_v4, 4  ;;  %v1754_v58 = vadd.f32 %v1753_v34, %v1752_v7  ;;  %v1767_v61 = vrot.slane %v1766_v38, 2 }
 0x13e   : > { %v1760_v41 = vrot.slane %v1759_v9, 2  ;;  %v1780_v33 = vadd.f32 %v1779_v46, %v1778_v10  ;;  %v1787_v44 = vadd.f32 %v1786_v47, %v1785_v11  ;;  %v1800_v1 = vrot.slane %v1799_v39, 4 }
 0x13f   : > { %v1773_v40 = vadd.f32 %v1772_v5, %v1771_v4  ;;  %v1755_v48 = vrot.slane %v1754_v58, 1  ;;  %v1768_v43 = vadd.f32 %v1767_v61, %v1766_v38  ;;  %v1795_v36 = vrot.slane %v1794_v37, 2 }
 0x140   : > { %v1761_v45 = vadd.f32 %v1760_v41, %v1759_v9  ;;  %v1781_v8 = vrot.slane %v1780_v33, 2  ;;  %v1788_v5 = vrot.slane %v1787_v44, 2  ;;  %v1748_v32 = vrot.slane %v1747_v30, 1 }
 0x141   : > { %v1774_v63 = vrot.slane %v1773_v40, 2  ;;  %v1769_v7 = vrot.slane %v1768_v43, 1  ;;  %v1801_v31 = vadd.f32 %v1800_v1, %v1799_v39  ;;  %v1796_v49 = vadd.f32 %v1795_v36, %v1794_v37 }
 0x142   : > { %v1762_v4 = vrot.slane %v1761_v45, 1  ;;  %v1782_v35 = vadd.f32 %v1781_v8, %v1780_v33  ;;  %v1789_v29 = vadd.f32 %v1788_v5, %v1787_v44  ;;  %v1756_v9 = vadd.f32 %v1755_v48, %v1754_v58 }
 0x143   : > { %v1775_v54 = vadd.f32 %v1774_v63, %v1773_v40  ;;  %v1770_v11 = vadd.f32 %v1769_v7, %v1768_v43  ;;  %v1802_v12 = vrot.slane %v1801_v31, 2  ;;  %v1797_v46 = vrot.slane %v1796_v49, 1 }
 0x144   : > { %v1763_v10 = vadd.f32 %v1762_v4, %v1761_v45  ;;  %v1783_v38 = vrot.slane %v1782_v35, 1  ;;  %v1790_v40 = vrot.slane %v1789_v29, 1  ;;  %v1742_v47 = vadd.f32 %v1741_v6, %v1740_v51 }
 0x145   : > { %v1776_v34 = vrot.slane %v1775_v54, 1  ;;  %v1749_v55 = vadd.f32 %v1748_v32, %v1747_v30  ;;  %v1803_v61 = vadd.f32 %v1802_v12, %v1801_v31  ;;  %v1806_v63 = vmul.f32 0.125, %v7447_v52 }
 0x146   : > { %v1784_v24 = vadd.f32 %v1783_v38, %v1782_v35  ;;  %v1791_v23 = vadd.f32 %v1790_v40, %v1789_v29  ;;  %v1807_v39 = vmul.f32 0.125, %v7449_v53  ;;  %v1808_v33 = vmul.f32 0.125, %v1714_v56 }
 0x147   : > { %v1777_v41 = vadd.f32 %v1776_v34, %v1775_v54  ;;  %v1798_v42 = vadd.f32 %v1797_v46, %v1796_v49  ;;  %v1804_v36 = vrot.slane %v1803_v61, 1  ;;  %v1809_v37 = vmul.f32 0.125, %v7454_v57 }
 0x148   : > { %v1810_v44 = vmul.f32 0.125, %v1728_v62  ;;  %v1814_v45 = vmul.f32 0.125, %v1756_v9  ;;  %v1815_v48 = vmul.f32 0.125, %v1763_v10  ;;  %v1816_v50 = vmul.f32 0.125, %v1770_v11 }
 0x149   : > { %v1817_v58 = vmul.f32 0.125, %v1777_v41  ;;  %v1805_v32 = vadd.f32 %v1804_v36, %v1803_v61  ;;  %v1811_v31 = vmul.f32 0.125, %v1735_v28  ;;  %v1812_v51 = vmul.f32 0.125, %v1742_v47 }
 0x14a   : > { %v1818_v52 = vmul.f32 0.125, %v1784_v24  ;;  %v1813_v29 = vmul.f32 0.125, %v1749_v55  ;;  %v1819_v35 = vmul.f32 0.125, %v1791_v23  ;;  %v1822_v53 = vpack.c.bf16 %v1806_v63, %v1806_v63 }
 0x14b   : > { %v1823_v56 = vpack.c.bf16 %v1807_v39, %v1807_v39  ;;  %v1820_v49 = vmul.f32 0.125, %v1798_v42  ;;  %v1821_v6 = vmul.f32 0.125, %v1805_v32  ;;  %v1824_v57 = vpack.c.bf16 %v1808_v33, %v1808_v33 }
 0x14c   : > { %v1825_v62 = vpack.c.bf16 %v1809_v37, %v1809_v37  ;;  %v1830_v30 = vpack.c.bf16 %v1814_v45, %v1814_v45  ;;  %v1831_v43 = vpack.c.bf16 %v1815_v48, %v1815_v48  ;;  %v1832_v54 = vpack.c.bf16 %v1816_v50, %v1816_v50 }
 0x14d   : > { %v1833_v1 = vpack.c.bf16 %v1817_v58, %v1817_v58  ;;  %v1826_v4 = vpack.c.bf16 %v1810_v44, %v1810_v44  ;;  %v1827_v8 = vpack.c.bf16 %v1811_v31, %v1811_v31  ;;  %v1828_v5 = vpack.c.bf16 %v1812_v51, %v1812_v51 }
 0x14e   : > { %v1834_v28 = vpack.c.bf16 %v1818_v52, %v1818_v52  ;;  %v1829_v7 = vpack.c.bf16 %v1813_v29, %v1813_v29  ;;  %v1835_v24 = vpack.c.bf16 %v1819_v35, %v1819_v35  ;;  %v1907_v34 = vunpack.c.l.b16 %v1822_v53 }
 0x14f   : > { %v1908_v9 = vunpack.c.l.b16 %v1823_v56  ;;  %v1836_v23 = vpack.c.bf16 %v1820_v49, %v1820_v49  ;;  %v1837_v10 = vpack.c.bf16 %v1821_v6, %v1821_v6  ;;  %v1909_v11 = vunpack.c.l.b16 %v1824_v57  ;;  %v6328_v6 = vld [vmem:[%s9171_s8 + $0x8] sm:$0xff]   ;;  %v6329_v57 = vld [vmem:[%s9171_s8] sm:$0xff]  }
 0x150   : > { %v1910_v12 = vunpack.c.l.b16 %v1825_v62  ;;  %v1915_v41 = vunpack.c.l.b16 %v1830_v30  ;;  %v1916_v38 = vunpack.c.l.b16 %v1831_v43  ;;  %v1917_v40 = vunpack.c.l.b16 %v1832_v54  ;;  %5920 = vmatprep.subr.bf16.mxu1 %v6328_v6 }
 0x151   : > { %v1918_v46 = vunpack.c.l.b16 %v1833_v1  ;;  %v1911_v47 = vunpack.c.l.b16 %v1826_v4  ;;  %v1919_v55 = vunpack.c.l.b16 %v1834_v28  ;;  %v1912_v61 = vunpack.c.l.b16 %v1827_v8  ;;  %v6334_v8 = vld [vmem:[%s9172_s4] sm:$0xff]   ;;  %s9194_s4 = sld [smem:[#allocation52_spill]] }
 0x152   : > { %v1920_v63 = vunpack.c.l.b16 %v1835_v24  ;;  %v1924_v39 = vsel %vm1923_vm2, %v1908_v9, %v1907_v34  ;;  %v1937_v33 = vsel %vm1923_vm2, %v1916_v38, %v1915_v41  ;;  %v1913_v42 = vunpack.c.l.b16 %v1828_v5  ;;  %5915 = vmatpush3.bf16.msra.mxu0 %v6334_v8  ;;  %v7536_v24 = vld [vmem:[%s9173_s10] sm:$0xff]   ;;  %v6341_v34 = vld [vmem:[%s9174_s13 + $0x8] sm:$0xff]  }
 0x153   : > { %v1921_v36 = vunpack.c.l.b16 %v1836_v23  ;;  %v1926_v37 = vsel %vm1925_vm3, %v1909_v11, %v1924_v39  ;;  %v1938_v44 = vsel %vm1925_vm3, %v1917_v40, %v1937_v33  ;;  %v1914_v45 = vunpack.c.l.b16 %v1829_v7  ;;  %v7533_v7 = vld [vmem:[%s9173_s10 + $0x8] sm:$0xff]   ;;  %v6342_v9 = vld [vmem:[%s9174_s13] sm:$0xff]  }
 0x154   : > { %v1922_v48 = vunpack.c.l.b16 %v1837_v10  ;;  %v1928_v50 = vsel %vm1927_vm4, %v1910_v12, %v1926_v37  ;;  %v1939_v58 = vsel %vm1927_vm4, %v1918_v46, %v1938_v44  ;;  %v7499_v62 = vcombine.low %v7343_v13, %v7346_v14  ;;  %5940 = vmatprep.subr.bf16.mxu0 %v7533_v7  ;;  %v5601_v23 = vld [vmem:[#allocation5] ss:$0 sm:$0xff] }
 0x155   : > { %v1930_v32 = vsel %vm1929_vm5, %v1911_v47, %v1928_v50  ;;  %v1940_v31 = vsel %vm1929_vm5, %v1919_v55, %v1939_v58  ;;  %v7505_v30 = vcombine.low %v7349_v15, %v7353_v16  ;;  %v7509_v43 = vcombine.low %v7356_v17, %v7359_v18  ;;  %v5608_v10 = vld [vmem:[%s9175_s16] ss:$0 sm:$0xff]  ;;  %s9195_s16 = sld [smem:[#allocation51_spill]] }
 0x156   : > { %v1932_v51 = vsel %vm1931_vm6, %v1912_v61, %v1930_v32  ;;  %v1941_v52 = vsel %vm1931_vm6, %v1920_v63, %v1940_v31  ;;  %v7517_v54 = vcombine.low %v7364_v20, %v7367_v21  ;;  %v5638_v1 = vcombine.low %v7370_v22, %v7376_v25 }
 0x157   : > { %v1934_v29 = vsel %vm1933_vm7, %v1913_v42, %v1932_v51  ;;  %v1942_v35 = vsel %vm1933_vm7, %v1921_v36, %v1941_v52  ;;  %v5639_v4 = vcombine.low %v7379_v26, %v7382_v27  ;;  %v5640_v5 = vcombine.low %v7427_v59, %v7430_v60 }
 0x158   : > { %v1936_v53 = vsel %vm1935_vm8, %v1914_v45, %v1934_v29  ;;  %v1943_v56 = vsel %vm1935_vm8, %v1922_v48, %v1942_v35  ;;  %v5641_v28 = vcombine.low %v7436_v2, %v7439_v3 }
 0x159   : > { %v1944_v49 = vpack.c.b16 %v1943_v56, %v1936_v53 }
 0x15b   : > { %5911 = vmatmul.mubr.msk.bf16.vlgmr.msra.gmra.mxu1 %vm1420_vm1, %v1944_v49 }
 0x15c   : > { %5921 = vmatpush3.bf16.msra.mxu1 %v6328_v6  ;;  %5924 = vmatprep.mubr.msk.bf16.mxu1 %vm1420_vm1, %v7499_v62 }
 0x15d   : > { %5922 = vmatprep.subr.bf16.mxu1 %v6329_v57 }
 0x160   : > { %5923 = vmatpush3.bf16.msra.mxu1 %v6329_v57 }
 0x161   : > { %6062 = vmatprep.subr.bf16.mxu1 %v7533_v7 }
 0x163   : > { %5925 = vmatmul.mubr.msk.bf16.vlgmr.msra.gmra.mxu1 %vm1420_vm1, %v7505_v30 }
 0x164   : > { %5928 = vmatprep.mubr.msk.bf16.mxu1 %vm1420_vm1, %v7509_v43  ;;  %6064 = vmatpush3.bf16.msra.mxu1 %v7533_v7 }
 0x165   : > { %6063 = vmatprep.subr.bf16.mxu1 %v7536_v24 }
 0x168   : > { %6065 = vmatpush3.bf16.msra.mxu1 %v7536_v24 }
 0x169   : > { %5960 = vmatprep.subr.bf16.mxu1 %v6341_v34 }
 0x16b   : > { %5929 = vmatmul.mubr.msk.bf16.gmra.mxu1 %vm1420_vm1, %v7517_v54 }
 0x16c   : > { %5932 = vmatprep.mubr.msk.bf16.mxu1 %vm1420_vm1, %v5638_v1 }
 0x173   : > { %5933 = vmatmul.mubr.msk.bf16.gmra.mxu1 %vm1420_vm1, %v5639_v4 }
 0x174   : > { %5936 = vmatprep.mubr.msk.bf16.mxu1 %vm1420_vm1, %v5640_v5 }
 0x17b   : > { %5937 = vmatmul.mubr.msk.bf16.gmra.mxu1 %vm1420_vm1, %v5641_v28 }
 0x17c   : > { %5952 = vmatprep.mubr.msk.bf16.mxu1 %vm1420_vm1, %v5638_v1 }
 0x183   : > { %5953 = vmatmul.mubr.msk.bf16.vlgmr.msra.gmra.mxu1 %vm1420_vm1, %v5639_v4 }
 0x184   : > { %5956 = vmatprep.mubr.msk.bf16.mxu1 %vm1420_vm1, %v5640_v5  ;;  %5961 = vmatpush3.bf16.msra.mxu1 %v6341_v34  ;;  %v6880_v34 = vmov 1966171168  }
 0x185   : > { %5962 = vmatprep.subr.bf16.mxu1 %v6342_v9 }
 0x188   : > { %5963 = vmatpush3.bf16.msra.mxu1 %v6342_v9  ;;  %v2390_v9 = vunpack.c.l.s4 %v6880_v34 }
 0x18b   : > { %5957 = vmatmul.mubr.msk.bf16.gmra.mxu1 %vm1420_vm1, %v5641_v28 }
 0x1e9   : > { %v1458_v11 = vpop.f32.mrf.mxu0  ;;  %v1529_v41 = vpop.f32.mrf.mxu1 }
 0x1ea   : > { %v1459_v12 = vadd.f32 %v5601_v23, %v1458_v11  ;;  %v1530_v38 = vadd.f32 %v5608_v10, %v1529_v41 }
 0x1eb   : > { %v5872_v40 = vpop.f32.mrf.mxu0  ;;  %v5880_v47 = vpop.f32.mrf.mxu1 }
 0x1ec   : > { %v5606_v46 = vmul.f32 -1.442695, %v1459_v12  ;;  %v5612_v55 = vmul.f32 -1.442695, %v1530_v38 }
 0x1ed   : > { %v1461_v61 = vpop.f32.mrf.mxu0  ;;  %v1532_v39 = vpop.f32.mrf.mxu1 }
 0x1ee   : > { %6354 = vpow2.f32 %v5606_v46  ;;  %v1462_v63 = vadd.f32 %v5601_v23, %v1461_v61  ;;  %v1533_v33 = vadd.f32 %v5608_v10, %v1532_v39  ;;  %v2392_v23 = vlaneseq }
 0x1ef   : > { %6356 = vpow2.f32 %v5612_v55  ;;  %v5873_v42 = vpop.f32.mrf.mxu0  ;;  %v5881_v37 = vpop.f32.mrf.mxu1  ;;  %v2391_v10 = vunpack.c.0.s8 %v2390_v9 }
 0x1f0   : > { %v5607_v36 = vmul.f32 -1.442695, %v1462_v63  ;;  %v5613_v44 = vmul.f32 -1.442695, %v1533_v33  ;;  %v2393_v11 = vshrl.u32 %v2392_v23, 7 }
 0x1f1   : > { %v7552_v45 = vpop.f32.mrf.mxu0  ;;  %v7554_v48 = vpop.f32.mrf.mxu1 }
 0x1f2   : > { %6358 = vpow2.f32 %v5607_v36  ;;  %9176 = vst [vmem:[#allocation70_spill] sm:$0xff] %v7554_v48  ;;  %v7566_v38 = vsub.s32 %v2391_v10, %v2393_v11  ;;  %v7574_v33 = vsub.s32 0, %v2393_v11 }
 0x1f3   : > { %6360 = vpow2.f32 %v5613_v44  ;;  %v5888_v50 = vpop.f32.mrf.mxu0  ;;  %v5896_v58 = vpop.f32.mrf.mxu1 }
 0x1f4   : > { %9178 = vst [vmem:[#allocation72_spill] sm:$0xff] %v7566_v38  ;;  %9179 = vst [vmem:[#allocation73_spill] sm:$0xff] %v7574_v33 }
 0x1f5   : > { %v7556_v32 = vpop.f32.mrf.mxu0  ;;  %v7558_v31 = vpop.f32.mrf.mxu1 }
 0x1f6   : > { %9177 = vst [vmem:[#allocation71_spill] sm:$0xff] %v7558_v31 }
 0x1f7   : > { %v5889_v51 = vpop.f32.mrf.mxu0  ;;  %v5897_v52 = vpop.f32.mrf.mxu1 }
 0x1f9   : > { %v7560_v29 = vpop.f32.mrf.mxu0 }
 0x1fb   : > { %v6355_v35 = vpop.eup %6354  ;;  %v5904_v53 = vpop.f32.mrf.mxu0 }
 0x1fc   : > { %v6357_v56 = vpop.eup %6356  ;;  %v1471_v49 = vadd.f32 1.0, %v6355_v35 }
 0x1fd   : > { %v1542_v6 = vadd.f32 1.0, %v6357_v56  ;;  %v7562_v57 = vpop.f32.mrf.mxu0 }
 0x1fe   : > { %6362 = vrcp.f32 %v1471_v49 }
 0x1ff   : > { %v6359_v1 = vpop.eup %6358  ;;  %v5905_v4 = vpop.f32.mrf.mxu0  ;;  %6364 = vrcp.f32 %v1542_v6 }
 0x200   : > { %v6361_v8 = vpop.eup %6360  ;;  %v1472_v5 = vadd.f32 1.0, %v6359_v1 }
 0x201   : > { %v1543_v28 = vadd.f32 1.0, %v6361_v8 }
 0x202   : > { %6366 = vrcp.f32 %v1472_v5 }
 0x203   : > { %6368 = vrcp.f32 %v1543_v28 }
 0x20b   : > { %v6363_v12 = vpop.eup %6362 }
 0x20c   : > { %v7564_v41 = vpop.eup %6364 }
 0x20f   : > { %v6367_v40 = vpop.eup %6366 }
 0x210   : > { %v7568_v46 = vpop.eup %6368  ;;  %v2386_v47 = vpack.c.bf16 %v6367_v40, %v6363_v12  ;;  %v5663_v55 = vpack.c.bf16 %v6367_v40, %v6367_v40 }
 0x212   : > { %v2395_v63 = vrot.slane %v2386_v47, %v7566_v38  ;;  %v2402_v39 = vrot.slane %v5663_v55, %v7566_v38 }
 0x214   : > { %v2403_v42 = vcombine.high %v2395_v63, %v2395_v63  ;;  %v2411_v36 = vrot.slane %v2395_v63, %v7566_v38  ;;  %v2418_v37 = vrot.slane %v2402_v39, %v7566_v38  ;;  %v2404_v44 = vcombine.high %v2402_v39, %v2402_v39 }
 0x216   : > { %v2425_v50 = vrot.slane %v2403_v42, %v7566_v38  ;;  %v2438_v58 = vunpack.i.h.s16 %v2411_v36  ;;  %v5664_v51 = vpack.i.b16 %v2411_v36, %v2411_v36  ;;  %v2433_v52 = vcombine.high %v2411_v36, %v2411_v36 }
 0x217   : > { %v2446_v35 = vunpack.i.h.s16 %v2418_v37  ;;  %v5668_v53 = vpack.i.b16 %v2418_v37, %v2418_v37  ;;  %v7580_v56 = vrot.slane %v2404_v44, %v7566_v38  ;;  %v7582_v49 = vcombine.high %v2418_v37, %v2418_v37 }
 0x218   : > { %v2454_v6 = vpack.i.b16 %v2438_v58, %v2438_v58  ;;  %v2472_v1 = vrot.slane %v5664_v51, %v7574_v33  ;;  %v2440_v4 = vunpack.i.h.s16 %v2425_v50  ;;  %v5665_v8 = vpack.i.b16 %v2425_v50, %v2425_v50 }
 0x219   : > { %v2442_v5 = vunpack.i.h.s16 %v2433_v52  ;;  %v5666_v28 = vpack.i.b16 %v2433_v52, %v2433_v52  ;;  %v2435_v34 = vcombine.high %v2425_v50, %v2425_v50  ;;  %v2462_v9 = vpack.i.b16 %v2446_v35, %v2446_v35 }
 0x21a   : > { %v2476_v23 = vrot.slane %v2454_v6, %v7574_v33  ;;  %v2534_v10 = vpack.i.b16 %v2472_v1, %v2472_v1  ;;  %v2456_v11 = vpack.i.b16 %v2440_v4, %v2440_v4  ;;  %v2480_v12 = vrot.slane %v5665_v8, %v7574_v33 }
 0x21b   : > { %v2458_v40 = vpack.i.b16 %v2442_v5, %v2442_v5  ;;  %v2488_v47 = vrot.slane %v5666_v28, %v7574_v33  ;;  %v2444_v55 = vunpack.i.h.s16 %v2435_v34  ;;  %v5667_v63 = vpack.i.b16 %v2435_v34, %v2435_v34 }
 0x21c   : > { %v2539_v39 = vrot.slane %v2534_v10, %v7574_v33  ;;  %v2541_v42 = vpack.i.b16 %v2476_v23, %v2476_v23  ;;  %v2484_v36 = vrot.slane %v2456_v11, %v7574_v33  ;;  %v2548_v37 = vpack.i.b16 %v2480_v12, %v2480_v12 }
 0x21d   : > { %v2492_v44 = vrot.slane %v2458_v40, %v7574_v33  ;;  %v2562_v50 = vpack.i.b16 %v2488_v47, %v2488_v47  ;;  %v2460_v58 = vpack.i.b16 %v2444_v55, %v2444_v55  ;;  %v2496_v51 = vrot.slane %v5667_v63, %v7574_v33 }
 0x21e   : > { %v2546_v52 = vrot.slane %v2541_v42, %v7574_v33  ;;  %v2645_v35 = vmul.bf16 %v2539_v39, %v7343_v13  ;;  %v2553_v6 = vrot.slane %v2548_v37, %v7574_v33  ;;  %v2555_v1 = vpack.i.b16 %v2484_v36, %v2484_v36 }
 0x21f   : > { %v2567_v4 = vrot.slane %v2562_v50, %v7574_v33  ;;  %v2569_v8 = vpack.i.b16 %v2492_v44, %v2492_v44  ;;  %v2500_v5 = vrot.slane %v2460_v58, %v7574_v33  ;;  %v2576_v28 = vpack.i.b16 %v2496_v51, %v2496_v51 }
 0x220   : > { %v2646_v34 = vmul.bf16 %v2546_v52, %v7346_v14  ;;  %v2560_v23 = vrot.slane %v2555_v1, %v7574_v33  ;;  %v2647_v10 = vmul.bf16 %v2553_v6, %v7349_v15  ;;  %v2504_v11 = vrot.slane %v5668_v53, %v7574_v33 }
 0x221   : > { %v2574_v12 = vrot.slane %v2569_v8, %v7574_v33  ;;  %v2649_v40 = vmul.bf16 %v2567_v4, %v7356_v17  ;;  %v2581_v47 = vrot.slane %v2576_v28, %v7574_v33  ;;  %v2583_v55 = vpack.i.b16 %v2500_v5, %v2500_v5 }
 0x222   : > { %v5673_v63 = vcombine.low %v2645_v35, %v2646_v34  ;;  %v2648_v39 = vmul.bf16 %v2560_v23, %v7353_v16  ;;  %v2508_v42 = vrot.slane %v2462_v9, %v7574_v33  ;;  %v2590_v36 = vpack.i.b16 %v2504_v11, %v2504_v11  ;;  %v1994_v35 = vpop.f32.mrf.mxu1  ;;  %v5629_v34 = vld [vmem:[#allocation10] ss:$0 sm:$0xff] }
 0x223   : > { %v2650_v37 = vmul.bf16 %v2574_v12, %v7359_v18  ;;  %v2588_v44 = vrot.slane %v2583_v55, %v7574_v33  ;;  %v2448_v50 = vunpack.i.h.s16 %v7580_v56  ;;  %v5669_v52 = vpack.i.b16 %v7580_v56, %v7580_v56 }
 0x224   : > { %5964 = vmatprep.mubr.msk.bf16.mxu1 %vm1420_vm1, %v5673_v63  ;;  %v5674_v53 = vcombine.low %v2647_v10, %v2648_v39  ;;  %v2595_v58 = vrot.slane %v2590_v36, %v7574_v33  ;;  %v2597_v51 = vpack.i.b16 %v2508_v42, %v2508_v42  ;;  %v2450_v9 = vunpack.i.h.s16 %v7582_v49  ;;  %v5912_v23 = vpop.f32.mrf.mxu1 }
 0x225   : > { %v5675_v6 = vcombine.low %v2649_v40, %v2650_v37  ;;  %v2464_v1 = vpack.i.b16 %v2448_v50, %v2448_v50  ;;  %v1995_v4 = vadd.f32 %v1994_v35, %v7560_v29  ;;  %v2651_v8 = vmul.bf16 %v2581_v47, %v7364_v20 }
 0x226   : > { %5965 = vmatmul.mubr.msk.bf16.vlgmr.msra.gmra.mxu1 %vm1420_vm1, %v5674_v53  ;;  %v2602_v5 = vrot.slane %v2597_v51, %v7574_v33  ;;  %v2512_v28 = vrot.slane %v5669_v52, %v7574_v33  ;;  %v2652_v10 = vmul.bf16 %v2588_v44, %v7367_v21  ;;  %v5670_v12 = vpack.i.b16 %v7582_v49, %v7582_v49  ;;  %v1997_v63 = vpop.f32.mrf.mxu1 }
 0x227   : > { %5968 = vmatprep.mubr.msk.bf16.mxu1 %vm1420_vm1, %v5675_v6  ;;  %v2516_v11 = vrot.slane %v2464_v1, %v7574_v33  ;;  %v2466_v29 = vpack.i.b16 %v2450_v9, %v2450_v9  ;;  %v2653_v40 = vmul.bf16 %v2595_v58, %v7370_v22  ;;  %v2436_v47 = vcombine.high %v7580_v56, %v7580_v56 }
 0x228   : > { %v2604_v55 = vpack.i.b16 %v2512_v28, %v2512_v28  ;;  %v2654_v39 = vmul.bf16 %v2602_v5, %v7376_v25  ;;  %v2520_v36 = vrot.slane %v5670_v12, %v7574_v33  ;;  %v2007_v44 = vadd.f32 %v5629_v34, %v1995_v4  ;;  %v5913_v53 = vpop.f32.mrf.mxu1 }
 0x229   : > { %v2611_v42 = vpack.i.b16 %v2516_v11, %v2516_v11  ;;  %v2524_v37 = vrot.slane %v2466_v29, %v7574_v33  ;;  %v1998_v50 = vadd.f32 %v1997_v63, %v7562_v57  ;;  %v5676_v49 = vcombine.low %v2651_v8, %v2652_v10 }
 0x22a   : > { %v2618_v51 = vpack.i.b16 %v2520_v36, %v2520_v36  ;;  %v2452_v58 = vunpack.i.h.s16 %v2436_v47  ;;  %v2609_v6 = vrot.slane %v2604_v55, %v7574_v33  ;;  %v5671_v1 = vpack.i.b16 %v2436_v47, %v2436_v47 }
 0x22b   : > { %v2625_v52 = vpack.i.b16 %v2524_v37, %v2524_v37  ;;  %v2008_v35 = vadd.f32 %v5629_v34, %v1998_v50  ;;  %v2616_v56 = vrot.slane %v2611_v42, %v7574_v33  ;;  %v5677_v9 = vcombine.low %v2653_v40, %v2654_v39 }
 0x22c   : > { %v2623_v5 = vrot.slane %v2618_v51, %v7574_v33  ;;  %v2468_v23 = vpack.i.b16 %v2452_v58, %v2452_v58  ;;  %v2009_v4 = vmax.f32 %v2007_v44, 0.0  ;;  %v2528_v57 = vrot.slane %v5671_v1, %v7574_v33 }
 0x22d   : > { %v2630_v28 = vrot.slane %v2625_v52, %v7574_v33  ;;  %v2010_v11 = vmax.f32 %v2008_v35, 0.0  ;;  %v2655_v10 = vmul.bf16 %v2609_v6, %v7379_v26  ;;  %v2656_v12 = vmul.bf16 %v2616_v56, %v7382_v27 }
 0x22e   : > { %5969 = vmatmul.mubr.msk.bf16.gmra.mxu1 %vm1420_vm1, %v5676_v49  ;;  %v2532_v8 = vrot.slane %v2468_v23, %v7574_v33  ;;  %v2632_v29 = vpack.i.b16 %v2528_v57, %v2528_v57  ;;  %v2657_v40 = vmul.bf16 %v2623_v5, %v7427_v59  ;;  %v7677_v49 = vld [vmem:[#allocation13] ss:$0 sm:$0xff] }
 0x22f   : > { %5972 = vmatprep.mubr.msk.bf16.mxu1 %vm1420_vm1, %v5677_v9  ;;  %v2011_v34 = vpack.c.bf16 %v2010_v11, %v2009_v4  ;;  %v2658_v55 = vmul.bf16 %v2630_v28, %v7430_v60  ;;  %v5678_v63 = vcombine.low %v2655_v10, %v2656_v12 }
 0x230   : > { %v2639_v47 = vpack.i.b16 %v2532_v8, %v2532_v8  ;;  %v2637_v39 = vrot.slane %v2632_v29, %v7574_v33 }
 0x231   : > { %5917 = vmatmul.mubr.msk.bf16.vlgmr.msra.gmra.mxu0 %vm2024_vm9, %v2011_v34  ;;  %v5679_v36 = vcombine.low %v2657_v40, %v2658_v55 }
 0x232   : > { %5941 = vmatpush3.bf16.msra.mxu0 %v7533_v7  ;;  %5944 = vmatprep.mubr.msk.bf16.mxu0 %vm1420_vm1, %v7499_v62  ;;  %v2644_v42 = vrot.slane %v2639_v47, %v7574_v33  ;;  %v2659_v37 = vmul.bf16 %v2637_v39, %v7436_v2 }
 0x233   : > { %5942 = vmatprep.subr.bf16.mxu0 %v7536_v24 }
 0x234   : > { %v2660_v7 = vmul.bf16 %v2644_v42, %v7439_v3 }
 0x236   : > { %5973 = vmatmul.mubr.msk.bf16.gmra.mxu1 %vm1420_vm1, %v5678_v63  ;;  %5943 = vmatpush3.bf16.msra.mxu0 %v7536_v24  ;;  %v5680_v62 = vcombine.low %v2659_v37, %v2660_v7  ;;  %v7665_v24 = vpop.f32.mrf.mxu1 }
 0x237   : > { %5976 = vmatprep.mubr.msk.bf16.mxu1 %vm1420_vm1, %v5679_v36  ;;  %5980 = vmatprep.subr.bf16.mxu0 %v9039_v0 }
 0x238   : > { %v7667_v44 = vpop.f32.mrf.mxu1 }
 0x239   : > { %5945 = vmatmul.mubr.msk.bf16.vlgmr.msra.gmra.mxu0 %vm1420_vm1, %v7505_v30 }
 0x23a   : > { %5948 = vmatprep.mubr.msk.bf16.mxu0 %vm1420_vm1, %v7509_v43  ;;  %v7669_v50 = vpop.f32.mrf.mxu1 }
 0x23c   : > { %v7671_v53 = vpop.f32.mrf.mxu1 }
 0x23e   : > { %5977 = vmatmul.mubr.msk.bf16.gmra.mxu1 %vm1420_vm1, %v5680_v62  ;;  %v7673_v30 = vpop.f32.mrf.mxu1  ;;  %v5630_v62 = vld [vmem:[#allocation11] ss:$0 sm:$0xff] }
 0x240   : > { %v7675_v43 = vpop.f32.mrf.mxu1 }
 0x241   : > { %5949 = vmatmul.mubr.msk.bf16.gmra.mxu0 %vm1420_vm1, %v7517_v54 }
 0x242   : > { %5984 = vmatprep.mubr.msk.bf16.mxu0 %vm6879_vm0, %v9039_v0  ;;  %v5931_v51 = vpop.f32.mrf.mxu1 }
 0x243   : > { %v7680_v54 = vadd.f32 %v5931_v51, %v7677_v49 }
 0x244   : > { %v7682_v52 = vpop.f32.mrf.mxu1 }
 0x245   : > { %9180 = vst [vmem:[#allocation74_spill] sm:$0xff] %v7680_v54 }
 0x246   : > { %v7684_v58 = vpop.f32.mrf.mxu1 }
 0x247   : > { %9181 = vst [vmem:[#allocation75_spill] sm:$0xff] %v7684_v58 }
 0x248   : > { %v7686_v35 = vpop.f32.mrf.mxu1 }
 0x24a   : > { %v5935_v6 = vpop.f32.mrf.mxu1 }
 0x24b   : > { %v7689_v56 = vadd.f32 %v5935_v6, %v7677_v49 }
 0x24c   : > { %v7691_v1 = vpop.f32.mrf.mxu1 }
 0x24d   : > { %9182 = vst [vmem:[#allocation76_spill] sm:$0xff] %v7689_v56 }
 0x24e   : > { %v5938_v9 = vpop.f32.mrf.mxu1 }
 0x24f   : > { %v7694_v5 = vadd.f32 %v5938_v9, %v7677_v49  ;;  %v7733_v9 = vld [vmem:[#allocation16] ss:$0 sm:$0xff] }
 0x250   : > { %v2256_v28 = vpop.f32.mrf.mxu1 }
 0x251   : > { %9183 = vst [vmem:[#allocation77_spill] sm:$0xff] %v7694_v5  ;;  %v7697_v23 = vadd.f32 %v7677_v49, %v2256_v28 }
 0x252   : > { %v5939_v4 = vpop.f32.mrf.mxu1 }
 0x253   : > { %9184 = vst [vmem:[#allocation78_spill] sm:$0xff] %v7697_v23  ;;  %v7700_v11 = vadd.f32 %v5939_v4, %v7677_v49 }
 0x254   : > { %v2259_v57 = vpop.f32.mrf.mxu1 }
 0x255   : > { %9185 = vst [vmem:[#allocation79_spill] sm:$0xff] %v7700_v11  ;;  %v7703_v8 = vadd.f32 %v7677_v49, %v2259_v57 }
 0x256   : > { %v7705_v34 = vpop.f32.mrf.mxu1 }
 0x257   : > { %9186 = vst [vmem:[#allocation80_spill] sm:$0xff] %v7703_v8 }
 0x258   : > { %v7707_v10 = vpop.f32.mrf.mxu1 }
 0x25a   : > { %v7709_v12 = vpop.f32.mrf.mxu1 }
 0x25c   : > { %v7711_v29 = vpop.f32.mrf.mxu1 }
 0x25d   : > { %9187 = vst [vmem:[#allocation81_spill] sm:$0xff] %v7711_v29 }
 0x25e   : > { %v7713_v40 = vpop.f32.mrf.mxu1 }
 0x260   : > { %v7715_v55 = vpop.f32.mrf.mxu1 }
 0x262   : > { %v7717_v47 = vpop.f32.mrf.mxu1 }
 0x264   : > { %v7719_v63 = vpop.f32.mrf.mxu1 }
 0x265   : > { %9188 = vst [vmem:[#allocation82_spill] sm:$0xff] %v7719_v63 }
 0x2e6   : > { %v7721_v39 = vpop.f32.mrf.mxu1 }
 0x2e8   : > { %v7723_v42 = vpop.f32.mrf.mxu1 }
 0x2ea   : > { %v7725_v36 = vpop.f32.mrf.mxu1 }
 0x2ec   : > { %v7727_v37 = vpop.f32.mrf.mxu1 }
 0x2ee   : > { %v7729_v7 = vpop.f32.mrf.mxu1 }
 0x2f0   : > { %v7731_v51 = vpop.f32.mrf.mxu1 }
 0x2f1   : > { %v2062_v6 = vpop.f32.mrf.mxu0 }
 0x2f2   : > { %v5971_v28 = vpop.f32.mrf.mxu1  ;;  %v2063_v4 = vadd.f32 %v5630_v62, %v2062_v6 }
 0x2f3   : > { %v7736_v57 = vadd.f32 %v5971_v28, %v7733_v9  ;;  %v5918_v19 = vpop.f32.mrf.mxu0 }
 0x2f4   : > { %v2070_v0 = vsel %vm2069_vm10, %v2063_v4, -inf }
 0x2f5   : > { %9189 = vst [vmem:[#allocation83_spill] sm:$0xff] %v7736_v57  ;;  %2071 = vmax.xlane.f32.xlu0 %v2070_v0  ;;  %v2065_v61 = vpop.f32.mrf.mxu0 }
 0x2f6   : > { %v2066_v31 = vadd.f32 %v5630_v62, %v2065_v61 }
 0x2f7   : > { %v5919_v48 = vpop.f32.mrf.mxu0 }
 0x2f8   : > { %v2073_v11 = vsel %vm2069_vm10, %v2066_v31, -inf  ;;  %v9044_v48 = vmov 2  }
 0x2f9   : > { %2074 = vmax.xlane.f32.xlu0 %v2073_v11  ;;  %6275 = vset.pattern.permute.xlu1 %v9044_v48 }
 0x2fa   : > { %6274 = vset.pattern.permute.xlu0 %v9044_v48 }
 0x37e   : > { %v2072_v3 = vpop.xlane.xlu0 %2071 }
 0x37f   : > { %v2076_v5 = vsub.f32 %v2063_v4, %v2072_v3 }
 0x381   : > { %v2078_v2 = vmul.f32 1.442695, %v2076_v5 }
 0x382   : > { %v2075_v8 = vpop.xlane.xlu0 %2074 }
 0x383   : > { %6370 = vpow2.f32 %v2078_v2  ;;  %v2077_v60 = vsub.f32 %v2066_v31, %v2075_v8 }
 0x385   : > { %v2080_v6 = vmul.f32 1.442695, %v2077_v60 }
 0x387   : > { %6372 = vpow2.f32 %v2080_v6 }
 0x390   : > { %v6371_v28 = vpop.eup %6370 }
 0x391   : > { %v2082_v19 = vsel %vm2069_vm10, %v6371_v28, 0.0 }
 0x392   : > { %2083 = vadd.xlane.f32.xlu1 %v2082_v19 }
 0x394   : > { %v6373_v57 = vpop.eup %6372 }
 0x395   : > { %v2085_v0 = vsel %vm2069_vm10, %v6373_v57, 0.0 }
 0x396   : > { %2086 = vadd.xlane.f32.xlu1 %v2085_v0 }
 0x41b   : > { %v2084_v3 = vpop.xlane.xlu1 %2083 }
 0x41c   : > { %6374 = vrcp.f32 %v2084_v3 }
 0x41f   : > { %v2087_v61 = vpop.xlane.xlu1 %2086 }
 0x420   : > { %6376 = vrcp.f32 %v2087_v61 }
 0x429   : > { %v6375_v2 = vpop.eup %6374 }
 0x42a   : > { %v7744_v60 = vmul.f32 %v6375_v2, %v6371_v28  ;;  %v9047_v28 = vmov 1   ;;  %v9052_v2 = vmov 0  }
 0x42c   : > { %9190 = vst [vmem:[#allocation84_spill] sm:$0xff] %v7744_v60  ;;  %3197 = vperm.xlu0 %6274, %v7744_v60   ;;  %v2865_v31 = vrot.slane %v7744_v60, %v7566_v38  ;;  %v2858_v5 = vcombine.high %v7744_v60, %v7744_v60 }
 0x42d   : > { %v6377_v11 = vpop.eup %6376 }
 0x42e   : > { %v7751_v8 = vmul.f32 %v6377_v11, %v6373_v57  ;;  %v2881_v62 = vrot.slane %v2865_v31, %v7566_v38  ;;  %v2872_v4 = vrot.slane %v2858_v5, %v7566_v38  ;;  %v2873_v6 = vcombine.high %v2865_v31, %v2865_v31 }
 0x430   : > { %9191 = vst [vmem:[#allocation85_spill] sm:$0xff] %v7751_v8  ;;  %3201 = vperm.xlu1 %6275, %v7751_v8   ;;  %6281 = vset.pattern.permute.xlu0 %v9047_v28  ;;  %v2903_v19 = vcombine.high %v2881_v62, %v2881_v62  ;;  %v2888_v3 = vrot.slane %v2872_v4, %v7566_v38 }
 0x431   : > { %v2959_v61 = vrot.slane %v2881_v62, %v7574_v33  ;;  %v2895_v57 = vrot.slane %v2873_v6, %v7566_v38  ;;  %v2874_v11 = vcombine.high %v2872_v4, %v2872_v4  ;;  %v2914_v62 = vrot.slane %v7751_v8, %v7566_v38 }
 0x432   : > { %v2967_v0 = vrot.slane %v2903_v19, %v7574_v33  ;;  %v2975_v31 = vrot.slane %v2888_v3, %v7574_v33  ;;  %v2904_v60 = vcombine.high %v2888_v3, %v2888_v3 }
 0x433   : > { %v2905_v5 = vcombine.high %v2895_v57, %v2895_v57  ;;  %v2902_v48 = vrot.slane %v2874_v11, %v7566_v38  ;;  %v2963_v6 = vrot.slane %v2895_v57, %v7574_v33  ;;  %v2907_v57 = vcombine.high %v7751_v8, %v7751_v8 }
 0x434   : > { %3109 = vperm.xlu0 %6281, %v2967_v0   ;;  %6276 = vset.pattern.permute.xlu1 %v9052_v2 }
 0x435   : > { %3021 = vperm.xlu1 %6276, %v2959_v61   ;;  %v2971_v19 = vrot.slane %v2905_v5, %v7574_v33  ;;  %v2979_v4 = vrot.slane %v2902_v48, %v7574_v33  ;;  %v2983_v5 = vrot.slane %v2904_v60, %v7574_v33  ;;  %v2906_v3 = vcombine.high %v2902_v48, %v2902_v48 }
 0x436   : > { %v2921_v27 = vrot.slane %v2907_v57, %v7566_v38  ;;  %v6344_v57 = vld [vmem:[#allocation19] sm:$0xff]  }
 0x437   : > { %v2987_v60 = vrot.slane %v2906_v3, %v7574_v33 }
 0x438   : > { %3117 = vperm.xlu0 %6281, %v2975_v31   ;;  %v2923_v54 = vcombine.high %v2921_v27, %v2921_v27 }
 0x439   : > { %6277 = vset.pattern.permute.xlu1 %v9047_v28  ;;  %v2922_v28 = vcombine.high %v2914_v62, %v2914_v62 }
 0x43a   : > { %3101 = vperm.xlu1 %6277, %v2959_v61   ;;  %v9192_v61 = vmov 1   ;;  %v2951_v48 = vrot.slane %v2923_v54, %v7566_v38  ;;  %v9193_v54 = vmov 2  }
 0x43b   : > { %v2944_v11 = vrot.slane %v2922_v28, %v7566_v38 }
 0x43c   : > { %6283 = vset.pattern.permute.xlu0 %v9052_v2 }
 0x43d   : > { %3033 = vperm.xlu0 %6283, %v2971_v19   ;;  %v2995_v56 = vrot.slane %v2944_v11, %v7574_v33  ;;  %v2954_v28 = vcombine.high %v2944_v11, %v2944_v11  ;;  %v6343_v11 = vld [vmem:[#allocation19 + $0x8] sm:$0xff]  }
 0x43e   : > { %6278 = vset.pattern.permute.xlu1 %v9052_v2  ;;  %6022 = vmatprep.subr.bf16.mxu1 %v6343_v11 }
 0x43f   : > { %3025 = vperm.xlu1 %6278, %v2963_v6   ;;  %v3003_v21 = vrot.slane %v2954_v28, %v7574_v33  ;;  %6023 = vmatpush3.bf16.msra.mxu1 %v6343_v11  ;;  %v6345_v28 = vld [vmem:[%s9194_s4 + $0x8] sm:$0xff]  }
 0x440   : > { %6024 = vmatprep.subr.bf16.mxu1 %v6344_v57  ;;  %5981 = vmatpush3.bf16.msra.mxu0 %v6345_v28  ;;  %v2209_v28 = vadd.f32 %v7677_v49, %v7667_v44 }
 0x441   : > { %3041 = vperm.xlu0 %6283, %v2979_v4  }
 0x443   : > { %6279 = vset.pattern.permute.xlu1 %v9192_v61  ;;  %6025 = vmatpush3.bf16.msra.mxu1 %v6344_v57 }
 0x444   : > { %3105 = vperm.xlu1 %6279, %v2963_v6   ;;  %v2930_v6 = vrot.slane %v2914_v62, %v7566_v38 }
 0x445   : > { %6285 = vset.pattern.permute.xlu0 %v9192_v61 }
 0x446   : > { %3125 = vperm.xlu0 %6285, %v2983_v5   ;;  %v2991_v8 = vrot.slane %v2930_v6, %v7574_v33 }
 0x448   : > { %6280 = vset.pattern.permute.xlu1 %v9052_v2 }
 0x449   : > { %3029 = vperm.xlu1 %6280, %v2967_v0   ;;  %v3011_v0 = vrot.slane %v2951_v48, %v7574_v33 }
 0x44a   : > { %3137 = vperm.xlu0 %6285, %v2995_v56  }
 0x44d   : > { %3037 = vperm.xlu1 %6280, %v2975_v31   ;;  %v2955_v31 = vcombine.high %v2951_v48, %v2951_v48  ;;  %v9196_v48 = vpack.c.bf16 %v7568_v46, %v7564_v41 }
 0x44e   : > { %6289 = vset.pattern.permute.xlu0 %v9052_v2 }
 0x44f   : > { %3049 = vperm.xlu0 %6289, %v2987_v60   ;;  %v3019_v62 = vrot.slane %v2955_v31, %v7574_v33  ;;  %v9197_v31 = vmov 0.0  }
 0x450   : > { %5982 = vmatprep.subr.bf16.mxu0 %v9197_v31 }
 0x451   : > { %3053 = vperm.xlu1 %6280, %v2991_v8  }
 0x453   : > { %6291 = vset.pattern.permute.xlu0 %v9192_v61 }
 0x454   : > { %3145 = vperm.xlu0 %6291, %v3003_v21  }
 0x455   : > { %6282 = vset.pattern.permute.xlu1 %v9192_v61 }
 0x456   : > { %3133 = vperm.xlu1 %6282, %v2991_v8   ;;  %v2952_v8 = vcombine.high %v2930_v6, %v2930_v6 }
 0x458   : > { %3153 = vperm.xlu0 %6291, %v3011_v0   ;;  %v2999_v3 = vrot.slane %v2952_v8, %v7574_v33 }
 0x45a   : > { %3113 = vperm.xlu1 %6282, %v2971_v19   ;;  %v2937_v19 = vrot.slane %v2921_v27, %v7566_v38  ;;  %v5614_v27 = vld [vmem:[#allocation7] ss:$0 sm:$0xff] }
 0x45b   : > { %v1609_v6 = vadd.f32 %v5614_v27, %v7552_v45 }
 0x45c   : > { %3161 = vperm.xlu0 %6291, %v3019_v62  }
 0x45d   : > { %6378 = vtanh.f32 %v1609_v6 }
 0x45e   : > { %3121 = vperm.xlu1 %6282, %v2979_v4   ;;  %v3007_v4 = vrot.slane %v2937_v19, %v7574_v33 }
 0x460   : > { %6295 = vset.pattern.permute.xlu0 %v9193_v54 }
 0x462   : > { %6284 = vset.pattern.permute.xlu1 %v9052_v2 }
 0x463   : > { %3045 = vperm.xlu1 %6284, %v2983_v5  }
 0x467   : > { %3057 = vperm.xlu1 %6284, %v2995_v56   ;;  %v2953_v56 = vcombine.high %v2937_v19, %v2937_v19 }
 0x469   : > { %v3015_v5 = vrot.slane %v2953_v56, %v7574_v33 }
 0x46a   : > { %v6379_v45 = vpop.eup %6378 }
 0x46b   : > { %3061 = vperm.xlu1 %6284, %v2999_v3  }
 0x46f   : > { %6286 = vset.pattern.permute.xlu1 %v9192_v61 }
 0x470   : > { %3141 = vperm.xlu1 %6286, %v2999_v3  }
 0x474   : > { %6287 = vset.pattern.permute.xlu1 %v9052_v2 }
 0x475   : > { %3069 = vperm.xlu1 %6287, %v3007_v4  }
 0x479   : > { %6288 = vset.pattern.permute.xlu1 %v9192_v61 }
 0x47a   : > { %3149 = vperm.xlu1 %6288, %v3007_v4   ;;  %v6394_v4 = vld [vmem:[%s7315_s14] sm:$0xff]   ;;  %s7929_s14 = scalar_lea.vmem [#allocation22], %s7267_s19 }
 0x47b   : > { %s5249_s5 = sshll.u32 %s7929_s14, 4  ;;  %s8640_s5 = int_to_ptr.vmem [resolvable:$true] %s5249_s5 }
 0x47c   : > { %s6709_s8 = scalar_lea.vmem %s8640_s5, 1024 }
 0x47d   : > { %p6710_p13 = scmp.ne.s32.totalorder %s8640_s5, %s6709_s8 }
 0x47e   : > { %6290 = vset.pattern.permute.xlu1 %v9052_v2 }
 0x47f   : > { %3065 = vperm.xlu1 %6290, %v3003_v21   ;;  %v1612_v21 = vadd.f32 %v5614_v27, %v7556_v32  ;;  %v6347_v32 = vld [vmem:[%s9195_s16 + $0x8] sm:$0xff]   ;;  %v6348_v27 = vld [vmem:[%s9195_s16] sm:$0xff]   ;;  %p6711_p2 = pnand %p6710_p13, %p9266_p6 }
 0x481   : > { %6380 = vtanh.f32 %v1612_v21  ;;  %v5731_v21 = vpack.c.bf16 %v7568_v46, %v7568_v46  ;;  %p6712_p8 = pneg %p6711_p2 }
 0x483   : > { %3073 = vperm.xlu1 %6290, %v3011_v0   ;;  %v4159_v0 = vrot.slane %v9196_v48, %v7566_v38  ;;  %v7838_v48 = vpop.f32.mrf.mxu0 }
 0x485   : > { %v7819_v8 = vrot.slane %v4159_v0, %v7566_v38 }
 0x487   : > { %3077 = vperm.xlu1 %6290, %v3015_v5   ;;  %v5732_v6 = vpack.i.b16 %v7819_v8, %v7819_v8 }
 0x48b   : > { %6292 = vset.pattern.permute.xlu1 %v9192_v61 }
 0x48c   : > { %3157 = vperm.xlu1 %6292, %v3015_v5  }
 0x48e   : > { %v6381_v41 = vpop.eup %6380 }
 0x490   : > { %6293 = vset.pattern.permute.xlu1 %v9052_v2  ;;  %v9198_v2 = vunpack.c.l.bf16 %v7343_v13 }
 0x491   : > { %3081 = vperm.xlu1 %6293, %v3019_v62   ;;  %v6346_v62 = vld [vmem:[%s9194_s4] sm:$0xff]  }
 0x492   : > { %5983 = vmatpush3.bf16.msra.mxu0 %v6346_v62 }
 0x493   : > { %5988 = vmatprep.subr.bf16.mxu0 %v9197_v31 }
 0x495   : > { %6294 = vset.pattern.permute.xlu1 %v9192_v61  ;;  %5985 = vmatmul.mubr.msk.bf16.vlgmr.msra.gmra.mxu0 %vm1420_vm1, %v6394_v4  ;;  %v4236_v4 = vrot.slane %v5732_v6, %v7574_v33  ;;  %v2323_v61 = vpop.f32.mrf.mxu0 }
 0x496   : > { %3129 = vperm.xlu1 %6294, %v2987_v60   ;;  %v4167_v60 = vcombine.high %v4159_v0, %v4159_v0  ;;  %5989 = vmatpush3.bf16.msra.mxu0 %v6347_v32  ;;  %v4202_v32 = vunpack.i.h.s16 %v7819_v8 }
 0x497   : > { %5990 = vmatprep.subr.bf16.mxu0 %v9197_v31  ;;  %5992 = vmatprep.mubr.msk.bf16.mxu0 %vm6879_vm0, %v9197_v31  ;;  %v4298_v59 = vpack.i.b16 %v4236_v4, %v4236_v4 }
 0x498   : > { %v7822_v19 = vrot.slane %v4167_v60, %v7566_v38 }
 0x49a   : > { %6296 = vset.pattern.permute.xlu1 %v9193_v54  ;;  %5991 = vmatpush3.bf16.msra.mxu0 %v6348_v27  ;;  %v2840_v27 = vadd.f32 %v2209_v28, %v9198_v2  ;;  %v2778_v54 = vadd.f32 %v7733_v9, %v7723_v42  ;;  %v4204_v28 = vunpack.i.h.s16 %v7822_v19 }
 0x49b   : > { %5996 = vmatprep.subr.bf16.mxu0 %v9197_v31 }
 0x4a7   : > { %v3198_v11 = vpop.permute.xlu0 %3197 }
 0x4a8   : > { %v7814_v57 = vmul.f32 %v6379_v45, %v3198_v11  ;;  %v5733_v45 = vpack.i.b16 %v7822_v19, %v7822_v19 }
 0x4aa   : > { %v3215_v56 = vrot.slane %v7814_v57, %v7566_v38 }
 0x4ab   : > { %v3202_v3 = vpop.permute.xlu1 %3201 }
 0x4ac   : > { %v3205_v5 = vmul.f32 %v6381_v41, %v3202_v3  ;;  %v7844_v60 = vrot.slane %v3215_v56, %v7566_v38  ;;  %v7847_v41 = vld [vmem:[#allocation14] ss:$0 sm:$0xff]  ;;  %v3223_v63 = vcombine.high %v3215_v56, %v3215_v56 }
 0x4ad   : > { %v2324_v6 = vadd.f32 %v7847_v41, %v2323_v61  ;;  %v2364_v42 = vadd.f32 %v7705_v34, %v7847_v41  ;;  %v2367_v58 = vadd.f32 %v7709_v12, %v7847_v41  ;;  %v2372_v34 = vadd.f32 %v7847_v41, %v7715_v55 }
 0x4ae   : > { %v3257_v0 = vcombine.high %v3205_v5, %v3205_v5  ;;  %v3264_v62 = vrot.slane %v3205_v5, %v7566_v38  ;;  %v7856_v5 = vrot.slane %v5731_v21, %v7566_v38  ;;  %v3309_v21 = vrot.slane %v7844_v60, %v7574_v33 }
 0x4af   : > { %v7897_v55 = vrot.slane %v4298_v59, %v7574_v33  ;;  %v3208_v59 = vcombine.high %v7814_v57, %v7814_v57 }
 0x4b0   : > { %v3022_v11 = vpop.permute.xlu1 %3021  ;;  %v3271_v46 = vrot.slane %v3257_v0, %v7566_v38  ;;  %v3272_v44 = vcombine.high %v3264_v62, %v3264_v62  ;;  %v7851_v3 = vrot.slane %v3264_v62, %v7566_v38  ;;  %v7867_v62 = vrot.slane %v5733_v45, %v7574_v33 }
 0x4b1   : > { %v3084_v61 = vmul.f32 %v3022_v11, %v2840_v27  ;;  %v3386_v56 = vmul.f32 %v3309_v21, %v2324_v6  ;;  %v7893_v11 = vpop.f32.mrf.mxu0 }
 0x4b2   : > { %v3287_v0 = vrot.slane %v3271_v46, %v7566_v38  ;;  %v7864_v23 = vrot.slane %v3272_v44, %v7566_v38  ;;  %v3273_v31 = vcombine.high %v3271_v46, %v3271_v46  ;;  %v3302_v13 = vcombine.high %v7851_v3, %v7851_v3 }
 0x4b3   : > { %v4218_v44 = vpack.i.b16 %v4202_v32, %v4202_v32  ;;  %v2212_v46 = vadd.f32 %v7677_v49, %v7671_v53  ;;  %v2383_v53 = vadd.f32 %v7717_v47, %v7847_v41 }
 0x4b4   : > { %v3304_v45 = vcombine.high %v7864_v23, %v7864_v23  ;;  %v3303_v25 = vcombine.high %v3287_v0, %v3287_v0  ;;  %v7886_v29 = vrot.slane %v3273_v31, %v7566_v38  ;;  %v3349_v4 = vrot.slane %v3302_v13, %v7574_v33 }
 0x4b5   : > { %v3102_v2 = vpop.permute.xlu1 %3101  ;;  %v3357_v12 = vrot.slane %v3287_v0, %v7574_v33  ;;  %v7900_v31 = vrot.slane %v3223_v63, %v7566_v38 }
 0x4b6   : > { %v3164_v26 = vmul.f32 %v3102_v2, %v2778_v54  ;;  %v2380_v54 = vadd.f32 %v7713_v40, %v7847_v41  ;;  %v7902_v6 = vmul.f32 %v3349_v4, %v2364_v42  ;;  %v3353_v21 = vrot.slane %v3304_v45, %v7574_v33 }
 0x4b7   : > { %v9199_v40 = vunpack.c.l.bf16 %v7346_v14  ;;  %v7907_v13 = vmul.f32 %v3357_v12, %v2372_v34  ;;  %v3365_v0 = vrot.slane %v3303_v25, %v7574_v33  ;;  %v3305_v42 = vcombine.high %v7886_v29, %v7886_v29  ;;  %v3110_v12 = vpop.permute.xlu0 %3109 }
 0x4b8   : > { %v3180_v32 = vadd.f32 %v3164_v26, %v3084_v61  ;;  %v7914_v2 = vmul.f32 %v3353_v21, %v2367_v58  ;;  %v2217_v45 = vadd.f32 %v7665_v24, %v7677_v49  ;;  %v2781_v14 = vadd.f32 %v7733_v9, %v7727_v37  ;;  %v2326_v61 = vpop.f32.mrf.mxu0 }
 0x4b9   : > { %v2841_v47 = vadd.f32 %v2212_v46, %v9199_v40  ;;  %v7922_v46 = vmul.f32 %v3365_v0, %v2380_v54  ;;  %v4240_v25 = vrot.slane %v4218_v44, %v7574_v33  ;;  %v2327_v57 = vadd.f32 %v7847_v41, %v2326_v61 }
 0x4ba   : > { %v3402_v26 = vadd.f32 %v3386_v56, %v3180_v32  ;;  %v3026_v27 = vpop.permute.xlu1 %3025  ;;  %v3313_v58 = vrot.slane %v7900_v31, %v7574_v33  ;;  %v3369_v24 = vrot.slane %v3305_v42, %v7574_v33  ;;  %v3253_v34 = vcombine.high %v7844_v60, %v7844_v60 }
 0x4bb   : > { %9201 = vst [vmem:[#allocation87_spill] sm:$0xff] %v7922_v46  ;;  %v4220_v32 = vpack.i.b16 %v4204_v28, %v4204_v28  ;;  %v4197_v56 = vcombine.high %v7819_v8, %v7819_v8  ;;  %v7943_v4 = vrot.slane %v7856_v5, %v7566_v38  ;;  %v7946_v54 = vrot.slane %v3208_v59, %v7566_v38 }
 0x4bc   : > { %v7912_v63 = vpack.c.bf16 %v3402_v26, %v3402_v26  ;;  %v3085_v21 = vmul.f32 %v3026_v27, %v2841_v47  ;;  %v7948_v0 = vmul.f32 %v3369_v24, %v2383_v53  ;;  %v2225_v60 = vadd.f32 %v7677_v49, %v7675_v43  ;;  %v7962_v47 = vpop.f32.mrf.mxu0 }
 0x4bd   : > { %v9202_v28 = vunpack.c.l.bf16 %v7349_v15  ;;  %v4168_v8 = vcombine.high %v7856_v5, %v7856_v5  ;;  %v3387_v42 = vmul.f32 %v3313_v58, %v2327_v57  ;;  %v4312_v59 = vpack.i.b16 %v7867_v62, %v7867_v62  ;;  %v7971_v58 = vpop.f32.mrf.mxu1 }
 0x4be   : > { %9200 = vst [vmem:[#allocation86_spill] sm:$0xff] %v7912_v63  ;;  %3435 = vst.msk [vmem:[%s7929_s14] sm:$0xf] %vm3434_vm11, %v7912_v63  ;;  %v4409_v37 = vmul.bf16 %v7897_v55, %v7912_v63  ;;  %v4305_v46 = vpack.i.b16 %v4240_v25, %v4240_v25  ;;  %v2786_v27 = vadd.f32 %v7721_v39, %v7733_v9  ;;  %v4210_v25 = vunpack.i.h.s16 %v7943_v4 }
 0x4bf   : > { %v3106_v44 = vpop.permute.xlu1 %3105  ;;  %v2842_v55 = vadd.f32 %v2217_v45, %v9202_v28  ;;  %v2332_v53 = vadd.f32 %v7838_v48, %v7847_v41  ;;  %v3317_v15 = vrot.slane %v3253_v34, %v7574_v33  ;;  %v5734_v43 = vpack.i.b16 %v4197_v56, %v4197_v56 }
 0x4c0   : > { %v3165_v40 = vmul.f32 %v3106_v44, %v2781_v14  ;;  %v7967_v45 = vrot.slane %v7946_v54, %v7566_v38  ;;  %v4248_v62 = vrot.slane %v4220_v32, %v7574_v33  ;;  %v3166_v39 = vmul.f32 %v3110_v12, %v2786_v27  ;;  %v2339_v12 = vpop.f32.mrf.mxu0 }
 0x4c1   : > { %v9203_v24 = vunpack.c.l.bf16 %v7356_v17  ;;  %v4206_v34 = vunpack.i.h.s16 %v4197_v56  ;;  %v4199_v32 = vcombine.high %v7822_v19, %v7822_v19  ;;  %v4252_v17 = vrot.slane %v5734_v43, %v7574_v33 }
 0x4c2   : > { %v3181_v61 = vadd.f32 %v3165_v40, %v3085_v21  ;;  %v3118_v21 = vpop.permute.xlu0 %3117  ;;  %v2340_v56 = vadd.f32 %v7847_v41, %v2339_v12  ;;  %v4319_v19 = vpack.i.b16 %v4248_v62, %v4248_v62 }
 0x4c3   : > { %v2844_v44 = vadd.f32 %v2225_v60, %v9203_v24  ;;  %v3325_v60 = vrot.slane %v7967_v45, %v7574_v33  ;;  %v4208_v24 = vunpack.i.h.s16 %v4199_v32 }
 0x4c4   : > { %v3403_v14 = vadd.f32 %v3387_v42, %v3181_v61  ;;  %v3030_v57 = vpop.permute.xlu1 %3029  ;;  %v4310_v42 = vrot.slane %v4305_v46, %v7574_v33  ;;  %v2794_v61 = vadd.f32 %v7733_v9, %v7731_v51  ;;  %v7994_v46 = vpop.f32.mrf.mxu1  ;;  %v8012_v12 = vrot.slane %v4319_v19, %v7574_v33 }
 0x4c5   : > { %v3086_v48 = vmul.f32 %v3030_v57, %v2842_v55  ;;  %v3388_v55 = vmul.f32 %v3317_v15, %v2332_v53  ;;  %v2241_v57 = vadd.f32 %v7677_v49, %v7686_v35  ;;  %v4224_v19 = vpack.i.b16 %v4208_v24, %v4208_v24 }
 0x4c6   : > { %v7975_v40 = vpack.c.bf16 %v3403_v14, %v3403_v14  ;;  %v7977_v28 = vpack.c.bf16 %v3403_v14, %v3402_v26  ;;  %v3168_v53 = vmul.f32 %v3118_v21, %v2794_v61  ;;  %v4222_v14 = vpack.i.b16 %v4206_v34, %v4206_v34  ;;  %v2809_v35 = vpop.f32.mrf.mxu1 }
 0x4c7   : > { %v3182_v27 = vadd.f32 %v3166_v39, %v3086_v48  ;;  %v8001_v39 = vrot.slane %v4312_v59, %v7574_v33  ;;  %v4326_v21 = vpack.i.b16 %v4252_v17, %v4252_v17  ;;  %v5736_v61 = vpack.i.b16 %v7943_v4, %v7943_v4 }
 0x4c8   : > { %9204 = vst [vmem:[#allocation88_spill] sm:$0xff] %v7975_v40  ;;  %3436 = vst.msk [vmem:[%s7929_s14 + $0x4] sm:$0xf] %vm3434_vm11, %v7975_v40  ;;  %v3038_v26 = vpop.permute.xlu1 %3037  ;;  %6026 = vmatprep.mubr.msk.bf16.mxu1 %vm1420_vm1, %v7977_v28  ;;  %v4410_v51 = vmul.bf16 %v4310_v42, %v7975_v40  ;;  %v4256_v59 = vrot.slane %v4222_v14, %v7574_v33  ;;  %v2220_v17 = vadd.f32 %v7669_v50, %v7677_v49 }
 0x4c9   : > { %v7996_v15 = vadd.f32 %v3388_v55, %v3182_v27  ;;  %v3088_v43 = vmul.f32 %v3038_v26, %v2844_v44  ;;  %v3390_v44 = vmul.f32 %v3325_v60, %v2340_v56  ;;  %v5735_v27 = vpack.i.b16 %v4199_v32, %v4199_v32 }
 0x4ca   : > { %v8003_v48 = vcombine.low %v4409_v37, %v4410_v51  ;;  %v4226_v55 = vpack.i.b16 %v4210_v25, %v4210_v25  ;;  %v9206_v56 = vunpack.c.l.bf16 %v7370_v22  ;;  %v2356_v51 = vadd.f32 %v7847_v41, %v7707_v10 }
 0x4cb   : > { %v8007_v62 = vpack.c.bf16 %v7996_v15, %v7996_v15  ;;  %v3184_v42 = vadd.f32 %v3168_v53, %v3088_v43  ;;  %v3034_v53 = vpop.permute.xlu0 %3033  ;;  %v8029_v43 = vrot.slane %v4326_v21, %v7574_v33  ;;  %v4268_v32 = vrot.slane %v5736_v61, %v7574_v33  ;;  %v8055_v21 = vpop.f32.mrf.mxu0 }
 0x4cc   : > { %v3054_v34 = vpop.permute.xlu1 %3053  ;;  %v2848_v60 = vadd.f32 %v2241_v57, %v9206_v56  ;;  %v8036_v50 = vrot.slane %v4168_v8, %v7566_v38  ;;  %v2810_v22 = vadd.f32 %v7733_v9, %v2809_v35  ;;  %v3255_v25 = vcombine.high %v7900_v31, %v7900_v31 }
 0x4cd   : > { %9205 = vst [vmem:[#allocation89_spill] sm:$0xff] %v8007_v62  ;;  %3437 = vst.msk [vmem:[%s7929_s14 + $0x8] sm:$0xf] %vm3434_vm11, %v8007_v62  ;;  %v4411_v37 = vmul.bf16 %v8001_v39, %v8007_v62  ;;  %v8022_v26 = vadd.f32 %v3390_v44, %v3184_v42  ;;  %v3341_v10 = vrot.slane %v7851_v3, %v7574_v33  ;;  %v9208_v31 = vunpack.c.l.bf16 %v7353_v16 }
 0x4ce   : > { %v3224_v57 = vcombine.high %v7946_v54, %v7946_v54  ;;  %v4333_v42 = vpack.i.b16 %v4256_v59, %v4256_v59  ;;  %v8050_v5 = vrot.slane %v5735_v27, %v7574_v33  ;;  %v8053_v8 = vrot.slane %v4226_v55, %v7574_v33 }
 0x4cf   : > { %v8045_v14 = vpack.c.bf16 %v8022_v26, %v8022_v26  ;;  %v2843_v3 = vadd.f32 %v2220_v17, %v9208_v31  ;;  %v3092_v61 = vmul.f32 %v3054_v34, %v2848_v60  ;;  %v2228_v35 = vadd.f32 %v7677_v49, %v7682_v52 }
 0x4d0   : > { %v2789_v59 = vadd.f32 %v7725_v36, %v7733_v9  ;;  %v8069_v27 = vrot.slane %v4224_v19, %v7574_v33  ;;  %v4354_v55 = vpack.i.b16 %v4268_v32, %v4268_v32  ;;  %v2335_v16 = vadd.f32 %v7893_v11, %v7847_v41  ;;  %v2342_v32 = vpop.f32.mrf.mxu0 }
 0x4d1   : > { %9207 = vst [vmem:[#allocation90_spill] sm:$0xff] %v8045_v14  ;;  %v3134_v24 = vpop.permute.xlu1 %3133  ;;  %3439 = vst.msk [vmem:[%s7929_s14 + $0x10] sm:$0xf] %vm3434_vm11, %v8045_v14  ;;  %v3321_v17 = vrot.slane %v3255_v25, %v7574_v33  ;;  %v3394_v34 = vmul.f32 %v3341_v10, %v2356_v51  ;;  %v8075_v60 = vrot.slane %v3224_v57, %v7566_v38  ;;  %v4212_v36 = vunpack.i.h.s16 %v8036_v50  ;;  %v9232_v38 = vld [vmem:[#allocation76_spill] sm:$0xff] }
 0x4d2   : > { %v3172_v44 = vmul.f32 %v3134_v24, %v2810_v22  ;;  %v3042_v22 = vpop.permute.xlu0 %3041  ;;  %v8078_v52 = vrot.slane %v4333_v42, %v7574_v33  ;;  %v9060_v11 = vunpack.c.l.bf16 %v7912_v63  ;;  %v3087_v31 = vmul.f32 %v3034_v53, %v2843_v3  ;;  %v9230_v63 = vld [vmem:[#allocation65_spill] sm:$0xff] }
 0x4d3   : > { %v2233_v10 = vadd.f32 %v7673_v30, %v7677_v49  ;;  %v9209_v57 = vunpack.c.l.bf16 %v7359_v18  ;;  %v2797_v19 = vadd.f32 %v7733_v9, %v7971_v58  ;;  %v3389_v53 = vmul.f32 %v3321_v17, %v2335_v16 }
 0x4d4   : > { %v3188_v56 = vadd.f32 %v3172_v44, %v3092_v61  ;;  %v4340_v61 = vpack.i.b16 %v8050_v5, %v8050_v5  ;;  %v3254_v18 = vcombine.high %v7967_v45, %v7967_v45  ;;  %v2343_v30 = vadd.f32 %v7847_v41, %v2342_v32 }
 0x4d5   : > { %v3114_v24 = vpop.permute.xlu1 %3113  ;;  %v2845_v42 = vadd.f32 %v2228_v35, %v9209_v57  ;;  %v3329_v5 = vrot.slane %v8075_v60, %v7574_v33  ;;  %v3467_v58 = vsel %vm1420_vm1, %v9060_v11, 0.0  ;;  %v8118_v45 = vcombine.high %v7943_v4, %v7943_v4 }
 0x4d6   : > { %v8084_v25 = vadd.f32 %v3394_v34, %v3188_v56  ;;  %v3167_v51 = vmul.f32 %v3114_v24, %v2789_v59  ;;  %v8100_v34 = vpop.f32.mrf.mxu1  ;;  %v8108_v56 = vrot.slane %v4354_v55, %v7574_v33  ;;  %v2244_v24 = vadd.f32 %v7677_v49, %v7691_v1  ;;  %v3126_v55 = vpop.permute.xlu0 %3125 }
 0x4d7   : > { %v3089_v32 = vmul.f32 %v3042_v22, %v2845_v42  ;;  %v9210_v1 = vunpack.c.l.bf16 %v7364_v20  ;;  %v3333_v42 = vrot.slane %v3254_v18, %v7574_v33  ;;  %v9061_v44 = vunpack.c.l.bf16 %v7975_v40 }
 0x4d8   : > { %v8098_v3 = vpack.c.bf16 %v8084_v25, %v8084_v25  ;;  %v3183_v59 = vadd.f32 %v3167_v51, %v3087_v31  ;;  %v8126_v51 = vcombine.high %v8036_v50, %v8036_v50  ;;  %v2812_v22 = vpop.f32.mrf.mxu1  ;;  %v2802_v31 = vadd.f32 %v7729_v7, %v7733_v9 }
 0x4d9   : > { %v3122_v35 = vpop.permute.xlu1 %3121  ;;  %v4228_v20 = vpack.i.b16 %v4212_v36, %v4212_v36  ;;  %v3345_v39 = vrot.slane %v7864_v23, %v7574_v33 }
 0x4da   : > { %3443 = vst.msk [vmem:[%s7929_s14 + $0x20] sm:$0xf] %vm3434_vm11, %v8098_v3  ;;  %v3405_v16 = vadd.f32 %v3389_v53, %v3183_v59  ;;  %v3169_v17 = vmul.f32 %v3122_v35, %v2797_v19  ;;  %v2348_v19 = vadd.f32 %v7962_v47, %v7847_v41  ;;  %v2846_v53 = vadd.f32 %v2233_v10, %v9210_v1 }
 0x4db   : > { %v3391_v59 = vmul.f32 %v3329_v5, %v2343_v30  ;;  %v3468_v35 = vrot.slane %v3467_v58, 4  ;;  %v4214_v30 = vunpack.i.h.s16 %v8118_v45  ;;  %v4216_v7 = vunpack.i.h.s16 %v8126_v51  ;;  %v9211_v5 = vld [vmem:[#allocation81_spill] sm:$0xff] }
 0x4dc   : > { %v8130_v57 = vpack.c.bf16 %v3405_v16, %v3405_v16  ;;  %v8133_v4 = vpack.c.bf16 %v3405_v16, %v7996_v15  ;;  %v3185_v11 = vadd.f32 %v3169_v17, %v3089_v32  ;;  %v2359_v16 = vadd.f32 %v7847_v41, %v9211_v5 }
 0x4dd   : > { %v2813_v17 = vadd.f32 %v7733_v9, %v2812_v22  ;;  %v3170_v32 = vmul.f32 %v3126_v55, %v2802_v31  ;;  %v3392_v1 = vmul.f32 %v3333_v42, %v2348_v19  ;;  %v3469_v36 = vadd.f32 %v3468_v35, %v3467_v58 }
 0x4de   : > { %3438 = vst.msk [vmem:[%s7929_s14 + $0xc] sm:$0xf] %vm3434_vm11, %v8130_v57  ;;  %v4412_v47 = vmul.bf16 %v8012_v12, %v8130_v57  ;;  %v3046_v15 = vpop.permute.xlu1 %3045  ;;  %6027 = vmatmul.mubr.msk.bf16.vlgmr.msra.gmra.mxu1 %vm1420_vm1, %v8133_v4  ;;  %v3407_v10 = vadd.f32 %v3391_v59, %v3185_v11  ;;  %v3138_v11 = vpop.permute.xlu0 %3137  ;;  %v9212_v59 = vld [vmem:[#allocation63_spill] sm:$0xff]  ;;  %v3474_v5 = vsel %vm1420_vm1, %v9061_v44, 0.0  ;;  %v8174_v58 = vrot.slane %v4340_v61, %v7574_v33 }
 0x4df   : > { %v3090_v18 = vmul.f32 %v3046_v15, %v2846_v53  ;;  %v9213_v15 = vunpack.c.l.bf16 %v9212_v59  ;;  %v4230_v31 = vpack.i.b16 %v4214_v30, %v4214_v30  ;;  %v5739_v19 = vpack.i.b16 %v8126_v51, %v8126_v51  ;;  %v9214_v61 = vld [vmem:[#allocation75_spill] sm:$0xff] }
 0x4e0   : > { %v8156_v12 = vcombine.low %v4411_v37, %v4412_v47  ;;  %v8158_v53 = vpack.c.bf16 %v3407_v10, %v3407_v10  ;;  %v8166_v22 = vpack.c.bf16 %v3407_v10, %v8022_v26  ;;  %v3173_v26 = vmul.f32 %v3138_v11, %v2813_v17 }
 0x4e1   : > { %v2849_v54 = vadd.f32 %v2244_v24, %v9213_v15  ;;  %v3186_v55 = vadd.f32 %v3170_v32, %v3090_v18  ;;  %v5738_v24 = vpack.i.b16 %v8118_v45, %v8118_v45  ;;  %v2249_v47 = vadd.f32 %v9214_v61, %v7677_v49  ;;  %v5978_v15 = vpop.f32.mrf.mxu1  ;;  %v9219_v61 = vld [vmem:[#allocation64_spill] sm:$0xff] }
 0x4e2   : > { %v3058_v37 = vpop.permute.xlu1 %3057  ;;  %3440 = vst.msk [vmem:[%s7929_s14 + $0x14] sm:$0xf] %vm3434_vm11, %v8158_v53  ;;  %6030 = vmatprep.mubr.msk.bf16.mxu1 %vm1420_vm1, %v8166_v22  ;;  %v4414_v23 = vmul.bf16 %v8078_v52, %v8158_v53  ;;  %v3470_v10 = vrot.slane %v3469_v36, 2  ;;  %v3475_v45 = vrot.slane %v3474_v5, 4  ;;  %v4232_v18 = vpack.i.b16 %v4216_v7, %v4216_v7 }
 0x4e3   : > { %v8180_v42 = vadd.f32 %v3392_v1, %v3186_v55  ;;  %v3093_v35 = vmul.f32 %v3058_v37, %v2849_v54  ;;  %v3395_v30 = vmul.f32 %v3345_v39, %v2359_v16  ;;  %v9215_v32 = vmul.bf16 %v8029_v43, %v8045_v14 }
 0x4e4   : > { %v9217_v52 = vpack.i.b16 %v8053_v8, %v8053_v8  ;;  %v9218_v7 = vpack.i.b16 %v8036_v50, %v8036_v50  ;;  %v4280_v59 = vrot.slane %v4228_v20, %v7574_v33  ;;  %v4284_v16 = vrot.slane %v5738_v24, %v7574_v33 }
 0x4e5   : > { %v8190_v51 = vpack.c.bf16 %v8180_v42, %v8180_v42  ;;  %v3189_v17 = vadd.f32 %v3173_v26, %v3093_v35  ;;  %v8195_v1 = vcombine.low %v9215_v32, %v4414_v23  ;;  %v9063_v55 = vunpack.c.l.bf16 %v8007_v62  ;;  %v9229_v62 = vld [vmem:[#allocation74_spill] sm:$0xff] }
 0x4e6   : > { %v3062_v54 = vpop.permute.xlu1 %3061  ;;  %v4366_v49 = vrot.slane %v9217_v52, %v7574_v33  ;;  %v4276_v11 = vrot.slane %v9218_v7, %v7574_v33  ;;  %v4288_v39 = vrot.slane %v4230_v31, %v7574_v33  ;;  %v3471_v37 = vadd.f32 %v3470_v10, %v3469_v36  ;;  %v2825_v10 = vpop.f32.mrf.mxu1 }
 0x4e7   : > { %9216 = vst [vmem:[#allocation81_spill] sm:$0xff] %v8195_v1  ;;  %3441 = vst.msk [vmem:[%s7929_s14 + $0x18] sm:$0xf] %vm3434_vm11, %v8190_v51  ;;  %v3411_v43 = vadd.f32 %v3395_v30, %v3189_v17  ;;  %v3476_v50 = vadd.f32 %v3475_v45, %v3474_v5  ;;  %v4292_v26 = vrot.slane %v5739_v19, %v7574_v33  ;;  %v9220_v30 = vunpack.c.l.bf16 %v9219_v61  ;;  %v8230_v45 = vpop.permute.xlu0 %3049 }
 0x4e8   : > { %v4296_v20 = vrot.slane %v4232_v18, %v7574_v33  ;;  %v2818_v24 = vadd.f32 %v7994_v46, %v7733_v9  ;;  %v4347_v36 = vpack.i.b16 %v8069_v27, %v8069_v27  ;;  %v4368_v5 = vpack.i.b16 %v4276_v11, %v4276_v11 }
 0x4e9   : > { %v8218_v35 = vpack.c.bf16 %v3411_v43, %v3411_v43  ;;  %v8221_v23 = vpack.c.bf16 %v3411_v43, %v8084_v25  ;;  %v2850_v17 = vadd.f32 %v2249_v47, %v9220_v30  ;;  %v4375_v31 = vpack.i.b16 %v4280_v59, %v4280_v59 }
 0x4ea   : > { %v4382_v19 = vpack.i.b16 %v4284_v16, %v4284_v16  ;;  %v3481_v46 = vsel %vm1420_vm1, %v9063_v55, 0.0  ;;  %v3472_v52 = vrot.slane %v3471_v37, 1  ;;  %v3477_v7 = vrot.slane %v3476_v50, 2 }
 0x4eb   : > { %v3142_v32 = vpop.permute.xlu1 %3141  ;;  %3444 = vst.msk [vmem:[%s7929_s14 + $0x24] sm:$0xf] %vm3434_vm11, %v8218_v35  ;;  %v3094_v25 = vmul.f32 %v3062_v54, %v2850_v17  ;;  %v4418_v47 = vmul.bf16 %v4366_v49, %v8218_v35  ;;  %v4389_v27 = vpack.i.b16 %v4288_v39, %v4288_v39  ;;  %v4396_v11 = vpack.i.b16 %v4292_v26, %v4292_v26 }
 0x4ec   : > { %v3174_v18 = vmul.f32 %v3142_v32, %v2818_v24  ;;  %v9221_v16 = vmul.bf16 %v8108_v56, %v8098_v3  ;;  %v4403_v61 = vpack.i.b16 %v4296_v20, %v4296_v20  ;;  %v3482_v30 = vrot.slane %v3481_v46, 4  ;;  %v5979_v24 = vpop.f32.mrf.mxu1 }
 0x4ed   : > { %v8242_v44 = vrot.slane %v4347_v36, %v7574_v33  ;;  %v8245_v54 = vrot.slane %v4368_v5, %v7574_v33  ;;  %v9062_v49 = vunpack.c.l.bf16 %v8045_v14  ;;  %v8252_v17 = vrot.slane %v4375_v31, %v7574_v33  ;;  %v3146_v31 = vpop.permute.xlu0 %3145 }
 0x4ee   : > { %v3190_v59 = vadd.f32 %v3174_v18, %v3094_v25  ;;  %v8239_v43 = vcombine.low %v9221_v16, %v4418_v47  ;;  %v8255_v56 = vrot.slane %v4382_v19, %v7574_v33  ;;  %v3473_v20 = vadd.f32 %v3472_v52, %v3471_v37  ;;  %v9223_v25 = vld [vmem:[#allocation82_spill] sm:$0xff] }
 0x4ef   : > { %v3478_v32 = vadd.f32 %v3477_v7, %v3476_v50  ;;  %v8258_v36 = vrot.slane %v4389_v27, %v7574_v33  ;;  %v8261_v5 = vrot.slane %v4396_v11, %v7574_v33  ;;  %v3256_v18 = vcombine.high %v8075_v60, %v8075_v60  ;;  %v2828_v60 = vpop.f32.mrf.mxu1 }
 0x4f0   : > { %9222 = vst [vmem:[#allocation63_spill] sm:$0xff] %v8239_v43  ;;  %v8249_v39 = vadd.f32 %v7902_v6, %v3190_v59  ;;  %v3070_v26 = vpop.permute.xlu1 %3069  ;;  %v2375_v6 = vadd.f32 %v7847_v41, %v9223_v25  ;;  %v8272_v37 = vrot.slane %v4403_v61, %v7574_v33  ;;  %v2821_v50 = vadd.f32 %v8100_v34, %v7733_v9  ;;  %v9224_v59 = vld [vmem:[#allocation66_spill] sm:$0xff] }
 0x4f1   : > { %v8277_v47 = vadd.f32 %v5978_v15, %v7733_v9  ;;  %v2826_v52 = vadd.f32 %v7733_v9, %v2825_v10  ;;  %v3483_v7 = vadd.f32 %v3482_v30, %v3481_v46  ;;  %v2837_v27 = vadd.f32 %v5979_v24, %v7733_v9  ;;  %v9226_v61 = vld [vmem:[#allocation78_spill] sm:$0xff] }
 0x4f2   : > { %v8269_v19 = vpack.c.bf16 %v8249_v39, %v8249_v39  ;;  %v3495_v11 = vsel %vm1420_vm1, %v9062_v49, 0.0  ;;  %v9225_v16 = vunpack.c.l.bf16 %v9224_v59  ;;  %v2351_v10 = vadd.f32 %v8055_v21, %v7847_v41  ;;  %v9227_v15 = vld [vmem:[#allocation62_spill] sm:$0xff]  ;;  %v3154_v21 = vpop.permute.xlu0 %3153 }
 0x4f3   : > { %v3579_v46 = vmul.f32 0.125, %v3473_v20  ;;  %v3479_v30 = vrot.slane %v3478_v32, 1  ;;  %v3337_v49 = vrot.slane %v3256_v18, %v7574_v33  ;;  %v3361_v59 = vrot.slane %v7886_v29, %v7574_v33  ;;  %v9233_v18 = vld [vmem:[#allocation67_spill] sm:$0xff]  ;;  %v9238_v33 = vld [vmem:[#allocation77_spill] sm:$0xff] }
 0x4f4   : > { %3445 = vst.msk [vmem:[%s7929_s14 + $0x28] sm:$0xf] %vm3434_vm11, %v8269_v19  ;;  %v2852_v34 = vadd.f32 %v9226_v61, %v9225_v16  ;;  %v2829_v16 = vadd.f32 %v7733_v9, %v2828_v60  ;;  %v3484_v61 = vrot.slane %v3483_v7, 2  ;;  %v3496_v14 = vrot.slane %v3495_v11, 4 }
 0x4f5   : > { %v3150_v25 = vpop.permute.xlu1 %3149  ;;  %v9228_v40 = vunpack.c.l.bf16 %v9227_v15  ;;  %v9231_v24 = vunpack.c.l.bf16 %v9230_v63  ;;  %v3595_v60 = vpack.c.bf16 %v3579_v46, %v3579_v46  ;;  %v3480_v1 = vadd.f32 %v3479_v30, %v3478_v32  ;;  %v9242_v63 = vld [vmem:[#allocation79_spill] sm:$0xff] }
 0x4f6   : > { %v3096_v55 = vmul.f32 %v3070_v26, %v2852_v34  ;;  %v3176_v8 = vmul.f32 %v3150_v25, %v2826_v52  ;;  %v9234_v26 = vunpack.c.l.bf16 %v9233_v18  ;;  %v9235_v52 = vld [vmem:[#allocation80_spill] sm:$0xff]  ;;  %v9239_v15 = vunpack.c.l.bf16 %v8098_v3 }
 0x4f7   : > { %v2847_v41 = vadd.f32 %v9229_v62, %v9228_v40  ;;  %v2851_v43 = vadd.f32 %v9232_v38, %v9231_v24  ;;  %v9236_v25 = vld [vmem:[#allocation68_spill] sm:$0xff]  ;;  %v9240_v62 = vld [vmem:[#allocation69_spill] sm:$0xff]  ;;  %v8321_v38 = vmul.f32 %v3337_v49, %v2351_v10  ;;  %v9075_v24 = vunpack.c.l.bf16 %v8130_v57 }
 0x4f8   : > { %v3192_v20 = vadd.f32 %v3176_v8, %v3096_v55  ;;  %v2853_v34 = vadd.f32 %v9235_v52, %v9234_v26  ;;  %v9237_v29 = vunpack.c.l.bf16 %v9236_v25  ;;  %v3523_v40 = vsel %vm1420_vm1, %v9239_v15, 0.0 }
 0x4f9   : > { %v9241_v55 = vunpack.c.l.bf16 %v9240_v62  ;;  %v8325_v52 = vadd.f32 %v3484_v61, %v3483_v7  ;;  %v3497_v32 = vadd.f32 %v3496_v14, %v3495_v11  ;;  %v3175_v46 = vmul.f32 %v3146_v31, %v2821_v50 }
 0x4fa   : > { %v8311_v9 = vadd.f32 %v9238_v33, %v9237_v29  ;;  %v3414_v18 = vadd.f32 %v7907_v13, %v3192_v20  ;;  %v3066_v26 = vpop.permute.xlu1 %3065  ;;  %v3399_v33 = vmul.f32 %v3361_v59, %v2375_v6  ;;  %v3524_v25 = vrot.slane %v3523_v40, 4 }
 0x4fb   : > { %v8319_v8 = vadd.f32 %v9242_v63, %v9241_v55  ;;  %v3095_v30 = vmul.f32 %v3066_v26, %v2851_v43  ;;  %v9073_v29 = vunpack.c.l.bf16 %v8218_v35  ;;  %v9072_v15 = vunpack.c.l.bf16 %v8269_v19  ;;  %v3162_v43 = vpop.permute.xlu0 %3161 }
 0x4fc   : > { %v8329_v62 = vpack.c.bf16 %v3414_v18, %v3414_v18  ;;  %v8331_v49 = vunpack.c.l.b16 %v3595_v60  ;;  %v8333_v10 = vmul.f32 0.125, %v3480_v1  ;;  %v8336_v13 = vmul.f32 %v8230_v45, %v2847_v41 }
 0x4fd   : > { %v3191_v6 = vadd.f32 %v3175_v46, %v3095_v30  ;;  %v3488_v14 = vsel %vm1420_vm1, %v9075_v24, 0.0  ;;  %v9078_v31 = vunpack.c.l.bf16 %v8158_v53  ;;  %v9074_v50 = vunpack.c.l.bf16 %v8190_v51 }
 0x4fe   : > { %3447 = vst.msk [vmem:[%s7929_s14 + $0x30] sm:$0xf] %vm3434_vm11, %v8329_v62  ;;  %v3074_v7 = vpop.permute.xlu1 %3073  ;;  %v4421_v1 = vmul.bf16 %v8255_v56, %v8329_v62  ;;  %v3486_v45 = vrot.slane %v8325_v52, 1  ;;  %v3177_v11 = vmul.f32 %v3154_v21, %v2829_v16  ;;  %v3498_v41 = vrot.slane %v3497_v32, 2 }
 0x4ff   : > { %v3413_v59 = vadd.f32 %v7914_v2, %v3191_v6  ;;  %v3097_v61 = vmul.f32 %v3074_v7, %v2853_v34  ;;  %v3525_v20 = vadd.f32 %v3524_v25, %v3523_v40  ;;  %v3530_v60 = vsel %vm1420_vm1, %v9073_v29, 0.0 }
 0x500   : > { %v3537_v55 = vsel %vm1420_vm1, %v9072_v15, 0.0  ;;  %v3596_v56 = vpack.c.bf16 %v8333_v10, %v8333_v10  ;;  %v3489_v63 = vrot.slane %v3488_v14, 4  ;;  %v3179_v26 = vmul.f32 %v3162_v43, %v2837_v27 }
 0x501   : > { %v8358_v16 = vpack.c.bf16 %v3413_v59, %v3413_v59  ;;  %v3502_v2 = vsel %vm1420_vm1, %v9078_v31, 0.0  ;;  %v3509_v21 = vsel %vm1420_vm1, %v9074_v50, 0.0  ;;  %v8367_v34 = vpack.c.bf16 %v3413_v59, %v8249_v39 }
 0x502   : > { %v3193_v40 = vadd.f32 %v3177_v11, %v3097_v61  ;;  %v3078_v46 = vpop.permute.xlu1 %3077  ;;  %v3531_v30 = vrot.slane %v3530_v60, 4  ;;  %v3538_v25 = vrot.slane %v3537_v55, 4  ;;  %v9077_v10 = vunpack.c.l.bf16 %v8329_v62 }
 0x503   : > { %9243 = vst [vmem:[#allocation75_spill] sm:$0xff] %v8358_v16  ;;  %3446 = vst.msk [vmem:[%s7929_s14 + $0x2c] sm:$0xf] %vm3434_vm11, %v8358_v16  ;;  %v9076_v27 = vunpack.c.l.bf16 %v8358_v16  ;;  %v3499_v6 = vadd.f32 %v3498_v41, %v3497_v32  ;;  %v3526_v43 = vrot.slane %v3525_v20, 2  ;;  %v4420_v15 = vmul.bf16 %v8252_v17, %v8358_v16 }
 0x504   : > { %v3415_v7 = vadd.f32 %v3399_v33, %v3193_v40  ;;  %v3490_v39 = vadd.f32 %v3489_v63, %v3488_v14  ;;  %v3503_v59 = vrot.slane %v3502_v2, 4  ;;  %v3510_v11 = vrot.slane %v3509_v21, 4 }
 0x505   : > { %v3544_v61 = vsel %vm1420_vm1, %v9076_v27, 0.0  ;;  %v9245_v32 = vmul.bf16 %v8245_v54, %v8269_v19  ;;  %v3532_v41 = vadd.f32 %v3531_v30, %v3530_v60  ;;  %v3539_v40 = vadd.f32 %v3538_v25, %v3537_v55 }
 0x506   : > { %v3545_v29 = vrot.slane %v3544_v61, 4  ;;  %v8379_v50 = vpack.c.bf16 %v3415_v7, %v3415_v7  ;;  %v8381_v24 = vpack.c.bf16 %v3415_v7, %v3414_v18  ;;  %v3551_v17 = vsel %vm1420_vm1, %v9077_v10, 0.0 }
 0x507   : > { %v8386_v33 = vcombine.low %v9245_v32, %v4420_v15  ;;  %v3098_v14 = vmul.f32 %v3078_v46, %v8311_v9  ;;  %v3158_v63 = vpop.permute.xlu1 %3157  ;;  %v3487_v15 = vadd.f32 %v3486_v45, %v8325_v52  ;;  %v3527_v60 = vadd.f32 %v3526_v43, %v3525_v20  ;;  %v9246_v52 = vld [vmem:[#allocation87_spill] sm:$0xff] }
 0x508   : > { %9244 = vst [vmem:[#allocation64_spill] sm:$0xff] %v8379_v50  ;;  %v3546_v27 = vadd.f32 %v3545_v29, %v3544_v61  ;;  %3448 = vst.msk [vmem:[%s7929_s14 + $0x34] sm:$0xf] %vm3434_vm11, %v8379_v50  ;;  %v9079_v18 = vunpack.c.l.bf16 %v8379_v50  ;;  %v3178_v7 = vmul.f32 %v3158_v63, %v8277_v47  ;;  %v4422_v54 = vmul.bf16 %v8258_v36, %v8379_v50 }
 0x509   : > { %v3491_v55 = vrot.slane %v3490_v39, 2  ;;  %v3504_v30 = vadd.f32 %v3503_v59, %v3502_v2  ;;  %v3552_v25 = vrot.slane %v3551_v17, 4  ;;  %v3500_v61 = vrot.slane %v3499_v6, 1 }
 0x50a   : > { %v3558_v9 = vsel %vm1420_vm1, %v9079_v18, 0.0  ;;  %v3194_v29 = vadd.f32 %v3178_v7, %v3098_v14  ;;  %v8403_v46 = vcombine.low %v4421_v1, %v4422_v54  ;;  %v3511_v32 = vadd.f32 %v3510_v11, %v3509_v21 }
 0x50b   : > { %v3533_v10 = vrot.slane %v3532_v41, 2  ;;  %v3559_v47 = vrot.slane %v3558_v9, 4  ;;  %v8405_v63 = vunpack.c.l.b16 %v3596_v56  ;;  %v3540_v36 = vrot.slane %v3539_v40, 2 }
 0x50c   : > { %v3547_v31 = vrot.slane %v3546_v27, 2  ;;  %v3416_v45 = vadd.f32 %v9246_v52, %v3194_v29  ;;  %v3082_v20 = vpop.permute.xlu1 %3081  ;;  %v3528_v2 = vrot.slane %v3527_v60, 1  ;;  %v3492_v43 = vadd.f32 %v3491_v55, %v3490_v39 }
 0x50d   : > { %v3560_v59 = vadd.f32 %v3559_v47, %v3558_v9  ;;  %v3099_v18 = vmul.f32 %v3082_v20, %v8319_v8  ;;  %v8409_v14 = vmul.f32 0.125, %v3487_v15  ;;  %v3505_v1 = vrot.slane %v3504_v30, 2 }
 0x50e   : > { %v3553_v7 = vadd.f32 %v3552_v25, %v3551_v17  ;;  %v8411_v21 = vpack.c.bf16 %v3416_v45, %v3416_v45  ;;  %v8413_v11 = vadd.f32 %v3500_v61, %v3499_v6  ;;  %v3512_v56 = vrot.slane %v3511_v32, 2 }
 0x50f   : > { %v3534_v54 = vadd.f32 %v3533_v10, %v3532_v41  ;;  %v3195_v50 = vadd.f32 %v3179_v26, %v3099_v18  ;;  %v3541_v16 = vadd.f32 %v3540_v36, %v3539_v40  ;;  %v3548_v29 = vadd.f32 %v3547_v31, %v3546_v27  ;;  %v9248_v26 = vld [vmem:[#allocation83_spill] sm:$0xff] }
 0x510   : > { %9247 = vst [vmem:[#allocation82_spill] sm:$0xff] %v8411_v21  ;;  %3449 = vst.msk [vmem:[%s7929_s14 + $0x38] sm:$0xf] %vm3434_vm11, %v8411_v21  ;;  %v9082_v39 = vunpack.c.l.bf16 %v8411_v21  ;;  %v4423_v8 = vmul.bf16 %v8261_v5, %v8411_v21  ;;  %v3529_v15 = vadd.f32 %v3528_v2, %v3527_v60  ;;  %v3493_v55 = vrot.slane %v3492_v43, 1 }
 0x511   : > { %v3561_v17 = vrot.slane %v3560_v59, 2  ;;  %v3417_v25 = vadd.f32 %v7948_v0, %v3195_v50  ;;  %v3130_v6 = vpop.permute.xlu1 %3129  ;;  %v3506_v9 = vadd.f32 %v3505_v1, %v3504_v30  ;;  %v3554_v10 = vrot.slane %v3553_v7, 2 }
 0x512   : > { %v3565_v31 = vsel %vm1420_vm1, %v9082_v39, 0.0  ;;  %v3171_v27 = vmul.f32 %v3130_v6, %v9248_v26  ;;  %v3535_v41 = vrot.slane %v3534_v54, 1  ;;  %v3513_v60 = vadd.f32 %v3512_v56, %v3511_v32 }
 0x513   : > { %v3566_v40 = vrot.slane %v3565_v31, 4  ;;  %v8426_v18 = vpack.c.bf16 %v3417_v25, %v3417_v25  ;;  %v8428_v5 = vpack.c.bf16 %v3417_v25, %v3416_v45  ;;  %v3542_v61 = vrot.slane %v3541_v16, 1 }
 0x514   : > { %v3549_v47 = vrot.slane %v3548_v29, 1  ;;  %v3187_v0 = vadd.f32 %v3171_v27, %v8336_v13  ;;  %v3562_v50 = vadd.f32 %v3561_v17, %v3560_v59  ;;  %v3494_v20 = vadd.f32 %v3493_v55, %v3492_v43 }
 0x515   : > { %v3567_v30 = vadd.f32 %v3566_v40, %v3565_v31  ;;  %3450 = vst.msk [vmem:[%s7929_s14 + $0x3c] sm:$0xf] %vm3434_vm11, %v8426_v18  ;;  %v9094_v36 = vunpack.c.l.bf16 %v8426_v18  ;;  %v4424_v52 = vmul.bf16 %v8272_v37, %v8426_v18  ;;  %v3507_v2 = vrot.slane %v3506_v9, 1 }
 0x516   : > { %v3555_v1 = vadd.f32 %v3554_v10, %v3553_v7  ;;  %v3409_v32 = vadd.f32 %v8321_v38, %v3187_v0  ;;  %v3536_v45 = vadd.f32 %v3535_v41, %v3534_v54  ;;  %v3543_v17 = vadd.f32 %v3542_v61, %v3541_v16 }
 0x517   : > { %v3568_v56 = vrot.slane %v3567_v30, 2  ;;  %v3572_v13 = vsel %vm1420_vm1, %v9094_v36, 0.0  ;;  %v8441_v59 = vcombine.low %v4423_v8, %v4424_v52  ;;  %v3514_v43 = vrot.slane %v3513_v60, 1 }
 0x518   : > { %v3573_v25 = vrot.slane %v3572_v13, 4  ;;  %v8443_v6 = vpack.c.bf16 %v3409_v32, %v3409_v32  ;;  %v8446_v37 = vpack.c.bf16 %v3409_v32, %v8180_v42  ;;  %v3550_v7 = vadd.f32 %v3549_v47, %v3548_v29 }
 0x519   : > { %v3563_v55 = vrot.slane %v3562_v50, 1  ;;  %v3569_v10 = vadd.f32 %v3568_v56, %v3567_v30  ;;  %v3556_v38 = vrot.slane %v3555_v1, 1  ;;  %v3587_v8 = vmul.f32 0.125, %v3529_v15 }
 0x51a   : > { %v3574_v54 = vadd.f32 %v3573_v25, %v3572_v13  ;;  %3442 = vst.msk [vmem:[%s7929_s14 + $0x1c] sm:$0xf] %vm3434_vm11, %v8443_v6  ;;  %v9083_v31 = vunpack.c.l.bf16 %v8443_v6  ;;  %6031 = vmatmul.mubr.msk.bf16.gmra.mxu1 %vm1420_vm1, %v8446_v37  ;;  %v4416_v16 = vmul.bf16 %v8242_v44, %v8443_v6  ;;  %v3582_v42 = vmul.f32 0.125, %v3494_v20 }
 0x51b   : > { %v3588_v26 = vmul.f32 0.125, %v3536_v45  ;;  %v3570_v27 = vrot.slane %v3569_v10, 1  ;;  %6034 = vmatprep.mubr.msk.bf16.mxu1 %vm1420_vm1, %v8221_v23  ;;  %v3589_v29 = vmul.f32 0.125, %v3543_v17  ;;  %v9249_v61 = vmul.bf16 %v8174_v58, %v8190_v51 }
 0x51c   : > { %v3575_v41 = vrot.slane %v3574_v54, 2  ;;  %v3516_v40 = vsel %vm1420_vm1, %v9083_v31, 0.0  ;;  %v3508_v0 = vadd.f32 %v3507_v2, %v3506_v9  ;;  %v3590_v44 = vmul.f32 0.125, %v3550_v7 }
 0x51d   : > { %v8464_v47 = vcombine.low %v9249_v61, %v4416_v16  ;;  %v3564_v15 = vadd.f32 %v3563_v55, %v3562_v50  ;;  %v3517_v30 = vrot.slane %v3516_v40, 4  ;;  %v3515_v52 = vadd.f32 %v3514_v43, %v3513_v60 }
 0x51e   : > { %v3557_v20 = vadd.f32 %v3556_v38, %v3555_v1  ;;  %v3571_v32 = vadd.f32 %v3570_v27, %v3569_v10  ;;  %v3576_v45 = vadd.f32 %v3575_v41, %v3574_v54  ;;  %v3597_v56 = vpack.c.bf16 %v8409_v14, %v8409_v14 }
 0x51f   : > { %v3583_v13 = vmul.f32 0.125, %v8413_v11  ;;  %v3604_v17 = vpack.c.bf16 %v3588_v26, %v3588_v26  ;;  %v3518_v25 = vadd.f32 %v3517_v30, %v3516_v40  ;;  %v3603_v39 = vpack.c.bf16 %v3587_v8, %v3587_v8 }
 0x520   : > { %v3598_v31 = vpack.c.bf16 %v3582_v42, %v3582_v42  ;;  %v3605_v58 = vpack.c.bf16 %v3589_v29, %v3589_v29  ;;  %v3577_v16 = vrot.slane %v3576_v45, 1  ;;  %v3584_v61 = vmul.f32 0.125, %v3508_v0 }
 0x521   : > { %v3606_v9 = vpack.c.bf16 %v3590_v44, %v3590_v44  ;;  %v3592_v2 = vmul.f32 0.125, %v3564_v15  ;;  %v3519_v50 = vrot.slane %v3518_v25, 2  ;;  %v3585_v7 = vmul.f32 0.125, %v3515_v52 }
 0x522   : > { %v3591_v60 = vmul.f32 0.125, %v3557_v20  ;;  %v3593_v1 = vmul.f32 0.125, %v3571_v32  ;;  %v3578_v43 = vadd.f32 %v3577_v16, %v3576_v45  ;;  %6035 = vmatmul.mubr.msk.bf16.gmra.mxu1 %vm1420_vm1, %v8367_v34  ;;  %v3696_v14 = vsel %vm1923_vm2, %v8405_v63, %v8331_v49 }
 0x523   : > { %v3682_v11 = vunpack.c.l.b16 %v3597_v56  ;;  %v3689_v55 = vunpack.c.l.b16 %v3604_v17  ;;  %v3520_v10 = vadd.f32 %v3519_v50, %v3518_v25  ;;  %6038 = vmatprep.mubr.msk.bf16.mxu1 %vm1420_vm1, %v8381_v24  ;;  %v3688_v38 = vunpack.c.l.b16 %v3603_v39 }
 0x524   : > { %v3683_v54 = vunpack.c.l.b16 %v3598_v31  ;;  %v3690_v8 = vunpack.c.l.b16 %v3605_v58  ;;  %v3594_v42 = vmul.f32 0.125, %v3578_v43  ;;  %v3600_v26 = vpack.c.bf16 %v3584_v61, %v3584_v61 }
 0x525   : > { %v3691_v27 = vunpack.c.l.b16 %v3606_v9  ;;  %v3608_v29 = vpack.c.bf16 %v3592_v2, %v3592_v2  ;;  %v3521_v41 = vrot.slane %v3520_v10, 1  ;;  %v3599_v40 = vpack.c.bf16 %v3583_v13, %v3583_v13 }
 0x526   : > { %v3601_v0 = vpack.c.bf16 %v3585_v7, %v3585_v7  ;;  %v3607_v44 = vpack.c.bf16 %v3591_v60, %v3591_v60  ;;  %v3609_v15 = vpack.c.bf16 %v3593_v1, %v3593_v1  ;;  %v3697_v49 = vsel %vm1925_vm3, %v3682_v11, %v3696_v14 }
 0x527   : > { %v3703_v63 = vsel %vm1923_vm2, %v3689_v55, %v3688_v38  ;;  %v3522_v30 = vadd.f32 %v3521_v41, %v3520_v10  ;;  %v3610_v52 = vpack.c.bf16 %v3594_v42, %v3594_v42  ;;  %v3698_v39 = vsel %vm1927_vm4, %v3683_v54, %v3697_v49 }
 0x528   : > { %v3704_v20 = vsel %vm1925_vm3, %v3690_v8, %v3703_v63  ;;  %v3685_v31 = vunpack.c.l.b16 %v3600_v26  ;;  %v3693_v32 = vunpack.c.l.b16 %v3608_v29  ;;  %v3684_v17 = vunpack.c.l.b16 %v3599_v40  ;;  %v6349_v26 = vld [vmem:[%s9250_s1] sm:$0xff]   ;;  %v5697_v40 = vld [vmem:[#allocation17] ss:$0 sm:$0xff]  ;;  %s9253_s1 = sld [smem:[#allocation54_spill]] }
 0x529   : > { %v3586_v45 = vmul.f32 0.125, %v3522_v30  ;;  %v3705_v56 = vsel %vm1927_vm4, %v3691_v27, %v3704_v20  ;;  %v3686_v13 = vunpack.c.l.b16 %v3601_v0  ;;  %v3692_v25 = vunpack.c.l.b16 %v3607_v44  ;;  %v6350_v27 = vld [vmem:[%s9251_s3 + $0x8] sm:$0xff]  }
 0x52a   : > { %v3694_v58 = vunpack.c.l.b16 %v3609_v15  ;;  %6039 = vmatmul.mubr.msk.bf16.gmra.mxu1 %vm1420_vm1, %v8428_v5  ;;  %v3695_v61 = vunpack.c.l.b16 %v3610_v52  ;;  %v3699_v9 = vsel %vm1929_vm5, %v3684_v17, %v3698_v39  ;;  %v9252_v10 = vmov 0.0  }
 0x52b   : > { %v3602_v16 = vpack.c.bf16 %v3586_v45, %v3586_v45  ;;  %v3706_v2 = vsel %vm1929_vm5, %v3692_v25, %v3705_v56  ;;  %v3700_v7 = vsel %vm1931_vm6, %v3685_v31, %v3699_v9  ;;  %v6351_v31 = vld [vmem:[%s9251_s3] sm:$0xff]   ;;  %s9256_s3 = sld [smem:[#allocation56_spill]] }
 0x52c   : > { %v3707_v60 = vsel %vm1931_vm6, %v3693_v32, %v3706_v2  ;;  %v3701_v1 = vsel %vm1933_vm7, %v3686_v13, %v3700_v7  ;;  %v6352_v32 = vld [vmem:[#allocation20 + $0x8] sm:$0xff]   ;;  %v6353_v45 = vld [vmem:[#allocation20] sm:$0xff]  }
 0x52d   : > { %v3687_v50 = vunpack.c.l.b16 %v3602_v16  ;;  %v3708_v43 = vsel %vm1933_vm7, %v3694_v58, %v3707_v60 }
 0x52e   : > { %v3709_v11 = vsel %vm1935_vm8, %v3695_v61, %v3708_v43 }
 0x52f   : > { %v3702_v14 = vsel %vm1935_vm8, %v3687_v50, %v3701_v1 }
 0x530   : > { %v3710_v55 = vpack.c.b16 %v3709_v11, %v3702_v14 }
 0x531   : > { %v8554_v9 = vld [vmem:[%s9256_s3] ss:$0 sm:$0xff]  ;;  %s6884_s3 = smov 3  }
 0x532   : > { %5993 = vmatmul.mubr.msk.bf16.vlgmr.msra.gmra.mxu0 %vm1420_vm1, %v3710_v55 }
 0x533   : > { %5998 = vmatprep.mubr.msk.bf16.mxu0 %vm6879_vm0, %v9252_v10  ;;  %5997 = vmatpush3.bf16.msra.mxu0 %v6349_v26 }
 0x534   : > { %6002 = vmatprep.subr.bf16.mxu0 %v6350_v27 }
 0x555   : > { %v3657_v38 = vpop.f32.mrf.mxu0 }
 0x557   : > { %v5986_v54 = vpop.f32.mrf.mxu0 }
 0x559   : > { %v3660_v8 = vpop.f32.mrf.mxu0 }
 0x55b   : > { %v5987_v42 = vpop.f32.mrf.mxu0 }
 0x5f2   : > { %v3760_v29 = vpop.f32.mrf.mxu0 }
 0x5f3   : > { %v3761_v41 = vadd.f32 %v3760_v29, %v3657_v38 }
 0x5f4   : > { %v5994_v0 = vpop.f32.mrf.mxu0 }
 0x5f5   : > { %v3773_v15 = vadd.f32 %v5697_v40, %v3761_v41 }
 0x5f6   : > { %v3763_v44 = vpop.f32.mrf.mxu0 }
 0x5f7   : > { %v3764_v49 = vadd.f32 %v3763_v44, %v3660_v8  ;;  %v3775_v52 = vmax.f32 %v3773_v15, 0.0 }
 0x5f8   : > { %v5995_v63 = vpop.f32.mrf.mxu0 }
 0x5f9   : > { %v3774_v30 = vadd.f32 %v5697_v40, %v3764_v49 }
 0x5fb   : > { %v3776_v20 = vmax.f32 %v3774_v30, 0.0  ;;  %v9260_v30 = vld [vmem:[#allocation72_spill] sm:$0xff] }
 0x5fd   : > { %v3777_v39 = vpack.c.bf16 %v3776_v20, %v3775_v52 }
 0x5ff   : > { %5999 = vmatmul.mubr.msk.bf16.vlgmr.msra.gmra.mxu0 %vm2024_vm9, %v3777_v39 }
 0x600   : > { %6003 = vmatpush3.bf16.msra.mxu0 %v6350_v27  ;;  %6006 = vmatprep.mubr.msk.bf16.mxu0 %vm1420_vm1, %v7977_v28  ;;  %v9254_v28 = vld [vmem:[#allocation81_spill] sm:$0xff] }
 0x601   : > { %6004 = vmatprep.subr.bf16.mxu0 %v6351_v31 }
 0x604   : > { %6005 = vmatpush3.bf16.msra.mxu0 %v6351_v31 }
 0x605   : > { %6042 = vmatprep.subr.bf16.mxu0 %v6352_v32 }
 0x607   : > { %6007 = vmatmul.mubr.msk.bf16.vlgmr.msra.gmra.mxu0 %vm1420_vm1, %v8133_v4  ;;  %v9255_v4 = vld [vmem:[#allocation63_spill] sm:$0xff] }
 0x608   : > { %6010 = vmatprep.mubr.msk.bf16.mxu0 %vm1420_vm1, %v8166_v22  ;;  %6043 = vmatpush3.bf16.msra.mxu0 %v6352_v32 }
 0x609   : > { %6044 = vmatprep.subr.bf16.mxu0 %v6353_v45 }
 0x60c   : > { %6045 = vmatpush3.bf16.msra.mxu0 %v6353_v45 }
 0x60f   : > { %6011 = vmatmul.mubr.msk.bf16.gmra.mxu0 %vm1420_vm1, %v8446_v37 }
 0x610   : > { %6014 = vmatprep.mubr.msk.bf16.mxu0 %vm1420_vm1, %v8221_v23 }
 0x617   : > { %6015 = vmatmul.mubr.msk.bf16.gmra.mxu0 %vm1420_vm1, %v8367_v34 }
 0x618   : > { %6018 = vmatprep.mubr.msk.bf16.mxu0 %vm1420_vm1, %v8381_v24 }
 0x61f   : > { %6019 = vmatmul.mubr.msk.bf16.gmra.mxu0 %vm1420_vm1, %v8428_v5 }
 0x620   : > { %6046 = vmatprep.mubr.msk.bf16.mxu0 %vm1420_vm1, %v8003_v48  ;;  %v5698_v48 = vld [vmem:[%s9253_s1] ss:$0 sm:$0xff]  ;;  %s9093_s1 = sshll.u32 %s7095_s2, 10 }
 0x621   : > { %s8637_s4 = scalar_lea.hbm %s7062_s9, %s9093_s1 }
 0x627   : > { %6047 = vmatmul.mubr.msk.bf16.vlgmr.msra.gmra.mxu0 %vm1420_vm1, %v8156_v12 }
 0x628   : > { %6050 = vmatprep.mubr.msk.bf16.mxu0 %vm1420_vm1, %v9254_v28 }
 0x62f   : > { %6051 = vmatmul.mubr.msk.bf16.gmra.mxu0 %vm1420_vm1, %v8464_v47 }
 0x630   : > { %6054 = vmatprep.mubr.msk.bf16.mxu0 %vm1420_vm1, %v9255_v4  ;;  %v9261_v4 = vmov 0  }
 0x637   : > { %6055 = vmatmul.mubr.msk.bf16.gmra.mxu0 %vm1420_vm1, %v8386_v33 }
 0x638   : > { %6058 = vmatprep.mubr.msk.bf16.mxu0 %vm1420_vm1, %v8403_v46 }
 0x63f   : > { %6059 = vmatmul.mubr.msk.bf16.gmra.mxu0 %vm1420_vm1, %v8441_v59 }
 0x6bf   : > { %v3827_v12 = vpop.f32.mrf.mxu0 }
 0x6c0   : > { %v3828_v22 = vadd.f32 %v5698_v48, %v3827_v12  ;;  %v9262_v12 = vld [vmem:[#allocation73_spill] sm:$0xff] }
 0x6c1   : > { %v6000_v23 = vpop.f32.mrf.mxu0 }
 0x6c2   : > { %v3834_v24 = vsel %vm2069_vm10, %v3828_v22, -inf }
 0x6c3   : > { %3835 = vmax.xlane.f32.xlu1 %v3834_v24  ;;  %v3830_v34 = vpop.f32.mrf.mxu0 }
 0x6c4   : > { %v3831_v5 = vadd.f32 %v5698_v48, %v3830_v34 }
 0x6c5   : > { %v6001_v37 = vpop.f32.mrf.mxu0 }
 0x6c6   : > { %v3837_v47 = vsel %vm2069_vm10, %v3831_v5, -inf }
 0x6c7   : > { %3838 = vmax.xlane.f32.xlu0 %v3837_v47  ;;  %v8533_v33 = vpop.f32.mrf.mxu0 }
 0x6c9   : > { %v8535_v46 = vpop.f32.mrf.mxu0 }
 0x6cb   : > { %v8537_v56 = vpop.f32.mrf.mxu0 }
 0x6cd   : > { %v8539_v59 = vpop.f32.mrf.mxu0 }
 0x6cf   : > { %v8541_v17 = vpop.f32.mrf.mxu0 }
 0x6d1   : > { %v8543_v13 = vpop.f32.mrf.mxu0 }
 0x6d3   : > { %v8545_v25 = vpop.f32.mrf.mxu0 }
 0x6d5   : > { %v8547_v58 = vpop.f32.mrf.mxu0 }
 0x6d7   : > { %v8549_v16 = vpop.f32.mrf.mxu0 }
 0x6d9   : > { %v8551_v61 = vpop.f32.mrf.mxu0 }
 0x6db   : > { %v6017_v2 = vpop.f32.mrf.mxu0 }
 0x6dc   : > { %v8557_v50 = vadd.f32 %v6017_v2, %v8554_v9  ;;  %v9263_v2 = vmov 1  }
 0x6dd   : > { %v8559_v7 = vpop.f32.mrf.mxu0 }
 0x6de   : > { %9257 = vst [vmem:[#allocation66_spill] sm:$0xff] %v8557_v50 }
 0x6df   : > { %v6020_v60 = vpop.f32.mrf.mxu0 }
 0x6e0   : > { %v8562_v1 = vadd.f32 %v6020_v60, %v8554_v9 }
 0x6e1   : > { %v4020_v43 = vpop.f32.mrf.mxu0 }
 0x6e2   : > { %9258 = vst [vmem:[#allocation78_spill] sm:$0xff] %v8562_v1  ;;  %v8565_v14 = vadd.f32 %v8554_v9, %v4020_v43 }
 0x6e3   : > { %v8567_v11 = vpop.f32.mrf.mxu0 }
 0x6e5   : > { %v4023_v55 = vpop.f32.mrf.mxu0 }
 0x6e6   : > { %v8570_v10 = vadd.f32 %v8554_v9, %v4023_v55 }
 0x6e8   : > { %9259 = vst [vmem:[#allocation62_spill] sm:$0xff] %v8570_v10 }
 0x74c   : > { %v3836_v38 = vpop.xlane.xlu1 %3835 }
 0x74d   : > { %v3840_v54 = vsub.f32 %v3828_v22, %v3836_v38 }
 0x74f   : > { %v3842_v8 = vmul.f32 1.442695, %v3840_v54 }
 0x750   : > { %v3839_v42 = vpop.xlane.xlu0 %3838 }
 0x751   : > { %6382 = vpow2.f32 %v3842_v8  ;;  %v3841_v26 = vsub.f32 %v3831_v5, %v3839_v42 }
 0x753   : > { %v3844_v27 = vmul.f32 1.442695, %v3841_v26 }
 0x755   : > { %6384 = vpow2.f32 %v3844_v27 }
 0x75e   : > { %v6383_v29 = vpop.eup %6382 }
 0x75f   : > { %v3846_v41 = vsel %vm2069_vm10, %v6383_v29, 0.0 }
 0x760   : > { %3847 = vadd.xlane.f32.xlu1 %v3846_v41 }
 0x762   : > { %v6385_v40 = vpop.eup %6384 }
 0x763   : > { %v3849_v0 = vsel %vm2069_vm10, %v6385_v40, 0.0 }
 0x764   : > { %3850 = vadd.xlane.f32.xlu0 %v3849_v0 }
 0x7e9   : > { %v3848_v44 = vpop.xlane.xlu1 %3847 }
 0x7ea   : > { %6386 = vrcp.f32 %v3848_v44 }
 0x7ed   : > { %v3851_v15 = vpop.xlane.xlu0 %3850 }
 0x7ee   : > { %6388 = vrcp.f32 %v3851_v15 }
 0x7f7   : > { %v6387_v49 = vpop.eup %6386 }
 0x7f8   : > { %v8574_v63 = vmul.f32 %v6387_v49, %v6383_v29 }
 0x7fa   : > { %4961 = vperm.xlu0 %6295, %v8574_v63   ;;  %v4629_v52 = vrot.slane %v8574_v63, %v9260_v30  ;;  %v4622_v20 = vcombine.high %v8574_v63, %v8574_v63 }
 0x7fb   : > { %v6389_v39 = vpop.eup %6388 }
 0x7fc   : > { %v8581_v31 = vmul.f32 %v6389_v39, %v6385_v40  ;;  %v4637_v32 = vcombine.high %v4629_v52, %v4629_v52  ;;  %v4645_v45 = vrot.slane %v4629_v52, %v9260_v30  ;;  %v4636_v28 = vrot.slane %v4622_v20, %v9260_v30 }
 0x7fe   : > { %4965 = vperm.xlu1 %6296, %v8581_v31   ;;  %6299 = vset.pattern.permute.xlu0 %v9261_v4  ;;  %v4659_v48 = vrot.slane %v4637_v32, %v9260_v30  ;;  %v4723_v23 = vrot.slane %v4645_v45, %v9262_v12  ;;  %v4667_v24 = vcombine.high %v4645_v45, %v4645_v45 }
 0x7ff   : > { %v4638_v34 = vcombine.high %v4636_v28, %v4636_v28  ;;  %v4678_v5 = vrot.slane %v8581_v31, %v9260_v30  ;;  %v4671_v43 = vcombine.high %v8581_v31, %v8581_v31  ;;  %v4652_v8 = vrot.slane %v4636_v28, %v9260_v30 }
 0x800   : > { %v4727_v22 = vrot.slane %v4659_v48, %v9262_v12  ;;  %v4731_v37 = vrot.slane %v4667_v24, %v9262_v12  ;;  %v4669_v15 = vcombine.high %v4659_v48, %v4659_v48 }
 0x801   : > { %v4666_v47 = vrot.slane %v4638_v34, %v9260_v30  ;;  %v4694_v60 = vrot.slane %v4678_v5, %v9260_v30  ;;  %v4685_v54 = vrot.slane %v4671_v43, %v9260_v30  ;;  %v4739_v27 = vrot.slane %v4652_v8, %v9262_v12 }
 0x802   : > { %4789 = vperm.xlu0 %6299, %v4727_v22   ;;  %6297 = vset.pattern.permute.xlu1 %v9261_v4  ;;  %v4686_v40 = vcombine.high %v4678_v5, %v4678_v5  ;;  %v4735_v39 = vrot.slane %v4669_v15, %v9262_v12  ;;  %v4668_v28 = vcombine.high %v4652_v8, %v4652_v8  ;;  %v9264_v5 = vmov 2  }
 0x803   : > { %4785 = vperm.xlu1 %6297, %v4723_v23   ;;  %v4743_v55 = vrot.slane %v4666_v47, %v9262_v12  ;;  %v4716_v38 = vcombine.high %v4694_v60, %v4694_v60  ;;  %v4701_v26 = vrot.slane %v4685_v54, %v9260_v30  ;;  %v4670_v41 = vcombine.high %v4666_v47, %v4666_v47  ;;  %v5619_v47 = vld [vmem:[#allocation8] ss:$0 sm:$0xff] }
 0x804   : > { %v4708_v44 = vrot.slane %v4686_v40, %v9260_v30  ;;  %v4687_v20 = vcombine.high %v4685_v54, %v4685_v54  ;;  %v4755_v34 = vrot.slane %v4694_v60, %v9262_v12 }
 0x805   : > { %v4763_v42 = vrot.slane %v4716_v38, %v9262_v12  ;;  %v4771_v29 = vrot.slane %v4701_v26, %v9262_v12  ;;  %v4751_v0 = vrot.slane %v4670_v41, %v9262_v12 }
 0x806   : > { %6302 = vset.pattern.permute.xlu0 %v9263_v2  ;;  %v4759_v49 = vrot.slane %v4708_v44, %v9262_v12  ;;  %v4718_v52 = vcombine.high %v4708_v44, %v4708_v44  ;;  %v4715_v45 = vrot.slane %v4687_v20, %v9260_v30 }
 0x807   : > { %4873 = vperm.xlu0 %6302, %v4731_v37   ;;  %6298 = vset.pattern.permute.xlu1 %v9263_v2 }
 0x808   : > { %4865 = vperm.xlu1 %6298, %v4723_v23   ;;  %v4767_v32 = vrot.slane %v4718_v52, %v9262_v12  ;;  %v4775_v48 = vrot.slane %v4715_v45, %v9262_v12  ;;  %v4747_v23 = vrot.slane %v4668_v28, %v9262_v12 }
 0x80b   : > { %4885 = vperm.xlu0 %6302, %v4743_v55  }
 0x80c   : > { %6300 = vset.pattern.permute.xlu1 %v9261_v4 }
 0x80d   : > { %4793 = vperm.xlu1 %6300, %v4731_v37  }
 0x80f   : > { %6306 = vset.pattern.permute.xlu0 %v9261_v4 }
 0x810   : > { %4825 = vperm.xlu0 %6306, %v4763_v42  }
 0x811   : > { %4801 = vperm.xlu1 %6300, %v4739_v27  }
 0x814   : > { %4833 = vperm.xlu0 %6306, %v4771_v29  }
 0x815   : > { %6301 = vset.pattern.permute.xlu1 %v9263_v2 }
 0x816   : > { %4869 = vperm.xlu1 %6301, %v4727_v22   ;;  %v4719_v22 = vcombine.high %v4715_v45, %v4715_v45 }
 0x818   : > { %6307 = vset.pattern.permute.xlu0 %v9263_v2  ;;  %v4783_v24 = vrot.slane %v4719_v22, %v9262_v12 }
 0x819   : > { %4893 = vperm.xlu0 %6307, %v4751_v0  }
 0x81a   : > { %4881 = vperm.xlu1 %6301, %v4739_v27  }
 0x81d   : > { %4901 = vperm.xlu0 %6307, %v4759_v49  }
 0x81e   : > { %6303 = vset.pattern.permute.xlu1 %v9261_v4 }
 0x81f   : > { %4797 = vperm.xlu1 %6303, %v4735_v39  }
 0x821   : > { %4909 = vperm.xlu0 %6307, %v4767_v32  }
 0x823   : > { %4805 = vperm.xlu1 %6303, %v4743_v55  }
 0x825   : > { %4917 = vperm.xlu0 %6307, %v4775_v48  }
 0x827   : > { %4809 = vperm.xlu1 %6303, %v4747_v23  }
 0x829   : > { %6311 = vset.pattern.permute.xlu0 %v9261_v4 }
 0x82a   : > { %4845 = vperm.xlu0 %6311, %v4783_v24  }
 0x82b   : > { %4817 = vperm.xlu1 %6303, %v4755_v34  }
 0x82e   : > { %6312 = vset.pattern.permute.xlu0 %v9263_v2 }
 0x82f   : > { %6304 = vset.pattern.permute.xlu1 %v9263_v2  ;;  %4925 = vperm.xlu0 %6312, %v4783_v24  }
 0x830   : > { %4877 = vperm.xlu1 %6304, %v4735_v39  }
 0x833   : > { %5216 = vrot.lane.b32.xlu0 %v8581_v31, %s6884_s3  ;;  %v4717_v31 = vcombine.high %v4701_v26, %v4701_v26 }
 0x834   : > { %4889 = vperm.xlu1 %6304, %v4747_v23   ;;  %6313 = vset.pattern.permute.xlu0 %v9264_v5 }
 0x835   : > { %v4779_v37 = vrot.slane %v4717_v31, %v9262_v12 }
 0x838   : > { %4897 = vperm.xlu1 %6304, %v4755_v34  }
 0x83c   : > { %6305 = vset.pattern.permute.xlu1 %v9261_v4 }
 0x83d   : > { %4813 = vperm.xlu1 %6305, %v4751_v0  }
 0x841   : > { %4821 = vperm.xlu1 %6305, %v4759_v49  }
 0x845   : > { %6308 = vset.pattern.permute.xlu1 %v9263_v2 }
 0x846   : > { %4905 = vperm.xlu1 %6308, %v4763_v42  }
 0x84a   : > { %4913 = vperm.xlu1 %6308, %v4771_v29  }
 0x84e   : > { %6309 = vset.pattern.permute.xlu1 %v9261_v4  ;;  %v9265_v4 = vld [vmem:[#allocation70_spill] sm:$0xff] }
 0x84f   : > { %4829 = vperm.xlu1 %6309, %v4767_v32   ;;  %v1670_v60 = vadd.f32 %v5619_v47, %v9265_v4 }
 0x853   : > { %4837 = vperm.xlu1 %6309, %v4775_v48  }
 0x857   : > { %4841 = vperm.xlu1 %6309, %v4779_v37  }
 0x85b   : > { %6310 = vset.pattern.permute.xlu1 %v9263_v2 }
 0x85c   : > { %4921 = vperm.xlu1 %6310, %v4779_v37  }
 0x860   : > { %5214 = vrot.lane.b32.xlu1 %v8574_v63, %s6884_s3  ;;  %s6885_s3 = smov [#allocation22]  }
 0x861   : > { %s6713_s10 = sshll.u32 %s6885_s3, 4  ;;  %s6714_s10 = int_to_ptr.vmem [resolvable:$false] %s6713_s10 }
 0x862   : > { %s6715_s11 = scalar_lea.vmem %s6714_s10, 2048  ;;  %p6716_p4 = scmp.lt.s32.totalorder %s8640_s5, %s6714_s10 }
 0x863   : > { %p6717_p9 = scmp.lt.s32.totalorder %s6715_s11, %s6709_s8 }
 0x865   : > { %p6718_p11 = por %p6717_p9, %p6716_p4 }
 0x867   : > { %p6719_p12 = pnand %p6718_p11, %p6712_p8 }
 0x869   : > { %6722 = shalt.err (!%p6719_p12)
}
 0x86a   : > { %s6723_s14 = scalar_lea.hbm %s8637_s4, 1024  ;;  %s6727_s1 = scalar_lea.hbm %s7062_s9, 2048 }
 0x86b   : > { %p6724_p0 = scmp.ne.s32.totalorder %s8637_s4, %s6723_s14  ;;  %p6728_p1 = scmp.lt.s32.totalorder %s8637_s4, %s7062_s9 }
 0x86c   : > { %p6729_p3 = scmp.lt.s32.totalorder %s6727_s1, %s6723_s14 }
 0x86d   : > { %p6725_p10 = pnand %p6724_p0, %p9266_p6 }
 0x86e   : > { %p6730_p7 = por %p6729_p3, %p6728_p1 }
 0x86f   : > { %p6726_p5 = pneg %p6725_p10 }
 0x871   : > { %p6731_p13 = pnand %p6730_p7, %p6726_p5 }
 0x873   : > { %6734 = shalt.err (!%p6731_p13)
}
 0x874   : > { %s9097_s11 = smov 64   ;;  %s6887_s8 = smov 4   ;;  %6390 = vtanh.f32 %v1670_v60  ;;  %v6048_v63 = vpop.f32.mrf.mxu0  ;;  %v6028_v2 = vpop.f32.mrf.mxu1  ;;  %v3973_v44 = vadd.f32 %v8554_v9, %v8535_v46  ;;  %v9269_v20 = vld [vmem:[#allocation71_spill] sm:$0xff]  ;;  %v9270_v23 = vld [vmem:[#allocation86_spill] sm:$0xff]  ;;  %v3981_v31 = vadd.f32 %v8533_v33, %v8554_v9  ;;  %vm5222_vm12 = vcmask 48128  }
 0x875   : > { %6112 = dma.vmem_to_hbm [thread:$0]  (%p9266_p6), %s8640_s5, 1024, %s8637_s4, %s5226_s6, %s9097_s11, %s9097_s11, %s6887_s8   ;;  %v4962_v54 = vpop.permute.xlu0 %4961  ;;  %v1673_v39 = vadd.f32 %v5619_v47, %v9269_v20  ;;  %v9271_v24 = vunpack.c.l.bf16 %v9270_v23 }
 0x876   : > { %v4541_v43 = vpop.f32.mrf.mxu0  ;;  %v4087_v38 = vpop.f32.mrf.mxu1  ;;  %s9267_s10 = sld [smem:[#allocation59_spill]]  ;;  %s8717_s5 = scalar_lea.vmem [#allocation23], %s7267_s19 }
 0x877   : > { %s9268_s1 = sld [smem:[#allocation58_spill]]  ;;  %v4604_v34 = vadd.f32 %v3973_v44, %v9271_v24  ;;  %6392 = vtanh.f32 %v1673_v39  ;;  %v9272_v39 = vld [vmem:[#allocation89_spill] sm:$0xff]  ;;  %s5600_s6 = sshll.u32 %s9321_s7, 3 }
 0x878   : > { %v8665_v8 = vpop.f32.mrf.mxu0  ;;  %v8667_v26 = vpop.f32.mrf.mxu1  ;;  %v9273_v24 = vunpack.c.l.bf16 %v9272_v39  ;;  %s9287_s19 = sld [smem:[#allocation61_spill]]  ;;  %s5265_s3 = sshll.u32 %s8717_s5, 4  ;;  %s8962_s3 = int_to_ptr.vmem [resolvable:$true] %s5265_s3 }
 0x879   : > { %v8669_v27 = vpop.permute.xlu1 %4965  ;;  %s9309_s4 = sld [smem:[#allocation60_spill]]  ;;  %s9312_s14 = sshll.u32 %s7095_s2, 10 }
 0x87a   : > { %v4544_v29 = vpop.f32.mrf.mxu0  ;;  %v8672_v40 = vpop.f32.mrf.mxu1  ;;  %v4606_v1 = vadd.f32 %v3981_v31, %v9273_v24 }
 0x87c   : > { %v8678_v15 = vpop.f32.mrf.mxu0  ;;  %v8682_v32 = vpop.f32.mrf.mxu1  ;;  %v8685_v45 = vld [vmem:[%s9267_s10] ss:$0 sm:$0xff] }
 0x87d   : > { %v8674_v0 = vpop.permute.xlu0 %4789  ;;  %v4542_v28 = vadd.f32 %v8685_v45, %v4541_v43  ;;  %v8692_v5 = vld [vmem:[%s9268_s1] ss:$0 sm:$0xff]  ;;  %v4550_v44 = vadd.f32 %v6048_v63, %v8685_v45  ;;  %v4545_v39 = vadd.f32 %v8685_v45, %v4544_v29  ;;  %s5231_s1 = scalar_lea.sflag [#allocation24], %s7264_s28 }
 0x87e   : > { %v4786_v52 = vpop.permute.xlu1 %4785  ;;  %v4557_v48 = vpop.f32.mrf.mxu0  ;;  %v4088_v4 = vadd.f32 %v8692_v5, %v4087_v38  ;;  %s8841_s7 = scalar_lea.vmem %s9287_s19, %s5600_s6  ;;  %s6735_s19 = scalar_lea.vmem %s8962_s3, 1024 }
 0x87f   : > { %v4103_v60 = vpop.f32.mrf.mxu1  ;;  %s8960_s10 = scalar_lea.hbm %s9309_s4, %s9312_s14  ;;  %p6736_p2 = scmp.ne.s32.totalorder %s8962_s3, %s6735_s19 }
 0x880   : > { %s6888_s6 = smov [#allocation23]  }
 0x881   : > { %v6391_v55 = vpop.eup %6390  ;;  %p6737_p8 = pnand %p6736_p2, %p9266_p6  ;;  %s6739_s11 = sshll.u32 %s6888_s6, 4  ;;  %s6740_s11 = int_to_ptr.vmem [resolvable:$false] %s6739_s11 }
 0x882   : > { %v4968_v42 = vmul.f32 %v6391_v55, %v4962_v54  ;;  %v4874_v46 = vpop.permute.xlu0 %4873  ;;  %v4848_v55 = vmul.f32 %v4786_v52, %v4604_v34  ;;  %v8697_v54 = vpop.f32.mrf.mxu0  ;;  %v4096_v34 = vadd.f32 %v6028_v2, %v8692_v5  ;;  %p6742_p9 = scmp.lt.s32.totalorder %s8962_s3, %s6740_s11 }
 0x883   : > { %v4866_v47 = vpop.permute.xlu1 %4865  ;;  %p6738_p4 = pneg %p6737_p8 }
 0x884   : > { %v4979_v41 = vrot.slane %v4968_v42, %v9260_v30  ;;  %v4928_v43 = vmul.f32 %v4866_v47, %v4542_v28  ;;  %v4972_v21 = vcombine.high %v4968_v42, %v4968_v42  ;;  %v4930_v47 = vmul.f32 %v4874_v46, %v4550_v44 }
 0x885   : > { %v3989_v46 = vadd.f32 %v8554_v9, %v8543_v13 }
 0x886   : > { %v4995_v49 = vrot.slane %v4979_v41, %v9260_v30  ;;  %v4944_v20 = vadd.f32 %v4928_v43, %v4848_v55  ;;  %v8699_v23 = vpop.permute.xlu0 %4885  ;;  %v4987_v38 = vcombine.high %v4979_v41, %v4979_v41  ;;  %v4986_v42 = vrot.slane %v4972_v21, %v9260_v30  ;;  %v6393_v21 = vpop.eup %6392 }
 0x888   : > { %v5073_v22 = vrot.slane %v4995_v49, %v9262_v12  ;;  %v5017_v37 = vcombine.high %v4995_v49, %v4995_v49  ;;  %v8705_v49 = vpop.f32.mrf.mxu1  ;;  %v4794_v28 = vpop.permute.xlu1 %4793  ;;  %v8714_v41 = vrot.slane %v4987_v38, %v9260_v30  ;;  %v8731_v24 = vrot.slane %v4986_v42, %v9260_v30 }
 0x88a   : > { %v5150_v36 = vmul.f32 %v5073_v22, %v4088_v4  ;;  %v5081_v33 = vrot.slane %v5017_v37, %v9262_v12  ;;  %v4850_v22 = vmul.f32 %v4794_v28, %v4606_v1  ;;  %v4560_v4 = vpop.f32.mrf.mxu0  ;;  %v4106_v31 = vpop.f32.mrf.mxu1  ;;  %v3976_v37 = vadd.f32 %v8554_v9, %v8539_v59 }
 0x88b   : > { %v8708_v10 = vpop.permute.xlu0 %4825  ;;  %v5077_v28 = vrot.slane %v8714_v41, %v9262_v12 }
 0x88c   : > { %v5166_v52 = vadd.f32 %v5150_v36, %v4944_v20  ;;  %v4946_v43 = vadd.f32 %v4930_v47, %v4850_v22  ;;  %v5152_v63 = vmul.f32 %v5081_v33, %v4096_v34  ;;  %v4802_v36 = vpop.permute.xlu1 %4801  ;;  %v8721_v2 = vpop.f32.mrf.mxu0  ;;  %v9274_v33 = vld [vmem:[#allocation88_spill] sm:$0xff]  ;;  %v8738_v34 = vmul.f32 %v6393_v21, %v8669_v27 }
 0x88d   : > { %v8727_v44 = vpop.f32.mrf.mxu1  ;;  %v9275_v38 = vunpack.c.l.bf16 %v9274_v33  ;;  %v4091_v47 = vadd.f32 %v8692_v5, %v8672_v40  ;;  %v4558_v33 = vadd.f32 %v8685_v45, %v4557_v48  ;;  %v4988_v40 = vcombine.high %v4986_v42, %v4986_v42 }
 0x88e   : > { %v5182_v55 = vpack.c.bf16 %v5166_v52, %v5166_v52  ;;  %v5168_v1 = vadd.f32 %v5152_v63, %v4946_v43  ;;  %v8744_v22 = vpop.f32.mrf.mxu0  ;;  %v9276_v43 = vld [vmem:[#allocation90_spill] sm:$0xff]  ;;  %v5021_v50 = vcombine.high %v8738_v34, %v8738_v34  ;;  %v3992_v42 = vadd.f32 %v8554_v9, %v8547_v58 }
 0x88f   : > { %v8725_v59 = vpop.permute.xlu0 %4833  ;;  %v4605_v52 = vadd.f32 %v3976_v37, %v9275_v38  ;;  %v9277_v63 = vunpack.c.l.bf16 %v9276_v43  ;;  %v5151_v21 = vmul.f32 %v5077_v28, %v4091_v47 }
 0x890   : > { %5198 = vst.msk [vmem:[%s8717_s5] sm:$0xf] %vm3434_vm11, %v5182_v55  ;;  %v5184_v20 = vpack.c.bf16 %v5168_v1, %v5168_v1  ;;  %v8749_v1 = vpop.f32.mrf.mxu1 }
 0x891   : > { %v4870_v13 = vpop.permute.xlu1 %4869  ;;  %v4849_v29 = vmul.f32 %v8674_v0, %v4605_v52  ;;  %v4608_v37 = vadd.f32 %v3989_v46, %v9277_v63  ;;  %v8759_v46 = vpop.f32.mrf.mxu0  ;;  %v8768_v63 = vrot.slane %v4988_v40, %v9260_v30  ;;  %v9280_v40 = vunpack.c.l.bf16 %v8158_v53 }
 0x892   : > { %5200 = vst.msk [vmem:[%s8717_s5 + $0x8] sm:$0xf] %vm3434_vm11, %v5184_v20  ;;  %v4929_v55 = vmul.f32 %v4870_v13, %v4545_v39  ;;  %v5089_v20 = vrot.slane %v8731_v24, %v9262_v12  ;;  %v4104_v39 = vadd.f32 %v8692_v5, %v4103_v60  ;;  %v8771_v60 = vrot.slane %v5021_v50, %v9260_v30 }
 0x893   : > { %v4852_v52 = vmul.f32 %v4802_v36, %v4608_v37  ;;  %v8773_v36 = vpop.f32.mrf.mxu0  ;;  %v4609_v50 = vadd.f32 %v3992_v42, %v9280_v40 }
 0x894   : > { %v4945_v27 = vadd.f32 %v4929_v55, %v4849_v29  ;;  %v8752_v38 = vpop.permute.xlu0 %4893  ;;  %v8761_v29 = vpop.f32.mrf.mxu1  ;;  %v5154_v55 = vmul.f32 %v5089_v20, %v4104_v39  ;;  %v5037_v58 = vcombine.high %v8771_v60, %v8771_v60  ;;  %v5093_v39 = vrot.slane %v8768_v63, %v9262_v12 }
 0x895   : > { %v4882_v0 = vpop.permute.xlu1 %4881  ;;  %9278 = vst [vmem:[#allocation74_spill] sm:$0xff] %v8761_v29 }
 0x896   : > { %v5167_v13 = vadd.f32 %v5151_v21, %v4945_v27  ;;  %v4932_v48 = vmul.f32 %v4882_v0, %v4558_v33  ;;  %v8777_v27 = vpop.f32.mrf.mxu1  ;;  %v4561_v0 = vadd.f32 %v8685_v45, %v4560_v4  ;;  %v8799_v53 = vrot.slane %v5037_v58, %v9260_v30 }
 0x898   : > { %v5183_v28 = vpack.c.bf16 %v5167_v13, %v5167_v13  ;;  %v4948_v47 = vadd.f32 %v4932_v48, %v4852_v52  ;;  %v8763_v43 = vpop.permute.xlu0 %4901  ;;  %v8788_v52 = vpop.f32.mrf.mxu0  ;;  %v4107_v48 = vadd.f32 %v8692_v5, %v4106_v31  ;;  %9284 = vst [vmem:[#allocation68_spill] sm:$0xff] %v8799_v53  ;;  %v4032_v31 = vadd.f32 %v8567_v11, %v8554_v9 }
 0x899   : > { %9281 = vst [vmem:[#allocation76_spill] sm:$0xff] %v8788_v52  ;;  %v8794_v4 = vpop.f32.mrf.mxu1  ;;  %v5069_v58 = vcombine.high %v8799_v53, %v8799_v53  ;;  %v9285_v11 = vunpack.c.l.bf16 %v8130_v57  ;;  %v4099_v57 = vadd.f32 %v8667_v26, %v8692_v5 }
 0x89a   : > { %5199 = vst.msk [vmem:[%s8717_s5 + $0x4] sm:$0xf] %vm3434_vm11, %v5183_v28  ;;  %v5170_v37 = vadd.f32 %v5154_v55, %v4948_v47  ;;  %v4798_v33 = vpop.permute.xlu1 %4797  ;;  %v4933_v28 = vmul.f32 %v8699_v23, %v4561_v0  ;;  %9282 = vst [vmem:[#allocation67_spill] sm:$0xff] %v8794_v4  ;;  %v8801_v40 = vpop.f32.mrf.mxu0  ;;  %v3984_v23 = vadd.f32 %v8537_v56, %v8554_v9 }
 0x89b   : > { %v3997_v56 = vadd.f32 %v8541_v17, %v8554_v9  ;;  %v5133_v4 = vrot.slane %v5069_v58, %v9262_v12 }
 0x89c   : > { %v5186_v21 = vpack.c.bf16 %v5170_v37, %v5170_v37  ;;  %v8779_v20 = vpop.permute.xlu0 %4909  ;;  %v5155_v37 = vmul.f32 %v5093_v39, %v4107_v48  ;;  %v5019_v39 = vcombine.high %v8714_v41, %v8714_v41  ;;  %v4553_v41 = vadd.f32 %v8665_v8, %v8685_v45 }
 0x89d   : > { %9279 = vst [vmem:[#allocation65_spill] sm:$0xff] %v8779_v20  ;;  %v8803_v20 = vpop.f32.mrf.mxu1  ;;  %v4005_v8 = vadd.f32 %v8554_v9, %v8551_v61 }
 0x89e   : > { %5202 = vst.msk [vmem:[%s8717_s5 + $0x10] sm:$0xf] %vm3434_vm11, %v5186_v21  ;;  %v4806_v13 = vpop.permute.xlu1 %4805 }
 0x89f   : > { %v4853_v47 = vmul.f32 %v4806_v13, %v4609_v50  ;;  %v6061_v13 = vpop.f32.mrf.mxu0 }
 0x8a0   : > { %v8796_v55 = vpop.permute.xlu0 %4917 }
 0x8a1   : > { %9283 = vst [vmem:[#allocation80_spill] sm:$0xff] %v8796_v55  ;;  %v4949_v42 = vadd.f32 %v4933_v28, %v4853_v47  ;;  %v6041_v28 = vpop.f32.mrf.mxu1  ;;  %v4601_v47 = vadd.f32 %v6061_v13, %v8685_v45  ;;  %v5028_v55 = vrot.slane %v8738_v34, %v9260_v30  ;;  %v5085_v13 = vrot.slane %v5019_v39, %v9262_v12 }
 0x8a2   : > { %v4810_v52 = vpop.permute.xlu1 %4809  ;;  %v4566_v39 = vadd.f32 %v8678_v15, %v8685_v45 }
 0x8a3   : > { %v5171_v21 = vadd.f32 %v5155_v37, %v4949_v42  ;;  %v4607_v42 = vadd.f32 %v3984_v23, %v9285_v11  ;;  %v9286_v37 = vunpack.c.l.bf16 %v8426_v18  ;;  %v4147_v18 = vadd.f32 %v6041_v28, %v8692_v5 }
 0x8a4   : > { %v9288_v11 = vunpack.c.l.bf16 %v8190_v51  ;;  %v8844_v26 = vrot.slane %v5028_v55, %v9260_v30  ;;  %v5153_v28 = vmul.f32 %v5085_v13, %v4099_v57 }
 0x8a5   : > { %v5187_v0 = vpack.c.bf16 %v5171_v21, %v5171_v21  ;;  %v4846_v50 = vpop.permute.xlu0 %4845  ;;  %v4619_v21 = vadd.f32 %v4032_v31, %v9286_v37  ;;  %v5165_v53 = vmul.f32 %v5133_v4, %v4147_v18  ;;  %v4112_v4 = vadd.f32 %v8682_v32, %v8692_v5 }
 0x8a6   : > { %v4818_v48 = vpop.permute.xlu1 %4817  ;;  %v4610_v34 = vadd.f32 %v3997_v56, %v9288_v11  ;;  %v9289_v56 = vld [vmem:[#allocation85_spill] sm:$0xff]  ;;  %v5105_v13 = vrot.slane %v8844_v26, %v9262_v12  ;;  %v4000_v32 = vadd.f32 %v8545_v25, %v8554_v9  ;;  %v4008_v11 = vadd.f32 %v8554_v9, %v8559_v7 }
 0x8a7   : > { %5203 = vst.msk [vmem:[%s8717_s5 + $0x14] sm:$0xf] %vm3434_vm11, %v5187_v0  ;;  %v5018_v0 = vcombine.high %v8731_v24, %v8731_v24  ;;  %v4863_v23 = vmul.f32 %v4846_v50, %v4619_v21  ;;  %v4851_v24 = vmul.f32 %v4798_v33, %v4607_v42  ;;  %v4115_v7 = vadd.f32 %v8705_v49, %v8692_v5 }
 0x8a8   : > { %v4854_v42 = vmul.f32 %v4810_v52, %v4610_v34  ;;  %v5036_v52 = vcombine.high %v5028_v55, %v5028_v55  ;;  %v5066_v49 = vcombine.high %v8844_v26, %v8844_v26 }
 0x8a9   : > { %v5097_v33 = vrot.slane %v5018_v0, %v9262_v12  ;;  %v9290_v0 = vunpack.c.l.bf16 %v8098_v3  ;;  %v4120_v3 = vadd.f32 %v8692_v5, %v8749_v1 }
 0x8aa   : > { %v4926_v17 = vpop.permute.xlu0 %4925 }
 0x8ab   : > { %v4943_v31 = vmul.f32 %v4926_v17, %v4601_v47  ;;  %v4878_v58 = vpop.permute.xlu1 %4877  ;;  %v4574_v17 = vadd.f32 %v8685_v45, %v8744_v22  ;;  %v5020_v22 = vcombine.high %v8768_v63, %v8768_v63  ;;  %v5158_v55 = vmul.f32 %v5105_v13, %v4120_v3 }
 0x8ac   : > { %v4931_v37 = vmul.f32 %v4878_v58, %v4553_v41  ;;  %v9291_v63 = vunpack.c.l.bf16 %v8443_v6  ;;  %v4577_v6 = vadd.f32 %v8685_v45, %v8773_v36  ;;  %v5113_v13 = vrot.slane %v5066_v49, %v9262_v12 }
 0x8ad   : > { %v4959_v29 = vadd.f32 %v4943_v31, %v4863_v23  ;;  %v5156_v23 = vmul.f32 %v5097_v33, %v4112_v4  ;;  %v5101_v1 = vrot.slane %v5020_v22, %v9262_v12 }
 0x8ae   : > { %v4947_v50 = vadd.f32 %v4931_v37, %v4851_v24  ;;  %v5217_v61 = vpop.permute.xlu0 %5216  ;;  %v4569_v37 = vadd.f32 %v8697_v54, %v8685_v45  ;;  %v9292_v54 = vunpack.c.l.bf16 %v8218_v35  ;;  %v4123_v35 = vadd.f32 %v8692_v5, %v8777_v27 }
 0x8af   : > { %v5181_v51 = vadd.f32 %v5165_v53, %v4959_v29  ;;  %v5221_v47 = vsel %vm2069_vm10, %v9289_v56, %v5217_v61  ;;  %v4890_v15 = vpop.permute.xlu1 %4889  ;;  %v4612_v29 = vadd.f32 %v4005_v8, %v9290_v0 }
 0x8b0   : > { %v5169_v21 = vadd.f32 %v5153_v28, %v4947_v50  ;;  %5224 = vst.msk [vmem:[%s8841_s7 + $0x8] sm:$0xff] %vm5222_vm12, %v5221_v47  ;;  %v4934_v41 = vmul.f32 %v4890_v15, %v4566_v39  ;;  %v5058_v39 = vrot.slane %v5036_v52, %v9260_v30  ;;  %v4611_v50 = vadd.f32 %v4000_v32, %v9291_v63  ;;  %v9298_v63 = vld [vmem:[#allocation74_spill] sm:$0xff] }
 0x8b1   : > { %v5197_v53 = vpack.c.bf16 %v5181_v51, %v5181_v51  ;;  %v4856_v58 = vmul.f32 %v4818_v48, %v4612_v29  ;;  %v4935_v61 = vmul.f32 %v8752_v38, %v4569_v37  ;;  %v4613_v56 = vadd.f32 %v4008_v11, %v9292_v54 }
 0x8b2   : > { %v5185_v57 = vpack.c.bf16 %v5169_v21, %v5169_v21  ;;  %v4950_v18 = vadd.f32 %v4934_v41, %v4854_v42  ;;  %v5157_v15 = vmul.f32 %v5101_v1, %v4115_v7  ;;  %v5109_v4 = vrot.slane %v5058_v39, %v9262_v12  ;;  %v9299_v1 = vld [vmem:[#allocation65_spill] sm:$0xff]  ;;  %v4138_v7 = vpop.f32.mrf.mxu1 }
 0x8b3   : > { %5213 = vst.msk [vmem:[%s8717_s5 + $0x3c] sm:$0xf] %vm3434_vm11, %v5197_v53  ;;  %v4898_v31 = vpop.permute.xlu1 %4897  ;;  %v4013_v42 = vadd.f32 %v8549_v16, %v8554_v9  ;;  %v4937_v21 = vmul.f32 %v8763_v43, %v4577_v6  ;;  %v4582_v53 = vadd.f32 %v8721_v2, %v8685_v45  ;;  %v5051_v16 = vrot.slane %v8771_v60, %v9260_v30 }
 0x8b4   : > { %5201 = vst.msk [vmem:[%s8717_s5 + $0xc] sm:$0xf] %vm3434_vm11, %v5185_v57  ;;  %v5172_v8 = vadd.f32 %v5156_v23, %v4950_v18  ;;  %v4936_v24 = vmul.f32 %v4898_v31, %v4574_v17  ;;  %v5159_v0 = vmul.f32 %v5109_v4, %v4123_v35  ;;  %v9293_v9 = vunpack.c.l.bf16 %v8269_v19 }
 0x8b5   : > { %v4128_v57 = vadd.f32 %v8727_v44, %v8692_v5  ;;  %v9294_v2 = vunpack.c.l.bf16 %v8329_v62  ;;  %v4590_v19 = vadd.f32 %v8685_v45, %v8801_v40  ;;  %v5121_v31 = vrot.slane %v5051_v16, %v9262_v12 }
 0x8b6   : > { %v5188_v25 = vpack.c.bf16 %v5172_v8, %v5172_v8  ;;  %v4952_v34 = vadd.f32 %v4936_v24, %v4856_v58  ;;  %v4614_v26 = vadd.f32 %v4013_v42, %v9293_v9  ;;  %v5068_v22 = vcombine.high %v5058_v39, %v5058_v39  ;;  %v4592_v39 = vpop.f32.mrf.mxu0 }
 0x8b7   : > { %v4616_v30 = vadd.f32 %v8565_v14, %v9294_v2  ;;  %v5160_v32 = vmul.f32 %v5113_v13, %v4128_v57  ;;  %v4585_v40 = vadd.f32 %v8759_v46, %v8685_v45  ;;  %v4139_v49 = vadd.f32 %v8692_v5, %v4138_v7  ;;  %v9305_v13 = vld [vmem:[#allocation76_spill] sm:$0xff] }
 0x8b8   : > { %5204 = vst.msk [vmem:[%s8717_s5 + $0x18] sm:$0xf] %vm3434_vm11, %v5188_v25  ;;  %v5174_v48 = vadd.f32 %v5158_v55, %v4952_v34  ;;  %v4814_v28 = vpop.permute.xlu1 %4813  ;;  %v4858_v18 = vmul.f32 %v8708_v10, %v4614_v26  ;;  %v4136_v10 = vadd.f32 %v8692_v5, %v8803_v20  ;;  %v5117_v11 = vrot.slane %v5068_v22, %v9262_v12  ;;  %v9295_v25 = vld [vmem:[#allocation75_spill] sm:$0xff]  ;;  %v9297_v34 = vld [vmem:[#allocation66_spill] sm:$0xff] }
 0x8b9   : > { %v4855_v33 = vmul.f32 %v4814_v28, %v4611_v50  ;;  %v4860_v62 = vmul.f32 %v8725_v59, %v4616_v30  ;;  %v9296_v55 = vunpack.c.l.bf16 %v9295_v25  ;;  %v4131_v50 = vadd.f32 %v9298_v63, %v8692_v5  ;;  %v9310_v30 = vld [vmem:[#allocation67_spill] sm:$0xff] }
 0x8ba   : > { %v5190_v51 = vpack.c.bf16 %v5174_v48, %v5174_v48  ;;  %v5162_v8 = vmul.f32 %v5121_v31, %v4136_v10  ;;  %v4939_v48 = vmul.f32 %v9299_v1, %v4585_v40 }
 0x8bb   : > { %v4951_v47 = vadd.f32 %v4935_v61, %v4855_v33  ;;  %v4615_v37 = vadd.f32 %v9297_v34, %v9296_v55  ;;  %v9300_v61 = vld [vmem:[#allocation64_spill] sm:$0xff]  ;;  %v5161_v6 = vmul.f32 %v5117_v11, %v4131_v50 }
 0x8bc   : > { %5206 = vst.msk [vmem:[%s8717_s5 + $0x20] sm:$0xf] %vm3434_vm11, %v5190_v51  ;;  %v4822_v38 = vpop.permute.xlu1 %4821  ;;  %v9301_v33 = vunpack.c.l.bf16 %v9300_v61  ;;  %v9302_v51 = vld [vmem:[#allocation62_spill] sm:$0xff] }
 0x8bd   : > { %v5173_v36 = vadd.f32 %v5157_v15, %v4951_v47  ;;  %v4857_v41 = vmul.f32 %v4822_v38, %v4613_v56  ;;  %v4593_v56 = vadd.f32 %v8685_v45, %v4592_v39  ;;  %v9303_v15 = vld [vmem:[#allocation68_spill] sm:$0xff] }
 0x8be   : > { %v4617_v54 = vadd.f32 %v9302_v51, %v9301_v33  ;;  %v5125_v4 = vrot.slane %v9303_v15, %v9262_v12  ;;  %v9304_v38 = vld [vmem:[#allocation80_spill] sm:$0xff] }
 0x8bf   : > { %v5189_v17 = vpack.c.bf16 %v5173_v36, %v5173_v36  ;;  %v4953_v29 = vadd.f32 %v4937_v21, %v4857_v41  ;;  %v4941_v35 = vmul.f32 %v9304_v38, %v4593_v56 }
 0x8c1   : > { %5205 = vst.msk [vmem:[%s8717_s5 + $0x1c] sm:$0xf] %vm3434_vm11, %v5189_v17  ;;  %v5175_v43 = vadd.f32 %v5159_v0, %v4953_v29  ;;  %v4906_v27 = vpop.permute.xlu1 %4905  ;;  %v5163_v17 = vmul.f32 %v5125_v4, %v4139_v49  ;;  %v5067_v29 = vcombine.high %v5051_v16, %v5051_v16 }
 0x8c2   : > { %v4938_v23 = vmul.f32 %v4906_v27, %v4582_v53  ;;  %v9306_v27 = vld [vmem:[#allocation82_spill] sm:$0xff] }
 0x8c3   : > { %v5191_v60 = vpack.c.bf16 %v5175_v43, %v5175_v43  ;;  %v4598_v43 = vadd.f32 %v9305_v13, %v8685_v45  ;;  %v9307_v57 = vunpack.c.l.bf16 %v9306_v27  ;;  %v5129_v2 = vrot.slane %v5067_v29, %v9262_v12 }
 0x8c4   : > { %v4954_v52 = vadd.f32 %v4938_v23, %v4858_v18  ;;  %v9308_v18 = vld [vmem:[#allocation78_spill] sm:$0xff] }
 0x8c5   : > { %5207 = vst.msk [vmem:[%s8717_s5 + $0x24] sm:$0xf] %vm3434_vm11, %v5191_v60  ;;  %v4914_v44 = vpop.permute.xlu1 %4913  ;;  %v4618_v23 = vadd.f32 %v9308_v18, %v9307_v57  ;;  %v4144_v60 = vadd.f32 %v9310_v30, %v8692_v5 }
 0x8c6   : > { %v5176_v3 = vadd.f32 %v5160_v32, %v4954_v52  ;;  %v4940_v14 = vmul.f32 %v4914_v44, %v4590_v19  ;;  %v9311_v44 = vld [vmem:[#allocation84_spill] sm:$0xff] }
 0x8c7   : > { %v5164_v45 = vmul.f32 %v5129_v2, %v4144_v60 }
 0x8c8   : > { %v5192_v58 = vpack.c.bf16 %v5176_v3, %v5176_v3  ;;  %v4956_v24 = vadd.f32 %v4940_v14, %v4860_v62 }
 0x8ca   : > { %5208 = vst.msk [vmem:[%s8717_s5 + $0x28] sm:$0xf] %vm3434_vm11, %v5192_v58  ;;  %v5178_v20 = vadd.f32 %v5162_v8, %v4956_v24  ;;  %v4830_v59 = vpop.permute.xlu1 %4829 }
 0x8cb   : > { %v4859_v28 = vmul.f32 %v4830_v59, %v4615_v37 }
 0x8cc   : > { %v5194_v46 = vpack.c.bf16 %v5178_v20, %v5178_v20 }
 0x8cd   : > { %v4955_v47 = vadd.f32 %v4939_v48, %v4859_v28 }
 0x8ce   : > { %5210 = vst.msk [vmem:[%s8717_s5 + $0x30] sm:$0xf] %vm3434_vm11, %v5194_v46  ;;  %v4838_v42 = vpop.permute.xlu1 %4837 }
 0x8cf   : > { %v5177_v21 = vadd.f32 %v5161_v6, %v4955_v47  ;;  %v4861_v36 = vmul.f32 %v4838_v42, %v4617_v54 }
 0x8d1   : > { %v5193_v41 = vpack.c.bf16 %v5177_v21, %v5177_v21  ;;  %v4957_v0 = vadd.f32 %v4941_v35, %v4861_v36 }
 0x8d2   : > { %v4842_v53 = vpop.permute.xlu1 %4841 }
 0x8d3   : > { %5209 = vst.msk [vmem:[%s8717_s5 + $0x2c] sm:$0xf] %vm3434_vm11, %v5193_v41  ;;  %v5179_v9 = vadd.f32 %v5163_v17, %v4957_v0  ;;  %v4862_v19 = vmul.f32 %v4842_v53, %v4618_v23 }
 0x8d5   : > { %v5195_v26 = vpack.c.bf16 %v5179_v9, %v5179_v9 }
 0x8d7   : > { %5211 = vst.msk [vmem:[%s8717_s5 + $0x34] sm:$0xf] %vm3434_vm11, %v5195_v26  ;;  %v4922_v16 = vpop.permute.xlu1 %4921 }
 0x8d8   : > { %v4942_v32 = vmul.f32 %v4922_v16, %v4598_v43 }
 0x8da   : > { %v4958_v52 = vadd.f32 %v4942_v32, %v4862_v19 }
 0x8db   : > { %v5215_v31 = vpop.permute.xlu1 %5214 }
 0x8dc   : > { %v5180_v22 = vadd.f32 %v5164_v45, %v4958_v52  ;;  %v5220_v10 = vsel %vm2069_vm10, %v9311_v44, %v5215_v31 }
 0x8dd   : > { %5223 = vst.msk [vmem:[%s8841_s7] sm:$0xff] %vm5222_vm12, %v5220_v10  ;;  %s6741_s7 = scalar_lea.vmem %s6740_s11, 2048 }
 0x8de   : > { %v5196_v12 = vpack.c.bf16 %v5180_v22, %v5180_v22  ;;  %p6743_p11 = scmp.lt.s32.totalorder %s6741_s7, %s6735_s19 }
 0x8e0   : > { %5212 = vst.msk [vmem:[%s8717_s5 + $0x38] sm:$0xf] %vm3434_vm11, %v5196_v12  ;;  %p6744_p12 = por %p6743_p11, %p6742_p9 }
 0x8e2   : > { %p6745_p0 = pnand %p6744_p12, %p6738_p4 }
 0x8e4   : > { %6748 = shalt.err (!%p6745_p0)
}
 0x8e5   : > { %s6749_s2 = scalar_lea.hbm %s8960_s10, 1024  ;;  %s6753_s28 = scalar_lea.hbm %s9309_s4, 2048 }
 0x8e6   : > { %p6750_p10 = scmp.ne.s32.totalorder %s8960_s10, %s6749_s2  ;;  %p6754_p3 = scmp.lt.s32.totalorder %s8960_s10, %s9309_s4 }
 0x8e7   : > { %p6755_p7 = scmp.lt.s32.totalorder %s6753_s28, %s6749_s2 }
 0x8e8   : > { %p6751_p5 = pnand %p6750_p10, %p9266_p6 }
 0x8e9   : > { %p6756_p13 = por %p6755_p7, %p6754_p3 }
 0x8ea   : > { %p6752_p1 = pneg %p6751_p5 }
 0x8ec   : > { %p6757_p2 = pnand %p6756_p13, %p6752_p1 }
 0x8ee   : > { %6760 = shalt.err (!%p6757_p2)
}
 0x8ef   : > { %s9313_s11 = smov 64  }
 0x8f0   : > { %6113 = dma.vmem_to_hbm [thread:$0]  (%p9266_p6), %s8962_s3, 1024, %s8960_s10, %s5231_s1, %s9313_s11, %s9313_s11, %s6887_s8  }
 0x8f1 PF: > { %s5284_s5 = sand.u32 1, %s6815_s22   ;;  %p9314_p8 = scmp.ne.s32.totalorder %s9139_s15, 0 }
 0x8f2   : > { %p9315_p4 = scmp.ge.s32.totalorder %s6827_s0, 2  ;;  %s5285_s14 = scalar_lea.sflag [#allocation4], %s5284_s5 }
 0x8f4   : > { %p6155_p9 = pnand %p9315_p4, %p9314_p8 }
 0x8f6   : > { %p6156_p11 = pneg %p6155_p9 }
 0x8f8   : > { %6806 = dma.done.wait (%p6156_p11), %s5285_s14, 1024  }
 0x8f9   : > { %6808 = vsyncadd (%p6156_p11), %s5285_s14, 4294966272  ;;  %s5294_s19 = scalar_lea.sflag [#allocation24], %s5284_s5 }
 0x8fa   : > { %6810 = dma.done.wait (%p6156_p11), %s5294_s19, 1024  }
 0x8fb   : > { %6812 = vsyncadd (%p6156_p11), %s5294_s19, 4294966272  ;;  %p94_p6 = scmp.ge.s32.totalorder %s7201_s18, 4   ;;  %s9316_s22 = smov %s6819_s23 }
 0x8fc   : > { %s9317_s23 = smov %s6823_s26  ;;  %s9318_s26 = smov %s7213_s12 }
 0x8fd   : > { %s9319_s0 = smov %s7201_s18  ;;  %96 = sbr.rel (!%p94_p6) target bundleno = 82 (0x52), region = 311 }
 0x902   :  { %5307 = vsyncpa [#allocation3], 1 }
 0x903   :  { %5309 = vsyncpa [#allocation3 + $0x1], 1 }
 0x904   :  { %5310 = vsyncpa [#allocation6], 1 }
 0x905   :  { %5311 = vsyncpa [#allocation9], 1 }
 0x906   :  { %5312 = vsyncpa [#allocation12], 1 }
 0x907   :  { %5313 = vsyncpa [#allocation15], 1 }
 0x908   :  { %5314 = vsyncpa [#allocation18], 1 }
 0x909   :  { %5315 = vsyncpa [#allocation21], 1 }
 0x90a   :  { %5316 = vsyncpa [#allocation4], 1 }
 0x90b   :  { %5318 = vsyncpa [#allocation4 + $0x1], 1 }
 0x90c   :  { %5319 = vsyncpa [#allocation24], 1 }
 0x90d   :  { %5321 = vsyncpa [#allocation24 + $0x1], 1 }

// kernel: tpu_custom_call.1
= control target key start
LH: loop header
LB: loop body
LE: loop exit
PB: predicated region body
PF: predicated region fallthrough
CT: control target
= control target key end

     0   :  { %s6829_s6 = smov 1   ;;  %s6830_s10 = smov 2   ;;  %s9004_s0 = inlined_call_operand.smem [shape: u32[36], index: -1, kind: input, shape index: {}] }
   0x1   :  { %s6897_s5 = sld [smem:[%s9004_s0]]   ;;  %s6831_s14 = smov 3  }
   0x2   :  { %s6902_s9 = sld [smem:[%s9004_s0 + %s6829_s6]]   ;;  %s6832_s18 = smov 4  }
   0x3   :  { %s6907_s13 = sld [smem:[%s9004_s0 + %s6830_s10]]   ;;  %s6833_s22 = smov 5  }
   0x4   :  { %s6912_s17 = sld [smem:[%s9004_s0 + %s6831_s14]]   ;;  %s6834_s26 = smov 6  }
   0x5   :  { %s6917_s21 = sld [smem:[%s9004_s0 + %s6832_s18]]   ;;  %s6835_s30 = smov 7  }
   0x6   :  { %s6922_s25 = sld [smem:[%s9004_s0 + %s6833_s22]]   ;;  %s6836_s4 = smov 8  }
   0x7   :  { %9098 = sst [smem:[#allocation34_spill]] %s6897_s5  ;;  %s6837_s10 = smov 9  }
   0x8   :  { %9099 = sst [smem:[#allocation35_spill]] %s6902_s9  ;;  %s6838_s15 = smov 10  }
   0x9   :  { %9100 = sst [smem:[#allocation36_spill]] %s6907_s13  ;;  %s6839_s20 = smov 11  }
   0xa   :  { %s6927_s29 = sld [smem:[%s9004_s0 + %s6834_s26]]   ;;  %s6840_s26 = smov 12  }
   0xb   :  { %s6932_s3 = sld [smem:[%s9004_s0 + %s6835_s30]]   ;;  %s6841_s1 = smov 13  }
   0xc   :  { %9101 = sst [smem:[#allocation37_spill]] %s6922_s25  ;;  %s6842_s7 = smov 14  }
   0xd   :  { %s6937_s8 = sld [smem:[%s9004_s0 + %s6836_s4]]   ;;  %s6844_s22 = smov 16  }
   0xe   :  { %s6942_s14 = sld [smem:[%s9004_s0 + %s6837_s10]]   ;;  %s6845_s28 = smov 17  }
   0xf   :  { %s6947_s19 = sld [smem:[%s9004_s0 + %s6838_s15]]   ;;  %s6843_s15 = smov 15  }
  0x10   :  { %s6952_s24 = sld [smem:[%s9004_s0 + %s6839_s20]]  }
  0x11   :  { %9102 = sst [smem:[#allocation38_spill]] %s6932_s3 }
  0x12   :  { %s6957_s30 = sld [smem:[%s9004_s0 + %s6840_s26]]  }
  0x13   :  { %9103 = sst [smem:[#allocation39_spill]] %s6937_s8 }
  0x14   :  { %9104 = sst [smem:[#allocation40_spill]] %s6942_s14 }
  0x15   :  { %9105 = sst [smem:[#allocation41_spill]] %s6947_s19 }
  0x16   :  { %9106 = sst [smem:[#allocation42_spill]] %s6952_s24 }
  0x17   :  { %s6962_s6 = sld [smem:[%s9004_s0 + %s6841_s1]]  }
  0x18   :  { %9107 = sst [smem:[#allocation43_spill]] %s6957_s30 }
  0x19   :  { %s6967_s12 = sld [smem:[%s9004_s0 + %s6842_s7]]   ;;  %s6846_s7 = smov 18  }
  0x1a   :  { %s6972_s20 = sld [smem:[%s9004_s0 + %s6843_s15]]   ;;  %s6847_s15 = smov 19  }
  0x1b   :  { %s6977_s27 = sld [smem:[%s9004_s0 + %s6844_s22]]   ;;  %s6848_s22 = smov 20  }
  0x1c   :  { %s6982_s4 = sld [smem:[%s9004_s0 + %s6845_s28]]   ;;  %s6849_s28 = smov 21  }
  0x1d   :  { %9108 = sst [smem:[#allocation44_spill]] %s6962_s6 }
  0x1e   :  { %s6987_s8 = sld [smem:[%s9004_s0 + %s6846_s7]]   ;;  %s6850_s7 = smov 22  }
  0x1f   :  { %9109 = sst [smem:[#allocation45_spill]] %s6967_s12 }
  0x20   :  { %s6992_s12 = sld [smem:[%s9004_s0 + %s6847_s15]]   ;;  %s6851_s15 = smov 23  }
  0x21   :  { %9110 = sst [smem:[#allocation46_spill]] %s6977_s27 }
  0x22   :  { %9111 = sst [smem:[#allocation47_spill]] %s6982_s4 }
  0x23   :  { %s6997_s27 = sld [smem:[%s9004_s0 + %s6848_s22]]   ;;  %s6852_s22 = smov 24  }
  0x24   :  { %9112 = sst [smem:[#allocation48_spill]] %s6987_s8 }
  0x25   :  { %s7002_s24 = sld [smem:[%s9004_s0 + %s6849_s28]]   ;;  %s6853_s28 = smov 25  }
  0x26   :  { %9113 = sst [smem:[#allocation49_spill]] %s6992_s12 }
  0x27   :  { %s7007_s8 = sld [smem:[%s9004_s0 + %s6850_s7]]   ;;  %s6854_s7 = smov 26  }
  0x28   :  { %s7012_s30 = sld [smem:[%s9004_s0 + %s6851_s15]]   ;;  %s6855_s15 = smov 27  }
  0x29   :  { %9114 = sst [smem:[#allocation50_spill]] %s6997_s27 }
  0x2a   :  { %s7017_s27 = sld [smem:[%s9004_s0 + %s6852_s22]]   ;;  %s6856_s22 = smov 28  }
  0x2b   :  { %s7022_s14 = sld [smem:[%s9004_s0 + %s6853_s28]]   ;;  %s6857_s28 = smov 29  }
  0x2c   :  { %s7037_s25 = sld [smem:[%s9004_s0 + %s6856_s22]]   ;;  %s6860_s22 = smov 32  }
  0x2d   :  { %9115 = sst [smem:[#allocation51_spill]] %s7007_s8 }
  0x2e   :  { %9116 = sst [smem:[#allocation52_spill]] %s7012_s30 }
  0x2f   :  { %s7027_s8 = sld [smem:[%s9004_s0 + %s6854_s7]]   ;;  %s6858_s7 = smov 30  }
  0x30   :  { %s7032_s30 = sld [smem:[%s9004_s0 + %s6855_s15]]   ;;  %s6859_s15 = smov 31  }
  0x31   :  { %9117 = sst [smem:[#allocation53_spill]] %s7022_s14 }
  0x32   :  { %9120 = sst [smem:[#allocation56_spill]] %s7037_s25 }
  0x33   :  { %s7042_s14 = sld [smem:[%s9004_s0 + %s6857_s28]]   ;;  %s6861_s28 = smov 33  }
  0x34   :  { %s7057_s25 = sld [smem:[%s9004_s0 + %s6860_s22]]  }
  0x35   :  { %9118 = sst [smem:[#allocation54_spill]] %s7027_s8 }
  0x36   :  { %9119 = sst [smem:[#allocation55_spill]] %s7032_s30 }
  0x37   :  { %s7047_s8 = sld [smem:[%s9004_s0 + %s6858_s7]]   ;;  %s6862_s7 = smov 34  }
  0x38   :  { %s7052_s30 = sld [smem:[%s9004_s0 + %s6859_s15]]   ;;  %s6863_s15 = smov 35  }
  0x39   :  { %9121 = sst [smem:[#allocation57_spill]] %s7042_s14 }
  0x3a   :  { %9123 = sst [smem:[#allocation59_spill]] %s7057_s25 }
  0x3b   :  { %s7062_s9 = sld [smem:[%s9004_s0 + %s6861_s28]]  }
  0x3c   :  { %s7072_s13 = sld [smem:[%s9004_s0 + %s6863_s15]]  }
  0x3d   :  { %9122 = sst [smem:[#allocation58_spill]] %s7047_s8 }
  0x3e   :  { %s7067_s8 = sld [smem:[%s9004_s0 + %s6862_s7]]  }
  0x42   :  { %9125 = sst [smem:[#allocation61_spill]] %s7072_s13 }
  0x44   :  { %9124 = sst [smem:[#allocation60_spill]] %s7067_s8 }
  0x45   :  { %77 = vsyncpa [#allocation3], 0 }
  0x46   :  { %79 = vsyncpa [#allocation3 + $0x1], 0 }
  0x47   :  { %80 = vsyncpa [#allocation6], 0 }
  0x48   :  { %81 = vsyncpa [#allocation9], 0 }
  0x49   :  { %82 = vsyncpa [#allocation12], 0 }
  0x4a   :  { %83 = vsyncpa [#allocation15], 0 }
  0x4b   :  { %84 = vsyncpa [#allocation18], 0 }
  0x4c   :  { %85 = vsyncpa [#allocation21], 0 }
  0x4d   :  { %86 = vsyncpa [#allocation4], 0 }
  0x4e   :  { %88 = vsyncpa [#allocation4 + $0x1], 0 }
  0x4f   :  { %89 = vsyncpa [#allocation24], 0 }
  0x50   :  { %91 = vsyncpa [#allocation24 + $0x1], 0  ;;  %s7074_s22 = smov 0   ;;  %s7076_s23 = smov 0  }
  0x51   :  { %s7078_s26 = smov 0   ;;  %s7080_s0 = smov 0  }
  0x52 LB: > { %s9126_s3 = sld [smem:[#allocation38_spill]]  ;;  %s6864_s28 = smov [#allocation5]   ;;  %s6819_s23 = sphi %s7076_s23, %s9317_s23   ;;  %s6815_s22 = sphi %s7074_s22, %s9316_s22   ;;  %s6827_s0 = sphi %s7080_s0, %s9319_s0   ;;  %s6823_s26 = sphi %s7078_s26, %s9318_s26  }
  0x53   : > { %s9127_s5 = sld [smem:[#allocation34_spill]]  ;;  %s904_s1 = sshll.u32 %s6864_s28, 4  ;;  %s905_s1 = int_to_ptr.vmem [resolvable:$true] %s904_s1 }
  0x54   : > { %s7095_s2 = sadd.s32 4294967295, %s6827_s0   ;;  %p5564_p0 = scmp.ge.s32.totalorder %s6827_s0, 1 }
  0x55   : > { %p9016_p1 = scmp.eq.s32.totalorder %s7095_s2, 0  ;;  %p888_p2 = scmp.lt.s32.totalorder %s6827_s0, 3 }
  0x56   : > { %s6865_s10 = smov [#allocation8]   ;;  %s6866_s15 = smov [#allocation11]  }
  0x57   : > { %p7100_p3 = pnand %p5564_p0, %p888_p2  ;;  %s938_s11 = sshll.u32 %s6865_s10, 4  ;;  %s7107_s11 = int_to_ptr.vmem [resolvable:$true] %s938_s11 }
  0x58   : > { %s969_s16 = sshll.u32 %s6866_s15, 4  ;;  %s6867_s28 = smov [#allocation14]   ;;  %s7115_s16 = int_to_ptr.vmem [resolvable:$true] %s969_s16 }
  0x59   : > { %s9128_s7 = scalar_select %p7100_p3, 1, 0 }
  0x5a   : > { %p6116_p5 = pneg %p7100_p3  ;;  %s7117_s8 = sshll.u32 %s6867_s28, 4  ;;  %s998_s8 = int_to_ptr.vmem [resolvable:$true] %s7117_s8 }
  0x5b   : > { %s6406_s10 = scalar_lea.vmem %s905_s1, 16  ;;  %s6413_s15 = scalar_lea.vmem %s905_s1, 32 }
  0x5c   : > { %p7111_p6 = pnand %p6116_p5, %p9016_p1  ;;  %p6407_p8 = scmp.ne.s32.totalorder %s905_s1, %s6406_s10 }
  0x5d   : > { %p6414_p11 = scmp.lt.s32.totalorder %s905_s1, %s905_s1  ;;  %p6415_p12 = scmp.lt.s32.totalorder %s6413_s15, %s6406_s10 }
  0x5e   : > { %p7121_p7 = pneg %p7111_p6 }
  0x5f   : > { %p6416_p13 = por %p6415_p12, %p6414_p11 }
  0x60   : > { %p6409_p9 = pnand %p6407_p8, %p7121_p7 }
  0x62   : > { %p6410_p10 = pneg %p6409_p9 }
  0x64   : > { %p6417_p0 = pnand %p6416_p13, %p6410_p10 }
  0x66   : > { %6420 = shalt.err (!%p6417_p0)
}
  0x67   : > { %6119 = dma.hbm_to_vmem [thread:$0]  (!%p7111_p6), %s6917_s21, 16, %s905_s1, [#allocation6]  }
  0x68   : > { %s6432_s28 = scalar_lea.vmem %s7107_s11, 16  ;;  %s6439_s25 = scalar_lea.vmem %s7107_s11, 32 }
  0x69   : > { %p6433_p2 = scmp.ne.s32.totalorder %s7107_s11, %s6432_s28  ;;  %p6440_p9 = scmp.lt.s32.totalorder %s7107_s11, %s7107_s11 }
  0x6a   : > { %p6441_p11 = scmp.lt.s32.totalorder %s6439_s25, %s6432_s28 }
  0x6b   : > { %p6435_p5 = pnand %p6433_p2, %p7121_p7 }
  0x6c   : > { %p6442_p10 = por %p6441_p11, %p6440_p9 }
  0x6d   : > { %p6436_p8 = pneg %p6435_p5 }
  0x6f   : > { %p6443_p12 = pnand %p6442_p10, %p6436_p8 }
  0x71   : > { %6446 = shalt.err (!%p6443_p12)
}
  0x72   : > { %s9131_s19 = sld [smem:[#allocation41_spill]]  ;;  %s6458_s1 = scalar_lea.vmem %s7115_s16, 16 }
  0x73   : > { %p6459_p13 = scmp.ne.s32.totalorder %s7115_s16, %s6458_s1  ;;  %s6465_s10 = scalar_lea.vmem %s7115_s16, 32 }
  0x74   : > { %p6466_p5 = scmp.lt.s32.totalorder %s7115_s16, %s7115_s16  ;;  %p6467_p8 = scmp.lt.s32.totalorder %s6465_s10, %s6458_s1 }
  0x75   : > { %p6461_p0 = pnand %p6459_p13, %p7121_p7 }
  0x76   : > { %p6468_p9 = por %p6467_p8, %p6466_p5 }
  0x77   : > { %p6462_p2 = pneg %p6461_p0 }
  0x78   : > { %6125 = dma.hbm_to_vmem [thread:$0]  (!%p7111_p6), %s9131_s19, 16, %s7107_s11, [#allocation9]  }
  0x79   : > { %p6469_p11 = pnand %p6468_p9, %p6462_p2 }
  0x7b   : > { %6472 = shalt.err (!%p6469_p11)
}
  0x7c   : > { %6131 = dma.hbm_to_vmem [thread:$0]  (!%p7111_p6), %s6972_s20, 16, %s7115_s16, [#allocation12]  }
  0x7d   : > { %s6868_s25 = smov [#allocation17]   ;;  %s6484_s15 = scalar_lea.vmem %s998_s8, 16 }
  0x7e   : > { %s1028_s11 = sshll.u32 %s6868_s25, 4  ;;  %p6485_p10 = scmp.ne.s32.totalorder %s998_s8, %s6484_s15  ;;  %s1029_s11 = int_to_ptr.vmem [resolvable:$true] %s1028_s11 }
  0x7f   : > { %s6491_s28 = scalar_lea.vmem %s998_s8, 32  ;;  %p6492_p0 = scmp.lt.s32.totalorder %s998_s8, %s998_s8 }
  0x80   : > { %p6487_p12 = pnand %p6485_p10, %p7121_p7  ;;  %p6493_p5 = scmp.lt.s32.totalorder %s6491_s28, %s6484_s15 }
  0x82   : > { %p6488_p13 = pneg %p6487_p12  ;;  %p6494_p2 = por %p6493_p5, %p6492_p0 }
  0x84   : > { %p6495_p8 = pnand %p6494_p2, %p6488_p13 }
  0x86   : > { %6498 = shalt.err (!%p6495_p8)
}
  0x87   : > { %s9132_s12 = sld [smem:[#allocation49_spill]]  ;;  %s6510_s16 = scalar_lea.vmem %s1029_s11, 16 }
  0x88   : > { %p6511_p9 = scmp.ne.s32.totalorder %s1029_s11, %s6510_s16  ;;  %s6517_s1 = scalar_lea.vmem %s1029_s11, 32 }
  0x89   : > { %p6518_p10 = scmp.lt.s32.totalorder %s1029_s11, %s1029_s11  ;;  %p6519_p12 = scmp.lt.s32.totalorder %s6517_s1, %s6510_s16 }
  0x8a   : > { %p6513_p11 = pnand %p6511_p9, %p7121_p7 }
  0x8b   : > { %p6520_p1 = por %p6519_p12, %p6518_p10 }
  0x8c   : > { %p6514_p4 = pneg %p6513_p11 }
  0x8d   : > { %6137 = dma.hbm_to_vmem [thread:$0]  (!%p7111_p6), %s9132_s12, 16, %s998_s8, [#allocation15]  }
  0x8e   : > { %p6521_p3 = pnand %p6520_p1, %p6514_p4 }
  0x90   : > { %6524 = shalt.err (!%p6521_p3)
}
  0x91   : > { %6143 = dma.hbm_to_vmem [thread:$0]  (!%p7111_p6), %s7017_s27, 16, %s1029_s11, [#allocation18]  }
  0x92   : > { %s6869_s10 = smov [#allocation7]   ;;  %s6870_s8 = smov [#allocation10]  }
  0x93   : > { %s918_s25 = sshll.u32 %s6869_s10, 4  ;;  %s955_s15 = sshll.u32 %s6870_s8, 4  ;;  %s919_s25 = int_to_ptr.vmem [resolvable:$true] %s918_s25  ;;  %s956_s15 = int_to_ptr.vmem [resolvable:$true] %s955_s15 }
  0x94   : > { %s6536_s28 = scalar_lea.vmem %s919_s25, 16  ;;  %s6543_s12 = scalar_lea.vmem %s919_s25, 32 }
  0x95   : > { %p6537_p13 = scmp.ne.s32.totalorder %s919_s25, %s6536_s28  ;;  %p6544_p2 = scmp.lt.s32.totalorder %s919_s25, %s919_s25 }
  0x96   : > { %p6545_p8 = scmp.lt.s32.totalorder %s6543_s12, %s6536_s28 }
  0x97   : > { %p6539_p0 = pnand %p6537_p13, %p7121_p7 }
  0x98   : > { %p6546_p1 = por %p6545_p8, %p6544_p2 }
  0x99   : > { %p6540_p5 = pneg %p6539_p0 }
  0x9b   : > { %p6547_p3 = pnand %p6546_p1, %p6540_p5 }
  0x9d   : > { %6550 = shalt.err (!%p6547_p3)
}
  0x9e   : > { %6122 = dma.hbm_to_vmem [thread:$0]  (!%p7111_p6), %s6927_s29, 16, %s919_s25, [#allocation6]  }
  0x9f   : > { %s6562_s11 = scalar_lea.vmem %s956_s15, 16  ;;  %s6569_s16 = scalar_lea.vmem %s956_s15, 32 }
  0xa0   : > { %p6563_p4 = scmp.ne.s32.totalorder %s956_s15, %s6562_s11  ;;  %p6570_p10 = scmp.lt.s32.totalorder %s956_s15, %s956_s15 }
  0xa1   : > { %p6571_p12 = scmp.lt.s32.totalorder %s6569_s16, %s6562_s11 }
  0xa2   : > { %p6565_p9 = pnand %p6563_p4, %p7121_p7 }
  0xa3   : > { %p6572_p13 = por %p6571_p12, %p6570_p10 }
  0xa4   : > { %p6566_p11 = pneg %p6565_p9 }
  0xa6   : > { %p6573_p0 = pnand %p6572_p13, %p6566_p11 }
  0xa8   : > { %6576 = shalt.err (!%p6573_p0)
}
  0xa9   : > { %s9133_s6 = sld [smem:[#allocation44_spill]]  ;;  %s6871_s12 = smov [#allocation13]  }
  0xaa   : > { %s983_s1 = sshll.u32 %s6871_s12, 4  ;;  %s6872_s10 = smov [#allocation16]   ;;  %s984_s1 = int_to_ptr.vmem [resolvable:$true] %s983_s1 }
  0xab   : > { %s1011_s25 = sshll.u32 %s6872_s10, 4  ;;  %s6588_s8 = scalar_lea.vmem %s984_s1, 16  ;;  %s1012_s25 = int_to_ptr.vmem [resolvable:$true] %s1011_s25 }
  0xac   : > { %p6589_p5 = scmp.ne.s32.totalorder %s984_s1, %s6588_s8  ;;  %s6595_s28 = scalar_lea.vmem %s984_s1, 32 }
  0xad   : > { %p6596_p1 = scmp.lt.s32.totalorder %s984_s1, %s984_s1  ;;  %p6597_p3 = scmp.lt.s32.totalorder %s6595_s28, %s6588_s8 }
  0xae   : > { %p6591_p2 = pnand %p6589_p5, %p7121_p7 }
  0xaf   : > { %6128 = dma.hbm_to_vmem [thread:$0]  (!%p7111_p6), %s9133_s6, 16, %s956_s15, [#allocation9]  }
  0xb0   : > { %p6592_p8 = pneg %p6591_p2  ;;  %p6598_p4 = por %p6597_p3, %p6596_p1 }
  0xb2   : > { %p6599_p9 = pnand %p6598_p4, %p6592_p8 }
  0xb4   : > { %6602 = shalt.err (!%p6599_p9)
}
  0xb5   : > { %s9134_s4 = sld [smem:[#allocation47_spill]]  ;;  %s6614_s15 = scalar_lea.vmem %s1012_s25, 16 }
  0xb6   : > { %p6615_p11 = scmp.ne.s32.totalorder %s1012_s25, %s6614_s15  ;;  %s6621_s11 = scalar_lea.vmem %s1012_s25, 32 }
  0xb7   : > { %p6622_p13 = scmp.lt.s32.totalorder %s1012_s25, %s1012_s25  ;;  %p6623_p0 = scmp.lt.s32.totalorder %s6621_s11, %s6614_s15 }
  0xb8   : > { %p6617_p10 = pnand %p6615_p11, %p7121_p7 }
  0xb9   : > { %p6624_p5 = por %p6623_p0, %p6622_p13 }
  0xba   : > { %p6618_p12 = pneg %p6617_p10 }
  0xbb   : > { %6134 = dma.hbm_to_vmem [thread:$0]  (!%p7111_p6), %s9134_s4, 16, %s984_s1, [#allocation12]  }
  0xbc   : > { %p6625_p2 = pnand %p6624_p5, %p6618_p12 }
  0xbe   : > { %6628 = shalt.err (!%p6625_p2)
}
  0xbf   : > { %6140 = dma.hbm_to_vmem [thread:$0]  (!%p7111_p6), %s7002_s24, 16, %s1012_s25, [#allocation15]  }
  0xc0   : > { %s6873_s16 = smov [#allocation19]  }
  0xc1   : > { %s1050_s12 = sshll.u32 %s6873_s16, 4  ;;  %s1051_s12 = int_to_ptr.vmem [resolvable:$true] %s1050_s12 }
  0xc2   : > { %s6640_s1 = scalar_lea.vmem %s1051_s12, 256  ;;  %p6648_p4 = scmp.lt.s32.totalorder %s1051_s12, %s1051_s12 }
  0xc3   : > { %p6641_p8 = scmp.ne.s32.totalorder %s1051_s12, %s6640_s1  ;;  %p6649_p9 = scmp.lt.s32.totalorder %s6640_s1, %s6640_s1 }
  0xc5   : > { %p6643_p1 = pnand %p6641_p8, %p7121_p7  ;;  %p6650_p11 = por %p6649_p9, %p6648_p4 }
  0xc7   : > { %p6644_p3 = pneg %p6643_p1 }
  0xc9   : > { %p6651_p10 = pnand %p6650_p11, %p6644_p3 }
  0xcb   : > { %6654 = shalt.err (!%p6651_p10)
}
  0xcc   : > { %s9018_s10 = smov 64   ;;  %s9135_s14 = sld [smem:[#allocation57_spill]] }
  0xcd   : > { %s9019_s8 = smov 4   ;;  %s6876_s25 = smov [#allocation20]  }
  0xce   : > { %s1066_s28 = sshll.u32 %s6876_s25, 4  ;;  %s1067_s28 = int_to_ptr.vmem [resolvable:$true] %s1066_s28 }
  0xcf   : > { %s6666_s15 = scalar_lea.vmem %s1067_s28, 256  ;;  %p6674_p5 = scmp.lt.s32.totalorder %s1067_s28, %s1067_s28 }
  0xd0   : > { %p6667_p12 = scmp.ne.s32.totalorder %s1067_s28, %s6666_s15  ;;  %p6675_p2 = scmp.lt.s32.totalorder %s6666_s15, %s6666_s15 }
  0xd2   : > { %6146 = dma.hbm_to_vmem [thread:$0]  (!%p7111_p6), %s9135_s14, 256, %s1051_s12, [#allocation18], %s9018_s10, %s9018_s10, %s9019_s8  }
  0xd3   : > { %p6669_p13 = pnand %p6667_p12, %p7121_p7  ;;  %p6676_p8 = por %p6675_p2, %p6674_p5 }
  0xd5   : > { %p6670_p0 = pneg %p6669_p13 }
  0xd7   : > { %p6677_p1 = pnand %p6676_p8, %p6670_p0 }
  0xd9   : > { %6680 = shalt.err (!%p6677_p1)
}
  0xda   : > { %6149 = dma.hbm_to_vmem [thread:$0]  (!%p7111_p6), %s7052_s30, 256, %s1067_s28, [#allocation21], %s9018_s10, %s9018_s10, %s9019_s8  }
  0xdb   : > { %s5563_s13 = sadd.s32 4294967294, %s6827_s0   ;;  %s7201_s18 = sadd.s32 1, %s6827_s0  }
  0xdc   : > { %s104_s11 = sadd.s32 1, %s6823_s26  ;;  %s101_s16 = ssub.s32 %s6827_s0, %s7201_s18 }
  0xdd   : > { %p111_p7 = scmp.ne.s32.totalorder %s6823_s26, %s6819_s23  ;;  %p102_p3 = scmp.eq.s32.totalorder %s101_s16, 0 }
  0xde   : > { %p112_p4 = scmp.eq.s32.totalorder %s6827_s0, 0  ;;  %p117_p9 = scmp.ne.s32.totalorder %s6819_s23, %s6815_s22 }
  0xdf   : > { %p823_p11 = scmp.eq.s32.totalorder %s7095_s2, 1  ;;  %p9136_p12 = scmp.eq.s32.totalorder %s7095_s2, 0 }
  0xe0   : > { %s7213_s12 = scalar_select %p102_p3, %s6823_s26, %s104_s11  }
  0xe1   : > { %p113_p10 = por %p112_p4, %p111_p7  ;;  %p7217_p13 = por %p9136_p12, %p117_p9 }
  0xe2   : > { %p7221_p6 = por %p823_p11, %p111_p7  ;;  %p829_p0 = scmp.eq.s32.totalorder %s5563_s13, 1 }
  0xe3   : > { %s9137_s1 = scalar_select %p7217_p13, 1, 0 }
  0xe4   : > { %s9138_s25 = scalar_select %p7221_p6, 1, 0 }
  0xe5   : > { %p6172_p5 = scmp.lt.s32.totalorder %s6827_s0, 2  ;;  %s1083_s28 = sand.u32 1, %s6823_s26  }
  0xe6   : > { %p7227_p2 = por %p829_p0, %p117_p9  ;;  %s5577_s11 = sshll.u32 %s1083_s28, 6 }
  0xe7   : > { %s5767_s16 = sshll.u32 %s6827_s0, 10  ;;  %s1087_s8 = scalar_lea.vmem [#allocation2], %s5577_s11 }
  0xe8   : > { %s9139_s15 = scalar_select %p7227_p2, 1, 0 }
  0xe9   : > { %s7233_s10 = scalar_lea.hbm %s9127_s5, %s5767_s16  ;;  %s1094_s4 = sshll.u32 %s1087_s8, 4  ;;  %s7239_s4 = int_to_ptr.vmem [resolvable:$true] %s1094_s4 }
  0xea   : > { %p7235_p8 = pnand %p6172_p5, %p113_p10  ;;  %s7241_s13 = scalar_lea.sflag [#allocation3], %s1083_s28 }
  0xeb   : > { %s6681_s14 = scalar_lea.hbm %s7233_s10, 1024  ;;  %s6686_s16 = scalar_lea.hbm %s9127_s5, 2048 }
  0xec   : > { %p6682_p1 = scmp.ne.s32.totalorder %s7233_s10, %s6681_s14  ;;  %p6683_p7 = pneg %p7235_p8 }
  0xed   : > { %p6687_p9 = scmp.lt.s32.totalorder %s7233_s10, %s9127_s5  ;;  %p6688_p11 = scmp.lt.s32.totalorder %s6686_s16, %s6681_s14 }
  0xee   : > { %p6684_p3 = pnand %p6683_p7, %p6682_p1 }
  0xef   : > { %p6689_p12 = por %p6688_p11, %p6687_p9 }
  0xf0   : > { %p6685_p4 = pneg %p6684_p3 }
  0xf2   : > { %p6690_p0 = pnand %p6689_p12, %p6685_p4 }
  0xf4   : > { %6693 = shalt.err (!%p6690_p0)
}
  0xf5   : > { %s6694_s8 = scalar_lea.vmem %s7239_s4, 1024  ;;  %s6877_s28 = smov [#allocation2]  }
  0xf6   : > { %p6695_p10 = scmp.ne.s32.totalorder %s7239_s4, %s6694_s8  ;;  %s6699_s11 = sshll.u32 %s6877_s28, 4  ;;  %s6700_s11 = int_to_ptr.vmem [resolvable:$false] %s6699_s11 }
  0xf7   : > { %s6701_s19 = scalar_lea.vmem %s6700_s11, 2048  ;;  %p6702_p6 = scmp.lt.s32.totalorder %s7239_s4, %s6700_s11 }
  0xf8   : > { %p6697_p5 = pnand %p6695_p10, %p6683_p7  ;;  %p6703_p1 = scmp.lt.s32.totalorder %s6701_s19, %s6694_s8 }
  0xfa   : > { %p6698_p2 = pneg %p6697_p5  ;;  %p6704_p3 = por %p6703_p1, %p6702_p6 }
  0xfc   : > { %p6705_p13 = pnand %p6704_p3, %p6698_p2 }
  0xfe   : > { %6708 = shalt.err (!%p6705_p13)
}
  0xff   : > { %s9141_s14 = smov 4   ;;  %s9142_s16 = smov 64  }
 0x100   : > { %6153 = dma.hbm_to_vmem [thread:$0]  (!%p7235_p8), %s7233_s10, 1024, %s7239_s4, %s7241_s13, %s9142_s16, %s9142_s16, %s9141_s14  }
 0x101   : > { %p9143_p7 = scmp.ne.s32.totalorder %s9128_s7, 0 }
 0x103   : > { %1124 = sbr.rel (%p9143_p7) target bundleno = 2289 (0x8f1), region = 152 }
 0x108   : > { %s7264_s28 = sand.u32 1, %s6819_s23   ;;  %p9144_p13 = scmp.ne.s32.totalorder %s9137_s1, 0 }
 0x109   : > { %s7267_s19 = sshll.u32 %s7264_s28, 6  ;;  %s1127_s6 = scalar_lea.sflag [#allocation3], %s7264_s28 }
 0x10a   : > { %s7271_s8 = scalar_lea.vmem [#allocation2], %s7267_s19 }
 0x10b   : > { %6778 = dma.done.wait (%p9144_p13), %s1127_s6, 1024  }
 0x10c   : > { %6780 = vsyncadd (%p9144_p13), %s1127_s6, 4294966272  ;;  %p9145_p6 = scmp.eq.s32.totalorder %s7095_s2, 0 }
 0x10e   : > { %6782 = dma.done.wait (%p9145_p6), [#allocation6], 32   ;;  %p9146_p2 = pmov %p9145_p6 }
 0x110   : > { %6784 = vsyncadd (%p9146_p2), [#allocation6], 4294967264  ;;  %p9147_p8 = pmov %p9146_p2 }
 0x111   : > { %p9148_p4 = pmov %p9146_p2 }
 0x112   : > { %6786 = dma.done.wait (%p9147_p8), [#allocation9], 32  }
 0x113   : > { %6788 = vsyncadd (%p9148_p4), [#allocation9], 4294967264  ;;  %p9149_p9 = pmov %p9146_p2 }
 0x114   : > { %p9150_p11 = pmov %p9146_p2 }
 0x115   : > { %6790 = dma.done.wait (%p9149_p9), [#allocation12], 32  }
 0x116   : > { %6792 = vsyncadd (%p9150_p11), [#allocation12], 4294967264  ;;  %p9151_p12 = pmov %p9146_p2 }
 0x117   : > { %p9152_p0 = pmov %p9146_p2 }
 0x118   : > { %6794 = dma.done.wait (%p9151_p12), [#allocation15], 32  }
 0x119   : > { %6796 = vsyncadd (%p9152_p0), [#allocation15], 4294967264  ;;  %p9153_p10 = pmov %p9152_p0 }
 0x11a   : > { %p9154_p5 = pmov %p9152_p0 }
 0x11b   : > { %6798 = dma.done.wait (%p9153_p10), [#allocation18], 272  }
 0x11c   : > { %6800 = vsyncadd (%p9154_p5), [#allocation18], 4294967024  ;;  %p9155_p1 = pmov %p9152_p0 }
 0x11d   : > { %p9156_p3 = pmov %p9152_p0 }
 0x11e   : > { %6802 = dma.done.wait (%p9155_p1), [#allocation21], 256  }
 0x11f   : > { %6804 = vsyncadd (%p9156_p3), [#allocation21], 4294967040  ;;  %s9157_s4 = sld [smem:[#allocation36_spill]]  ;;  %s5595_s7 = sshll.u32 %s7095_s2, 1  ;;  %v9039_v0 = vmov 0.0   ;;  %vm6879_vm0 = vmmov 0  }
 0x120   : > { %5866 = vmatprep.subr.bf16.mxu0 %v9039_v0  ;;  %s9158_s10 = sld [smem:[#allocation35_spill]]  ;;  %5874 = vmatprep.subr.bf16.mxu1 %v9039_v0  ;;  %p1283_p7 = scmp.lt.s32.totalorder %s5595_s7, 3  ;;  %v6314_v1 = vld [vmem:[%s6912_s17 + $0x8] sm:$0xff]   ;;  %v6316_v3 = vld [vmem:[%s6912_s17] sm:$0xff]   ;;  %vm1420_vm1 = vcmask 261120   ;;  %vm1923_vm2 = vcmask 1041409  }
 0x121   : > { %5870 = vmatprep.mubr.msk.bf16.mxu0 %vm6879_vm0, %v9039_v0  ;;  %s9159_s1 = sld [smem:[#allocation37_spill]]  ;;  %5878 = vmatprep.mubr.msk.bf16.mxu1 %vm6879_vm0, %v9039_v0  ;;  %v6315_v2 = vld [vmem:[%s9126_s3 + $0x8] sm:$0xff]   ;;  %v6317_v4 = vld [vmem:[%s9126_s3] sm:$0xff]   ;;  %v7356_v17 = vld [vmem:[%s7271_s8 + $0x10] sm:$0xf]  ;;  %vm1925_vm3 = vcmask 1042434  }
 0x122   : > { %s9321_s7 = smov (!%p1283_p7, %s5595_s7), 3  ;;  %s9160_s11 = sld [smem:[#allocation40_spill]]  ;;  %5867 = vmatpush3.bf16.msra.mxu0 %v6314_v1  ;;  %5875 = vmatpush3.bf16.msra.mxu1 %v6315_v2  ;;  %v7343_v13 = vld [vmem:[%s7271_s8] sm:$0xf]  ;;  %v7346_v14 = vld [vmem:[%s7271_s8 + $0x4] sm:$0xf]  ;;  %v9034_v29 = vunpack.c.l.bf16 %v7356_v17 }
 0x123   : > { %s5596_s13 = sshll.u32 %s9321_s7, 2  ;;  %5868 = vmatprep.subr.bf16.mxu0 %v9039_v0  ;;  %5876 = vmatprep.subr.bf16.mxu1 %v9039_v0  ;;  %s9161_s6 = sld [smem:[#allocation43_spill]]  ;;  %v7349_v15 = vld [vmem:[%s7271_s8 + $0x8] sm:$0xf]  ;;  %v7353_v16 = vld [vmem:[%s7271_s8 + $0xc] sm:$0xf]  ;;  %v9038_v19 = vunpack.c.l.bf16 %v7343_v13  ;;  %v9037_v23 = vunpack.c.l.bf16 %v7346_v14 }
 0x124   : > { %s9162_s5 = sld [smem:[#allocation42_spill]]  ;;  %v7359_v18 = vld [vmem:[%s7271_s8 + $0x14] sm:$0xf]  ;;  %v7364_v20 = vld [vmem:[%s7271_s8 + $0x18] sm:$0xf]  ;;  %v9036_v24 = vunpack.c.l.bf16 %v7349_v15  ;;  %v9032_v28 = vunpack.c.l.bf16 %v7353_v16  ;;  %v1722_v46 = vsel %vm1420_vm1, %v9034_v29, 0.0 }
 0x125   : > { %s7315_s14 = scalar_lea.vmem %s9157_s4, %s5596_s13  ;;  %v7367_v21 = vld [vmem:[%s7271_s8 + $0x1c] sm:$0xf]  ;;  %v7370_v22 = vld [vmem:[%s7271_s8 + $0x20] sm:$0xf]  ;;  %v7376_v25 = vld [vmem:[%s7271_s8 + $0x24] sm:$0xf]  ;;  %v9031_v31 = vunpack.c.l.bf16 %v7359_v18  ;;  %v9030_v32 = vunpack.c.l.bf16 %v7364_v20 }
 0x126   : > { %s1286_s16 = scalar_lea.vmem %s9158_s10, %s5596_s13  ;;  %v7322_v5 = vld [vmem:[%s7315_s14] sm:$0xff]   ;;  %5869 = vmatpush3.bf16.msra.mxu0 %v6316_v3  ;;  %5877 = vmatpush3.bf16.msra.mxu1 %v6317_v4  ;;  %9163 = vst [vmem:[#allocation62_spill] sm:$0xff] %v7367_v21  ;;  %9164 = vst [vmem:[#allocation63_spill] sm:$0xff] %v7376_v25  ;;  %v7379_v26 = vld [vmem:[%s7271_s8 + $0x28] sm:$0xf]  ;;  %v9025_v33 = vunpack.c.l.bf16 %v7367_v21  ;;  %v9033_v35 = vunpack.c.l.bf16 %v7370_v22  ;;  %v9029_v36 = vunpack.c.l.bf16 %v7376_v25  ;;  %v1694_v38 = vsel %vm1420_vm1, %v9038_v19, 0.0 }
 0x127   : > { %v6319_v6 = vld [vmem:[%s9159_s1 + $0x8] sm:$0xff]   ;;  %5882 = vmatprep.subr.bf16.mxu0 %v9039_v0  ;;  %5890 = vmatprep.subr.bf16.mxu1 %v9039_v0  ;;  %v6321_v8 = vld [vmem:[%s9159_s1] sm:$0xff]   ;;  %9165 = vst [vmem:[#allocation64_spill] sm:$0xff] %v7379_v26  ;;  %v9027_v37 = vunpack.c.l.bf16 %v7379_v26  ;;  %v1695_v40 = vrot.slane %v1694_v38, 4  ;;  %v1701_v41 = vsel %vm1420_vm1, %v9037_v23, 0.0  ;;  %v1708_v42 = vsel %vm1420_vm1, %v9036_v24, 0.0 }
 0x128   : > { %v6320_v7 = vld [vmem:[%s9160_s11 + $0x8] sm:$0xff]   ;;  %v6322_v9 = vld [vmem:[%s9160_s11] sm:$0xff]   ;;  %v1702_v43 = vrot.slane %v1701_v41, 4  ;;  %v1709_v44 = vrot.slane %v1708_v42, 4  ;;  %v1715_v45 = vsel %vm1420_vm1, %v9032_v28, 0.0  ;;  %v1723_v49 = vrot.slane %v1722_v46, 4 }
 0x129   : > { %5871 = vmatmul.mubr.msk.bf16.vlgmr.msra.gmra.mxu0 %vm1420_vm1, %v7322_v5  ;;  %5879 = vmatmul.mubr.msk.bf16.vlgmr.msra.gmra.mxu1 %vm1420_vm1, %v7322_v5  ;;  %v6323_v10 = vld [vmem:[%s1286_s16] sm:$0xff]   ;;  %v6324_v11 = vld [vmem:[%s9161_s6 + $0x8] sm:$0xff]   ;;  %v1696_v47 = vadd.f32 %v1695_v40, %v1694_v38  ;;  %v1716_v48 = vrot.slane %v1715_v45, 4  ;;  %v1729_v50 = vsel %vm1420_vm1, %v9031_v31, 0.0  ;;  %v1736_v54 = vsel %vm1420_vm1, %v9030_v32, 0.0  ;;  %s9172_s4 = sld [smem:[#allocation45_spill]] }
 0x12a   : > { %5883 = vmatpush3.bf16.msra.mxu0 %v6319_v6  ;;  %5891 = vmatpush3.bf16.msra.mxu1 %v6320_v7  ;;  %v6326_v12 = vld [vmem:[%s9162_s5 + $0x8] sm:$0xff]   ;;  %v6325_v30 = vld [vmem:[%s9161_s6] sm:$0xff]   ;;  %v1703_v51 = vadd.f32 %v1702_v43, %v1701_v41  ;;  %v1710_v52 = vadd.f32 %v1709_v44, %v1708_v42  ;;  %v1730_v53 = vrot.slane %v1729_v50, 4  ;;  %v1724_v57 = vadd.f32 %v1723_v49, %v1722_v46  ;;  %v7427_v59 = vld [vmem:[%s7271_s8 + $0x30] sm:$0xf]  ;;  %s9173_s10 = sld [smem:[#allocation48_spill]] }
 0x12b   : > { %5884 = vmatprep.subr.bf16.mxu0 %v9039_v0  ;;  %5892 = vmatprep.subr.bf16.mxu1 %v9039_v0  ;;  %v7382_v27 = vld [vmem:[%s7271_s8 + $0x2c] sm:$0xf]  ;;  %v6327_v34 = vld [vmem:[%s9162_s5] sm:$0xff]   ;;  %v1697_v55 = vrot.slane %v1696_v47, 2  ;;  %v1717_v56 = vadd.f32 %v1716_v48, %v1715_v45  ;;  %v1737_v58 = vrot.slane %v1736_v54, 4  ;;  %9167 = vst [vmem:[#allocation66_spill] sm:$0xff] %v7427_v59  ;;  %v9026_v44 = vunpack.c.l.bf16 %v7427_v59 }
 0x12c   : > { %5886 = vmatprep.mubr.msk.bf16.mxu0 %vm6879_vm0, %v9039_v0  ;;  %5894 = vmatprep.mubr.msk.bf16.mxu1 %vm6879_vm0, %v9039_v0  ;;  %9166 = vst [vmem:[#allocation65_spill] sm:$0xff] %v7382_v27  ;;  %v9023_v39 = vunpack.c.l.bf16 %v7382_v27  ;;  %v7430_v60 = vld [vmem:[%s7271_s8 + $0x34] sm:$0xf]  ;;  %v1704_v61 = vrot.slane %v1703_v51, 2  ;;  %v1711_v62 = vrot.slane %v1710_v52, 2  ;;  %v1731_v63 = vadd.f32 %v1730_v53, %v1729_v50  ;;  %s9174_s13 = sld [smem:[#allocation50_spill]] }
 0x12d   : > { %9168 = vst [vmem:[#allocation67_spill] sm:$0xff] %v7430_v60  ;;  %v1743_v1 = vsel %vm1420_vm1, %v9025_v33, 0.0  ;;  %v7436_v2 = vld [vmem:[%s7271_s8 + $0x38] sm:$0xf]  ;;  %v7439_v3 = vld [vmem:[%s7271_s8 + $0x3c] sm:$0xf]  ;;  %v1698_v4 = vadd.f32 %v1697_v55, %v1696_v47  ;;  %v9024_v45 = vunpack.c.l.bf16 %v7430_v60 }
 0x12e   : > { %5885 = vmatpush3.bf16.msra.mxu0 %v6321_v8  ;;  %5893 = vmatpush3.bf16.msra.mxu1 %v6322_v9  ;;  %9169 = vst [vmem:[#allocation68_spill] sm:$0xff] %v7436_v2  ;;  %9170 = vst [vmem:[#allocation69_spill] sm:$0xff] %v7439_v3  ;;  %v1718_v6 = vrot.slane %v1717_v56, 2  ;;  %v1725_v7 = vrot.slane %v1724_v57, 2  ;;  %v1738_v8 = vadd.f32 %v1737_v58, %v1736_v54  ;;  %v9028_v48 = vunpack.c.l.bf16 %v7436_v2  ;;  %s9171_s8 = sld [smem:[#allocation46_spill]]  ;;  %s5226_s6 = scalar_lea.sflag [#allocation4], %s7264_s28 }
 0x12f   : > { %5898 = vmatprep.subr.bf16.mxu0 %v9039_v0  ;;  %5906 = vmatprep.subr.bf16.mxu1 %v9039_v0  ;;  %v1712_v9 = vadd.f32 %v1711_v62, %v1710_v52  ;;  %v9035_v49 = vunpack.c.l.bf16 %v7439_v3  ;;  %v1750_v55 = vsel %vm1420_vm1, %v9033_v35, 0.0  ;;  %vm1927_vm4 = vcmask 1043459   ;;  %s9175_s16 = sld [smem:[#allocation39_spill]]  ;;  %p9266_p6 = scmp.ne.s32.totalorder %s9138_s25, 0 }
 0x130   : > { %v1739_v38 = vrot.slane %v1738_v8, 2  ;;  %v1751_v58 = vrot.slane %v1750_v55, 4  ;;  %vm1929_vm5 = vcmask 1044484   ;;  %vm1931_vm6 = vcmask 1045509   ;;  %s9250_s1 = sld [smem:[#allocation53_spill]] }
 0x131   : > { %5887 = vmatmul.mubr.msk.bf16.vlgmr.msra.gmra.mxu0 %vm1420_vm1, %v6323_v10  ;;  %5895 = vmatmul.mubr.msk.bf16.vlgmr.msra.gmra.mxu1 %vm1420_vm1, %v6323_v10  ;;  %v1732_v10 = vrot.slane %v1731_v63, 2  ;;  %v1713_v41 = vrot.slane %v1712_v9, 1  ;;  %vm1933_vm7 = vcmask 1046534   ;;  %vm1935_vm8 = vcmask 1047559   ;;  %s9251_s3 = sld [smem:[#allocation55_spill]] }
 0x132   : > { %5899 = vmatpush3.bf16.msra.mxu0 %v6324_v11  ;;  %5907 = vmatpush3.bf16.msra.mxu1 %v6326_v12  ;;  %v1744_v11 = vrot.slane %v1743_v1, 4  ;;  %v1699_v12 = vrot.slane %v1698_v4, 1  ;;  %vm2024_vm9 = vcmask 130048   ;;  %vm2069_vm10 = vcmask 23552  }
 0x133   : > { %5900 = vmatprep.subr.bf16.mxu0 %v9039_v0  ;;  %5902 = vmatprep.mubr.msk.bf16.mxu0 %vm6879_vm0, %v9039_v0  ;;  %v1733_v42 = vadd.f32 %v1732_v10, %v1731_v63  ;;  %v1778_v10 = vsel %vm1420_vm1, %v9026_v44, 0.0  ;;  %vm3434_vm11 = vcmask 257024  }
 0x134   : > { %5908 = vmatprep.subr.bf16.mxu1 %v9039_v0  ;;  %5910 = vmatprep.mubr.msk.bf16.mxu1 %vm6879_vm0, %v9039_v0  ;;  %v1745_v43 = vadd.f32 %v1744_v11, %v1743_v1  ;;  %v7447_v52 = vadd.f32 %v1699_v12, %v1698_v4  ;;  %v1764_v1 = vsel %vm1420_vm1, %v9027_v37, 0.0  ;;  %v1771_v4 = vsel %vm1420_vm1, %v9023_v39, 0.0 }
 0x135   : > { %v1734_v50 = vrot.slane %v1733_v42, 1  ;;  %v1785_v11 = vsel %vm1420_vm1, %v9024_v45, 0.0  ;;  %v1792_v12 = vsel %vm1420_vm1, %v9028_v48, 0.0  ;;  %v1799_v39 = vsel %vm1420_vm1, %v9035_v49, 0.0 }
 0x136   : > { %5901 = vmatpush3.bf16.msra.mxu0 %v6325_v30  ;;  %5909 = vmatpush3.bf16.msra.mxu1 %v6327_v34  ;;  %v1719_v30 = vadd.f32 %v1718_v6, %v1717_v56  ;;  %v1726_v34 = vadd.f32 %v1725_v7, %v1724_v57  ;;  %v1746_v54 = vrot.slane %v1745_v43, 2  ;;  %v1714_v56 = vadd.f32 %v1713_v41, %v1712_v9 }
 0x137   : > { %5914 = vmatprep.subr.bf16.mxu0 %v9039_v0  ;;  %v1752_v7 = vadd.f32 %v1751_v58, %v1750_v55  ;;  %v1793_v55 = vrot.slane %v1792_v12, 4  ;;  %v1735_v28 = vadd.f32 %v1734_v50, %v1733_v42 }
 0x138   : > { %v1720_v46 = vrot.slane %v1719_v30, 1  ;;  %v1727_v47 = vrot.slane %v1726_v34, 1 }
 0x139   : > { %5903 = vmatmul.mubr.msk.bf16.vlgmr.msra.gmra.mxu0 %vm1420_vm1, %v7322_v5  ;;  %v1705_v5 = vadd.f32 %v1704_v61, %v1703_v51  ;;  %v1740_v51 = vadd.f32 %v1739_v38, %v1738_v8  ;;  %v1757_v61 = vsel %vm1420_vm1, %v9029_v36, 0.0  ;;  %v1765_v8 = vrot.slane %v1764_v1, 4 }
 0x13a   : > { %5916 = vmatprep.mubr.msk.bf16.mxu0 %vm6879_vm0, %v9039_v0  ;;  %v7454_v57 = vadd.f32 %v1720_v46, %v1719_v30  ;;  %v1728_v62 = vadd.f32 %v1727_v47, %v1726_v34  ;;  %v1758_v63 = vrot.slane %v1757_v61, 4  ;;  %v1747_v30 = vadd.f32 %v1746_v54, %v1745_v43 }
 0x13b   : > { %v1706_v40 = vrot.slane %v1705_v5, 1  ;;  %v1741_v6 = vrot.slane %v1740_v51, 1  ;;  %v1753_v34 = vrot.slane %v1752_v7, 2  ;;  %v1766_v38 = vadd.f32 %v1765_v8, %v1764_v1 }
 0x13c   : > { %v1759_v9 = vadd.f32 %v1758_v63, %v1757_v61  ;;  %v1779_v46 = vrot.slane %v1778_v10, 4  ;;  %v1786_v47 = vrot.slane %v1785_v11, 4  ;;  %v1794_v37 = vadd.f32 %v1793_v55, %v1792_v12 }
 0x13d   : > { %v7449_v53 = vadd.f32 %v1706_v40, %v1705_v5  ;;  %v1772_v5 = vrot.slane %v1771_v4, 4  ;;  %v1754_v58 = vadd.f32 %v1753_v34, %v1752_v7  ;;  %v1767_v61 = vrot.slane %v1766_v38, 2 }
 0x13e   : > { %v1760_v41 = vrot.slane %v1759_v9, 2  ;;  %v1780_v33 = vadd.f32 %v1779_v46, %v1778_v10  ;;  %v1787_v44 = vadd.f32 %v1786_v47, %v1785_v11  ;;  %v1800_v1 = vrot.slane %v1799_v39, 4 }
 0x13f   : > { %v1773_v40 = vadd.f32 %v1772_v5, %v1771_v4  ;;  %v1755_v48 = vrot.slane %v1754_v58, 1  ;;  %v1768_v43 = vadd.f32 %v1767_v61, %v1766_v38  ;;  %v1795_v36 = vrot.slane %v1794_v37, 2 }
 0x140   : > { %v1761_v45 = vadd.f32 %v1760_v41, %v1759_v9  ;;  %v1781_v8 = vrot.slane %v1780_v33, 2  ;;  %v1788_v5 = vrot.slane %v1787_v44, 2  ;;  %v1748_v32 = vrot.slane %v1747_v30, 1 }
 0x141   : > { %v1774_v63 = vrot.slane %v1773_v40, 2  ;;  %v1769_v7 = vrot.slane %v1768_v43, 1  ;;  %v1801_v31 = vadd.f32 %v1800_v1, %v1799_v39  ;;  %v1796_v49 = vadd.f32 %v1795_v36, %v1794_v37 }
 0x142   : > { %v1762_v4 = vrot.slane %v1761_v45, 1  ;;  %v1782_v35 = vadd.f32 %v1781_v8, %v1780_v33  ;;  %v1789_v29 = vadd.f32 %v1788_v5, %v1787_v44  ;;  %v1756_v9 = vadd.f32 %v1755_v48, %v1754_v58 }
 0x143   : > { %v1775_v54 = vadd.f32 %v1774_v63, %v1773_v40  ;;  %v1770_v11 = vadd.f32 %v1769_v7, %v1768_v43  ;;  %v1802_v12 = vrot.slane %v1801_v31, 2  ;;  %v1797_v46 = vrot.slane %v1796_v49, 1 }
 0x144   : > { %v1763_v10 = vadd.f32 %v1762_v4, %v1761_v45  ;;  %v1783_v38 = vrot.slane %v1782_v35, 1  ;;  %v1790_v40 = vrot.slane %v1789_v29, 1  ;;  %v1742_v47 = vadd.f32 %v1741_v6, %v1740_v51 }
 0x145   : > { %v1776_v34 = vrot.slane %v1775_v54, 1  ;;  %v1749_v55 = vadd.f32 %v1748_v32, %v1747_v30  ;;  %v1803_v61 = vadd.f32 %v1802_v12, %v1801_v31  ;;  %v1806_v63 = vmul.f32 0.125, %v7447_v52 }
 0x146   : > { %v1784_v24 = vadd.f32 %v1783_v38, %v1782_v35  ;;  %v1791_v23 = vadd.f32 %v1790_v40, %v1789_v29  ;;  %v1807_v39 = vmul.f32 0.125, %v7449_v53  ;;  %v1808_v33 = vmul.f32 0.125, %v1714_v56 }
 0x147   : > { %v1777_v41 = vadd.f32 %v1776_v34, %v1775_v54  ;;  %v1798_v42 = vadd.f32 %v1797_v46, %v1796_v49  ;;  %v1804_v36 = vrot.slane %v1803_v61, 1  ;;  %v1809_v37 = vmul.f32 0.125, %v7454_v57 }
 0x148   : > { %v1810_v44 = vmul.f32 0.125, %v1728_v62  ;;  %v1814_v45 = vmul.f32 0.125, %v1756_v9  ;;  %v1815_v48 = vmul.f32 0.125, %v1763_v10  ;;  %v1816_v50 = vmul.f32 0.125, %v1770_v11 }
 0x149   : > { %v1817_v58 = vmul.f32 0.125, %v1777_v41  ;;  %v1805_v32 = vadd.f32 %v1804_v36, %v1803_v61  ;;  %v1811_v31 = vmul.f32 0.125, %v1735_v28  ;;  %v1812_v51 = vmul.f32 0.125, %v1742_v47 }
 0x14a   : > { %v1818_v52 = vmul.f32 0.125, %v1784_v24  ;;  %v1813_v29 = vmul.f32 0.125, %v1749_v55  ;;  %v1819_v35 = vmul.f32 0.125, %v1791_v23  ;;  %v1822_v53 = vpack.c.bf16 %v1806_v63, %v1806_v63 }
 0x14b   : > { %v1823_v56 = vpack.c.bf16 %v1807_v39, %v1807_v39  ;;  %v1820_v49 = vmul.f32 0.125, %v1798_v42  ;;  %v1821_v6 = vmul.f32 0.125, %v1805_v32  ;;  %v1824_v57 = vpack.c.bf16 %v1808_v33, %v1808_v33 }
 0x14c   : > { %v1825_v62 = vpack.c.bf16 %v1809_v37, %v1809_v37  ;;  %v1830_v30 = vpack.c.bf16 %v1814_v45, %v1814_v45  ;;  %v1831_v43 = vpack.c.bf16 %v1815_v48, %v1815_v48  ;;  %v1832_v54 = vpack.c.bf16 %v1816_v50, %v1816_v50 }
 0x14d   : > { %v1833_v1 = vpack.c.bf16 %v1817_v58, %v1817_v58  ;;  %v1826_v4 = vpack.c.bf16 %v1810_v44, %v1810_v44  ;;  %v1827_v8 = vpack.c.bf16 %v1811_v31, %v1811_v31  ;;  %v1828_v5 = vpack.c.bf16 %v1812_v51, %v1812_v51 }
 0x14e   : > { %v1834_v28 = vpack.c.bf16 %v1818_v52, %v1818_v52  ;;  %v1829_v7 = vpack.c.bf16 %v1813_v29, %v1813_v29  ;;  %v1835_v24 = vpack.c.bf16 %v1819_v35, %v1819_v35  ;;  %v1907_v34 = vunpack.c.l.b16 %v1822_v53 }
 0x14f   : > { %v1908_v9 = vunpack.c.l.b16 %v1823_v56  ;;  %v1836_v23 = vpack.c.bf16 %v1820_v49, %v1820_v49  ;;  %v1837_v10 = vpack.c.bf16 %v1821_v6, %v1821_v6  ;;  %v1909_v11 = vunpack.c.l.b16 %v1824_v57  ;;  %v6328_v6 = vld [vmem:[%s9171_s8 + $0x8] sm:$0xff]   ;;  %v6329_v57 = vld [vmem:[%s9171_s8] sm:$0xff]  }
 0x150   : > { %v1910_v12 = vunpack.c.l.b16 %v1825_v62  ;;  %v1915_v41 = vunpack.c.l.b16 %v1830_v30  ;;  %v1916_v38 = vunpack.c.l.b16 %v1831_v43  ;;  %v1917_v40 = vunpack.c.l.b16 %v1832_v54  ;;  %5920 = vmatprep.subr.bf16.mxu1 %v6328_v6 }
 0x151   : > { %v1918_v46 = vunpack.c.l.b16 %v1833_v1  ;;  %v1911_v47 = vunpack.c.l.b16 %v1826_v4  ;;  %v1919_v55 = vunpack.c.l.b16 %v1834_v28  ;;  %v1912_v61 = vunpack.c.l.b16 %v1827_v8  ;;  %v6334_v8 = vld [vmem:[%s9172_s4] sm:$0xff]   ;;  %s9194_s4 = sld [smem:[#allocation52_spill]] }
 0x152   : > { %v1920_v63 = vunpack.c.l.b16 %v1835_v24  ;;  %v1924_v39 = vsel %vm1923_vm2, %v1908_v9, %v1907_v34  ;;  %v1937_v33 = vsel %vm1923_vm2, %v1916_v38, %v1915_v41  ;;  %v1913_v42 = vunpack.c.l.b16 %v1828_v5  ;;  %5915 = vmatpush3.bf16.msra.mxu0 %v6334_v8  ;;  %v7536_v24 = vld [vmem:[%s9173_s10] sm:$0xff]   ;;  %v6341_v34 = vld [vmem:[%s9174_s13 + $0x8] sm:$0xff]  }
 0x153   : > { %v1921_v36 = vunpack.c.l.b16 %v1836_v23  ;;  %v1926_v37 = vsel %vm1925_vm3, %v1909_v11, %v1924_v39  ;;  %v1938_v44 = vsel %vm1925_vm3, %v1917_v40, %v1937_v33  ;;  %v1914_v45 = vunpack.c.l.b16 %v1829_v7  ;;  %v7533_v7 = vld [vmem:[%s9173_s10 + $0x8] sm:$0xff]   ;;  %v6342_v9 = vld [vmem:[%s9174_s13] sm:$0xff]  }
 0x154   : > { %v1922_v48 = vunpack.c.l.b16 %v1837_v10  ;;  %v1928_v50 = vsel %vm1927_vm4, %v1910_v12, %v1926_v37  ;;  %v1939_v58 = vsel %vm1927_vm4, %v1918_v46, %v1938_v44  ;;  %v7499_v62 = vcombine.low %v7343_v13, %v7346_v14  ;;  %5940 = vmatprep.subr.bf16.mxu0 %v7533_v7  ;;  %v5601_v23 = vld [vmem:[#allocation5] ss:$0 sm:$0xff] }
 0x155   : > { %v1930_v32 = vsel %vm1929_vm5, %v1911_v47, %v1928_v50  ;;  %v1940_v31 = vsel %vm1929_vm5, %v1919_v55, %v1939_v58  ;;  %v7505_v30 = vcombine.low %v7349_v15, %v7353_v16  ;;  %v7509_v43 = vcombine.low %v7356_v17, %v7359_v18  ;;  %v5608_v10 = vld [vmem:[%s9175_s16] ss:$0 sm:$0xff]  ;;  %s9195_s16 = sld [smem:[#allocation51_spill]] }
 0x156   : > { %v1932_v51 = vsel %vm1931_vm6, %v1912_v61, %v1930_v32  ;;  %v1941_v52 = vsel %vm1931_vm6, %v1920_v63, %v1940_v31  ;;  %v7517_v54 = vcombine.low %v7364_v20, %v7367_v21  ;;  %v5638_v1 = vcombine.low %v7370_v22, %v7376_v25 }
 0x157   : > { %v1934_v29 = vsel %vm1933_vm7, %v1913_v42, %v1932_v51  ;;  %v1942_v35 = vsel %vm1933_vm7, %v1921_v36, %v1941_v52  ;;  %v5639_v4 = vcombine.low %v7379_v26, %v7382_v27  ;;  %v5640_v5 = vcombine.low %v7427_v59, %v7430_v60 }
 0x158   : > { %v1936_v53 = vsel %vm1935_vm8, %v1914_v45, %v1934_v29  ;;  %v1943_v56 = vsel %vm1935_vm8, %v1922_v48, %v1942_v35  ;;  %v5641_v28 = vcombine.low %v7436_v2, %v7439_v3 }
 0x159   : > { %v1944_v49 = vpack.c.b16 %v1943_v56, %v1936_v53 }
 0x15b   : > { %5911 = vmatmul.mubr.msk.bf16.vlgmr.msra.gmra.mxu1 %vm1420_vm1, %v1944_v49 }
 0x15c   : > { %5921 = vmatpush3.bf16.msra.mxu1 %v6328_v6  ;;  %5924 = vmatprep.mubr.msk.bf16.mxu1 %vm1420_vm1, %v7499_v62 }
 0x15d   : > { %5922 = vmatprep.subr.bf16.mxu1 %v6329_v57 }
 0x160   : > { %5923 = vmatpush3.bf16.msra.mxu1 %v6329_v57 }
 0x161   : > { %6062 = vmatprep.subr.bf16.mxu1 %v7533_v7 }
 0x163   : > { %5925 = vmatmul.mubr.msk.bf16.vlgmr.msra.gmra.mxu1 %vm1420_vm1, %v7505_v30 }
 0x164   : > { %5928 = vmatprep.mubr.msk.bf16.mxu1 %vm1420_vm1, %v7509_v43  ;;  %6064 = vmatpush3.bf16.msra.mxu1 %v7533_v7 }
 0x165   : > { %6063 = vmatprep.subr.bf16.mxu1 %v7536_v24 }
 0x168   : > { %6065 = vmatpush3.bf16.msra.mxu1 %v7536_v24 }
 0x169   : > { %5960 = vmatprep.subr.bf16.mxu1 %v6341_v34 }
 0x16b   : > { %5929 = vmatmul.mubr.msk.bf16.gmra.mxu1 %vm1420_vm1, %v7517_v54 }
 0x16c   : > { %5932 = vmatprep.mubr.msk.bf16.mxu1 %vm1420_vm1, %v5638_v1 }
 0x173   : > { %5933 = vmatmul.mubr.msk.bf16.gmra.mxu1 %vm1420_vm1, %v5639_v4 }
 0x174   : > { %5936 = vmatprep.mubr.msk.bf16.mxu1 %vm1420_vm1, %v5640_v5 }
 0x17b   : > { %5937 = vmatmul.mubr.msk.bf16.gmra.mxu1 %vm1420_vm1, %v5641_v28 }
 0x17c   : > { %5952 = vmatprep.mubr.msk.bf16.mxu1 %vm1420_vm1, %v5638_v1 }
 0x183   : > { %5953 = vmatmul.mubr.msk.bf16.vlgmr.msra.gmra.mxu1 %vm1420_vm1, %v5639_v4 }
 0x184   : > { %5956 = vmatprep.mubr.msk.bf16.mxu1 %vm1420_vm1, %v5640_v5  ;;  %5961 = vmatpush3.bf16.msra.mxu1 %v6341_v34  ;;  %v6880_v34 = vmov 1966171168  }
 0x185   : > { %5962 = vmatprep.subr.bf16.mxu1 %v6342_v9 }
 0x188   : > { %5963 = vmatpush3.bf16.msra.mxu1 %v6342_v9  ;;  %v2390_v9 = vunpack.c.l.s4 %v6880_v34 }
 0x18b   : > { %5957 = vmatmul.mubr.msk.bf16.gmra.mxu1 %vm1420_vm1, %v5641_v28 }
 0x1e9   : > { %v1458_v11 = vpop.f32.mrf.mxu0  ;;  %v1529_v41 = vpop.f32.mrf.mxu1 }
 0x1ea   : > { %v1459_v12 = vadd.f32 %v5601_v23, %v1458_v11  ;;  %v1530_v38 = vadd.f32 %v5608_v10, %v1529_v41 }
 0x1eb   : > { %v5872_v40 = vpop.f32.mrf.mxu0  ;;  %v5880_v47 = vpop.f32.mrf.mxu1 }
 0x1ec   : > { %v5606_v46 = vmul.f32 -1.442695, %v1459_v12  ;;  %v5612_v55 = vmul.f32 -1.442695, %v1530_v38 }
 0x1ed   : > { %v1461_v61 = vpop.f32.mrf.mxu0  ;;  %v1532_v39 = vpop.f32.mrf.mxu1 }
 0x1ee   : > { %6354 = vpow2.f32 %v5606_v46  ;;  %v1462_v63 = vadd.f32 %v5601_v23, %v1461_v61  ;;  %v1533_v33 = vadd.f32 %v5608_v10, %v1532_v39  ;;  %v2392_v23 = vlaneseq }
 0x1ef   : > { %6356 = vpow2.f32 %v5612_v55  ;;  %v5873_v42 = vpop.f32.mrf.mxu0  ;;  %v5881_v37 = vpop.f32.mrf.mxu1  ;;  %v2391_v10 = vunpack.c.0.s8 %v2390_v9 }
 0x1f0   : > { %v5607_v36 = vmul.f32 -1.442695, %v1462_v63  ;;  %v5613_v44 = vmul.f32 -1.442695, %v1533_v33  ;;  %v2393_v11 = vshrl.u32 %v2392_v23, 7 }
 0x1f1   : > { %v7552_v45 = vpop.f32.mrf.mxu0  ;;  %v7554_v48 = vpop.f32.mrf.mxu1 }
 0x1f2   : > { %6358 = vpow2.f32 %v5607_v36  ;;  %9176 = vst [vmem:[#allocation70_spill] sm:$0xff] %v7554_v48  ;;  %v7566_v38 = vsub.s32 %v2391_v10, %v2393_v11  ;;  %v7574_v33 = vsub.s32 0, %v2393_v11 }
 0x1f3   : > { %6360 = vpow2.f32 %v5613_v44  ;;  %v5888_v50 = vpop.f32.mrf.mxu0  ;;  %v5896_v58 = vpop.f32.mrf.mxu1 }
 0x1f4   : > { %9178 = vst [vmem:[#allocation72_spill] sm:$0xff] %v7566_v38  ;;  %9179 = vst [vmem:[#allocation73_spill] sm:$0xff] %v7574_v33 }
 0x1f5   : > { %v7556_v32 = vpop.f32.mrf.mxu0  ;;  %v7558_v31 = vpop.f32.mrf.mxu1 }
 0x1f6   : > { %9177 = vst [vmem:[#allocation71_spill] sm:$0xff] %v7558_v31 }
 0x1f7   : > { %v5889_v51 = vpop.f32.mrf.mxu0  ;;  %v5897_v52 = vpop.f32.mrf.mxu1 }
 0x1f9   : > { %v7560_v29 = vpop.f32.mrf.mxu0 }
 0x1fb   : > { %v6355_v35 = vpop.eup %6354  ;;  %v5904_v53 = vpop.f32.mrf.mxu0 }
 0x1fc   : > { %v6357_v56 = vpop.eup %6356  ;;  %v1471_v49 = vadd.f32 1.0, %v6355_v35 }
 0x1fd   : > { %v1542_v6 = vadd.f32 1.0, %v6357_v56  ;;  %v7562_v57 = vpop.f32.mrf.mxu0 }
 0x1fe   : > { %6362 = vrcp.f32 %v1471_v49 }
 0x1ff   : > { %v6359_v1 = vpop.eup %6358  ;;  %v5905_v4 = vpop.f32.mrf.mxu0  ;;  %6364 = vrcp.f32 %v1542_v6 }
 0x200   : > { %v6361_v8 = vpop.eup %6360  ;;  %v1472_v5 = vadd.f32 1.0, %v6359_v1 }
 0x201   : > { %v1543_v28 = vadd.f32 1.0, %v6361_v8 }
 0x202   : > { %6366 = vrcp.f32 %v1472_v5 }
 0x203   : > { %6368 = vrcp.f32 %v1543_v28 }
 0x20b   : > { %v6363_v12 = vpop.eup %6362 }
 0x20c   : > { %v7564_v41 = vpop.eup %6364 }
 0x20f   : > { %v6367_v40 = vpop.eup %6366 }
 0x210   : > { %v7568_v46 = vpop.eup %6368  ;;  %v2386_v47 = vpack.c.bf16 %v6367_v40, %v6363_v12  ;;  %v5663_v55 = vpack.c.bf16 %v6367_v40, %v6367_v40 }
 0x212   : > { %v2395_v63 = vrot.slane %v2386_v47, %v7566_v38  ;;  %v2402_v39 = vrot.slane %v5663_v55, %v7566_v38 }
 0x214   : > { %v2403_v42 = vcombine.high %v2395_v63, %v2395_v63  ;;  %v2411_v36 = vrot.slane %v2395_v63, %v7566_v38  ;;  %v2418_v37 = vrot.slane %v2402_v39, %v7566_v38  ;;  %v2404_v44 = vcombine.high %v2402_v39, %v2402_v39 }
 0x216   : > { %v2425_v50 = vrot.slane %v2403_v42, %v7566_v38  ;;  %v2438_v58 = vunpack.i.h.s16 %v2411_v36  ;;  %v5664_v51 = vpack.i.b16 %v2411_v36, %v2411_v36  ;;  %v2433_v52 = vcombine.high %v2411_v36, %v2411_v36 }
 0x217   : > { %v2446_v35 = vunpack.i.h.s16 %v2418_v37  ;;  %v5668_v53 = vpack.i.b16 %v2418_v37, %v2418_v37  ;;  %v7580_v56 = vrot.slane %v2404_v44, %v7566_v38  ;;  %v7582_v49 = vcombine.high %v2418_v37, %v2418_v37 }
 0x218   : > { %v2454_v6 = vpack.i.b16 %v2438_v58, %v2438_v58  ;;  %v2472_v1 = vrot.slane %v5664_v51, %v7574_v33  ;;  %v2440_v4 = vunpack.i.h.s16 %v2425_v50  ;;  %v5665_v8 = vpack.i.b16 %v2425_v50, %v2425_v50 }
 0x219   : > { %v2442_v5 = vunpack.i.h.s16 %v2433_v52  ;;  %v5666_v28 = vpack.i.b16 %v2433_v52, %v2433_v52  ;;  %v2435_v34 = vcombine.high %v2425_v50, %v2425_v50  ;;  %v2462_v9 = vpack.i.b16 %v2446_v35, %v2446_v35 }
 0x21a   : > { %v2476_v23 = vrot.slane %v2454_v6, %v7574_v33  ;;  %v2534_v10 = vpack.i.b16 %v2472_v1, %v2472_v1  ;;  %v2456_v11 = vpack.i.b16 %v2440_v4, %v2440_v4  ;;  %v2480_v12 = vrot.slane %v5665_v8, %v7574_v33 }
 0x21b   : > { %v2458_v40 = vpack.i.b16 %v2442_v5, %v2442_v5  ;;  %v2488_v47 = vrot.slane %v5666_v28, %v7574_v33  ;;  %v2444_v55 = vunpack.i.h.s16 %v2435_v34  ;;  %v5667_v63 = vpack.i.b16 %v2435_v34, %v2435_v34 }
 0x21c   : > { %v2539_v39 = vrot.slane %v2534_v10, %v7574_v33  ;;  %v2541_v42 = vpack.i.b16 %v2476_v23, %v2476_v23  ;;  %v2484_v36 = vrot.slane %v2456_v11, %v7574_v33  ;;  %v2548_v37 = vpack.i.b16 %v2480_v12, %v2480_v12 }
 0x21d   : > { %v2492_v44 = vrot.slane %v2458_v40, %v7574_v33  ;;  %v2562_v50 = vpack.i.b16 %v2488_v47, %v2488_v47  ;;  %v2460_v58 = vpack.i.b16 %v2444_v55, %v2444_v55  ;;  %v2496_v51 = vrot.slane %v5667_v63, %v7574_v33 }
 0x21e   : > { %v2546_v52 = vrot.slane %v2541_v42, %v7574_v33  ;;  %v2645_v35 = vmul.bf16 %v2539_v39, %v7343_v13  ;;  %v2553_v6 = vrot.slane %v2548_v37, %v7574_v33  ;;  %v2555_v1 = vpack.i.b16 %v2484_v36, %v2484_v36 }
 0x21f   : > { %v2567_v4 = vrot.slane %v2562_v50, %v7574_v33  ;;  %v2569_v8 = vpack.i.b16 %v2492_v44, %v2492_v44  ;;  %v2500_v5 = vrot.slane %v2460_v58, %v7574_v33  ;;  %v2576_v28 = vpack.i.b16 %v2496_v51, %v2496_v51 }
 0x220   : > { %v2646_v34 = vmul.bf16 %v2546_v52, %v7346_v14  ;;  %v2560_v23 = vrot.slane %v2555_v1, %v7574_v33  ;;  %v2647_v10 = vmul.bf16 %v2553_v6, %v7349_v15  ;;  %v2504_v11 = vrot.slane %v5668_v53, %v7574_v33 }
 0x221   : > { %v2574_v12 = vrot.slane %v2569_v8, %v7574_v33  ;;  %v2649_v40 = vmul.bf16 %v2567_v4, %v7356_v17  ;;  %v2581_v47 = vrot.slane %v2576_v28, %v7574_v33  ;;  %v2583_v55 = vpack.i.b16 %v2500_v5, %v2500_v5 }
 0x222   : > { %v5673_v63 = vcombine.low %v2645_v35, %v2646_v34  ;;  %v2648_v39 = vmul.bf16 %v2560_v23, %v7353_v16  ;;  %v2508_v42 = vrot.slane %v2462_v9, %v7574_v33  ;;  %v2590_v36 = vpack.i.b16 %v2504_v11, %v2504_v11  ;;  %v1994_v35 = vpop.f32.mrf.mxu1  ;;  %v5629_v34 = vld [vmem:[#allocation10] ss:$0 sm:$0xff] }
 0x223   : > { %v2650_v37 = vmul.bf16 %v2574_v12, %v7359_v18  ;;  %v2588_v44 = vrot.slane %v2583_v55, %v7574_v33  ;;  %v2448_v50 = vunpack.i.h.s16 %v7580_v56  ;;  %v5669_v52 = vpack.i.b16 %v7580_v56, %v7580_v56 }
 0x224   : > { %5964 = vmatprep.mubr.msk.bf16.mxu1 %vm1420_vm1, %v5673_v63  ;;  %v5674_v53 = vcombine.low %v2647_v10, %v2648_v39  ;;  %v2595_v58 = vrot.slane %v2590_v36, %v7574_v33  ;;  %v2597_v51 = vpack.i.b16 %v2508_v42, %v2508_v42  ;;  %v2450_v9 = vunpack.i.h.s16 %v7582_v49  ;;  %v5912_v23 = vpop.f32.mrf.mxu1 }
 0x225   : > { %v5675_v6 = vcombine.low %v2649_v40, %v2650_v37  ;;  %v2464_v1 = vpack.i.b16 %v2448_v50, %v2448_v50  ;;  %v1995_v4 = vadd.f32 %v1994_v35, %v7560_v29  ;;  %v2651_v8 = vmul.bf16 %v2581_v47, %v7364_v20 }
 0x226   : > { %5965 = vmatmul.mubr.msk.bf16.vlgmr.msra.gmra.mxu1 %vm1420_vm1, %v5674_v53  ;;  %v2602_v5 = vrot.slane %v2597_v51, %v7574_v33  ;;  %v2512_v28 = vrot.slane %v5669_v52, %v7574_v33  ;;  %v2652_v10 = vmul.bf16 %v2588_v44, %v7367_v21  ;;  %v5670_v12 = vpack.i.b16 %v7582_v49, %v7582_v49  ;;  %v1997_v63 = vpop.f32.mrf.mxu1 }
 0x227   : > { %5968 = vmatprep.mubr.msk.bf16.mxu1 %vm1420_vm1, %v5675_v6  ;;  %v2516_v11 = vrot.slane %v2464_v1, %v7574_v33  ;;  %v2466_v29 = vpack.i.b16 %v2450_v9, %v2450_v9  ;;  %v2653_v40 = vmul.bf16 %v2595_v58, %v7370_v22  ;;  %v2436_v47 = vcombine.high %v7580_v56, %v7580_v56 }
 0x228   : > { %v2604_v55 = vpack.i.b16 %v2512_v28, %v2512_v28  ;;  %v2654_v39 = vmul.bf16 %v2602_v5, %v7376_v25  ;;  %v2520_v36 = vrot.slane %v5670_v12, %v7574_v33  ;;  %v2007_v44 = vadd.f32 %v5629_v34, %v1995_v4  ;;  %v5913_v53 = vpop.f32.mrf.mxu1 }
 0x229   : > { %v2611_v42 = vpack.i.b16 %v2516_v11, %v2516_v11  ;;  %v2524_v37 = vrot.slane %v2466_v29, %v7574_v33  ;;  %v1998_v50 = vadd.f32 %v1997_v63, %v7562_v57  ;;  %v5676_v49 = vcombine.low %v2651_v8, %v2652_v10 }
 0x22a   : > { %v2618_v51 = vpack.i.b16 %v2520_v36, %v2520_v36  ;;  %v2452_v58 = vunpack.i.h.s16 %v2436_v47  ;;  %v2609_v6 = vrot.slane %v2604_v55, %v7574_v33  ;;  %v5671_v1 = vpack.i.b16 %v2436_v47, %v2436_v47 }
 0x22b   : > { %v2625_v52 = vpack.i.b16 %v2524_v37, %v2524_v37  ;;  %v2008_v35 = vadd.f32 %v5629_v34, %v1998_v50  ;;  %v2616_v56 = vrot.slane %v2611_v42, %v7574_v33  ;;  %v5677_v9 = vcombine.low %v2653_v40, %v2654_v39 }
 0x22c   : > { %v2623_v5 = vrot.slane %v2618_v51, %v7574_v33  ;;  %v2468_v23 = vpack.i.b16 %v2452_v58, %v2452_v58  ;;  %v2009_v4 = vmax.f32 %v2007_v44, 0.0  ;;  %v2528_v57 = vrot.slane %v5671_v1, %v7574_v33 }
 0x22d   : > { %v2630_v28 = vrot.slane %v2625_v52, %v7574_v33  ;;  %v2010_v11 = vmax.f32 %v2008_v35, 0.0  ;;  %v2655_v10 = vmul.bf16 %v2609_v6, %v7379_v26  ;;  %v2656_v12 = vmul.bf16 %v2616_v56, %v7382_v27 }
 0x22e   : > { %5969 = vmatmul.mubr.msk.bf16.gmra.mxu1 %vm1420_vm1, %v5676_v49  ;;  %v2532_v8 = vrot.slane %v2468_v23, %v7574_v33  ;;  %v2632_v29 = vpack.i.b16 %v2528_v57, %v2528_v57  ;;  %v2657_v40 = vmul.bf16 %v2623_v5, %v7427_v59  ;;  %v7677_v49 = vld [vmem:[#allocation13] ss:$0 sm:$0xff] }
 0x22f   : > { %5972 = vmatprep.mubr.msk.bf16.mxu1 %vm1420_vm1, %v5677_v9  ;;  %v2011_v34 = vpack.c.bf16 %v2010_v11, %v2009_v4  ;;  %v2658_v55 = vmul.bf16 %v2630_v28, %v7430_v60  ;;  %v5678_v63 = vcombine.low %v2655_v10, %v2656_v12 }
 0x230   : > { %v2639_v47 = vpack.i.b16 %v2532_v8, %v2532_v8  ;;  %v2637_v39 = vrot.slane %v2632_v29, %v7574_v33 }
 0x231   : > { %5917 = vmatmul.mubr.msk.bf16.vlgmr.msra.gmra.mxu0 %vm2024_vm9, %v2011_v34  ;;  %v5679_v36 = vcombine.low %v2657_v40, %v2658_v55 }
 0x232   : > { %5941 = vmatpush3.bf16.msra.mxu0 %v7533_v7  ;;  %5944 = vmatprep.mubr.msk.bf16.mxu0 %vm1420_vm1, %v7499_v62  ;;  %v2644_v42 = vrot.slane %v2639_v47, %v7574_v33  ;;  %v2659_v37 = vmul.bf16 %v2637_v39, %v7436_v2 }
 0x233   : > { %5942 = vmatprep.subr.bf16.mxu0 %v7536_v24 }
 0x234   : > { %v2660_v7 = vmul.bf16 %v2644_v42, %v7439_v3 }
 0x236   : > { %5973 = vmatmul.mubr.msk.bf16.gmra.mxu1 %vm1420_vm1, %v5678_v63  ;;  %5943 = vmatpush3.bf16.msra.mxu0 %v7536_v24  ;;  %v5680_v62 = vcombine.low %v2659_v37, %v2660_v7  ;;  %v7665_v24 = vpop.f32.mrf.mxu1 }
 0x237   : > { %5976 = vmatprep.mubr.msk.bf16.mxu1 %vm1420_vm1, %v5679_v36  ;;  %5980 = vmatprep.subr.bf16.mxu0 %v9039_v0 }
 0x238   : > { %v7667_v44 = vpop.f32.mrf.mxu1 }
 0x239   : > { %5945 = vmatmul.mubr.msk.bf16.vlgmr.msra.gmra.mxu0 %vm1420_vm1, %v7505_v30 }
 0x23a   : > { %5948 = vmatprep.mubr.msk.bf16.mxu0 %vm1420_vm1, %v7509_v43  ;;  %v7669_v50 = vpop.f32.mrf.mxu1 }
 0x23c   : > { %v7671_v53 = vpop.f32.mrf.mxu1 }
 0x23e   : > { %5977 = vmatmul.mubr.msk.bf16.gmra.mxu1 %vm1420_vm1, %v5680_v62  ;;  %v7673_v30 = vpop.f32.mrf.mxu1  ;;  %v5630_v62 = vld [vmem:[#allocation11] ss:$0 sm:$0xff] }
 0x240   : > { %v7675_v43 = vpop.f32.mrf.mxu1 }
 0x241   : > { %5949 = vmatmul.mubr.msk.bf16.gmra.mxu0 %vm1420_vm1, %v7517_v54 }
 0x242   : > { %5984 = vmatprep.mubr.msk.bf16.mxu0 %vm6879_vm0, %v9039_v0  ;;  %v5931_v51 = vpop.f32.mrf.mxu1 }
 0x243   : > { %v7680_v54 = vadd.f32 %v5931_v51, %v7677_v49 }
 0x244   : > { %v7682_v52 = vpop.f32.mrf.mxu1 }
 0x245   : > { %9180 = vst [vmem:[#allocation74_spill] sm:$0xff] %v7680_v54 }
 0x246   : > { %v7684_v58 = vpop.f32.mrf.mxu1 }
 0x247   : > { %9181 = vst [vmem:[#allocation75_spill] sm:$0xff] %v7684_v58 }
 0x248   : > { %v7686_v35 = vpop.f32.mrf.mxu1 }
 0x24a   : > { %v5935_v6 = vpop.f32.mrf.mxu1 }
 0x24b   : > { %v7689_v56 = vadd.f32 %v5935_v6, %v7677_v49 }
 0x24c   : > { %v7691_v1 = vpop.f32.mrf.mxu1 }
 0x24d   : > { %9182 = vst [vmem:[#allocation76_spill] sm:$0xff] %v7689_v56 }
 0x24e   : > { %v5938_v9 = vpop.f32.mrf.mxu1 }
 0x24f   : > { %v7694_v5 = vadd.f32 %v5938_v9, %v7677_v49  ;;  %v7733_v9 = vld [vmem:[#allocation16] ss:$0 sm:$0xff] }
 0x250   : > { %v2256_v28 = vpop.f32.mrf.mxu1 }
 0x251   : > { %9183 = vst [vmem:[#allocation77_spill] sm:$0xff] %v7694_v5  ;;  %v7697_v23 = vadd.f32 %v7677_v49, %v2256_v28 }
 0x252   : > { %v5939_v4 = vpop.f32.mrf.mxu1 }
 0x253   : > { %9184 = vst [vmem:[#allocation78_spill] sm:$0xff] %v7697_v23  ;;  %v7700_v11 = vadd.f32 %v5939_v4, %v7677_v49 }
 0x254   : > { %v2259_v57 = vpop.f32.mrf.mxu1 }
 0x255   : > { %9185 = vst [vmem:[#allocation79_spill] sm:$0xff] %v7700_v11  ;;  %v7703_v8 = vadd.f32 %v7677_v49, %v2259_v57 }
 0x256   : > { %v7705_v34 = vpop.f32.mrf.mxu1 }
 0x257   : > { %9186 = vst [vmem:[#allocation80_spill] sm:$0xff] %v7703_v8 }
 0x258   : > { %v7707_v10 = vpop.f32.mrf.mxu1 }
 0x25a   : > { %v7709_v12 = vpop.f32.mrf.mxu1 }
 0x25c   : > { %v7711_v29 = vpop.f32.mrf.mxu1 }
 0x25d   : > { %9187 = vst [vmem:[#allocation81_spill] sm:$0xff] %v7711_v29 }
 0x25e   : > { %v7713_v40 = vpop.f32.mrf.mxu1 }
 0x260   : > { %v7715_v55 = vpop.f32.mrf.mxu1 }
 0x262   : > { %v7717_v47 = vpop.f32.mrf.mxu1 }
 0x264   : > { %v7719_v63 = vpop.f32.mrf.mxu1 }
 0x265   : > { %9188 = vst [vmem:[#allocation82_spill] sm:$0xff] %v7719_v63 }
 0x2e6   : > { %v7721_v39 = vpop.f32.mrf.mxu1 }
 0x2e8   : > { %v7723_v42 = vpop.f32.mrf.mxu1 }
 0x2ea   : > { %v7725_v36 = vpop.f32.mrf.mxu1 }
 0x2ec   : > { %v7727_v37 = vpop.f32.mrf.mxu1 }
 0x2ee   : > { %v7729_v7 = vpop.f32.mrf.mxu1 }
 0x2f0   : > { %v7731_v51 = vpop.f32.mrf.mxu1 }
 0x2f1   : > { %v2062_v6 = vpop.f32.mrf.mxu0 }
 0x2f2   : > { %v5971_v28 = vpop.f32.mrf.mxu1  ;;  %v2063_v4 = vadd.f32 %v5630_v62, %v2062_v6 }
 0x2f3   : > { %v7736_v57 = vadd.f32 %v5971_v28, %v7733_v9  ;;  %v5918_v19 = vpop.f32.mrf.mxu0 }
 0x2f4   : > { %v2070_v0 = vsel %vm2069_vm10, %v2063_v4, -inf }
 0x2f5   : > { %9189 = vst [vmem:[#allocation83_spill] sm:$0xff] %v7736_v57  ;;  %2071 = vmax.xlane.f32.xlu0 %v2070_v0  ;;  %v2065_v61 = vpop.f32.mrf.mxu0 }
 0x2f6   : > { %v2066_v31 = vadd.f32 %v5630_v62, %v2065_v61 }
 0x2f7   : > { %v5919_v48 = vpop.f32.mrf.mxu0 }
 0x2f8   : > { %v2073_v11 = vsel %vm2069_vm10, %v2066_v31, -inf  ;;  %v9044_v48 = vmov 2  }
 0x2f9   : > { %2074 = vmax.xlane.f32.xlu0 %v2073_v11  ;;  %6275 = vset.pattern.permute.xlu1 %v9044_v48 }
 0x2fa   : > { %6274 = vset.pattern.permute.xlu0 %v9044_v48 }
 0x37e   : > { %v2072_v3 = vpop.xlane.xlu0 %2071 }
 0x37f   : > { %v2076_v5 = vsub.f32 %v2063_v4, %v2072_v3 }
 0x381   : > { %v2078_v2 = vmul.f32 1.442695, %v2076_v5 }
 0x382   : > { %v2075_v8 = vpop.xlane.xlu0 %2074 }
 0x383   : > { %6370 = vpow2.f32 %v2078_v2  ;;  %v2077_v60 = vsub.f32 %v2066_v31, %v2075_v8 }
 0x385   : > { %v2080_v6 = vmul.f32 1.442695, %v2077_v60 }
 0x387   : > { %6372 = vpow2.f32 %v2080_v6 }
 0x390   : > { %v6371_v28 = vpop.eup %6370 }
 0x391   : > { %v2082_v19 = vsel %vm2069_vm10, %v6371_v28, 0.0 }
 0x392   : > { %2083 = vadd.xlane.f32.xlu1 %v2082_v19 }
 0x394   : > { %v6373_v57 = vpop.eup %6372 }
 0x395   : > { %v2085_v0 = vsel %vm2069_vm10, %v6373_v57, 0.0 }
 0x396   : > { %2086 = vadd.xlane.f32.xlu1 %v2085_v0 }
 0x41b   : > { %v2084_v3 = vpop.xlane.xlu1 %2083 }
 0x41c   : > { %6374 = vrcp.f32 %v2084_v3 }
 0x41f   : > { %v2087_v61 = vpop.xlane.xlu1 %2086 }
 0x420   : > { %6376 = vrcp.f32 %v2087_v61 }
 0x429   : > { %v6375_v2 = vpop.eup %6374 }
 0x42a   : > { %v7744_v60 = vmul.f32 %v6375_v2, %v6371_v28  ;;  %v9047_v28 = vmov 1   ;;  %v9052_v2 = vmov 0  }
 0x42c   : > { %9190 = vst [vmem:[#allocation84_spill] sm:$0xff] %v7744_v60  ;;  %3197 = vperm.xlu0 %6274, %v7744_v60   ;;  %v2865_v31 = vrot.slane %v7744_v60, %v7566_v38  ;;  %v2858_v5 = vcombine.high %v7744_v60, %v7744_v60 }
 0x42d   : > { %v6377_v11 = vpop.eup %6376 }
 0x42e   : > { %v7751_v8 = vmul.f32 %v6377_v11, %v6373_v57  ;;  %v2881_v62 = vrot.slane %v2865_v31, %v7566_v38  ;;  %v2872_v4 = vrot.slane %v2858_v5, %v7566_v38  ;;  %v2873_v6 = vcombine.high %v2865_v31, %v2865_v31 }
 0x430   : > { %9191 = vst [vmem:[#allocation85_spill] sm:$0xff] %v7751_v8  ;;  %3201 = vperm.xlu1 %6275, %v7751_v8   ;;  %6281 = vset.pattern.permute.xlu0 %v9047_v28  ;;  %v2903_v19 = vcombine.high %v2881_v62, %v2881_v62  ;;  %v2888_v3 = vrot.slane %v2872_v4, %v7566_v38 }
 0x431   : > { %v2959_v61 = vrot.slane %v2881_v62, %v7574_v33  ;;  %v2895_v57 = vrot.slane %v2873_v6, %v7566_v38  ;;  %v2874_v11 = vcombine.high %v2872_v4, %v2872_v4  ;;  %v2914_v62 = vrot.slane %v7751_v8, %v7566_v38 }
 0x432   : > { %v2967_v0 = vrot.slane %v2903_v19, %v7574_v33  ;;  %v2975_v31 = vrot.slane %v2888_v3, %v7574_v33  ;;  %v2904_v60 = vcombine.high %v2888_v3, %v2888_v3 }
 0x433   : > { %v2905_v5 = vcombine.high %v2895_v57, %v2895_v57  ;;  %v2902_v48 = vrot.slane %v2874_v11, %v7566_v38  ;;  %v2963_v6 = vrot.slane %v2895_v57, %v7574_v33  ;;  %v2907_v57 = vcombine.high %v7751_v8, %v7751_v8 }
 0x434   : > { %3109 = vperm.xlu0 %6281, %v2967_v0   ;;  %6276 = vset.pattern.permute.xlu1 %v9052_v2 }
 0x435   : > { %3021 = vperm.xlu1 %6276, %v2959_v61   ;;  %v2971_v19 = vrot.slane %v2905_v5, %v7574_v33  ;;  %v2979_v4 = vrot.slane %v2902_v48, %v7574_v33  ;;  %v2983_v5 = vrot.slane %v2904_v60, %v7574_v33  ;;  %v2906_v3 = vcombine.high %v2902_v48, %v2902_v48 }
 0x436   : > { %v2921_v27 = vrot.slane %v2907_v57, %v7566_v38  ;;  %v6344_v57 = vld [vmem:[#allocation19] sm:$0xff]  }
 0x437   : > { %v2987_v60 = vrot.slane %v2906_v3, %v7574_v33 }
 0x438   : > { %3117 = vperm.xlu0 %6281, %v2975_v31   ;;  %v2923_v54 = vcombine.high %v2921_v27, %v2921_v27 }
 0x439   : > { %6277 = vset.pattern.permute.xlu1 %v9047_v28  ;;  %v2922_v28 = vcombine.high %v2914_v62, %v2914_v62 }
 0x43a   : > { %3101 = vperm.xlu1 %6277, %v2959_v61   ;;  %v9192_v61 = vmov 1   ;;  %v2951_v48 = vrot.slane %v2923_v54, %v7566_v38  ;;  %v9193_v54 = vmov 2  }
 0x43b   : > { %v2944_v11 = vrot.slane %v2922_v28, %v7566_v38 }
 0x43c   : > { %6283 = vset.pattern.permute.xlu0 %v9052_v2 }
 0x43d   : > { %3033 = vperm.xlu0 %6283, %v2971_v19   ;;  %v2995_v56 = vrot.slane %v2944_v11, %v7574_v33  ;;  %v2954_v28 = vcombine.high %v2944_v11, %v2944_v11  ;;  %v6343_v11 = vld [vmem:[#allocation19 + $0x8] sm:$0xff]  }
 0x43e   : > { %6278 = vset.pattern.permute.xlu1 %v9052_v2  ;;  %6022 = vmatprep.subr.bf16.mxu1 %v6343_v11 }
 0x43f   : > { %3025 = vperm.xlu1 %6278, %v2963_v6   ;;  %v3003_v21 = vrot.slane %v2954_v28, %v7574_v33  ;;  %6023 = vmatpush3.bf16.msra.mxu1 %v6343_v11  ;;  %v6345_v28 = vld [vmem:[%s9194_s4 + $0x8] sm:$0xff]  }
 0x440   : > { %6024 = vmatprep.subr.bf16.mxu1 %v6344_v57  ;;  %5981 = vmatpush3.bf16.msra.mxu0 %v6345_v28  ;;  %v2209_v28 = vadd.f32 %v7677_v49, %v7667_v44 }
 0x441   : > { %3041 = vperm.xlu0 %6283, %v2979_v4  }
 0x443   : > { %6279 = vset.pattern.permute.xlu1 %v9192_v61  ;;  %6025 = vmatpush3.bf16.msra.mxu1 %v6344_v57 }
 0x444   : > { %3105 = vperm.xlu1 %6279, %v2963_v6   ;;  %v2930_v6 = vrot.slane %v2914_v62, %v7566_v38 }
 0x445   : > { %6285 = vset.pattern.permute.xlu0 %v9192_v61 }
 0x446   : > { %3125 = vperm.xlu0 %6285, %v2983_v5   ;;  %v2991_v8 = vrot.slane %v2930_v6, %v7574_v33 }
 0x448   : > { %6280 = vset.pattern.permute.xlu1 %v9052_v2 }
 0x449   : > { %3029 = vperm.xlu1 %6280, %v2967_v0   ;;  %v3011_v0 = vrot.slane %v2951_v48, %v7574_v33 }
 0x44a   : > { %3137 = vperm.xlu0 %6285, %v2995_v56  }
 0x44d   : > { %3037 = vperm.xlu1 %6280, %v2975_v31   ;;  %v2955_v31 = vcombine.high %v2951_v48, %v2951_v48  ;;  %v9196_v48 = vpack.c.bf16 %v7568_v46, %v7564_v41 }
 0x44e   : > { %6289 = vset.pattern.permute.xlu0 %v9052_v2 }
 0x44f   : > { %3049 = vperm.xlu0 %6289, %v2987_v60   ;;  %v3019_v62 = vrot.slane %v2955_v31, %v7574_v33  ;;  %v9197_v31 = vmov 0.0  }
 0x450   : > { %5982 = vmatprep.subr.bf16.mxu0 %v9197_v31 }
 0x451   : > { %3053 = vperm.xlu1 %6280, %v2991_v8  }
 0x453   : > { %6291 = vset.pattern.permute.xlu0 %v9192_v61 }
 0x454   : > { %3145 = vperm.xlu0 %6291, %v3003_v21  }
 0x455   : > { %6282 = vset.pattern.permute.xlu1 %v9192_v61 }
 0x456   : > { %3133 = vperm.xlu1 %6282, %v2991_v8   ;;  %v2952_v8 = vcombine.high %v2930_v6, %v2930_v6 }
 0x458   : > { %3153 = vperm.xlu0 %6291, %v3011_v0   ;;  %v2999_v3 = vrot.slane %v2952_v8, %v7574_v33 }
 0x45a   : > { %3113 = vperm.xlu1 %6282, %v2971_v19   ;;  %v2937_v19 = vrot.slane %v2921_v27, %v7566_v38  ;;  %v5614_v27 = vld [vmem:[#allocation7] ss:$0 sm:$0xff] }
 0x45b   : > { %v1609_v6 = vadd.f32 %v5614_v27, %v7552_v45 }
 0x45c   : > { %3161 = vperm.xlu0 %6291, %v3019_v62  }
 0x45d   : > { %6378 = vtanh.f32 %v1609_v6 }
 0x45e   : > { %3121 = vperm.xlu1 %6282, %v2979_v4   ;;  %v3007_v4 = vrot.slane %v2937_v19, %v7574_v33 }
 0x460   : > { %6295 = vset.pattern.permute.xlu0 %v9193_v54 }
 0x462   : > { %6284 = vset.pattern.permute.xlu1 %v9052_v2 }
 0x463   : > { %3045 = vperm.xlu1 %6284, %v2983_v5  }
 0x467   : > { %3057 = vperm.xlu1 %6284, %v2995_v56   ;;  %v2953_v56 = vcombine.high %v2937_v19, %v2937_v19 }
 0x469   : > { %v3015_v5 = vrot.slane %v2953_v56, %v7574_v33 }
 0x46a   : > { %v6379_v45 = vpop.eup %6378 }
 0x46b   : > { %3061 = vperm.xlu1 %6284, %v2999_v3  }
 0x46f   : > { %6286 = vset.pattern.permute.xlu1 %v9192_v61 }
 0x470   : > { %3141 = vperm.xlu1 %6286, %v2999_v3  }
 0x474   : > { %6287 = vset.pattern.permute.xlu1 %v9052_v2 }
 0x475   : > { %3069 = vperm.xlu1 %6287, %v3007_v4  }
 0x479   : > { %6288 = vset.pattern.permute.xlu1 %v9192_v61 }
 0x47a   : > { %3149 = vperm.xlu1 %6288, %v3007_v4   ;;  %v6394_v4 = vld [vmem:[%s7315_s14] sm:$0xff]   ;;  %s7929_s14 = scalar_lea.vmem [#allocation22], %s7267_s19 }
 0x47b   : > { %s5249_s5 = sshll.u32 %s7929_s14, 4  ;;  %s8640_s5 = int_to_ptr.vmem [resolvable:$true] %s5249_s5 }
 0x47c   : > { %s6709_s8 = scalar_lea.vmem %s8640_s5, 1024 }
 0x47d   : > { %p6710_p13 = scmp.ne.s32.totalorder %s8640_s5, %s6709_s8 }
 0x47e   : > { %6290 = vset.pattern.permute.xlu1 %v9052_v2 }
 0x47f   : > { %3065 = vperm.xlu1 %6290, %v3003_v21   ;;  %v1612_v21 = vadd.f32 %v5614_v27, %v7556_v32  ;;  %v6347_v32 = vld [vmem:[%s9195_s16 + $0x8] sm:$0xff]   ;;  %v6348_v27 = vld [vmem:[%s9195_s16] sm:$0xff]   ;;  %p6711_p2 = pnand %p6710_p13, %p9266_p6 }
 0x481   : > { %6380 = vtanh.f32 %v1612_v21  ;;  %v5731_v21 = vpack.c.bf16 %v7568_v46, %v7568_v46  ;;  %p6712_p8 = pneg %p6711_p2 }
 0x483   : > { %3073 = vperm.xlu1 %6290, %v3011_v0   ;;  %v4159_v0 = vrot.slane %v9196_v48, %v7566_v38  ;;  %v7838_v48 = vpop.f32.mrf.mxu0 }
 0x485   : > { %v7819_v8 = vrot.slane %v4159_v0, %v7566_v38 }
 0x487   : > { %3077 = vperm.xlu1 %6290, %v3015_v5   ;;  %v5732_v6 = vpack.i.b16 %v7819_v8, %v7819_v8 }
 0x48b   : > { %6292 = vset.pattern.permute.xlu1 %v9192_v61 }
 0x48c   : > { %3157 = vperm.xlu1 %6292, %v3015_v5  }
 0x48e   : > { %v6381_v41 = vpop.eup %6380 }
 0x490   : > { %6293 = vset.pattern.permute.xlu1 %v9052_v2  ;;  %v9198_v2 = vunpack.c.l.bf16 %v7343_v13 }
 0x491   : > { %3081 = vperm.xlu1 %6293, %v3019_v62   ;;  %v6346_v62 = vld [vmem:[%s9194_s4] sm:$0xff]  }
 0x492   : > { %5983 = vmatpush3.bf16.msra.mxu0 %v6346_v62 }
 0x493   : > { %5988 = vmatprep.subr.bf16.mxu0 %v9197_v31 }
 0x495   : > { %6294 = vset.pattern.permute.xlu1 %v9192_v61  ;;  %5985 = vmatmul.mubr.msk.bf16.vlgmr.msra.gmra.mxu0 %vm1420_vm1, %v6394_v4  ;;  %v4236_v4 = vrot.slane %v5732_v6, %v7574_v33  ;;  %v2323_v61 = vpop.f32.mrf.mxu0 }
 0x496   : > { %3129 = vperm.xlu1 %6294, %v2987_v60   ;;  %v4167_v60 = vcombine.high %v4159_v0, %v4159_v0  ;;  %5989 = vmatpush3.bf16.msra.mxu0 %v6347_v32  ;;  %v4202_v32 = vunpack.i.h.s16 %v7819_v8 }
 0x497   : > { %5990 = vmatprep.subr.bf16.mxu0 %v9197_v31  ;;  %5992 = vmatprep.mubr.msk.bf16.mxu0 %vm6879_vm0, %v9197_v31  ;;  %v4298_v59 = vpack.i.b16 %v4236_v4, %v4236_v4 }
 0x498   : > { %v7822_v19 = vrot.slane %v4167_v60, %v7566_v38 }
 0x49a   : > { %6296 = vset.pattern.permute.xlu1 %v9193_v54  ;;  %5991 = vmatpush3.bf16.msra.mxu0 %v6348_v27  ;;  %v2840_v27 = vadd.f32 %v2209_v28, %v9198_v2  ;;  %v2778_v54 = vadd.f32 %v7733_v9, %v7723_v42  ;;  %v4204_v28 = vunpack.i.h.s16 %v7822_v19 }
 0x49b   : > { %5996 = vmatprep.subr.bf16.mxu0 %v9197_v31 }
 0x4a7   : > { %v3198_v11 = vpop.permute.xlu0 %3197 }
 0x4a8   : > { %v7814_v57 = vmul.f32 %v6379_v45, %v3198_v11  ;;  %v5733_v45 = vpack.i.b16 %v7822_v19, %v7822_v19 }
 0x4aa   : > { %v3215_v56 = vrot.slane %v7814_v57, %v7566_v38 }
 0x4ab   : > { %v3202_v3 = vpop.permute.xlu1 %3201 }
 0x4ac   : > { %v3205_v5 = vmul.f32 %v6381_v41, %v3202_v3  ;;  %v7844_v60 = vrot.slane %v3215_v56, %v7566_v38  ;;  %v7847_v41 = vld [vmem:[#allocation14] ss:$0 sm:$0xff]  ;;  %v3223_v63 = vcombine.high %v3215_v56, %v3215_v56 }
 0x4ad   : > { %v2324_v6 = vadd.f32 %v7847_v41, %v2323_v61  ;;  %v2364_v42 = vadd.f32 %v7705_v34, %v7847_v41  ;;  %v2367_v58 = vadd.f32 %v7709_v12, %v7847_v41  ;;  %v2372_v34 = vadd.f32 %v7847_v41, %v7715_v55 }
 0x4ae   : > { %v3257_v0 = vcombine.high %v3205_v5, %v3205_v5  ;;  %v3264_v62 = vrot.slane %v3205_v5, %v7566_v38  ;;  %v7856_v5 = vrot.slane %v5731_v21, %v7566_v38  ;;  %v3309_v21 = vrot.slane %v7844_v60, %v7574_v33 }
 0x4af   : > { %v7897_v55 = vrot.slane %v4298_v59, %v7574_v33  ;;  %v3208_v59 = vcombine.high %v7814_v57, %v7814_v57 }
 0x4b0   : > { %v3022_v11 = vpop.permute.xlu1 %3021  ;;  %v3271_v46 = vrot.slane %v3257_v0, %v7566_v38  ;;  %v3272_v44 = vcombine.high %v3264_v62, %v3264_v62  ;;  %v7851_v3 = vrot.slane %v3264_v62, %v7566_v38  ;;  %v7867_v62 = vrot.slane %v5733_v45, %v7574_v33 }
 0x4b1   : > { %v3084_v61 = vmul.f32 %v3022_v11, %v2840_v27  ;;  %v3386_v56 = vmul.f32 %v3309_v21, %v2324_v6  ;;  %v7893_v11 = vpop.f32.mrf.mxu0 }
 0x4b2   : > { %v3287_v0 = vrot.slane %v3271_v46, %v7566_v38  ;;  %v7864_v23 = vrot.slane %v3272_v44, %v7566_v38  ;;  %v3273_v31 = vcombine.high %v3271_v46, %v3271_v46  ;;  %v3302_v13 = vcombine.high %v7851_v3, %v7851_v3 }
 0x4b3   : > { %v4218_v44 = vpack.i.b16 %v4202_v32, %v4202_v32  ;;  %v2212_v46 = vadd.f32 %v7677_v49, %v7671_v53  ;;  %v2383_v53 = vadd.f32 %v7717_v47, %v7847_v41 }
 0x4b4   : > { %v3304_v45 = vcombine.high %v7864_v23, %v7864_v23  ;;  %v3303_v25 = vcombine.high %v3287_v0, %v3287_v0  ;;  %v7886_v29 = vrot.slane %v3273_v31, %v7566_v38  ;;  %v3349_v4 = vrot.slane %v3302_v13, %v7574_v33 }
 0x4b5   : > { %v3102_v2 = vpop.permute.xlu1 %3101  ;;  %v3357_v12 = vrot.slane %v3287_v0, %v7574_v33  ;;  %v7900_v31 = vrot.slane %v3223_v63, %v7566_v38 }
 0x4b6   : > { %v3164_v26 = vmul.f32 %v3102_v2, %v2778_v54  ;;  %v2380_v54 = vadd.f32 %v7713_v40, %v7847_v41  ;;  %v7902_v6 = vmul.f32 %v3349_v4, %v2364_v42  ;;  %v3353_v21 = vrot.slane %v3304_v45, %v7574_v33 }
 0x4b7   : > { %v9199_v40 = vunpack.c.l.bf16 %v7346_v14  ;;  %v7907_v13 = vmul.f32 %v3357_v12, %v2372_v34  ;;  %v3365_v0 = vrot.slane %v3303_v25, %v7574_v33  ;;  %v3305_v42 = vcombine.high %v7886_v29, %v7886_v29  ;;  %v3110_v12 = vpop.permute.xlu0 %3109 }
 0x4b8   : > { %v3180_v32 = vadd.f32 %v3164_v26, %v3084_v61  ;;  %v7914_v2 = vmul.f32 %v3353_v21, %v2367_v58  ;;  %v2217_v45 = vadd.f32 %v7665_v24, %v7677_v49  ;;  %v2781_v14 = vadd.f32 %v7733_v9, %v7727_v37  ;;  %v2326_v61 = vpop.f32.mrf.mxu0 }
 0x4b9   : > { %v2841_v47 = vadd.f32 %v2212_v46, %v9199_v40  ;;  %v7922_v46 = vmul.f32 %v3365_v0, %v2380_v54  ;;  %v4240_v25 = vrot.slane %v4218_v44, %v7574_v33  ;;  %v2327_v57 = vadd.f32 %v7847_v41, %v2326_v61 }
 0x4ba   : > { %v3402_v26 = vadd.f32 %v3386_v56, %v3180_v32  ;;  %v3026_v27 = vpop.permute.xlu1 %3025  ;;  %v3313_v58 = vrot.slane %v7900_v31, %v7574_v33  ;;  %v3369_v24 = vrot.slane %v3305_v42, %v7574_v33  ;;  %v3253_v34 = vcombine.high %v7844_v60, %v7844_v60 }
 0x4bb   : > { %9201 = vst [vmem:[#allocation87_spill] sm:$0xff] %v7922_v46  ;;  %v4220_v32 = vpack.i.b16 %v4204_v28, %v4204_v28  ;;  %v4197_v56 = vcombine.high %v7819_v8, %v7819_v8  ;;  %v7943_v4 = vrot.slane %v7856_v5, %v7566_v38  ;;  %v7946_v54 = vrot.slane %v3208_v59, %v7566_v38 }
 0x4bc   : > { %v7912_v63 = vpack.c.bf16 %v3402_v26, %v3402_v26  ;;  %v3085_v21 = vmul.f32 %v3026_v27, %v2841_v47  ;;  %v7948_v0 = vmul.f32 %v3369_v24, %v2383_v53  ;;  %v2225_v60 = vadd.f32 %v7677_v49, %v7675_v43  ;;  %v7962_v47 = vpop.f32.mrf.mxu0 }
 0x4bd   : > { %v9202_v28 = vunpack.c.l.bf16 %v7349_v15  ;;  %v4168_v8 = vcombine.high %v7856_v5, %v7856_v5  ;;  %v3387_v42 = vmul.f32 %v3313_v58, %v2327_v57  ;;  %v4312_v59 = vpack.i.b16 %v7867_v62, %v7867_v62  ;;  %v7971_v58 = vpop.f32.mrf.mxu1 }
 0x4be   : > { %9200 = vst [vmem:[#allocation86_spill] sm:$0xff] %v7912_v63  ;;  %3435 = vst.msk [vmem:[%s7929_s14] sm:$0xf] %vm3434_vm11, %v7912_v63  ;;  %v4409_v37 = vmul.bf16 %v7897_v55, %v7912_v63  ;;  %v4305_v46 = vpack.i.b16 %v4240_v25, %v4240_v25  ;;  %v2786_v27 = vadd.f32 %v7721_v39, %v7733_v9  ;;  %v4210_v25 = vunpack.i.h.s16 %v7943_v4 }
 0x4bf   : > { %v3106_v44 = vpop.permute.xlu1 %3105  ;;  %v2842_v55 = vadd.f32 %v2217_v45, %v9202_v28  ;;  %v2332_v53 = vadd.f32 %v7838_v48, %v7847_v41  ;;  %v3317_v15 = vrot.slane %v3253_v34, %v7574_v33  ;;  %v5734_v43 = vpack.i.b16 %v4197_v56, %v4197_v56 }
 0x4c0   : > { %v3165_v40 = vmul.f32 %v3106_v44, %v2781_v14  ;;  %v7967_v45 = vrot.slane %v7946_v54, %v7566_v38  ;;  %v4248_v62 = vrot.slane %v4220_v32, %v7574_v33  ;;  %v3166_v39 = vmul.f32 %v3110_v12, %v2786_v27  ;;  %v2339_v12 = vpop.f32.mrf.mxu0 }
 0x4c1   : > { %v9203_v24 = vunpack.c.l.bf16 %v7356_v17  ;;  %v4206_v34 = vunpack.i.h.s16 %v4197_v56  ;;  %v4199_v32 = vcombine.high %v7822_v19, %v7822_v19  ;;  %v4252_v17 = vrot.slane %v5734_v43, %v7574_v33 }
 0x4c2   : > { %v3181_v61 = vadd.f32 %v3165_v40, %v3085_v21  ;;  %v3118_v21 = vpop.permute.xlu0 %3117  ;;  %v2340_v56 = vadd.f32 %v7847_v41, %v2339_v12  ;;  %v4319_v19 = vpack.i.b16 %v4248_v62, %v4248_v62 }
 0x4c3   : > { %v2844_v44 = vadd.f32 %v2225_v60, %v9203_v24  ;;  %v3325_v60 = vrot.slane %v7967_v45, %v7574_v33  ;;  %v4208_v24 = vunpack.i.h.s16 %v4199_v32 }
 0x4c4   : > { %v3403_v14 = vadd.f32 %v3387_v42, %v3181_v61  ;;  %v3030_v57 = vpop.permute.xlu1 %3029  ;;  %v4310_v42 = vrot.slane %v4305_v46, %v7574_v33  ;;  %v2794_v61 = vadd.f32 %v7733_v9, %v7731_v51  ;;  %v7994_v46 = vpop.f32.mrf.mxu1  ;;  %v8012_v12 = vrot.slane %v4319_v19, %v7574_v33 }
 0x4c5   : > { %v3086_v48 = vmul.f32 %v3030_v57, %v2842_v55  ;;  %v3388_v55 = vmul.f32 %v3317_v15, %v2332_v53  ;;  %v2241_v57 = vadd.f32 %v7677_v49, %v7686_v35  ;;  %v4224_v19 = vpack.i.b16 %v4208_v24, %v4208_v24 }
 0x4c6   : > { %v7975_v40 = vpack.c.bf16 %v3403_v14, %v3403_v14  ;;  %v7977_v28 = vpack.c.bf16 %v3403_v14, %v3402_v26  ;;  %v3168_v53 = vmul.f32 %v3118_v21, %v2794_v61  ;;  %v4222_v14 = vpack.i.b16 %v4206_v34, %v4206_v34  ;;  %v2809_v35 = vpop.f32.mrf.mxu1 }
 0x4c7   : > { %v3182_v27 = vadd.f32 %v3166_v39, %v3086_v48  ;;  %v8001_v39 = vrot.slane %v4312_v59, %v7574_v33  ;;  %v4326_v21 = vpack.i.b16 %v4252_v17, %v4252_v17  ;;  %v5736_v61 = vpack.i.b16 %v7943_v4, %v7943_v4 }
 0x4c8   : > { %9204 = vst [vmem:[#allocation88_spill] sm:$0xff] %v7975_v40  ;;  %3436 = vst.msk [vmem:[%s7929_s14 + $0x4] sm:$0xf] %vm3434_vm11, %v7975_v40  ;;  %v3038_v26 = vpop.permute.xlu1 %3037  ;;  %6026 = vmatprep.mubr.msk.bf16.mxu1 %vm1420_vm1, %v7977_v28  ;;  %v4410_v51 = vmul.bf16 %v4310_v42, %v7975_v40  ;;  %v4256_v59 = vrot.slane %v4222_v14, %v7574_v33  ;;  %v2220_v17 = vadd.f32 %v7669_v50, %v7677_v49 }
 0x4c9   : > { %v7996_v15 = vadd.f32 %v3388_v55, %v3182_v27  ;;  %v3088_v43 = vmul.f32 %v3038_v26, %v2844_v44  ;;  %v3390_v44 = vmul.f32 %v3325_v60, %v2340_v56  ;;  %v5735_v27 = vpack.i.b16 %v4199_v32, %v4199_v32 }
 0x4ca   : > { %v8003_v48 = vcombine.low %v4409_v37, %v4410_v51  ;;  %v4226_v55 = vpack.i.b16 %v4210_v25, %v4210_v25  ;;  %v9206_v56 = vunpack.c.l.bf16 %v7370_v22  ;;  %v2356_v51 = vadd.f32 %v7847_v41, %v7707_v10 }
 0x4cb   : > { %v8007_v62 = vpack.c.bf16 %v7996_v15, %v7996_v15  ;;  %v3184_v42 = vadd.f32 %v3168_v53, %v3088_v43  ;;  %v3034_v53 = vpop.permute.xlu0 %3033  ;;  %v8029_v43 = vrot.slane %v4326_v21, %v7574_v33  ;;  %v4268_v32 = vrot.slane %v5736_v61, %v7574_v33  ;;  %v8055_v21 = vpop.f32.mrf.mxu0 }
 0x4cc   : > { %v3054_v34 = vpop.permute.xlu1 %3053  ;;  %v2848_v60 = vadd.f32 %v2241_v57, %v9206_v56  ;;  %v8036_v50 = vrot.slane %v4168_v8, %v7566_v38  ;;  %v2810_v22 = vadd.f32 %v7733_v9, %v2809_v35  ;;  %v3255_v25 = vcombine.high %v7900_v31, %v7900_v31 }
 0x4cd   : > { %9205 = vst [vmem:[#allocation89_spill] sm:$0xff] %v8007_v62  ;;  %3437 = vst.msk [vmem:[%s7929_s14 + $0x8] sm:$0xf] %vm3434_vm11, %v8007_v62  ;;  %v4411_v37 = vmul.bf16 %v8001_v39, %v8007_v62  ;;  %v8022_v26 = vadd.f32 %v3390_v44, %v3184_v42  ;;  %v3341_v10 = vrot.slane %v7851_v3, %v7574_v33  ;;  %v9208_v31 = vunpack.c.l.bf16 %v7353_v16 }
 0x4ce   : > { %v3224_v57 = vcombine.high %v7946_v54, %v7946_v54  ;;  %v4333_v42 = vpack.i.b16 %v4256_v59, %v4256_v59  ;;  %v8050_v5 = vrot.slane %v5735_v27, %v7574_v33  ;;  %v8053_v8 = vrot.slane %v4226_v55, %v7574_v33 }
 0x4cf   : > { %v8045_v14 = vpack.c.bf16 %v8022_v26, %v8022_v26  ;;  %v2843_v3 = vadd.f32 %v2220_v17, %v9208_v31  ;;  %v3092_v61 = vmul.f32 %v3054_v34, %v2848_v60  ;;  %v2228_v35 = vadd.f32 %v7677_v49, %v7682_v52 }
 0x4d0   : > { %v2789_v59 = vadd.f32 %v7725_v36, %v7733_v9  ;;  %v8069_v27 = vrot.slane %v4224_v19, %v7574_v33  ;;  %v4354_v55 = vpack.i.b16 %v4268_v32, %v4268_v32  ;;  %v2335_v16 = vadd.f32 %v7893_v11, %v7847_v41  ;;  %v2342_v32 = vpop.f32.mrf.mxu0 }
 0x4d1   : > { %9207 = vst [vmem:[#allocation90_spill] sm:$0xff] %v8045_v14  ;;  %v3134_v24 = vpop.permute.xlu1 %3133  ;;  %3439 = vst.msk [vmem:[%s7929_s14 + $0x10] sm:$0xf] %vm3434_vm11, %v8045_v14  ;;  %v3321_v17 = vrot.slane %v3255_v25, %v7574_v33  ;;  %v3394_v34 = vmul.f32 %v3341_v10, %v2356_v51  ;;  %v8075_v60 = vrot.slane %v3224_v57, %v7566_v38  ;;  %v4212_v36 = vunpack.i.h.s16 %v8036_v50  ;;  %v9232_v38 = vld [vmem:[#allocation76_spill] sm:$0xff] }
 0x4d2   : > { %v3172_v44 = vmul.f32 %v3134_v24, %v2810_v22  ;;  %v3042_v22 = vpop.permute.xlu0 %3041  ;;  %v8078_v52 = vrot.slane %v4333_v42, %v7574_v33  ;;  %v9060_v11 = vunpack.c.l.bf16 %v7912_v63  ;;  %v3087_v31 = vmul.f32 %v3034_v53, %v2843_v3  ;;  %v9230_v63 = vld [vmem:[#allocation65_spill] sm:$0xff] }
 0x4d3   : > { %v2233_v10 = vadd.f32 %v7673_v30, %v7677_v49  ;;  %v9209_v57 = vunpack.c.l.bf16 %v7359_v18  ;;  %v2797_v19 = vadd.f32 %v7733_v9, %v7971_v58  ;;  %v3389_v53 = vmul.f32 %v3321_v17, %v2335_v16 }
 0x4d4   : > { %v3188_v56 = vadd.f32 %v3172_v44, %v3092_v61  ;;  %v4340_v61 = vpack.i.b16 %v8050_v5, %v8050_v5  ;;  %v3254_v18 = vcombine.high %v7967_v45, %v7967_v45  ;;  %v2343_v30 = vadd.f32 %v7847_v41, %v2342_v32 }
 0x4d5   : > { %v3114_v24 = vpop.permute.xlu1 %3113  ;;  %v2845_v42 = vadd.f32 %v2228_v35, %v9209_v57  ;;  %v3329_v5 = vrot.slane %v8075_v60, %v7574_v33  ;;  %v3467_v58 = vsel %vm1420_vm1, %v9060_v11, 0.0  ;;  %v8118_v45 = vcombine.high %v7943_v4, %v7943_v4 }
 0x4d6   : > { %v8084_v25 = vadd.f32 %v3394_v34, %v3188_v56  ;;  %v3167_v51 = vmul.f32 %v3114_v24, %v2789_v59  ;;  %v8100_v34 = vpop.f32.mrf.mxu1  ;;  %v8108_v56 = vrot.slane %v4354_v55, %v7574_v33  ;;  %v2244_v24 = vadd.f32 %v7677_v49, %v7691_v1  ;;  %v3126_v55 = vpop.permute.xlu0 %3125 }
 0x4d7   : > { %v3089_v32 = vmul.f32 %v3042_v22, %v2845_v42  ;;  %v9210_v1 = vunpack.c.l.bf16 %v7364_v20  ;;  %v3333_v42 = vrot.slane %v3254_v18, %v7574_v33  ;;  %v9061_v44 = vunpack.c.l.bf16 %v7975_v40 }
 0x4d8   : > { %v8098_v3 = vpack.c.bf16 %v8084_v25, %v8084_v25  ;;  %v3183_v59 = vadd.f32 %v3167_v51, %v3087_v31  ;;  %v8126_v51 = vcombine.high %v8036_v50, %v8036_v50  ;;  %v2812_v22 = vpop.f32.mrf.mxu1  ;;  %v2802_v31 = vadd.f32 %v7729_v7, %v7733_v9 }
 0x4d9   : > { %v3122_v35 = vpop.permute.xlu1 %3121  ;;  %v4228_v20 = vpack.i.b16 %v4212_v36, %v4212_v36  ;;  %v3345_v39 = vrot.slane %v7864_v23, %v7574_v33 }
 0x4da   : > { %3443 = vst.msk [vmem:[%s7929_s14 + $0x20] sm:$0xf] %vm3434_vm11, %v8098_v3  ;;  %v3405_v16 = vadd.f32 %v3389_v53, %v3183_v59  ;;  %v3169_v17 = vmul.f32 %v3122_v35, %v2797_v19  ;;  %v2348_v19 = vadd.f32 %v7962_v47, %v7847_v41  ;;  %v2846_v53 = vadd.f32 %v2233_v10, %v9210_v1 }
 0x4db   : > { %v3391_v59 = vmul.f32 %v3329_v5, %v2343_v30  ;;  %v3468_v35 = vrot.slane %v3467_v58, 4  ;;  %v4214_v30 = vunpack.i.h.s16 %v8118_v45  ;;  %v4216_v7 = vunpack.i.h.s16 %v8126_v51  ;;  %v9211_v5 = vld [vmem:[#allocation81_spill] sm:$0xff] }
 0x4dc   : > { %v8130_v57 = vpack.c.bf16 %v3405_v16, %v3405_v16  ;;  %v8133_v4 = vpack.c.bf16 %v3405_v16, %v7996_v15  ;;  %v3185_v11 = vadd.f32 %v3169_v17, %v3089_v32  ;;  %v2359_v16 = vadd.f32 %v7847_v41, %v9211_v5 }
 0x4dd   : > { %v2813_v17 = vadd.f32 %v7733_v9, %v2812_v22  ;;  %v3170_v32 = vmul.f32 %v3126_v55, %v2802_v31  ;;  %v3392_v1 = vmul.f32 %v3333_v42, %v2348_v19  ;;  %v3469_v36 = vadd.f32 %v3468_v35, %v3467_v58 }
 0x4de   : > { %3438 = vst.msk [vmem:[%s7929_s14 + $0xc] sm:$0xf] %vm3434_vm11, %v8130_v57  ;;  %v4412_v47 = vmul.bf16 %v8012_v12, %v8130_v57  ;;  %v3046_v15 = vpop.permute.xlu1 %3045  ;;  %6027 = vmatmul.mubr.msk.bf16.vlgmr.msra.gmra.mxu1 %vm1420_vm1, %v8133_v4  ;;  %v3407_v10 = vadd.f32 %v3391_v59, %v3185_v11  ;;  %v3138_v11 = vpop.permute.xlu0 %3137  ;;  %v9212_v59 = vld [vmem:[#allocation63_spill] sm:$0xff]  ;;  %v3474_v5 = vsel %vm1420_vm1, %v9061_v44, 0.0  ;;  %v8174_v58 = vrot.slane %v4340_v61, %v7574_v33 }
 0x4df   : > { %v3090_v18 = vmul.f32 %v3046_v15, %v2846_v53  ;;  %v9213_v15 = vunpack.c.l.bf16 %v9212_v59  ;;  %v4230_v31 = vpack.i.b16 %v4214_v30, %v4214_v30  ;;  %v5739_v19 = vpack.i.b16 %v8126_v51, %v8126_v51  ;;  %v9214_v61 = vld [vmem:[#allocation75_spill] sm:$0xff] }
 0x4e0   : > { %v8156_v12 = vcombine.low %v4411_v37, %v4412_v47  ;;  %v8158_v53 = vpack.c.bf16 %v3407_v10, %v3407_v10  ;;  %v8166_v22 = vpack.c.bf16 %v3407_v10, %v8022_v26  ;;  %v3173_v26 = vmul.f32 %v3138_v11, %v2813_v17 }
 0x4e1   : > { %v2849_v54 = vadd.f32 %v2244_v24, %v9213_v15  ;;  %v3186_v55 = vadd.f32 %v3170_v32, %v3090_v18  ;;  %v5738_v24 = vpack.i.b16 %v8118_v45, %v8118_v45  ;;  %v2249_v47 = vadd.f32 %v9214_v61, %v7677_v49  ;;  %v5978_v15 = vpop.f32.mrf.mxu1  ;;  %v9219_v61 = vld [vmem:[#allocation64_spill] sm:$0xff] }
 0x4e2   : > { %v3058_v37 = vpop.permute.xlu1 %3057  ;;  %3440 = vst.msk [vmem:[%s7929_s14 + $0x14] sm:$0xf] %vm3434_vm11, %v8158_v53  ;;  %6030 = vmatprep.mubr.msk.bf16.mxu1 %vm1420_vm1, %v8166_v22  ;;  %v4414_v23 = vmul.bf16 %v8078_v52, %v8158_v53  ;;  %v3470_v10 = vrot.slane %v3469_v36, 2  ;;  %v3475_v45 = vrot.slane %v3474_v5, 4  ;;  %v4232_v18 = vpack.i.b16 %v4216_v7, %v4216_v7 }
 0x4e3   : > { %v8180_v42 = vadd.f32 %v3392_v1, %v3186_v55  ;;  %v3093_v35 = vmul.f32 %v3058_v37, %v2849_v54  ;;  %v3395_v30 = vmul.f32 %v3345_v39, %v2359_v16  ;;  %v9215_v32 = vmul.bf16 %v8029_v43, %v8045_v14 }
 0x4e4   : > { %v9217_v52 = vpack.i.b16 %v8053_v8, %v8053_v8  ;;  %v9218_v7 = vpack.i.b16 %v8036_v50, %v8036_v50  ;;  %v4280_v59 = vrot.slane %v4228_v20, %v7574_v33  ;;  %v4284_v16 = vrot.slane %v5738_v24, %v7574_v33 }
 0x4e5   : > { %v8190_v51 = vpack.c.bf16 %v8180_v42, %v8180_v42  ;;  %v3189_v17 = vadd.f32 %v3173_v26, %v3093_v35  ;;  %v8195_v1 = vcombine.low %v9215_v32, %v4414_v23  ;;  %v9063_v55 = vunpack.c.l.bf16 %v8007_v62  ;;  %v9229_v62 = vld [vmem:[#allocation74_spill] sm:$0xff] }
 0x4e6   : > { %v3062_v54 = vpop.permute.xlu1 %3061  ;;  %v4366_v49 = vrot.slane %v9217_v52, %v7574_v33  ;;  %v4276_v11 = vrot.slane %v9218_v7, %v7574_v33  ;;  %v4288_v39 = vrot.slane %v4230_v31, %v7574_v33  ;;  %v3471_v37 = vadd.f32 %v3470_v10, %v3469_v36  ;;  %v2825_v10 = vpop.f32.mrf.mxu1 }
 0x4e7   : > { %9216 = vst [vmem:[#allocation81_spill] sm:$0xff] %v8195_v1  ;;  %3441 = vst.msk [vmem:[%s7929_s14 + $0x18] sm:$0xf] %vm3434_vm11, %v8190_v51  ;;  %v3411_v43 = vadd.f32 %v3395_v30, %v3189_v17  ;;  %v3476_v50 = vadd.f32 %v3475_v45, %v3474_v5  ;;  %v4292_v26 = vrot.slane %v5739_v19, %v7574_v33  ;;  %v9220_v30 = vunpack.c.l.bf16 %v9219_v61  ;;  %v8230_v45 = vpop.permute.xlu0 %3049 }
 0x4e8   : > { %v4296_v20 = vrot.slane %v4232_v18, %v7574_v33  ;;  %v2818_v24 = vadd.f32 %v7994_v46, %v7733_v9  ;;  %v4347_v36 = vpack.i.b16 %v8069_v27, %v8069_v27  ;;  %v4368_v5 = vpack.i.b16 %v4276_v11, %v4276_v11 }
 0x4e9   : > { %v8218_v35 = vpack.c.bf16 %v3411_v43, %v3411_v43  ;;  %v8221_v23 = vpack.c.bf16 %v3411_v43, %v8084_v25  ;;  %v2850_v17 = vadd.f32 %v2249_v47, %v9220_v30  ;;  %v4375_v31 = vpack.i.b16 %v4280_v59, %v4280_v59 }
 0x4ea   : > { %v4382_v19 = vpack.i.b16 %v4284_v16, %v4284_v16  ;;  %v3481_v46 = vsel %vm1420_vm1, %v9063_v55, 0.0  ;;  %v3472_v52 = vrot.slane %v3471_v37, 1  ;;  %v3477_v7 = vrot.slane %v3476_v50, 2 }
 0x4eb   : > { %v3142_v32 = vpop.permute.xlu1 %3141  ;;  %3444 = vst.msk [vmem:[%s7929_s14 + $0x24] sm:$0xf] %vm3434_vm11, %v8218_v35  ;;  %v3094_v25 = vmul.f32 %v3062_v54, %v2850_v17  ;;  %v4418_v47 = vmul.bf16 %v4366_v49, %v8218_v35  ;;  %v4389_v27 = vpack.i.b16 %v4288_v39, %v4288_v39  ;;  %v4396_v11 = vpack.i.b16 %v4292_v26, %v4292_v26 }
 0x4ec   : > { %v3174_v18 = vmul.f32 %v3142_v32, %v2818_v24  ;;  %v9221_v16 = vmul.bf16 %v8108_v56, %v8098_v3  ;;  %v4403_v61 = vpack.i.b16 %v4296_v20, %v4296_v20  ;;  %v3482_v30 = vrot.slane %v3481_v46, 4  ;;  %v5979_v24 = vpop.f32.mrf.mxu1 }
 0x4ed   : > { %v8242_v44 = vrot.slane %v4347_v36, %v7574_v33  ;;  %v8245_v54 = vrot.slane %v4368_v5, %v7574_v33  ;;  %v9062_v49 = vunpack.c.l.bf16 %v8045_v14  ;;  %v8252_v17 = vrot.slane %v4375_v31, %v7574_v33  ;;  %v3146_v31 = vpop.permute.xlu0 %3145 }
 0x4ee   : > { %v3190_v59 = vadd.f32 %v3174_v18, %v3094_v25  ;;  %v8239_v43 = vcombine.low %v9221_v16, %v4418_v47  ;;  %v8255_v56 = vrot.slane %v4382_v19, %v7574_v33  ;;  %v3473_v20 = vadd.f32 %v3472_v52, %v3471_v37  ;;  %v9223_v25 = vld [vmem:[#allocation82_spill] sm:$0xff] }
 0x4ef   : > { %v3478_v32 = vadd.f32 %v3477_v7, %v3476_v50  ;;  %v8258_v36 = vrot.slane %v4389_v27, %v7574_v33  ;;  %v8261_v5 = vrot.slane %v4396_v11, %v7574_v33  ;;  %v3256_v18 = vcombine.high %v8075_v60, %v8075_v60  ;;  %v2828_v60 = vpop.f32.mrf.mxu1 }
 0x4f0   : > { %9222 = vst [vmem:[#allocation63_spill] sm:$0xff] %v8239_v43  ;;  %v8249_v39 = vadd.f32 %v7902_v6, %v3190_v59  ;;  %v3070_v26 = vpop.permute.xlu1 %3069  ;;  %v2375_v6 = vadd.f32 %v7847_v41, %v9223_v25  ;;  %v8272_v37 = vrot.slane %v4403_v61, %v7574_v33  ;;  %v2821_v50 = vadd.f32 %v8100_v34, %v7733_v9  ;;  %v9224_v59 = vld [vmem:[#allocation66_spill] sm:$0xff] }
 0x4f1   : > { %v8277_v47 = vadd.f32 %v5978_v15, %v7733_v9  ;;  %v2826_v52 = vadd.f32 %v7733_v9, %v2825_v10  ;;  %v3483_v7 = vadd.f32 %v3482_v30, %v3481_v46  ;;  %v2837_v27 = vadd.f32 %v5979_v24, %v7733_v9  ;;  %v9226_v61 = vld [vmem:[#allocation78_spill] sm:$0xff] }
 0x4f2   : > { %v8269_v19 = vpack.c.bf16 %v8249_v39, %v8249_v39  ;;  %v3495_v11 = vsel %vm1420_vm1, %v9062_v49, 0.0  ;;  %v9225_v16 = vunpack.c.l.bf16 %v9224_v59  ;;  %v2351_v10 = vadd.f32 %v8055_v21, %v7847_v41  ;;  %v9227_v15 = vld [vmem:[#allocation62_spill] sm:$0xff]  ;;  %v3154_v21 = vpop.permute.xlu0 %3153 }
 0x4f3   : > { %v3579_v46 = vmul.f32 0.125, %v3473_v20  ;;  %v3479_v30 = vrot.slane %v3478_v32, 1  ;;  %v3337_v49 = vrot.slane %v3256_v18, %v7574_v33  ;;  %v3361_v59 = vrot.slane %v7886_v29, %v7574_v33  ;;  %v9233_v18 = vld [vmem:[#allocation67_spill] sm:$0xff]  ;;  %v9238_v33 = vld [vmem:[#allocation77_spill] sm:$0xff] }
 0x4f4   : > { %3445 = vst.msk [vmem:[%s7929_s14 + $0x28] sm:$0xf] %vm3434_vm11, %v8269_v19  ;;  %v2852_v34 = vadd.f32 %v9226_v61, %v9225_v16  ;;  %v2829_v16 = vadd.f32 %v7733_v9, %v2828_v60  ;;  %v3484_v61 = vrot.slane %v3483_v7, 2  ;;  %v3496_v14 = vrot.slane %v3495_v11, 4 }
 0x4f5   : > { %v3150_v25 = vpop.permute.xlu1 %3149  ;;  %v9228_v40 = vunpack.c.l.bf16 %v9227_v15  ;;  %v9231_v24 = vunpack.c.l.bf16 %v9230_v63  ;;  %v3595_v60 = vpack.c.bf16 %v3579_v46, %v3579_v46  ;;  %v3480_v1 = vadd.f32 %v3479_v30, %v3478_v32  ;;  %v9242_v63 = vld [vmem:[#allocation79_spill] sm:$0xff] }
 0x4f6   : > { %v3096_v55 = vmul.f32 %v3070_v26, %v2852_v34  ;;  %v3176_v8 = vmul.f32 %v3150_v25, %v2826_v52  ;;  %v9234_v26 = vunpack.c.l.bf16 %v9233_v18  ;;  %v9235_v52 = vld [vmem:[#allocation80_spill] sm:$0xff]  ;;  %v9239_v15 = vunpack.c.l.bf16 %v8098_v3 }
 0x4f7   : > { %v2847_v41 = vadd.f32 %v9229_v62, %v9228_v40  ;;  %v2851_v43 = vadd.f32 %v9232_v38, %v9231_v24  ;;  %v9236_v25 = vld [vmem:[#allocation68_spill] sm:$0xff]  ;;  %v9240_v62 = vld [vmem:[#allocation69_spill] sm:$0xff]  ;;  %v8321_v38 = vmul.f32 %v3337_v49, %v2351_v10  ;;  %v9075_v24 = vunpack.c.l.bf16 %v8130_v57 }
 0x4f8   : > { %v3192_v20 = vadd.f32 %v3176_v8, %v3096_v55  ;;  %v2853_v34 = vadd.f32 %v9235_v52, %v9234_v26  ;;  %v9237_v29 = vunpack.c.l.bf16 %v9236_v25  ;;  %v3523_v40 = vsel %vm1420_vm1, %v9239_v15, 0.0 }
 0x4f9   : > { %v9241_v55 = vunpack.c.l.bf16 %v9240_v62  ;;  %v8325_v52 = vadd.f32 %v3484_v61, %v3483_v7  ;;  %v3497_v32 = vadd.f32 %v3496_v14, %v3495_v11  ;;  %v3175_v46 = vmul.f32 %v3146_v31, %v2821_v50 }
 0x4fa   : > { %v8311_v9 = vadd.f32 %v9238_v33, %v9237_v29  ;;  %v3414_v18 = vadd.f32 %v7907_v13, %v3192_v20  ;;  %v3066_v26 = vpop.permute.xlu1 %3065  ;;  %v3399_v33 = vmul.f32 %v3361_v59, %v2375_v6  ;;  %v3524_v25 = vrot.slane %v3523_v40, 4 }
 0x4fb   : > { %v8319_v8 = vadd.f32 %v9242_v63, %v9241_v55  ;;  %v3095_v30 = vmul.f32 %v3066_v26, %v2851_v43  ;;  %v9073_v29 = vunpack.c.l.bf16 %v8218_v35  ;;  %v9072_v15 = vunpack.c.l.bf16 %v8269_v19  ;;  %v3162_v43 = vpop.permute.xlu0 %3161 }
 0x4fc   : > { %v8329_v62 = vpack.c.bf16 %v3414_v18, %v3414_v18  ;;  %v8331_v49 = vunpack.c.l.b16 %v3595_v60  ;;  %v8333_v10 = vmul.f32 0.125, %v3480_v1  ;;  %v8336_v13 = vmul.f32 %v8230_v45, %v2847_v41 }
 0x4fd   : > { %v3191_v6 = vadd.f32 %v3175_v46, %v3095_v30  ;;  %v3488_v14 = vsel %vm1420_vm1, %v9075_v24, 0.0  ;;  %v9078_v31 = vunpack.c.l.bf16 %v8158_v53  ;;  %v9074_v50 = vunpack.c.l.bf16 %v8190_v51 }
 0x4fe   : > { %3447 = vst.msk [vmem:[%s7929_s14 + $0x30] sm:$0xf] %vm3434_vm11, %v8329_v62  ;;  %v3074_v7 = vpop.permute.xlu1 %3073  ;;  %v4421_v1 = vmul.bf16 %v8255_v56, %v8329_v62  ;;  %v3486_v45 = vrot.slane %v8325_v52, 1  ;;  %v3177_v11 = vmul.f32 %v3154_v21, %v2829_v16  ;;  %v3498_v41 = vrot.slane %v3497_v32, 2 }
 0x4ff   : > { %v3413_v59 = vadd.f32 %v7914_v2, %v3191_v6  ;;  %v3097_v61 = vmul.f32 %v3074_v7, %v2853_v34  ;;  %v3525_v20 = vadd.f32 %v3524_v25, %v3523_v40  ;;  %v3530_v60 = vsel %vm1420_vm1, %v9073_v29, 0.0 }
 0x500   : > { %v3537_v55 = vsel %vm1420_vm1, %v9072_v15, 0.0  ;;  %v3596_v56 = vpack.c.bf16 %v8333_v10, %v8333_v10  ;;  %v3489_v63 = vrot.slane %v3488_v14, 4  ;;  %v3179_v26 = vmul.f32 %v3162_v43, %v2837_v27 }
 0x501   : > { %v8358_v16 = vpack.c.bf16 %v3413_v59, %v3413_v59  ;;  %v3502_v2 = vsel %vm1420_vm1, %v9078_v31, 0.0  ;;  %v3509_v21 = vsel %vm1420_vm1, %v9074_v50, 0.0  ;;  %v8367_v34 = vpack.c.bf16 %v3413_v59, %v8249_v39 }
 0x502   : > { %v3193_v40 = vadd.f32 %v3177_v11, %v3097_v61  ;;  %v3078_v46 = vpop.permute.xlu1 %3077  ;;  %v3531_v30 = vrot.slane %v3530_v60, 4  ;;  %v3538_v25 = vrot.slane %v3537_v55, 4  ;;  %v9077_v10 = vunpack.c.l.bf16 %v8329_v62 }
 0x503   : > { %9243 = vst [vmem:[#allocation75_spill] sm:$0xff] %v8358_v16  ;;  %3446 = vst.msk [vmem:[%s7929_s14 + $0x2c] sm:$0xf] %vm3434_vm11, %v8358_v16  ;;  %v9076_v27 = vunpack.c.l.bf16 %v8358_v16  ;;  %v3499_v6 = vadd.f32 %v3498_v41, %v3497_v32  ;;  %v3526_v43 = vrot.slane %v3525_v20, 2  ;;  %v4420_v15 = vmul.bf16 %v8252_v17, %v8358_v16 }
 0x504   : > { %v3415_v7 = vadd.f32 %v3399_v33, %v3193_v40  ;;  %v3490_v39 = vadd.f32 %v3489_v63, %v3488_v14  ;;  %v3503_v59 = vrot.slane %v3502_v2, 4  ;;  %v3510_v11 = vrot.slane %v3509_v21, 4 }
 0x505   : > { %v3544_v61 = vsel %vm1420_vm1, %v9076_v27, 0.0  ;;  %v9245_v32 = vmul.bf16 %v8245_v54, %v8269_v19  ;;  %v3532_v41 = vadd.f32 %v3531_v30, %v3530_v60  ;;  %v3539_v40 = vadd.f32 %v3538_v25, %v3537_v55 }
 0x506   : > { %v3545_v29 = vrot.slane %v3544_v61, 4  ;;  %v8379_v50 = vpack.c.bf16 %v3415_v7, %v3415_v7  ;;  %v8381_v24 = vpack.c.bf16 %v3415_v7, %v3414_v18  ;;  %v3551_v17 = vsel %vm1420_vm1, %v9077_v10, 0.0 }
 0x507   : > { %v8386_v33 = vcombine.low %v9245_v32, %v4420_v15  ;;  %v3098_v14 = vmul.f32 %v3078_v46, %v8311_v9  ;;  %v3158_v63 = vpop.permute.xlu1 %3157  ;;  %v3487_v15 = vadd.f32 %v3486_v45, %v8325_v52  ;;  %v3527_v60 = vadd.f32 %v3526_v43, %v3525_v20  ;;  %v9246_v52 = vld [vmem:[#allocation87_spill] sm:$0xff] }
 0x508   : > { %9244 = vst [vmem:[#allocation64_spill] sm:$0xff] %v8379_v50  ;;  %v3546_v27 = vadd.f32 %v3545_v29, %v3544_v61  ;;  %3448 = vst.msk [vmem:[%s7929_s14 + $0x34] sm:$0xf] %vm3434_vm11, %v8379_v50  ;;  %v9079_v18 = vunpack.c.l.bf16 %v8379_v50  ;;  %v3178_v7 = vmul.f32 %v3158_v63, %v8277_v47  ;;  %v4422_v54 = vmul.bf16 %v8258_v36, %v8379_v50 }
 0x509   : > { %v3491_v55 = vrot.slane %v3490_v39, 2  ;;  %v3504_v30 = vadd.f32 %v3503_v59, %v3502_v2  ;;  %v3552_v25 = vrot.slane %v3551_v17, 4  ;;  %v3500_v61 = vrot.slane %v3499_v6, 1 }
 0x50a   : > { %v3558_v9 = vsel %vm1420_vm1, %v9079_v18, 0.0  ;;  %v3194_v29 = vadd.f32 %v3178_v7, %v3098_v14  ;;  %v8403_v46 = vcombine.low %v4421_v1, %v4422_v54  ;;  %v3511_v32 = vadd.f32 %v3510_v11, %v3509_v21 }
 0x50b   : > { %v3533_v10 = vrot.slane %v3532_v41, 2  ;;  %v3559_v47 = vrot.slane %v3558_v9, 4  ;;  %v8405_v63 = vunpack.c.l.b16 %v3596_v56  ;;  %v3540_v36 = vrot.slane %v3539_v40, 2 }
 0x50c   : > { %v3547_v31 = vrot.slane %v3546_v27, 2  ;;  %v3416_v45 = vadd.f32 %v9246_v52, %v3194_v29  ;;  %v3082_v20 = vpop.permute.xlu1 %3081  ;;  %v3528_v2 = vrot.slane %v3527_v60, 1  ;;  %v3492_v43 = vadd.f32 %v3491_v55, %v3490_v39 }
 0x50d   : > { %v3560_v59 = vadd.f32 %v3559_v47, %v3558_v9  ;;  %v3099_v18 = vmul.f32 %v3082_v20, %v8319_v8  ;;  %v8409_v14 = vmul.f32 0.125, %v3487_v15  ;;  %v3505_v1 = vrot.slane %v3504_v30, 2 }
 0x50e   : > { %v3553_v7 = vadd.f32 %v3552_v25, %v3551_v17  ;;  %v8411_v21 = vpack.c.bf16 %v3416_v45, %v3416_v45  ;;  %v8413_v11 = vadd.f32 %v3500_v61, %v3499_v6  ;;  %v3512_v56 = vrot.slane %v3511_v32, 2 }
 0x50f   : > { %v3534_v54 = vadd.f32 %v3533_v10, %v3532_v41  ;;  %v3195_v50 = vadd.f32 %v3179_v26, %v3099_v18  ;;  %v3541_v16 = vadd.f32 %v3540_v36, %v3539_v40  ;;  %v3548_v29 = vadd.f32 %v3547_v31, %v3546_v27  ;;  %v9248_v26 = vld [vmem:[#allocation83_spill] sm:$0xff] }
 0x510   : > { %9247 = vst [vmem:[#allocation82_spill] sm:$0xff] %v8411_v21  ;;  %3449 = vst.msk [vmem:[%s7929_s14 + $0x38] sm:$0xf] %vm3434_vm11, %v8411_v21  ;;  %v9082_v39 = vunpack.c.l.bf16 %v8411_v21  ;;  %v4423_v8 = vmul.bf16 %v8261_v5, %v8411_v21  ;;  %v3529_v15 = vadd.f32 %v3528_v2, %v3527_v60  ;;  %v3493_v55 = vrot.slane %v3492_v43, 1 }
 0x511   : > { %v3561_v17 = vrot.slane %v3560_v59, 2  ;;  %v3417_v25 = vadd.f32 %v7948_v0, %v3195_v50  ;;  %v3130_v6 = vpop.permute.xlu1 %3129  ;;  %v3506_v9 = vadd.f32 %v3505_v1, %v3504_v30  ;;  %v3554_v10 = vrot.slane %v3553_v7, 2 }
 0x512   : > { %v3565_v31 = vsel %vm1420_vm1, %v9082_v39, 0.0  ;;  %v3171_v27 = vmul.f32 %v3130_v6, %v9248_v26  ;;  %v3535_v41 = vrot.slane %v3534_v54, 1  ;;  %v3513_v60 = vadd.f32 %v3512_v56, %v3511_v32 }
 0x513   : > { %v3566_v40 = vrot.slane %v3565_v31, 4  ;;  %v8426_v18 = vpack.c.bf16 %v3417_v25, %v3417_v25  ;;  %v8428_v5 = vpack.c.bf16 %v3417_v25, %v3416_v45  ;;  %v3542_v61 = vrot.slane %v3541_v16, 1 }
 0x514   : > { %v3549_v47 = vrot.slane %v3548_v29, 1  ;;  %v3187_v0 = vadd.f32 %v3171_v27, %v8336_v13  ;;  %v3562_v50 = vadd.f32 %v3561_v17, %v3560_v59  ;;  %v3494_v20 = vadd.f32 %v3493_v55, %v3492_v43 }
 0x515   : > { %v3567_v30 = vadd.f32 %v3566_v40, %v3565_v31  ;;  %3450 = vst.msk [vmem:[%s7929_s14 + $0x3c] sm:$0xf] %vm3434_vm11, %v8426_v18  ;;  %v9094_v36 = vunpack.c.l.bf16 %v8426_v18  ;;  %v4424_v52 = vmul.bf16 %v8272_v37, %v8426_v18  ;;  %v3507_v2 = vrot.slane %v3506_v9, 1 }
 0x516   : > { %v3555_v1 = vadd.f32 %v3554_v10, %v3553_v7  ;;  %v3409_v32 = vadd.f32 %v8321_v38, %v3187_v0  ;;  %v3536_v45 = vadd.f32 %v3535_v41, %v3534_v54  ;;  %v3543_v17 = vadd.f32 %v3542_v61, %v3541_v16 }
 0x517   : > { %v3568_v56 = vrot.slane %v3567_v30, 2  ;;  %v3572_v13 = vsel %vm1420_vm1, %v9094_v36, 0.0  ;;  %v8441_v59 = vcombine.low %v4423_v8, %v4424_v52  ;;  %v3514_v43 = vrot.slane %v3513_v60, 1 }
 0x518   : > { %v3573_v25 = vrot.slane %v3572_v13, 4  ;;  %v8443_v6 = vpack.c.bf16 %v3409_v32, %v3409_v32  ;;  %v8446_v37 = vpack.c.bf16 %v3409_v32, %v8180_v42  ;;  %v3550_v7 = vadd.f32 %v3549_v47, %v3548_v29 }
 0x519   : > { %v3563_v55 = vrot.slane %v3562_v50, 1  ;;  %v3569_v10 = vadd.f32 %v3568_v56, %v3567_v30  ;;  %v3556_v38 = vrot.slane %v3555_v1, 1  ;;  %v3587_v8 = vmul.f32 0.125, %v3529_v15 }
 0x51a   : > { %v3574_v54 = vadd.f32 %v3573_v25, %v3572_v13  ;;  %3442 = vst.msk [vmem:[%s7929_s14 + $0x1c] sm:$0xf] %vm3434_vm11, %v8443_v6  ;;  %v9083_v31 = vunpack.c.l.bf16 %v8443_v6  ;;  %6031 = vmatmul.mubr.msk.bf16.gmra.mxu1 %vm1420_vm1, %v8446_v37  ;;  %v4416_v16 = vmul.bf16 %v8242_v44, %v8443_v6  ;;  %v3582_v42 = vmul.f32 0.125, %v3494_v20 }
 0x51b   : > { %v3588_v26 = vmul.f32 0.125, %v3536_v45  ;;  %v3570_v27 = vrot.slane %v3569_v10, 1  ;;  %6034 = vmatprep.mubr.msk.bf16.mxu1 %vm1420_vm1, %v8221_v23  ;;  %v3589_v29 = vmul.f32 0.125, %v3543_v17  ;;  %v9249_v61 = vmul.bf16 %v8174_v58, %v8190_v51 }
 0x51c   : > { %v3575_v41 = vrot.slane %v3574_v54, 2  ;;  %v3516_v40 = vsel %vm1420_vm1, %v9083_v31, 0.0  ;;  %v3508_v0 = vadd.f32 %v3507_v2, %v3506_v9  ;;  %v3590_v44 = vmul.f32 0.125, %v3550_v7 }
 0x51d   : > { %v8464_v47 = vcombine.low %v9249_v61, %v4416_v16  ;;  %v3564_v15 = vadd.f32 %v3563_v55, %v3562_v50  ;;  %v3517_v30 = vrot.slane %v3516_v40, 4  ;;  %v3515_v52 = vadd.f32 %v3514_v43, %v3513_v60 }
 0x51e   : > { %v3557_v20 = vadd.f32 %v3556_v38, %v3555_v1  ;;  %v3571_v32 = vadd.f32 %v3570_v27, %v3569_v10  ;;  %v3576_v45 = vadd.f32 %v3575_v41, %v3574_v54  ;;  %v3597_v56 = vpack.c.bf16 %v8409_v14, %v8409_v14 }
 0x51f   : > { %v3583_v13 = vmul.f32 0.125, %v8413_v11  ;;  %v3604_v17 = vpack.c.bf16 %v3588_v26, %v3588_v26  ;;  %v3518_v25 = vadd.f32 %v3517_v30, %v3516_v40  ;;  %v3603_v39 = vpack.c.bf16 %v3587_v8, %v3587_v8 }
 0x520   : > { %v3598_v31 = vpack.c.bf16 %v3582_v42, %v3582_v42  ;;  %v3605_v58 = vpack.c.bf16 %v3589_v29, %v3589_v29  ;;  %v3577_v16 = vrot.slane %v3576_v45, 1  ;;  %v3584_v61 = vmul.f32 0.125, %v3508_v0 }
 0x521   : > { %v3606_v9 = vpack.c.bf16 %v3590_v44, %v3590_v44  ;;  %v3592_v2 = vmul.f32 0.125, %v3564_v15  ;;  %v3519_v50 = vrot.slane %v3518_v25, 2  ;;  %v3585_v7 = vmul.f32 0.125, %v3515_v52 }
 0x522   : > { %v3591_v60 = vmul.f32 0.125, %v3557_v20  ;;  %v3593_v1 = vmul.f32 0.125, %v3571_v32  ;;  %v3578_v43 = vadd.f32 %v3577_v16, %v3576_v45  ;;  %6035 = vmatmul.mubr.msk.bf16.gmra.mxu1 %vm1420_vm1, %v8367_v34  ;;  %v3696_v14 = vsel %vm1923_vm2, %v8405_v63, %v8331_v49 }
 0x523   : > { %v3682_v11 = vunpack.c.l.b16 %v3597_v56  ;;  %v3689_v55 = vunpack.c.l.b16 %v3604_v17  ;;  %v3520_v10 = vadd.f32 %v3519_v50, %v3518_v25  ;;  %6038 = vmatprep.mubr.msk.bf16.mxu1 %vm1420_vm1, %v8381_v24  ;;  %v3688_v38 = vunpack.c.l.b16 %v3603_v39 }
 0x524   : > { %v3683_v54 = vunpack.c.l.b16 %v3598_v31  ;;  %v3690_v8 = vunpack.c.l.b16 %v3605_v58  ;;  %v3594_v42 = vmul.f32 0.125, %v3578_v43  ;;  %v3600_v26 = vpack.c.bf16 %v3584_v61, %v3584_v61 }
 0x525   : > { %v3691_v27 = vunpack.c.l.b16 %v3606_v9  ;;  %v3608_v29 = vpack.c.bf16 %v3592_v2, %v3592_v2  ;;  %v3521_v41 = vrot.slane %v3520_v10, 1  ;;  %v3599_v40 = vpack.c.bf16 %v3583_v13, %v3583_v13 }
 0x526   : > { %v3601_v0 = vpack.c.bf16 %v3585_v7, %v3585_v7  ;;  %v3607_v44 = vpack.c.bf16 %v3591_v60, %v3591_v60  ;;  %v3609_v15 = vpack.c.bf16 %v3593_v1, %v3593_v1  ;;  %v3697_v49 = vsel %vm1925_vm3, %v3682_v11, %v3696_v14 }
 0x527   : > { %v3703_v63 = vsel %vm1923_vm2, %v3689_v55, %v3688_v38  ;;  %v3522_v30 = vadd.f32 %v3521_v41, %v3520_v10  ;;  %v3610_v52 = vpack.c.bf16 %v3594_v42, %v3594_v42  ;;  %v3698_v39 = vsel %vm1927_vm4, %v3683_v54, %v3697_v49 }
 0x528   : > { %v3704_v20 = vsel %vm1925_vm3, %v3690_v8, %v3703_v63  ;;  %v3685_v31 = vunpack.c.l.b16 %v3600_v26  ;;  %v3693_v32 = vunpack.c.l.b16 %v3608_v29  ;;  %v3684_v17 = vunpack.c.l.b16 %v3599_v40  ;;  %v6349_v26 = vld [vmem:[%s9250_s1] sm:$0xff]   ;;  %v5697_v40 = vld [vmem:[#allocation17] ss:$0 sm:$0xff]  ;;  %s9253_s1 = sld [smem:[#allocation54_spill]] }
 0x529   : > { %v3586_v45 = vmul.f32 0.125, %v3522_v30  ;;  %v3705_v56 = vsel %vm1927_vm4, %v3691_v27, %v3704_v20  ;;  %v3686_v13 = vunpack.c.l.b16 %v3601_v0  ;;  %v3692_v25 = vunpack.c.l.b16 %v3607_v44  ;;  %v6350_v27 = vld [vmem:[%s9251_s3 + $0x8] sm:$0xff]  }
 0x52a   : > { %v3694_v58 = vunpack.c.l.b16 %v3609_v15  ;;  %6039 = vmatmul.mubr.msk.bf16.gmra.mxu1 %vm1420_vm1, %v8428_v5  ;;  %v3695_v61 = vunpack.c.l.b16 %v3610_v52  ;;  %v3699_v9 = vsel %vm1929_vm5, %v3684_v17, %v3698_v39  ;;  %v9252_v10 = vmov 0.0  }
 0x52b   : > { %v3602_v16 = vpack.c.bf16 %v3586_v45, %v3586_v45  ;;  %v3706_v2 = vsel %vm1929_vm5, %v3692_v25, %v3705_v56  ;;  %v3700_v7 = vsel %vm1931_vm6, %v3685_v31, %v3699_v9  ;;  %v6351_v31 = vld [vmem:[%s9251_s3] sm:$0xff]   ;;  %s9256_s3 = sld [smem:[#allocation56_spill]] }
 0x52c   : > { %v3707_v60 = vsel %vm1931_vm6, %v3693_v32, %v3706_v2  ;;  %v3701_v1 = vsel %vm1933_vm7, %v3686_v13, %v3700_v7  ;;  %v6352_v32 = vld [vmem:[#allocation20 + $0x8] sm:$0xff]   ;;  %v6353_v45 = vld [vmem:[#allocation20] sm:$0xff]  }
 0x52d   : > { %v3687_v50 = vunpack.c.l.b16 %v3602_v16  ;;  %v3708_v43 = vsel %vm1933_vm7, %v3694_v58, %v3707_v60 }
 0x52e   : > { %v3709_v11 = vsel %vm1935_vm8, %v3695_v61, %v3708_v43 }
 0x52f   : > { %v3702_v14 = vsel %vm1935_vm8, %v3687_v50, %v3701_v1 }
 0x530   : > { %v3710_v55 = vpack.c.b16 %v3709_v11, %v3702_v14 }
 0x531   : > { %v8554_v9 = vld [vmem:[%s9256_s3] ss:$0 sm:$0xff]  ;;  %s6884_s3 = smov 3  }
 0x532   : > { %5993 = vmatmul.mubr.msk.bf16.vlgmr.msra.gmra.mxu0 %vm1420_vm1, %v3710_v55 }
 0x533   : > { %5998 = vmatprep.mubr.msk.bf16.mxu0 %vm6879_vm0, %v9252_v10  ;;  %5997 = vmatpush3.bf16.msra.mxu0 %v6349_v26 }
 0x534   : > { %6002 = vmatprep.subr.bf16.mxu0 %v6350_v27 }
 0x555   : > { %v3657_v38 = vpop.f32.mrf.mxu0 }
 0x557   : > { %v5986_v54 = vpop.f32.mrf.mxu0 }
 0x559   : > { %v3660_v8 = vpop.f32.mrf.mxu0 }
 0x55b   : > { %v5987_v42 = vpop.f32.mrf.mxu0 }
 0x5f2   : > { %v3760_v29 = vpop.f32.mrf.mxu0 }
 0x5f3   : > { %v3761_v41 = vadd.f32 %v3760_v29, %v3657_v38 }
 0x5f4   : > { %v5994_v0 = vpop.f32.mrf.mxu0 }
 0x5f5   : > { %v3773_v15 = vadd.f32 %v5697_v40, %v3761_v41 }
 0x5f6   : > { %v3763_v44 = vpop.f32.mrf.mxu0 }
 0x5f7   : > { %v3764_v49 = vadd.f32 %v3763_v44, %v3660_v8  ;;  %v3775_v52 = vmax.f32 %v3773_v15, 0.0 }
 0x5f8   : > { %v5995_v63 = vpop.f32.mrf.mxu0 }
 0x5f9   : > { %v3774_v30 = vadd.f32 %v5697_v40, %v3764_v49 }
 0x5fb   : > { %v3776_v20 = vmax.f32 %v3774_v30, 0.0  ;;  %v9260_v30 = vld [vmem:[#allocation72_spill] sm:$0xff] }
 0x5fd   : > { %v3777_v39 = vpack.c.bf16 %v3776_v20, %v3775_v52 }
 0x5ff   : > { %5999 = vmatmul.mubr.msk.bf16.vlgmr.msra.gmra.mxu0 %vm2024_vm9, %v3777_v39 }
 0x600   : > { %6003 = vmatpush3.bf16.msra.mxu0 %v6350_v27  ;;  %6006 = vmatprep.mubr.msk.bf16.mxu0 %vm1420_vm1, %v7977_v28  ;;  %v9254_v28 = vld [vmem:[#allocation81_spill] sm:$0xff] }
 0x601   : > { %6004 = vmatprep.subr.bf16.mxu0 %v6351_v31 }
 0x604   : > { %6005 = vmatpush3.bf16.msra.mxu0 %v6351_v31 }
 0x605   : > { %6042 = vmatprep.subr.bf16.mxu0 %v6352_v32 }
 0x607   : > { %6007 = vmatmul.mubr.msk.bf16.vlgmr.msra.gmra.mxu0 %vm1420_vm1, %v8133_v4  ;;  %v9255_v4 = vld [vmem:[#allocation63_spill] sm:$0xff] }
 0x608   : > { %6010 = vmatprep.mubr.msk.bf16.mxu0 %vm1420_vm1, %v8166_v22  ;;  %6043 = vmatpush3.bf16.msra.mxu0 %v6352_v32 }
 0x609   : > { %6044 = vmatprep.subr.bf16.mxu0 %v6353_v45 }
 0x60c   : > { %6045 = vmatpush3.bf16.msra.mxu0 %v6353_v45 }
 0x60f   : > { %6011 = vmatmul.mubr.msk.bf16.gmra.mxu0 %vm1420_vm1, %v8446_v37 }
 0x610   : > { %6014 = vmatprep.mubr.msk.bf16.mxu0 %vm1420_vm1, %v8221_v23 }
 0x617   : > { %6015 = vmatmul.mubr.msk.bf16.gmra.mxu0 %vm1420_vm1, %v8367_v34 }
 0x618   : > { %6018 = vmatprep.mubr.msk.bf16.mxu0 %vm1420_vm1, %v8381_v24 }
 0x61f   : > { %6019 = vmatmul.mubr.msk.bf16.gmra.mxu0 %vm1420_vm1, %v8428_v5 }
 0x620   : > { %6046 = vmatprep.mubr.msk.bf16.mxu0 %vm1420_vm1, %v8003_v48  ;;  %v5698_v48 = vld [vmem:[%s9253_s1] ss:$0 sm:$0xff]  ;;  %s9093_s1 = sshll.u32 %s7095_s2, 10 }
 0x621   : > { %s8637_s4 = scalar_lea.hbm %s7062_s9, %s9093_s1 }
 0x627   : > { %6047 = vmatmul.mubr.msk.bf16.vlgmr.msra.gmra.mxu0 %vm1420_vm1, %v8156_v12 }
 0x628   : > { %6050 = vmatprep.mubr.msk.bf16.mxu0 %vm1420_vm1, %v9254_v28 }
 0x62f   : > { %6051 = vmatmul.mubr.msk.bf16.gmra.mxu0 %vm1420_vm1, %v8464_v47 }
 0x630   : > { %6054 = vmatprep.mubr.msk.bf16.mxu0 %vm1420_vm1, %v9255_v4  ;;  %v9261_v4 = vmov 0  }
 0x637   : > { %6055 = vmatmul.mubr.msk.bf16.gmra.mxu0 %vm1420_vm1, %v8386_v33 }
 0x638   : > { %6058 = vmatprep.mubr.msk.bf16.mxu0 %vm1420_vm1, %v8403_v46 }
 0x63f   : > { %6059 = vmatmul.mubr.msk.bf16.gmra.mxu0 %vm1420_vm1, %v8441_v59 }
 0x6bf   : > { %v3827_v12 = vpop.f32.mrf.mxu0 }
 0x6c0   : > { %v3828_v22 = vadd.f32 %v5698_v48, %v3827_v12  ;;  %v9262_v12 = vld [vmem:[#allocation73_spill] sm:$0xff] }
 0x6c1   : > { %v6000_v23 = vpop.f32.mrf.mxu0 }
 0x6c2   : > { %v3834_v24 = vsel %vm2069_vm10, %v3828_v22, -inf }
 0x6c3   : > { %3835 = vmax.xlane.f32.xlu1 %v3834_v24  ;;  %v3830_v34 = vpop.f32.mrf.mxu0 }
 0x6c4   : > { %v3831_v5 = vadd.f32 %v5698_v48, %v3830_v34 }
 0x6c5   : > { %v6001_v37 = vpop.f32.mrf.mxu0 }
 0x6c6   : > { %v3837_v47 = vsel %vm2069_vm10, %v3831_v5, -inf }
 0x6c7   : > { %3838 = vmax.xlane.f32.xlu0 %v3837_v47  ;;  %v8533_v33 = vpop.f32.mrf.mxu0 }
 0x6c9   : > { %v8535_v46 = vpop.f32.mrf.mxu0 }
 0x6cb   : > { %v8537_v56 = vpop.f32.mrf.mxu0 }
 0x6cd   : > { %v8539_v59 = vpop.f32.mrf.mxu0 }
 0x6cf   : > { %v8541_v17 = vpop.f32.mrf.mxu0 }
 0x6d1   : > { %v8543_v13 = vpop.f32.mrf.mxu0 }
 0x6d3   : > { %v8545_v25 = vpop.f32.mrf.mxu0 }
 0x6d5   : > { %v8547_v58 = vpop.f32.mrf.mxu0 }
 0x6d7   : > { %v8549_v16 = vpop.f32.mrf.mxu0 }
 0x6d9   : > { %v8551_v61 = vpop.f32.mrf.mxu0 }
 0x6db   : > { %v6017_v2 = vpop.f32.mrf.mxu0 }
 0x6dc   : > { %v8557_v50 = vadd.f32 %v6017_v2, %v8554_v9  ;;  %v9263_v2 = vmov 1  }
 0x6dd   : > { %v8559_v7 = vpop.f32.mrf.mxu0 }
 0x6de   : > { %9257 = vst [vmem:[#allocation66_spill] sm:$0xff] %v8557_v50 }
 0x6df   : > { %v6020_v60 = vpop.f32.mrf.mxu0 }
 0x6e0   : > { %v8562_v1 = vadd.f32 %v6020_v60, %v8554_v9 }
 0x6e1   : > { %v4020_v43 = vpop.f32.mrf.mxu0 }
 0x6e2   : > { %9258 = vst [vmem:[#allocation78_spill] sm:$0xff] %v8562_v1  ;;  %v8565_v14 = vadd.f32 %v8554_v9, %v4020_v43 }
 0x6e3   : > { %v8567_v11 = vpop.f32.mrf.mxu0 }
 0x6e5   : > { %v4023_v55 = vpop.f32.mrf.mxu0 }
 0x6e6   : > { %v8570_v10 = vadd.f32 %v8554_v9, %v4023_v55 }
 0x6e8   : > { %9259 = vst [vmem:[#allocation62_spill] sm:$0xff] %v8570_v10 }
 0x74c   : > { %v3836_v38 = vpop.xlane.xlu1 %3835 }
 0x74d   : > { %v3840_v54 = vsub.f32 %v3828_v22, %v3836_v38 }
 0x74f   : > { %v3842_v8 = vmul.f32 1.442695, %v3840_v54 }
 0x750   : > { %v3839_v42 = vpop.xlane.xlu0 %3838 }
 0x751   : > { %6382 = vpow2.f32 %v3842_v8  ;;  %v3841_v26 = vsub.f32 %v3831_v5, %v3839_v42 }
 0x753   : > { %v3844_v27 = vmul.f32 1.442695, %v3841_v26 }
 0x755   : > { %6384 = vpow2.f32 %v3844_v27 }
 0x75e   : > { %v6383_v29 = vpop.eup %6382 }
 0x75f   : > { %v3846_v41 = vsel %vm2069_vm10, %v6383_v29, 0.0 }
 0x760   : > { %3847 = vadd.xlane.f32.xlu1 %v3846_v41 }
 0x762   : > { %v6385_v40 = vpop.eup %6384 }
 0x763   : > { %v3849_v0 = vsel %vm2069_vm10, %v6385_v40, 0.0 }
 0x764   : > { %3850 = vadd.xlane.f32.xlu0 %v3849_v0 }
 0x7e9   : > { %v3848_v44 = vpop.xlane.xlu1 %3847 }
 0x7ea   : > { %6386 = vrcp.f32 %v3848_v44 }
 0x7ed   : > { %v3851_v15 = vpop.xlane.xlu0 %3850 }
 0x7ee   : > { %6388 = vrcp.f32 %v3851_v15 }
 0x7f7   : > { %v6387_v49 = vpop.eup %6386 }
 0x7f8   : > { %v8574_v63 = vmul.f32 %v6387_v49, %v6383_v29 }
 0x7fa   : > { %4961 = vperm.xlu0 %6295, %v8574_v63   ;;  %v4629_v52 = vrot.slane %v8574_v63, %v9260_v30  ;;  %v4622_v20 = vcombine.high %v8574_v63, %v8574_v63 }
 0x7fb   : > { %v6389_v39 = vpop.eup %6388 }
 0x7fc   : > { %v8581_v31 = vmul.f32 %v6389_v39, %v6385_v40  ;;  %v4637_v32 = vcombine.high %v4629_v52, %v4629_v52  ;;  %v4645_v45 = vrot.slane %v4629_v52, %v9260_v30  ;;  %v4636_v28 = vrot.slane %v4622_v20, %v9260_v30 }
 0x7fe   : > { %4965 = vperm.xlu1 %6296, %v8581_v31   ;;  %6299 = vset.pattern.permute.xlu0 %v9261_v4  ;;  %v4659_v48 = vrot.slane %v4637_v32, %v9260_v30  ;;  %v4723_v23 = vrot.slane %v4645_v45, %v9262_v12  ;;  %v4667_v24 = vcombine.high %v4645_v45, %v4645_v45 }
 0x7ff   : > { %v4638_v34 = vcombine.high %v4636_v28, %v4636_v28  ;;  %v4678_v5 = vrot.slane %v8581_v31, %v9260_v30  ;;  %v4671_v43 = vcombine.high %v8581_v31, %v8581_v31  ;;  %v4652_v8 = vrot.slane %v4636_v28, %v9260_v30 }
 0x800   : > { %v4727_v22 = vrot.slane %v4659_v48, %v9262_v12  ;;  %v4731_v37 = vrot.slane %v4667_v24, %v9262_v12  ;;  %v4669_v15 = vcombine.high %v4659_v48, %v4659_v48 }
 0x801   : > { %v4666_v47 = vrot.slane %v4638_v34, %v9260_v30  ;;  %v4694_v60 = vrot.slane %v4678_v5, %v9260_v30  ;;  %v4685_v54 = vrot.slane %v4671_v43, %v9260_v30  ;;  %v4739_v27 = vrot.slane %v4652_v8, %v9262_v12 }
 0x802   : > { %4789 = vperm.xlu0 %6299, %v4727_v22   ;;  %6297 = vset.pattern.permute.xlu1 %v9261_v4  ;;  %v4686_v40 = vcombine.high %v4678_v5, %v4678_v5  ;;  %v4735_v39 = vrot.slane %v4669_v15, %v9262_v12  ;;  %v4668_v28 = vcombine.high %v4652_v8, %v4652_v8  ;;  %v9264_v5 = vmov 2  }
 0x803   : > { %4785 = vperm.xlu1 %6297, %v4723_v23   ;;  %v4743_v55 = vrot.slane %v4666_v47, %v9262_v12  ;;  %v4716_v38 = vcombine.high %v4694_v60, %v4694_v60  ;;  %v4701_v26 = vrot.slane %v4685_v54, %v9260_v30  ;;  %v4670_v41 = vcombine.high %v4666_v47, %v4666_v47  ;;  %v5619_v47 = vld [vmem:[#allocation8] ss:$0 sm:$0xff] }
 0x804   : > { %v4708_v44 = vrot.slane %v4686_v40, %v9260_v30  ;;  %v4687_v20 = vcombine.high %v4685_v54, %v4685_v54  ;;  %v4755_v34 = vrot.slane %v4694_v60, %v9262_v12 }
 0x805   : > { %v4763_v42 = vrot.slane %v4716_v38, %v9262_v12  ;;  %v4771_v29 = vrot.slane %v4701_v26, %v9262_v12  ;;  %v4751_v0 = vrot.slane %v4670_v41, %v9262_v12 }
 0x806   : > { %6302 = vset.pattern.permute.xlu0 %v9263_v2  ;;  %v4759_v49 = vrot.slane %v4708_v44, %v9262_v12  ;;  %v4718_v52 = vcombine.high %v4708_v44, %v4708_v44  ;;  %v4715_v45 = vrot.slane %v4687_v20, %v9260_v30 }
 0x807   : > { %4873 = vperm.xlu0 %6302, %v4731_v37   ;;  %6298 = vset.pattern.permute.xlu1 %v9263_v2 }
 0x808   : > { %4865 = vperm.xlu1 %6298, %v4723_v23   ;;  %v4767_v32 = vrot.slane %v4718_v52, %v9262_v12  ;;  %v4775_v48 = vrot.slane %v4715_v45, %v9262_v12  ;;  %v4747_v23 = vrot.slane %v4668_v28, %v9262_v12 }
 0x80b   : > { %4885 = vperm.xlu0 %6302, %v4743_v55  }
 0x80c   : > { %6300 = vset.pattern.permute.xlu1 %v9261_v4 }
 0x80d   : > { %4793 = vperm.xlu1 %6300, %v4731_v37  }
 0x80f   : > { %6306 = vset.pattern.permute.xlu0 %v9261_v4 }
 0x810   : > { %4825 = vperm.xlu0 %6306, %v4763_v42  }
 0x811   : > { %4801 = vperm.xlu1 %6300, %v4739_v27  }
 0x814   : > { %4833 = vperm.xlu0 %6306, %v4771_v29  }
 0x815   : > { %6301 = vset.pattern.permute.xlu1 %v9263_v2 }
 0x816   : > { %4869 = vperm.xlu1 %6301, %v4727_v22   ;;  %v4719_v22 = vcombine.high %v4715_v45, %v4715_v45 }
 0x818   : > { %6307 = vset.pattern.permute.xlu0 %v9263_v2  ;;  %v4783_v24 = vrot.slane %v4719_v22, %v9262_v12 }
 0x819   : > { %4893 = vperm.xlu0 %6307, %v4751_v0  }
 0x81a   : > { %4881 = vperm.xlu1 %6301, %v4739_v27  }
 0x81d   : > { %4901 = vperm.xlu0 %6307, %v4759_v49  }
 0x81e   : > { %6303 = vset.pattern.permute.xlu1 %v9261_v4 }
 0x81f   : > { %4797 = vperm.xlu1 %6303, %v4735_v39  }
 0x821   : > { %4909 = vperm.xlu0 %6307, %v4767_v32  }
 0x823   : > { %4805 = vperm.xlu1 %6303, %v4743_v55  }
 0x825   : > { %4917 = vperm.xlu0 %6307, %v4775_v48  }
 0x827   : > { %4809 = vperm.xlu1 %6303, %v4747_v23  }
 0x829   : > { %6311 = vset.pattern.permute.xlu0 %v9261_v4 }
 0x82a   : > { %4845 = vperm.xlu0 %6311, %v4783_v24  }
 0x82b   : > { %4817 = vperm.xlu1 %6303, %v4755_v34  }
 0x82e   : > { %6312 = vset.pattern.permute.xlu0 %v9263_v2 }
 0x82f   : > { %6304 = vset.pattern.permute.xlu1 %v9263_v2  ;;  %4925 = vperm.xlu0 %6312, %v4783_v24  }
 0x830   : > { %4877 = vperm.xlu1 %6304, %v4735_v39  }
 0x833   : > { %5216 = vrot.lane.b32.xlu0 %v8581_v31, %s6884_s3  ;;  %v4717_v31 = vcombine.high %v4701_v26, %v4701_v26 }
 0x834   : > { %4889 = vperm.xlu1 %6304, %v4747_v23   ;;  %6313 = vset.pattern.permute.xlu0 %v9264_v5 }
 0x835   : > { %v4779_v37 = vrot.slane %v4717_v31, %v9262_v12 }
 0x838   : > { %4897 = vperm.xlu1 %6304, %v4755_v34  }
 0x83c   : > { %6305 = vset.pattern.permute.xlu1 %v9261_v4 }
 0x83d   : > { %4813 = vperm.xlu1 %6305, %v4751_v0  }
 0x841   : > { %4821 = vperm.xlu1 %6305, %v4759_v49  }
 0x845   : > { %6308 = vset.pattern.permute.xlu1 %v9263_v2 }
 0x846   : > { %4905 = vperm.xlu1 %6308, %v4763_v42  }
 0x84a   : > { %4913 = vperm.xlu1 %6308, %v4771_v29  }
 0x84e   : > { %6309 = vset.pattern.permute.xlu1 %v9261_v4  ;;  %v9265_v4 = vld [vmem:[#allocation70_spill] sm:$0xff] }
 0x84f   : > { %4829 = vperm.xlu1 %6309, %v4767_v32   ;;  %v1670_v60 = vadd.f32 %v5619_v47, %v9265_v4 }
 0x853   : > { %4837 = vperm.xlu1 %6309, %v4775_v48  }
 0x857   : > { %4841 = vperm.xlu1 %6309, %v4779_v37  }
 0x85b   : > { %6310 = vset.pattern.permute.xlu1 %v9263_v2 }
 0x85c   : > { %4921 = vperm.xlu1 %6310, %v4779_v37  }
 0x860   : > { %5214 = vrot.lane.b32.xlu1 %v8574_v63, %s6884_s3  ;;  %s6885_s3 = smov [#allocation22]  }
 0x861   : > { %s6713_s10 = sshll.u32 %s6885_s3, 4  ;;  %s6714_s10 = int_to_ptr.vmem [resolvable:$false] %s6713_s10 }
 0x862   : > { %s6715_s11 = scalar_lea.vmem %s6714_s10, 2048  ;;  %p6716_p4 = scmp.lt.s32.totalorder %s8640_s5, %s6714_s10 }
 0x863   : > { %p6717_p9 = scmp.lt.s32.totalorder %s6715_s11, %s6709_s8 }
 0x865   : > { %p6718_p11 = por %p6717_p9, %p6716_p4 }
 0x867   : > { %p6719_p12 = pnand %p6718_p11, %p6712_p8 }
 0x869   : > { %6722 = shalt.err (!%p6719_p12)
}
 0x86a   : > { %s6723_s14 = scalar_lea.hbm %s8637_s4, 1024  ;;  %s6727_s1 = scalar_lea.hbm %s7062_s9, 2048 }
 0x86b   : > { %p6724_p0 = scmp.ne.s32.totalorder %s8637_s4, %s6723_s14  ;;  %p6728_p1 = scmp.lt.s32.totalorder %s8637_s4, %s7062_s9 }
 0x86c   : > { %p6729_p3 = scmp.lt.s32.totalorder %s6727_s1, %s6723_s14 }
 0x86d   : > { %p6725_p10 = pnand %p6724_p0, %p9266_p6 }
 0x86e   : > { %p6730_p7 = por %p6729_p3, %p6728_p1 }
 0x86f   : > { %p6726_p5 = pneg %p6725_p10 }
 0x871   : > { %p6731_p13 = pnand %p6730_p7, %p6726_p5 }
 0x873   : > { %6734 = shalt.err (!%p6731_p13)
}
 0x874   : > { %s9097_s11 = smov 64   ;;  %s6887_s8 = smov 4   ;;  %6390 = vtanh.f32 %v1670_v60  ;;  %v6048_v63 = vpop.f32.mrf.mxu0  ;;  %v6028_v2 = vpop.f32.mrf.mxu1  ;;  %v3973_v44 = vadd.f32 %v8554_v9, %v8535_v46  ;;  %v9269_v20 = vld [vmem:[#allocation71_spill] sm:$0xff]  ;;  %v9270_v23 = vld [vmem:[#allocation86_spill] sm:$0xff]  ;;  %v3981_v31 = vadd.f32 %v8533_v33, %v8554_v9  ;;  %vm5222_vm12 = vcmask 48128  }
 0x875   : > { %6112 = dma.vmem_to_hbm [thread:$0]  (%p9266_p6), %s8640_s5, 1024, %s8637_s4, %s5226_s6, %s9097_s11, %s9097_s11, %s6887_s8   ;;  %v4962_v54 = vpop.permute.xlu0 %4961  ;;  %v1673_v39 = vadd.f32 %v5619_v47, %v9269_v20  ;;  %v9271_v24 = vunpack.c.l.bf16 %v9270_v23 }
 0x876   : > { %v4541_v43 = vpop.f32.mrf.mxu0  ;;  %v4087_v38 = vpop.f32.mrf.mxu1  ;;  %s9267_s10 = sld [smem:[#allocation59_spill]]  ;;  %s8717_s5 = scalar_lea.vmem [#allocation23], %s7267_s19 }
 0x877   : > { %s9268_s1 = sld [smem:[#allocation58_spill]]  ;;  %v4604_v34 = vadd.f32 %v3973_v44, %v9271_v24  ;;  %6392 = vtanh.f32 %v1673_v39  ;;  %v9272_v39 = vld [vmem:[#allocation89_spill] sm:$0xff]  ;;  %s5600_s6 = sshll.u32 %s9321_s7, 3 }
 0x878   : > { %v8665_v8 = vpop.f32.mrf.mxu0  ;;  %v8667_v26 = vpop.f32.mrf.mxu1  ;;  %v9273_v24 = vunpack.c.l.bf16 %v9272_v39  ;;  %s9287_s19 = sld [smem:[#allocation61_spill]]  ;;  %s5265_s3 = sshll.u32 %s8717_s5, 4  ;;  %s8962_s3 = int_to_ptr.vmem [resolvable:$true] %s5265_s3 }
 0x879   : > { %v8669_v27 = vpop.permute.xlu1 %4965  ;;  %s9309_s4 = sld [smem:[#allocation60_spill]]  ;;  %s9312_s14 = sshll.u32 %s7095_s2, 10 }
 0x87a   : > { %v4544_v29 = vpop.f32.mrf.mxu0  ;;  %v8672_v40 = vpop.f32.mrf.mxu1  ;;  %v4606_v1 = vadd.f32 %v3981_v31, %v9273_v24 }
 0x87c   : > { %v8678_v15 = vpop.f32.mrf.mxu0  ;;  %v8682_v32 = vpop.f32.mrf.mxu1  ;;  %v8685_v45 = vld [vmem:[%s9267_s10] ss:$0 sm:$0xff] }
 0x87d   : > { %v8674_v0 = vpop.permute.xlu0 %4789  ;;  %v4542_v28 = vadd.f32 %v8685_v45, %v4541_v43  ;;  %v8692_v5 = vld [vmem:[%s9268_s1] ss:$0 sm:$0xff]  ;;  %v4550_v44 = vadd.f32 %v6048_v63, %v8685_v45  ;;  %v4545_v39 = vadd.f32 %v8685_v45, %v4544_v29  ;;  %s5231_s1 = scalar_lea.sflag [#allocation24], %s7264_s28 }
 0x87e   : > { %v4786_v52 = vpop.permute.xlu1 %4785  ;;  %v4557_v48 = vpop.f32.mrf.mxu0  ;;  %v4088_v4 = vadd.f32 %v8692_v5, %v4087_v38  ;;  %s8841_s7 = scalar_lea.vmem %s9287_s19, %s5600_s6  ;;  %s6735_s19 = scalar_lea.vmem %s8962_s3, 1024 }
 0x87f   : > { %v4103_v60 = vpop.f32.mrf.mxu1  ;;  %s8960_s10 = scalar_lea.hbm %s9309_s4, %s9312_s14  ;;  %p6736_p2 = scmp.ne.s32.totalorder %s8962_s3, %s6735_s19 }
 0x880   : > { %s6888_s6 = smov [#allocation23]  }
 0x881   : > { %v6391_v55 = vpop.eup %6390  ;;  %p6737_p8 = pnand %p6736_p2, %p9266_p6  ;;  %s6739_s11 = sshll.u32 %s6888_s6, 4  ;;  %s6740_s11 = int_to_ptr.vmem [resolvable:$false] %s6739_s11 }
 0x882   : > { %v4968_v42 = vmul.f32 %v6391_v55, %v4962_v54  ;;  %v4874_v46 = vpop.permute.xlu0 %4873  ;;  %v4848_v55 = vmul.f32 %v4786_v52, %v4604_v34  ;;  %v8697_v54 = vpop.f32.mrf.mxu0  ;;  %v4096_v34 = vadd.f32 %v6028_v2, %v8692_v5  ;;  %p6742_p9 = scmp.lt.s32.totalorder %s8962_s3, %s6740_s11 }
 0x883   : > { %v4866_v47 = vpop.permute.xlu1 %4865  ;;  %p6738_p4 = pneg %p6737_p8 }
 0x884   : > { %v4979_v41 = vrot.slane %v4968_v42, %v9260_v30  ;;  %v4928_v43 = vmul.f32 %v4866_v47, %v4542_v28  ;;  %v4972_v21 = vcombine.high %v4968_v42, %v4968_v42  ;;  %v4930_v47 = vmul.f32 %v4874_v46, %v4550_v44 }
 0x885   : > { %v3989_v46 = vadd.f32 %v8554_v9, %v8543_v13 }
 0x886   : > { %v4995_v49 = vrot.slane %v4979_v41, %v9260_v30  ;;  %v4944_v20 = vadd.f32 %v4928_v43, %v4848_v55  ;;  %v8699_v23 = vpop.permute.xlu0 %4885  ;;  %v4987_v38 = vcombine.high %v4979_v41, %v4979_v41  ;;  %v4986_v42 = vrot.slane %v4972_v21, %v9260_v30  ;;  %v6393_v21 = vpop.eup %6392 }
 0x888   : > { %v5073_v22 = vrot.slane %v4995_v49, %v9262_v12  ;;  %v5017_v37 = vcombine.high %v4995_v49, %v4995_v49  ;;  %v8705_v49 = vpop.f32.mrf.mxu1  ;;  %v4794_v28 = vpop.permute.xlu1 %4793  ;;  %v8714_v41 = vrot.slane %v4987_v38, %v9260_v30  ;;  %v8731_v24 = vrot.slane %v4986_v42, %v9260_v30 }
 0x88a   : > { %v5150_v36 = vmul.f32 %v5073_v22, %v4088_v4  ;;  %v5081_v33 = vrot.slane %v5017_v37, %v9262_v12  ;;  %v4850_v22 = vmul.f32 %v4794_v28, %v4606_v1  ;;  %v4560_v4 = vpop.f32.mrf.mxu0  ;;  %v4106_v31 = vpop.f32.mrf.mxu1  ;;  %v3976_v37 = vadd.f32 %v8554_v9, %v8539_v59 }
 0x88b   : > { %v8708_v10 = vpop.permute.xlu0 %4825  ;;  %v5077_v28 = vrot.slane %v8714_v41, %v9262_v12 }
 0x88c   : > { %v5166_v52 = vadd.f32 %v5150_v36, %v4944_v20  ;;  %v4946_v43 = vadd.f32 %v4930_v47, %v4850_v22  ;;  %v5152_v63 = vmul.f32 %v5081_v33, %v4096_v34  ;;  %v4802_v36 = vpop.permute.xlu1 %4801  ;;  %v8721_v2 = vpop.f32.mrf.mxu0  ;;  %v9274_v33 = vld [vmem:[#allocation88_spill] sm:$0xff]  ;;  %v8738_v34 = vmul.f32 %v6393_v21, %v8669_v27 }
 0x88d   : > { %v8727_v44 = vpop.f32.mrf.mxu1  ;;  %v9275_v38 = vunpack.c.l.bf16 %v9274_v33  ;;  %v4091_v47 = vadd.f32 %v8692_v5, %v8672_v40  ;;  %v4558_v33 = vadd.f32 %v8685_v45, %v4557_v48  ;;  %v4988_v40 = vcombine.high %v4986_v42, %v4986_v42 }
 0x88e   : > { %v5182_v55 = vpack.c.bf16 %v5166_v52, %v5166_v52  ;;  %v5168_v1 = vadd.f32 %v5152_v63, %v4946_v43  ;;  %v8744_v22 = vpop.f32.mrf.mxu0  ;;  %v9276_v43 = vld [vmem:[#allocation90_spill] sm:$0xff]  ;;  %v5021_v50 = vcombine.high %v8738_v34, %v8738_v34  ;;  %v3992_v42 = vadd.f32 %v8554_v9, %v8547_v58 }
 0x88f   : > { %v8725_v59 = vpop.permute.xlu0 %4833  ;;  %v4605_v52 = vadd.f32 %v3976_v37, %v9275_v38  ;;  %v9277_v63 = vunpack.c.l.bf16 %v9276_v43  ;;  %v5151_v21 = vmul.f32 %v5077_v28, %v4091_v47 }
 0x890   : > { %5198 = vst.msk [vmem:[%s8717_s5] sm:$0xf] %vm3434_vm11, %v5182_v55  ;;  %v5184_v20 = vpack.c.bf16 %v5168_v1, %v5168_v1  ;;  %v8749_v1 = vpop.f32.mrf.mxu1 }
 0x891   : > { %v4870_v13 = vpop.permute.xlu1 %4869  ;;  %v4849_v29 = vmul.f32 %v8674_v0, %v4605_v52  ;;  %v4608_v37 = vadd.f32 %v3989_v46, %v9277_v63  ;;  %v8759_v46 = vpop.f32.mrf.mxu0  ;;  %v8768_v63 = vrot.slane %v4988_v40, %v9260_v30  ;;  %v9280_v40 = vunpack.c.l.bf16 %v8158_v53 }
 0x892   : > { %5200 = vst.msk [vmem:[%s8717_s5 + $0x8] sm:$0xf] %vm3434_vm11, %v5184_v20  ;;  %v4929_v55 = vmul.f32 %v4870_v13, %v4545_v39  ;;  %v5089_v20 = vrot.slane %v8731_v24, %v9262_v12  ;;  %v4104_v39 = vadd.f32 %v8692_v5, %v4103_v60  ;;  %v8771_v60 = vrot.slane %v5021_v50, %v9260_v30 }
 0x893   : > { %v4852_v52 = vmul.f32 %v4802_v36, %v4608_v37  ;;  %v8773_v36 = vpop.f32.mrf.mxu0  ;;  %v4609_v50 = vadd.f32 %v3992_v42, %v9280_v40 }
 0x894   : > { %v4945_v27 = vadd.f32 %v4929_v55, %v4849_v29  ;;  %v8752_v38 = vpop.permute.xlu0 %4893  ;;  %v8761_v29 = vpop.f32.mrf.mxu1  ;;  %v5154_v55 = vmul.f32 %v5089_v20, %v4104_v39  ;;  %v5037_v58 = vcombine.high %v8771_v60, %v8771_v60  ;;  %v5093_v39 = vrot.slane %v8768_v63, %v9262_v12 }
 0x895   : > { %v4882_v0 = vpop.permute.xlu1 %4881  ;;  %9278 = vst [vmem:[#allocation74_spill] sm:$0xff] %v8761_v29 }
 0x896   : > { %v5167_v13 = vadd.f32 %v5151_v21, %v4945_v27  ;;  %v4932_v48 = vmul.f32 %v4882_v0, %v4558_v33  ;;  %v8777_v27 = vpop.f32.mrf.mxu1  ;;  %v4561_v0 = vadd.f32 %v8685_v45, %v4560_v4  ;;  %v8799_v53 = vrot.slane %v5037_v58, %v9260_v30 }
 0x898   : > { %v5183_v28 = vpack.c.bf16 %v5167_v13, %v5167_v13  ;;  %v4948_v47 = vadd.f32 %v4932_v48, %v4852_v52  ;;  %v8763_v43 = vpop.permute.xlu0 %4901  ;;  %v8788_v52 = vpop.f32.mrf.mxu0  ;;  %v4107_v48 = vadd.f32 %v8692_v5, %v4106_v31  ;;  %9284 = vst [vmem:[#allocation68_spill] sm:$0xff] %v8799_v53  ;;  %v4032_v31 = vadd.f32 %v8567_v11, %v8554_v9 }
 0x899   : > { %9281 = vst [vmem:[#allocation76_spill] sm:$0xff] %v8788_v52  ;;  %v8794_v4 = vpop.f32.mrf.mxu1  ;;  %v5069_v58 = vcombine.high %v8799_v53, %v8799_v53  ;;  %v9285_v11 = vunpack.c.l.bf16 %v8130_v57  ;;  %v4099_v57 = vadd.f32 %v8667_v26, %v8692_v5 }
 0x89a   : > { %5199 = vst.msk [vmem:[%s8717_s5 + $0x4] sm:$0xf] %vm3434_vm11, %v5183_v28  ;;  %v5170_v37 = vadd.f32 %v5154_v55, %v4948_v47  ;;  %v4798_v33 = vpop.permute.xlu1 %4797  ;;  %v4933_v28 = vmul.f32 %v8699_v23, %v4561_v0  ;;  %9282 = vst [vmem:[#allocation67_spill] sm:$0xff] %v8794_v4  ;;  %v8801_v40 = vpop.f32.mrf.mxu0  ;;  %v3984_v23 = vadd.f32 %v8537_v56, %v8554_v9 }
 0x89b   : > { %v3997_v56 = vadd.f32 %v8541_v17, %v8554_v9  ;;  %v5133_v4 = vrot.slane %v5069_v58, %v9262_v12 }
 0x89c   : > { %v5186_v21 = vpack.c.bf16 %v5170_v37, %v5170_v37  ;;  %v8779_v20 = vpop.permute.xlu0 %4909  ;;  %v5155_v37 = vmul.f32 %v5093_v39, %v4107_v48  ;;  %v5019_v39 = vcombine.high %v8714_v41, %v8714_v41  ;;  %v4553_v41 = vadd.f32 %v8665_v8, %v8685_v45 }
 0x89d   : > { %9279 = vst [vmem:[#allocation65_spill] sm:$0xff] %v8779_v20  ;;  %v8803_v20 = vpop.f32.mrf.mxu1  ;;  %v4005_v8 = vadd.f32 %v8554_v9, %v8551_v61 }
 0x89e   : > { %5202 = vst.msk [vmem:[%s8717_s5 + $0x10] sm:$0xf] %vm3434_vm11, %v5186_v21  ;;  %v4806_v13 = vpop.permute.xlu1 %4805 }
 0x89f   : > { %v4853_v47 = vmul.f32 %v4806_v13, %v4609_v50  ;;  %v6061_v13 = vpop.f32.mrf.mxu0 }
 0x8a0   : > { %v8796_v55 = vpop.permute.xlu0 %4917 }
 0x8a1   : > { %9283 = vst [vmem:[#allocation80_spill] sm:$0xff] %v8796_v55  ;;  %v4949_v42 = vadd.f32 %v4933_v28, %v4853_v47  ;;  %v6041_v28 = vpop.f32.mrf.mxu1  ;;  %v4601_v47 = vadd.f32 %v6061_v13, %v8685_v45  ;;  %v5028_v55 = vrot.slane %v8738_v34, %v9260_v30  ;;  %v5085_v13 = vrot.slane %v5019_v39, %v9262_v12 }
 0x8a2   : > { %v4810_v52 = vpop.permute.xlu1 %4809  ;;  %v4566_v39 = vadd.f32 %v8678_v15, %v8685_v45 }
 0x8a3   : > { %v5171_v21 = vadd.f32 %v5155_v37, %v4949_v42  ;;  %v4607_v42 = vadd.f32 %v3984_v23, %v9285_v11  ;;  %v9286_v37 = vunpack.c.l.bf16 %v8426_v18  ;;  %v4147_v18 = vadd.f32 %v6041_v28, %v8692_v5 }
 0x8a4   : > { %v9288_v11 = vunpack.c.l.bf16 %v8190_v51  ;;  %v8844_v26 = vrot.slane %v5028_v55, %v9260_v30  ;;  %v5153_v28 = vmul.f32 %v5085_v13, %v4099_v57 }
 0x8a5   : > { %v5187_v0 = vpack.c.bf16 %v5171_v21, %v5171_v21  ;;  %v4846_v50 = vpop.permute.xlu0 %4845  ;;  %v4619_v21 = vadd.f32 %v4032_v31, %v9286_v37  ;;  %v5165_v53 = vmul.f32 %v5133_v4, %v4147_v18  ;;  %v4112_v4 = vadd.f32 %v8682_v32, %v8692_v5 }
 0x8a6   : > { %v4818_v48 = vpop.permute.xlu1 %4817  ;;  %v4610_v34 = vadd.f32 %v3997_v56, %v9288_v11  ;;  %v9289_v56 = vld [vmem:[#allocation85_spill] sm:$0xff]  ;;  %v5105_v13 = vrot.slane %v8844_v26, %v9262_v12  ;;  %v4000_v32 = vadd.f32 %v8545_v25, %v8554_v9  ;;  %v4008_v11 = vadd.f32 %v8554_v9, %v8559_v7 }
 0x8a7   : > { %5203 = vst.msk [vmem:[%s8717_s5 + $0x14] sm:$0xf] %vm3434_vm11, %v5187_v0  ;;  %v5018_v0 = vcombine.high %v8731_v24, %v8731_v24  ;;  %v4863_v23 = vmul.f32 %v4846_v50, %v4619_v21  ;;  %v4851_v24 = vmul.f32 %v4798_v33, %v4607_v42  ;;  %v4115_v7 = vadd.f32 %v8705_v49, %v8692_v5 }
 0x8a8   : > { %v4854_v42 = vmul.f32 %v4810_v52, %v4610_v34  ;;  %v5036_v52 = vcombine.high %v5028_v55, %v5028_v55  ;;  %v5066_v49 = vcombine.high %v8844_v26, %v8844_v26 }
 0x8a9   : > { %v5097_v33 = vrot.slane %v5018_v0, %v9262_v12  ;;  %v9290_v0 = vunpack.c.l.bf16 %v8098_v3  ;;  %v4120_v3 = vadd.f32 %v8692_v5, %v8749_v1 }
 0x8aa   : > { %v4926_v17 = vpop.permute.xlu0 %4925 }
 0x8ab   : > { %v4943_v31 = vmul.f32 %v4926_v17, %v4601_v47  ;;  %v4878_v58 = vpop.permute.xlu1 %4877  ;;  %v4574_v17 = vadd.f32 %v8685_v45, %v8744_v22  ;;  %v5020_v22 = vcombine.high %v8768_v63, %v8768_v63  ;;  %v5158_v55 = vmul.f32 %v5105_v13, %v4120_v3 }
 0x8ac   : > { %v4931_v37 = vmul.f32 %v4878_v58, %v4553_v41  ;;  %v9291_v63 = vunpack.c.l.bf16 %v8443_v6  ;;  %v4577_v6 = vadd.f32 %v8685_v45, %v8773_v36  ;;  %v5113_v13 = vrot.slane %v5066_v49, %v9262_v12 }
 0x8ad   : > { %v4959_v29 = vadd.f32 %v4943_v31, %v4863_v23  ;;  %v5156_v23 = vmul.f32 %v5097_v33, %v4112_v4  ;;  %v5101_v1 = vrot.slane %v5020_v22, %v9262_v12 }
 0x8ae   : > { %v4947_v50 = vadd.f32 %v4931_v37, %v4851_v24  ;;  %v5217_v61 = vpop.permute.xlu0 %5216  ;;  %v4569_v37 = vadd.f32 %v8697_v54, %v8685_v45  ;;  %v9292_v54 = vunpack.c.l.bf16 %v8218_v35  ;;  %v4123_v35 = vadd.f32 %v8692_v5, %v8777_v27 }
 0x8af   : > { %v5181_v51 = vadd.f32 %v5165_v53, %v4959_v29  ;;  %v5221_v47 = vsel %vm2069_vm10, %v9289_v56, %v5217_v61  ;;  %v4890_v15 = vpop.permute.xlu1 %4889  ;;  %v4612_v29 = vadd.f32 %v4005_v8, %v9290_v0 }
 0x8b0   : > { %v5169_v21 = vadd.f32 %v5153_v28, %v4947_v50  ;;  %5224 = vst.msk [vmem:[%s8841_s7 + $0x8] sm:$0xff] %vm5222_vm12, %v5221_v47  ;;  %v4934_v41 = vmul.f32 %v4890_v15, %v4566_v39  ;;  %v5058_v39 = vrot.slane %v5036_v52, %v9260_v30  ;;  %v4611_v50 = vadd.f32 %v4000_v32, %v9291_v63  ;;  %v9298_v63 = vld [vmem:[#allocation74_spill] sm:$0xff] }
 0x8b1   : > { %v5197_v53 = vpack.c.bf16 %v5181_v51, %v5181_v51  ;;  %v4856_v58 = vmul.f32 %v4818_v48, %v4612_v29  ;;  %v4935_v61 = vmul.f32 %v8752_v38, %v4569_v37  ;;  %v4613_v56 = vadd.f32 %v4008_v11, %v9292_v54 }
 0x8b2   : > { %v5185_v57 = vpack.c.bf16 %v5169_v21, %v5169_v21  ;;  %v4950_v18 = vadd.f32 %v4934_v41, %v4854_v42  ;;  %v5157_v15 = vmul.f32 %v5101_v1, %v4115_v7  ;;  %v5109_v4 = vrot.slane %v5058_v39, %v9262_v12  ;;  %v9299_v1 = vld [vmem:[#allocation65_spill] sm:$0xff]  ;;  %v4138_v7 = vpop.f32.mrf.mxu1 }
 0x8b3   : > { %5213 = vst.msk [vmem:[%s8717_s5 + $0x3c] sm:$0xf] %vm3434_vm11, %v5197_v53  ;;  %v4898_v31 = vpop.permute.xlu1 %4897  ;;  %v4013_v42 = vadd.f32 %v8549_v16, %v8554_v9  ;;  %v4937_v21 = vmul.f32 %v8763_v43, %v4577_v6  ;;  %v4582_v53 = vadd.f32 %v8721_v2, %v8685_v45  ;;  %v5051_v16 = vrot.slane %v8771_v60, %v9260_v30 }
 0x8b4   : > { %5201 = vst.msk [vmem:[%s8717_s5 + $0xc] sm:$0xf] %vm3434_vm11, %v5185_v57  ;;  %v5172_v8 = vadd.f32 %v5156_v23, %v4950_v18  ;;  %v4936_v24 = vmul.f32 %v4898_v31, %v4574_v17  ;;  %v5159_v0 = vmul.f32 %v5109_v4, %v4123_v35  ;;  %v9293_v9 = vunpack.c.l.bf16 %v8269_v19 }
 0x8b5   : > { %v4128_v57 = vadd.f32 %v8727_v44, %v8692_v5  ;;  %v9294_v2 = vunpack.c.l.bf16 %v8329_v62  ;;  %v4590_v19 = vadd.f32 %v8685_v45, %v8801_v40  ;;  %v5121_v31 = vrot.slane %v5051_v16, %v9262_v12 }
 0x8b6   : > { %v5188_v25 = vpack.c.bf16 %v5172_v8, %v5172_v8  ;;  %v4952_v34 = vadd.f32 %v4936_v24, %v4856_v58  ;;  %v4614_v26 = vadd.f32 %v4013_v42, %v9293_v9  ;;  %v5068_v22 = vcombine.high %v5058_v39, %v5058_v39  ;;  %v4592_v39 = vpop.f32.mrf.mxu0 }
 0x8b7   : > { %v4616_v30 = vadd.f32 %v8565_v14, %v9294_v2  ;;  %v5160_v32 = vmul.f32 %v5113_v13, %v4128_v57  ;;  %v4585_v40 = vadd.f32 %v8759_v46, %v8685_v45  ;;  %v4139_v49 = vadd.f32 %v8692_v5, %v4138_v7  ;;  %v9305_v13 = vld [vmem:[#allocation76_spill] sm:$0xff] }
 0x8b8   : > { %5204 = vst.msk [vmem:[%s8717_s5 + $0x18] sm:$0xf] %vm3434_vm11, %v5188_v25  ;;  %v5174_v48 = vadd.f32 %v5158_v55, %v4952_v34  ;;  %v4814_v28 = vpop.permute.xlu1 %4813  ;;  %v4858_v18 = vmul.f32 %v8708_v10, %v4614_v26  ;;  %v4136_v10 = vadd.f32 %v8692_v5, %v8803_v20  ;;  %v5117_v11 = vrot.slane %v5068_v22, %v9262_v12  ;;  %v9295_v25 = vld [vmem:[#allocation75_spill] sm:$0xff]  ;;  %v9297_v34 = vld [vmem:[#allocation66_spill] sm:$0xff] }
 0x8b9   : > { %v4855_v33 = vmul.f32 %v4814_v28, %v4611_v50  ;;  %v4860_v62 = vmul.f32 %v8725_v59, %v4616_v30  ;;  %v9296_v55 = vunpack.c.l.bf16 %v9295_v25  ;;  %v4131_v50 = vadd.f32 %v9298_v63, %v8692_v5  ;;  %v9310_v30 = vld [vmem:[#allocation67_spill] sm:$0xff] }
 0x8ba   : > { %v5190_v51 = vpack.c.bf16 %v5174_v48, %v5174_v48  ;;  %v5162_v8 = vmul.f32 %v5121_v31, %v4136_v10  ;;  %v4939_v48 = vmul.f32 %v9299_v1, %v4585_v40 }
 0x8bb   : > { %v4951_v47 = vadd.f32 %v4935_v61, %v4855_v33  ;;  %v4615_v37 = vadd.f32 %v9297_v34, %v9296_v55  ;;  %v9300_v61 = vld [vmem:[#allocation64_spill] sm:$0xff]  ;;  %v5161_v6 = vmul.f32 %v5117_v11, %v4131_v50 }
 0x8bc   : > { %5206 = vst.msk [vmem:[%s8717_s5 + $0x20] sm:$0xf] %vm3434_vm11, %v5190_v51  ;;  %v4822_v38 = vpop.permute.xlu1 %4821  ;;  %v9301_v33 = vunpack.c.l.bf16 %v9300_v61  ;;  %v9302_v51 = vld [vmem:[#allocation62_spill] sm:$0xff] }
 0x8bd   : > { %v5173_v36 = vadd.f32 %v5157_v15, %v4951_v47  ;;  %v4857_v41 = vmul.f32 %v4822_v38, %v4613_v56  ;;  %v4593_v56 = vadd.f32 %v8685_v45, %v4592_v39  ;;  %v9303_v15 = vld [vmem:[#allocation68_spill] sm:$0xff] }
 0x8be   : > { %v4617_v54 = vadd.f32 %v9302_v51, %v9301_v33  ;;  %v5125_v4 = vrot.slane %v9303_v15, %v9262_v12  ;;  %v9304_v38 = vld [vmem:[#allocation80_spill] sm:$0xff] }
 0x8bf   : > { %v5189_v17 = vpack.c.bf16 %v5173_v36, %v5173_v36  ;;  %v4953_v29 = vadd.f32 %v4937_v21, %v4857_v41  ;;  %v4941_v35 = vmul.f32 %v9304_v38, %v4593_v56 }
 0x8c1   : > { %5205 = vst.msk [vmem:[%s8717_s5 + $0x1c] sm:$0xf] %vm3434_vm11, %v5189_v17  ;;  %v5175_v43 = vadd.f32 %v5159_v0, %v4953_v29  ;;  %v4906_v27 = vpop.permute.xlu1 %4905  ;;  %v5163_v17 = vmul.f32 %v5125_v4, %v4139_v49  ;;  %v5067_v29 = vcombine.high %v5051_v16, %v5051_v16 }
 0x8c2   : > { %v4938_v23 = vmul.f32 %v4906_v27, %v4582_v53  ;;  %v9306_v27 = vld [vmem:[#allocation82_spill] sm:$0xff] }
 0x8c3   : > { %v5191_v60 = vpack.c.bf16 %v5175_v43, %v5175_v43  ;;  %v4598_v43 = vadd.f32 %v9305_v13, %v8685_v45  ;;  %v9307_v57 = vunpack.c.l.bf16 %v9306_v27  ;;  %v5129_v2 = vrot.slane %v5067_v29, %v9262_v12 }
 0x8c4   : > { %v4954_v52 = vadd.f32 %v4938_v23, %v4858_v18  ;;  %v9308_v18 = vld [vmem:[#allocation78_spill] sm:$0xff] }
 0x8c5   : > { %5207 = vst.msk [vmem:[%s8717_s5 + $0x24] sm:$0xf] %vm3434_vm11, %v5191_v60  ;;  %v4914_v44 = vpop.permute.xlu1 %4913  ;;  %v4618_v23 = vadd.f32 %v9308_v18, %v9307_v57  ;;  %v4144_v60 = vadd.f32 %v9310_v30, %v8692_v5 }
 0x8c6   : > { %v5176_v3 = vadd.f32 %v5160_v32, %v4954_v52  ;;  %v4940_v14 = vmul.f32 %v4914_v44, %v4590_v19  ;;  %v9311_v44 = vld [vmem:[#allocation84_spill] sm:$0xff] }
 0x8c7   : > { %v5164_v45 = vmul.f32 %v5129_v2, %v4144_v60 }
 0x8c8   : > { %v5192_v58 = vpack.c.bf16 %v5176_v3, %v5176_v3  ;;  %v4956_v24 = vadd.f32 %v4940_v14, %v4860_v62 }
 0x8ca   : > { %5208 = vst.msk [vmem:[%s8717_s5 + $0x28] sm:$0xf] %vm3434_vm11, %v5192_v58  ;;  %v5178_v20 = vadd.f32 %v5162_v8, %v4956_v24  ;;  %v4830_v59 = vpop.permute.xlu1 %4829 }
 0x8cb   : > { %v4859_v28 = vmul.f32 %v4830_v59, %v4615_v37 }
 0x8cc   : > { %v5194_v46 = vpack.c.bf16 %v5178_v20, %v5178_v20 }
 0x8cd   : > { %v4955_v47 = vadd.f32 %v4939_v48, %v4859_v28 }
 0x8ce   : > { %5210 = vst.msk [vmem:[%s8717_s5 + $0x30] sm:$0xf] %vm3434_vm11, %v5194_v46  ;;  %v4838_v42 = vpop.permute.xlu1 %4837 }
 0x8cf   : > { %v5177_v21 = vadd.f32 %v5161_v6, %v4955_v47  ;;  %v4861_v36 = vmul.f32 %v4838_v42, %v4617_v54 }
 0x8d1   : > { %v5193_v41 = vpack.c.bf16 %v5177_v21, %v5177_v21  ;;  %v4957_v0 = vadd.f32 %v4941_v35, %v4861_v36 }
 0x8d2   : > { %v4842_v53 = vpop.permute.xlu1 %4841 }
 0x8d3   : > { %5209 = vst.msk [vmem:[%s8717_s5 + $0x2c] sm:$0xf] %vm3434_vm11, %v5193_v41  ;;  %v5179_v9 = vadd.f32 %v5163_v17, %v4957_v0  ;;  %v4862_v19 = vmul.f32 %v4842_v53, %v4618_v23 }
 0x8d5   : > { %v5195_v26 = vpack.c.bf16 %v5179_v9, %v5179_v9 }
 0x8d7   : > { %5211 = vst.msk [vmem:[%s8717_s5 + $0x34] sm:$0xf] %vm3434_vm11, %v5195_v26  ;;  %v4922_v16 = vpop.permute.xlu1 %4921 }
 0x8d8   : > { %v4942_v32 = vmul.f32 %v4922_v16, %v4598_v43 }
 0x8da   : > { %v4958_v52 = vadd.f32 %v4942_v32, %v4862_v19 }
 0x8db   : > { %v5215_v31 = vpop.permute.xlu1 %5214 }
 0x8dc   : > { %v5180_v22 = vadd.f32 %v5164_v45, %v4958_v52  ;;  %v5220_v10 = vsel %vm2069_vm10, %v9311_v44, %v5215_v31 }
 0x8dd   : > { %5223 = vst.msk [vmem:[%s8841_s7] sm:$0xff] %vm5222_vm12, %v5220_v10  ;;  %s6741_s7 = scalar_lea.vmem %s6740_s11, 2048 }
 0x8de   : > { %v5196_v12 = vpack.c.bf16 %v5180_v22, %v5180_v22  ;;  %p6743_p11 = scmp.lt.s32.totalorder %s6741_s7, %s6735_s19 }
 0x8e0   : > { %5212 = vst.msk [vmem:[%s8717_s5 + $0x38] sm:$0xf] %vm3434_vm11, %v5196_v12  ;;  %p6744_p12 = por %p6743_p11, %p6742_p9 }
 0x8e2   : > { %p6745_p0 = pnand %p6744_p12, %p6738_p4 }
 0x8e4   : > { %6748 = shalt.err (!%p6745_p0)
}
 0x8e5   : > { %s6749_s2 = scalar_lea.hbm %s8960_s10, 1024  ;;  %s6753_s28 = scalar_lea.hbm %s9309_s4, 2048 }
 0x8e6   : > { %p6750_p10 = scmp.ne.s32.totalorder %s8960_s10, %s6749_s2  ;;  %p6754_p3 = scmp.lt.s32.totalorder %s8960_s10, %s9309_s4 }
 0x8e7   : > { %p6755_p7 = scmp.lt.s32.totalorder %s6753_s28, %s6749_s2 }
 0x8e8   : > { %p6751_p5 = pnand %p6750_p10, %p9266_p6 }
 0x8e9   : > { %p6756_p13 = por %p6755_p7, %p6754_p3 }
 0x8ea   : > { %p6752_p1 = pneg %p6751_p5 }
 0x8ec   : > { %p6757_p2 = pnand %p6756_p13, %p6752_p1 }
 0x8ee   : > { %6760 = shalt.err (!%p6757_p2)
}
 0x8ef   : > { %s9313_s11 = smov 64  }
 0x8f0   : > { %6113 = dma.vmem_to_hbm [thread:$0]  (%p9266_p6), %s8962_s3, 1024, %s8960_s10, %s5231_s1, %s9313_s11, %s9313_s11, %s6887_s8  }
 0x8f1 PF: > { %s5284_s5 = sand.u32 1, %s6815_s22   ;;  %p9314_p8 = scmp.ne.s32.totalorder %s9139_s15, 0 }
 0x8f2   : > { %p9315_p4 = scmp.ge.s32.totalorder %s6827_s0, 2  ;;  %s5285_s14 = scalar_lea.sflag [#allocation4], %s5284_s5 }
 0x8f4   : > { %p6155_p9 = pnand %p9315_p4, %p9314_p8 }
 0x8f6   : > { %p6156_p11 = pneg %p6155_p9 }
 0x8f8   : > { %6806 = dma.done.wait (%p6156_p11), %s5285_s14, 1024  }
 0x8f9   : > { %6808 = vsyncadd (%p6156_p11), %s5285_s14, 4294966272  ;;  %s5294_s19 = scalar_lea.sflag [#allocation24], %s5284_s5 }
 0x8fa   : > { %6810 = dma.done.wait (%p6156_p11), %s5294_s19, 1024  }
 0x8fb   : > { %6812 = vsyncadd (%p6156_p11), %s5294_s19, 4294966272  ;;  %p94_p6 = scmp.ge.s32.totalorder %s7201_s18, 4   ;;  %s9316_s22 = smov %s6819_s23 }
 0x8fc   : > { %s9317_s23 = smov %s6823_s26  ;;  %s9318_s26 = smov %s7213_s12 }
 0x8fd   : > { %s9319_s0 = smov %s7201_s18  ;;  %96 = sbr.rel (!%p94_p6) target bundleno = 82 (0x52), region = 311 }
 0x902   :  { %5307 = vsyncpa [#allocation3], 1 }
 0x903   :  { %5309 = vsyncpa [#allocation3 + $0x1], 1 }
 0x904   :  { %5310 = vsyncpa [#allocation6], 1 }
 0x905   :  { %5311 = vsyncpa [#allocation9], 1 }
 0x906   :  { %5312 = vsyncpa [#allocation12], 1 }
 0x907   :  { %5313 = vsyncpa [#allocation15], 1 }
 0x908   :  { %5314 = vsyncpa [#allocation18], 1 }
 0x909   :  { %5315 = vsyncpa [#allocation21], 1 }
 0x90a   :  { %5316 = vsyncpa [#allocation4], 1 }
 0x90b   :  { %5318 = vsyncpa [#allocation4 + $0x1], 1 }
 0x90c   :  { %5319 = vsyncpa [#allocation24], 1 }
 0x90d   :  { %5321 = vsyncpa [#allocation24 + $0x1], 1 }

</bundles_post_ra>
